<compile_context>
chip_gen: v5e
topology: v5e:2x2
jax: 0.10.0
libtpu: 0.0.40
codegen_flags: <defaults>
</compile_context>

<pallas_src>
import jax
import jax.numpy as jnp
from jax.experimental import pallas as pl
from jax.experimental.pallas import tpu as pltpu


# ----------------------------- wrapper-built matrices -----------------------------

def _build_banded(Wk, W):
    """Wk: (3,3,Cin,Cout) -> B: (3, W*Cin, W*Cout).
    B[dy] implements the dx taps of a 'same' 3x3 conv along the flattened width
    axis (width zero padding folded into the band structure)."""
    _, _, Cin, Cout = Wk.shape
    wi = jnp.arange(W)[:, None]
    wo = jnp.arange(W)[None, :]
    dx = wi - wo + 1                                       # (W, W)
    valid = (dx >= 0) & (dx <= 2)
    Wg = Wk[:, jnp.clip(dx, 0, 2), :, :]                   # (3, W, W, Cin, Cout)
    Wg = jnp.where(valid[None, :, :, None, None], Wg, 0.0)
    return jnp.transpose(Wg, (0, 1, 3, 2, 4)).reshape(3, W * Cin, W * Cout)


def _build_banded_up(Wk, w):
    """3x3 'same' conv fused with 2x nearest upsample along width.
    Wk: (3,3,Cin,Cout) -> (3, w*Cin, (2w)*Cout)."""
    _, _, Cin, Cout = Wk.shape
    W2 = 2 * w
    wo = jnp.arange(W2)[None, :]
    wi = jnp.arange(w)[:, None]
    B = jnp.zeros((3, w, W2, Cin, Cout), jnp.float32)
    for dx in range(3):
        p = wo + dx                                        # padded upsampled column
        valid = (p >= 1) & (p <= W2)
        src = jnp.clip((p - 1) // 2, 0, w - 1)
        hit = ((wi == src) & valid).astype(jnp.float32)    # (w, W2)
        B = B + hit[None, :, :, None, None] * Wk[:, dx][:, None, None, :, :]
    return jnp.transpose(B, (0, 1, 3, 2, 4)).reshape(3, w * Cin, W2 * Cout)


# --------------------------------- kernel body ------------------------------------

def _make_conv_kernel(*, pre, up, external_res, post_sigmoid, pool, want_out):
    def kernel(*refs):
        it = iter(refs)
        x_ref = next(it)                      # (Rin, Ki)  f32 activations
        B_ref = next(it)                      # (3, Ki, No) bf16 banded conv weights
        b_ref = next(it)                      # (1, No)    f32 bias (width-tiled)
        top_ref = next(it)                    # (Rout, 1)  f32: 0 at top row of each image
        bot_ref = next(it)                    # (Rout, 1)  f32: 0 at bottom row of each image
        scale_ref = shift_ref = None
        if pre == "bn_relu":
            scale_ref, shift_ref = next(it), next(it)     # (1, Ki) f32
        res_ref = None
        if external_res:
            res_ref = next(it)                # (Rout, No) f32 skip from the pool tail
        rdup_ref = dcol_ref = None
        if up:
            rdup_ref = next(it)               # (Rout, Rin) bf16 row duplication (0/1)
            dcol_ref = next(it)               # (Ki, No)    f32 column duplication (0/1)
        E_ref = Eo_ref = Pe_ref = Po_ref = None
        if pool:
            E_ref, Eo_ref, Pe_ref, Po_ref = next(it), next(it), next(it), next(it)
        out_ref = pooled_ref = skip_ref = None
        if want_out:
            out_ref = next(it)
        if pool:
            pooled_ref, skip_ref = next(it), next(it)

        x = x_ref[...]                                     # (Rin, Ki) f32
        # ---- pre-activation: BN affine + ReLU, all f32 pointwise ----------------
        if pre == "relu":
            xa = jnp.maximum(x, 0.0)
        elif pre == "bn_relu":
            xa = jnp.maximum(x * scale_ref[...] + shift_ref[...], 0.0)
        else:
            xa = x
        xa16 = xa.astype(jnp.bfloat16)                     # bf16 MXU operand

        if up:
            # nearest row-upsample of the activated tensor (exact 0/1 bf16 matmul;
            # BN/ReLU commute with nearest upsample, so activating at low-res first
            # is exactly Upsample -> BN -> ReLU of the reference).
            xa16 = jnp.dot(rdup_ref[...], xa16,
                           preferred_element_type=jnp.float32).astype(jnp.bfloat16)

        rows, Ki = xa16.shape
        zrow = jnp.zeros((1, Ki), jnp.bfloat16)
        # dy=0 tap reads row r-1, dy=2 tap reads row r+1: sublane concat-shift (no MXU);
        # per-image zero padding comes from the wrapper-built boundary masks.
        x_dn = jnp.concatenate([zrow, xa16[:-1, :]], axis=0)
        x_up = jnp.concatenate([xa16[1:, :], zrow], axis=0)
        x_dn = jnp.where(top_ref[...] > 0.0, x_dn, 0.0)
        x_up = jnp.where(bot_ref[...] > 0.0, x_up, 0.0)

        # 3x3 'same' conv = three banded bf16 matmuls (K = W_in*Cin), f32 accumulation.
        acc = jnp.dot(x_dn, B_ref[0], preferred_element_type=jnp.float32)
        acc = acc + jnp.dot(xa16, B_ref[1], preferred_element_type=jnp.float32)
        acc = acc + jnp.dot(x_up, B_ref[2], preferred_element_type=jnp.float32)
        acc = acc + b_ref[...]

        if post_sigmoid:
            acc = jax.nn.sigmoid(acc)
        if external_res:                                   # skip from the pool tail (f32)
            acc = acc + res_ref[...]
        elif up:
            # residual = nearest-up(raw x): exact 0/1 selections, kept f32 so the
            # residual path does not pick up bf16 rounding.
            res_rows = jnp.dot(rdup_ref[...].astype(jnp.float32), x,
                               preferred_element_type=jnp.float32)
            acc = acc + jnp.dot(res_rows, dcol_ref[...],
                                preferred_element_type=jnp.float32)
        if want_out:
            out_ref[...] = acc

        if pool:
            # Fused MaxPool2d(2) + nearest-downsample skip corner.  Selection matmuls
            # are exact (0/1, one term per output) and kept f32 so pooled values are
            # bit-exact maxima of the f32 accumulator.
            acc_e = jnp.dot(E_ref[...], acc, preferred_element_type=jnp.float32)
            acc_o = jnp.dot(Eo_ref[...], acc, preferred_element_type=jnp.float32)
            vmax = jnp.maximum(acc_e, acc_o)
            pooled_ref[...] = jnp.maximum(
                jnp.dot(vmax, Pe_ref[...], preferred_element_type=jnp.float32),
                jnp.dot(vmax, Po_ref[...], preferred_element_type=jnp.float32))
            skip_ref[...] = jnp.dot(acc_e, Pe_ref[...],
                                    preferred_element_type=jnp.float32)
    return kernel


# ------------------------------- fused conv wrapper --------------------------------

def fused_conv(x2d, Wk, bias, *, N, H, W, Cin, Cout, up=False,
               pre=None, scale=None, shift=None, residual=None,
               post_sigmoid=False, pool=False, want_out=True):
    """x2d: (N*H_in, W_in*Cin) batch-stacked flat activations (f32).
    Output spatial is (H, W); up=True means input spatial is (H//2, W//2)."""
    assert not (post_sigmoid and (up or residual is not None))
    assert not (pool and up)
    if up:
        assert Cin == Cout
    f32, bf16 = jnp.float32, jnp.bfloat16
    Hin, Win = (H // 2, W // 2) if up else (H, W)
    Rin, Ki = N * Hin, Win * Cin
    Rout, No = N * H, W * Cout
    assert x2d.shape == (Rin, Ki)

    B = (_build_banded_up(Wk, Win) if up else _build_banded(Wk, W)).astype(bf16)
    bias2d = jnp.tile(bias.reshape(1, Cout), (1, W)).astype(f32)
    ridx = jnp.arange(Rout)
    top_mask = ((ridx % H) != 0).astype(f32).reshape(Rout, 1)       # zero top row / image
    bot_mask = ((ridx % H) != H - 1).astype(f32).reshape(Rout, 1)   # zero bottom row / image

    inputs = [x2d, B, bias2d, top_mask, bot_mask]
    in_specs = [
        pl.BlockSpec((Rin, Ki), lambda i: (0, 0)),
        pl.BlockSpec((3, Ki, No), lambda i: (0, 0, 0)),
        pl.BlockSpec((1, No), lambda i: (0, 0)),
        pl.BlockSpec((Rout, 1), lambda i: (0, 0)),
        pl.BlockSpec((Rout, 1), lambda i: (0, 0)),
    ]
    if pre == "bn_relu":
        scale2d = jnp.tile(scale.reshape(1, Cin), (1, Win)).astype(f32)
        shift2d = jnp.tile(shift.reshape(1, Cin), (1, Win)).astype(f32)
        inputs += [scale2d, shift2d]
        in_specs += [pl.BlockSpec((1, Ki), lambda i: (0, 0))] * 2
    if residual is not None:
        assert residual.shape == (Rout, No)
        inputs.append(residual)
        in_specs.append(pl.BlockSpec((Rout, No), lambda i: (0, 0)))
    if up:
        rdup = (jnp.arange(Rin)[None, :] ==
                (jnp.arange(Rout)[:, None] // 2)).astype(bf16)       # (Rout, Rin)
        dbl = (jnp.arange(Win)[:, None] ==
               (jnp.arange(W)[None, :] // 2)).astype(f32)
        dcol = jnp.kron(dbl, jnp.eye(Cin, dtype=f32))                # (Ki, No)
        inputs += [rdup, dcol]
        in_specs += [pl.BlockSpec((Rout, Rin), lambda i: (0, 0)),
                     pl.BlockSpec((Ki, No), lambda i: (0, 0))]
    Rh, Wh, Np = Rout // 2, W // 2, (W // 2) * Cout
    if pool:
        E = (jnp.arange(Rout)[None, :] ==
             2 * jnp.arange(Rh)[:, None]).astype(f32)                # even rows
        Eo = (jnp.arange(Rout)[None, :] ==
              2 * jnp.arange(Rh)[:, None] + 1).astype(f32)           # odd rows
        sel_e = (jnp.arange(W)[:, None] ==
                 2 * jnp.arange(Wh)[None, :]).astype(f32)
        sel_o = (jnp.arange(W)[:, None] ==
                 2 * jnp.arange(Wh)[None, :] + 1).astype(f32)
        eyec = jnp.eye(Cout, dtype=f32)
        Pe, Po = jnp.kron(sel_e, eyec), jnp.kron(sel_o, eyec)        # (No, Np)
        inputs += [E, Eo, Pe, Po]
        in_specs += [pl.BlockSpec((Rh, Rout), lambda i: (0, 0)),
                     pl.BlockSpec((Rh, Rout), lambda i: (0, 0)),
                     pl.BlockSpec((No, Np), lambda i: (0, 0)),
                     pl.BlockSpec((No, Np), lambda i: (0, 0))]

    out_shapes, out_specs, names = [], [], []
    if want_out:
        out_shapes.append(jax.ShapeDtypeStruct((Rout, No), f32))
        out_specs.append(pl.BlockSpec((Rout, No), lambda i: (0, 0)))
        names.append("out")
    if pool:
        for nm in ("pooled", "skip"):
            out_shapes.append(jax.ShapeDtypeStruct((Rh, Np), f32))
            out_specs.append(pl.BlockSpec((Rh, Np), lambda i: (0, 0)))
            names.append(nm)

    kernel = _make_conv_kernel(pre=pre, up=up, external_res=residual is not None,
                               post_sigmoid=post_sigmoid, pool=pool,
                               want_out=want_out)
    results = pl.pallas_call(
        kernel,
        out_shape=tuple(out_shapes),
        grid=(1,),
        in_specs=in_specs,
        out_specs=tuple(out_specs),
        compiler_params=pltpu.CompilerParams(
            dimension_semantics=("arbitrary",),
            vmem_limit_bytes=32 * 1024 * 1024),
    )(*inputs)
    if not isinstance(results, (list, tuple)):
        results = (results,)
    return dict(zip(names, results))


# ------------------------------ parameters & forward -------------------------------

def init_conv(key, cin, cout, k=3):
    kw, kb = jax.random.split(key)
    bound = 1.0 / (cin * k * k) ** 0.5            # PyTorch Conv2d default init bound
    w = jax.random.uniform(kw, (k, k, cin, cout), jnp.float32, -bound, bound)
    b = jax.random.uniform(kb, (cout,), jnp.float32, -bound, bound)
    return {"w": w, "b": b}


def init_block(key, cin, cmid, cout, depth):
    keys = jax.random.split(key, depth + 2)
    return {
        "conv_in": init_conv(keys[0], cin, cmid),
        "res": [{"gamma": jnp.ones((cmid,), jnp.float32),
                 "beta": jnp.zeros((cmid,), jnp.float32),
                 "conv": init_conv(keys[1 + d], cmid, cmid)}
                for d in range(depth)],
        "conv_out": init_conv(keys[depth + 1], cmid, cout),
    }


def channel_stats(t2d, C):
    """Per-channel sum / sum-of-squares of a (R, W*C) flat tensor (plain XLA;
    the tensor is already materialised by the producing kernel)."""
    t = t2d.reshape(-1, C)
    return jnp.sum(t, axis=0), jnp.sum(t * t, axis=0), t.shape[0]


def bn_from_stats(s, sq, count, gamma, beta, eps=1e-5):
    """Training-mode BatchNorm scale/shift from per-channel sum / sum-of-squares."""
    mean = s / count
    var = jnp.maximum(sq / count - mean * mean, 0.0)        # clamp fp cancellation
    scale = gamma / jnp.sqrt(var + eps)
    shift = beta - mean * scale
    return scale, shift


def encoder_block(p, xf, N, H, W, Cin):
    cmid = p["conv_in"]["w"].shape[-1]
    cout = p["conv_out"]["w"].shape[-1]
    r = fused_conv(xf, p["conv_in"]["w"], p["conv_in"]["b"],
                   N=N, H=H, W=W, Cin=Cin, Cout=cmid,
                   pool=True, want_out=False)
    pooled, skip = r["pooled"], r["skip"]
    h, w = H // 2, W // 2
    x_full = None
    depth = len(p["res"])
    for d, rp in enumerate(p["res"]):
        last = d == depth - 1
        # BN stats of the MaxPool output (the BN input in the reference module).
        s, sq, cnt = channel_stats(pooled, cmid)
        scale, shift = bn_from_stats(s, sq, cnt, rp["gamma"], rp["beta"])
        r = fused_conv(pooled, rp["conv"]["w"], rp["conv"]["b"],
                       N=N, H=h, W=w, Cin=cmid, Cout=cmid,
                       pre="bn_relu", scale=scale, shift=shift, residual=skip,
                       pool=not last, want_out=last)
        if last:
            x_full = r["out"]
        else:
            pooled, skip = r["pooled"], r["skip"]
            h, w = h // 2, w // 2
    r = fused_conv(x_full, p["conv_out"]["w"], p["conv_out"]["b"],
                   N=N, H=h, W=w, Cin=cmid, Cout=cout,
                   pre="relu", post_sigmoid=True, want_out=True)
    return r["out"], h, w


def decoder_block(p, xf, N, h, w, Cin):
    cmid = p["conv_in"]["w"].shape[-1]
    cout = p["conv_out"]["w"].shape[-1]
    r = fused_conv(xf, p["conv_in"]["w"], p["conv_in"]["b"],
                   N=N, H=h, W=w, Cin=Cin, Cout=cmid, want_out=True)
    x_cur = r["out"]
    depth = len(p["res"])
    for d, rp in enumerate(p["res"]):
        # BN stats of Upsample(x_cur) == stats of x_cur (nearest duplication preserves
        # mean and E[x^2]); keep count = N*h*w for BOTH sum and sum-of-squares.
        s, sq, cnt = channel_stats(x_cur, cmid)
        scale, shift = bn_from_stats(s, sq, cnt, rp["gamma"], rp["beta"])
        r = fused_conv(x_cur, rp["conv"]["w"], rp["conv"]["b"],
                       N=N, H=2 * h, W=2 * w, Cin=cmid, Cout=cmid,
                       up=True, pre="bn_relu", scale=scale, shift=shift,
                       want_out=True)
        x_cur = r["out"]
        h, w = 2 * h, 2 * w
    r = fused_conv(x_cur, p["conv_out"]["w"], p["conv_out"]["b"],
                   N=N, H=h, W=w, Cin=cmid, Cout=cout, pre="relu", want_out=True)
    return r["out"], h, w


def autoencoder_forward(params, x_nchw):
    x = jnp.transpose(x_nchw, (0, 2, 3, 1)).astype(jnp.float32)   # NCHW -> NHWC
    N, H, W, Cin = x.shape
    xf = x.reshape(N * H, W * Cin)                # batch-stacked flat (N*H, W*C)
    code, h, w = encoder_block(params["enc"], xf, N, H, W, Cin)   # enc(x).sigmoid()
    c_hidden = params["enc"]["conv_out"]["w"].shape[-1]
    out2d, oh, ow = decoder_block(params["dec"], code, N, h, w, c_hidden)
    c_out = params["dec"]["conv_out"]["w"].shape[-1]
    out = out2d.reshape(N, oh, ow, c_out)
    return jnp.transpose(out, (0, 3, 1, 2))                       # NHWC -> NCHW


if __name__ == "__main__":
    key = jax.random.PRNGKey(0)
    kx, kenc, kdec = jax.random.split(key, 3)

    # kernel=3, stride=2, hidden=1, depth=3; intermediate reduced 128 -> 32 to keep
    # the test small (same structure as the PyTorch module).
    hidden, intermediate, depth = 1, 32, 3
    params = {
        "enc": init_block(kenc, 1, intermediate, hidden, depth),
        "dec": init_block(kdec, hidden, intermediate, 1, depth),
    }
    x = jax.random.normal(kx, (2, 1, 16, 16), jnp.float32)   # NCHW, 1 input channel

    out = jax.jit(autoencoder_forward)(params, x)
    out = jax.block_until_ready(out)
    assert out.shape == (2, 1, 16, 16) and out.dtype == jnp.float32
    print("KERNEL_OK")
</pallas_src>

<mosaic_0001>
module attributes {stable_mosaic.version = 11 : i64} {
  func.func @kernel(%arg0: i32, %arg1: memref<32x16xf32, #tpu.memory_space<vmem>>, %arg2: memref<3x16x512xbf16, #tpu.memory_space<vmem>>, %arg3: memref<1x512xf32, #tpu.memory_space<vmem>>, %arg4: memref<32x1xf32, #tpu.memory_space<vmem>>, %arg5: memref<32x1xf32, #tpu.memory_space<vmem>>, %arg6: memref<16x32xf32, #tpu.memory_space<vmem>>, %arg7: memref<16x32xf32, #tpu.memory_space<vmem>>, %arg8: memref<512x256xf32, #tpu.memory_space<vmem>>, %arg9: memref<512x256xf32, #tpu.memory_space<vmem>>, %arg10: memref<16x256xf32, #tpu.memory_space<vmem>>, %arg11: memref<16x256xf32, #tpu.memory_space<vmem>>) attributes {dimension_semantics = [#tpu.dimension_semantics<arbitrary>], iteration_bounds = array<i64: 1>, scalar_prefetch = 0 : i64, scratch_operands = 0 : i64, tpu.core_type = #tpu.core_type<tc>, window_params = [{pipeline_mode = #tpu.pipeline_mode<synchronous>, transform_indices = @transform_0, window_bounds = array<i64: 32, 16>}, {pipeline_mode = #tpu.pipeline_mode<synchronous>, transform_indices = @transform_1, window_bounds = array<i64: 3, 16, 512>}, {pipeline_mode = #tpu.pipeline_mode<synchronous>, transform_indices = @transform_2, window_bounds = array<i64: 1, 512>}, {pipeline_mode = #tpu.pipeline_mode<synchronous>, transform_indices = @transform_3, window_bounds = array<i64: 32, 1>}, {pipeline_mode = #tpu.pipeline_mode<synchronous>, transform_indices = @transform_4, window_bounds = array<i64: 32, 1>}, {pipeline_mode = #tpu.pipeline_mode<synchronous>, transform_indices = @transform_5, window_bounds = array<i64: 16, 32>}, {pipeline_mode = #tpu.pipeline_mode<synchronous>, transform_indices = @transform_6, window_bounds = array<i64: 16, 32>}, {pipeline_mode = #tpu.pipeline_mode<synchronous>, transform_indices = @transform_7, window_bounds = array<i64: 512, 256>}, {pipeline_mode = #tpu.pipeline_mode<synchronous>, transform_indices = @transform_8, window_bounds = array<i64: 512, 256>}, {pipeline_mode = #tpu.pipeline_mode<synchronous>, transform_indices = @transform_9, window_bounds = array<i64: 16, 256>}, {pipeline_mode = #tpu.pipeline_mode<synchronous>, transform_indices = @transform_10, window_bounds = array<i64: 16, 256>}]} {
    %c0 = arith.constant 0 : index
    %c0_0 = arith.constant 0 : index
    %0 = vector.load %arg1[%c0, %c0_0] : memref<32x16xf32, #tpu.memory_space<vmem>>, vector<32x16xf32>
    %1 = arith.truncf %0 : vector<32x16xf32> to vector<32x16xbf16>
    %cst = arith.constant 0.000000e+00 : bf16
    %2 = vector.broadcast %cst : bf16 to vector<1x16xbf16>
    %3 = vector.extract_strided_slice %1 {offsets = [0, 0], sizes = [31, 16], strides = [1, 1]} : vector<32x16xbf16> to vector<31x16xbf16>
    %4 = tpu.concatenate %2, %3 in 0 : vector<1x16xbf16>, vector<31x16xbf16> -> vector<32x16xbf16>
    %5 = vector.extract_strided_slice %1 {offsets = [1, 0], sizes = [31, 16], strides = [1, 1]} : vector<32x16xbf16> to vector<31x16xbf16>
    %6 = tpu.concatenate %5, %2 in 0 : vector<31x16xbf16>, vector<1x16xbf16> -> vector<32x16xbf16>
    %c0_1 = arith.constant 0 : index
    %c0_2 = arith.constant 0 : index
    %7 = vector.load %arg4[%c0_1, %c0_2] : memref<32x1xf32, #tpu.memory_space<vmem>>, vector<32x1xf32>
    %cst_3 = arith.constant 0.000000e+00 : f32
    %8 = vector.broadcast %cst_3 : f32 to vector<32x1xf32>
    %9 = arith.cmpf ogt, %7, %8 : vector<32x1xf32>
    %cst_4 = arith.constant 0.000000e+00 : f32
    %10 = arith.truncf %cst_4 : f32 to bf16
    %11 = vector.shape_cast %9 : vector<32x1xi1> to vector<32x1xi1>
    %12 = vector.broadcast %11 : vector<32x1xi1> to vector<32x16xi1>
    %13 = vector.broadcast %10 : bf16 to vector<32x16xbf16>
    %14 = arith.select %12, %4, %13 : vector<32x16xi1>, vector<32x16xbf16>
    %c0_5 = arith.constant 0 : index
    %c0_6 = arith.constant 0 : index
    %15 = vector.load %arg5[%c0_5, %c0_6] : memref<32x1xf32, #tpu.memory_space<vmem>>, vector<32x1xf32>
    %cst_7 = arith.constant 0.000000e+00 : f32
    %16 = vector.broadcast %cst_7 : f32 to vector<32x1xf32>
    %17 = arith.cmpf ogt, %15, %16 : vector<32x1xf32>
    %cst_8 = arith.constant 0.000000e+00 : f32
    %18 = arith.truncf %cst_8 : f32 to bf16
    %19 = vector.shape_cast %17 : vector<32x1xi1> to vector<32x1xi1>
    %20 = vector.broadcast %19 : vector<32x1xi1> to vector<32x16xi1>
    %21 = vector.broadcast %18 : bf16 to vector<32x16xbf16>
    %22 = arith.select %20, %6, %21 : vector<32x16xi1>, vector<32x16xbf16>
    %c0_9 = arith.constant 0 : index
    %c0_10 = arith.constant 0 : index
    %c0_11 = arith.constant 0 : index
    %23 = vector.load %arg2[%c0_9, %c0_10, %c0_11] : memref<3x16x512xbf16, #tpu.memory_space<vmem>>, vector<1x16x512xbf16>
    %24 = vector.shape_cast %23 : vector<1x16x512xbf16> to vector<16x512xbf16>
    %cst_12 = arith.constant dense<0.000000e+00> : vector<32x512xf32>
    %25 = tpu.matmul %14, %24, %cst_12 {dimension_numbers = #tpu.dot_dimension_numbers<[1], [0], [0], [1], [0, 0, 1, 1], [], []>} : vector<32x16xbf16>, vector<16x512xbf16>, vector<32x512xf32> -> vector<32x512xf32>
    %c1 = arith.constant 1 : index
    %c0_13 = arith.constant 0 : index
    %c0_14 = arith.constant 0 : index
    %26 = vector.load %arg2[%c1, %c0_13, %c0_14] : memref<3x16x512xbf16, #tpu.memory_space<vmem>>, vector<1x16x512xbf16>
    %27 = vector.shape_cast %26 : vector<1x16x512xbf16> to vector<16x512xbf16>
    %cst_15 = arith.constant dense<0.000000e+00> : vector<32x512xf32>
    %28 = tpu.matmul %1, %27, %cst_15 {dimension_numbers = #tpu.dot_dimension_numbers<[1], [0], [0], [1], [0, 0, 1, 1], [], []>} : vector<32x16xbf16>, vector<16x512xbf16>, vector<32x512xf32> -> vector<32x512xf32>
    %29 = arith.addf %25, %28 : vector<32x512xf32>
    %c2 = arith.constant 2 : index
    %c0_16 = arith.constant 0 : index
    %c0_17 = arith.constant 0 : index
    %30 = vector.load %arg2[%c2, %c0_16, %c0_17] : memref<3x16x512xbf16, #tpu.memory_space<vmem>>, vector<1x16x512xbf16>
    %31 = vector.shape_cast %30 : vector<1x16x512xbf16> to vector<16x512xbf16>
    %cst_18 = arith.constant dense<0.000000e+00> : vector<32x512xf32>
    %32 = tpu.matmul %22, %31, %cst_18 {dimension_numbers = #tpu.dot_dimension_numbers<[1], [0], [0], [1], [0, 0, 1, 1], [], []>} : vector<32x16xbf16>, vector<16x512xbf16>, vector<32x512xf32> -> vector<32x512xf32>
    %33 = arith.addf %29, %32 : vector<32x512xf32>
    %c0_19 = arith.constant 0 : index
    %c0_20 = arith.constant 0 : index
    %34 = vector.load %arg3[%c0_19, %c0_20] : memref<1x512xf32, #tpu.memory_space<vmem>>, vector<1x512xf32>
    %35 = vector.broadcast %34 : vector<1x512xf32> to vector<32x512xf32>
    %36 = arith.addf %33, %35 : vector<32x512xf32>
    %c0_21 = arith.constant 0 : index
    %c0_22 = arith.constant 0 : index
    %37 = vector.load %arg6[%c0_21, %c0_22] : memref<16x32xf32, #tpu.memory_space<vmem>>, vector<16x32xf32>
    %cst_23 = arith.constant dense<0.000000e+00> : vector<16x512xf32>
    %38 = tpu.matmul %37, %36, %cst_23 {dimension_numbers = #tpu.dot_dimension_numbers<[1], [0], [0], [1], [0, 0, 1, 1], [], []>} : vector<16x32xf32>, vector<32x512xf32>, vector<16x512xf32> -> vector<16x512xf32>
    %c0_24 = arith.constant 0 : index
    %c0_25 = arith.constant 0 : index
    %39 = vector.load %arg7[%c0_24, %c0_25] : memref<16x32xf32, #tpu.memory_space<vmem>>, vector<16x32xf32>
    %cst_26 = arith.constant dense<0.000000e+00> : vector<16x512xf32>
    %40 = tpu.matmul %39, %36, %cst_26 {dimension_numbers = #tpu.dot_dimension_numbers<[1], [0], [0], [1], [0, 0, 1, 1], [], []>} : vector<16x32xf32>, vector<32x512xf32>, vector<16x512xf32> -> vector<16x512xf32>
    %41 = arith.maximumf %38, %40 : vector<16x512xf32>
    %c0_27 = arith.constant 0 : index
    %c0_28 = arith.constant 0 : index
    %42 = vector.load %arg8[%c0_27, %c0_28] : memref<512x256xf32, #tpu.memory_space<vmem>>, vector<512x256xf32>
    %cst_29 = arith.constant dense<0.000000e+00> : vector<16x256xf32>
    %43 = tpu.matmul %41, %42, %cst_29 {dimension_numbers = #tpu.dot_dimension_numbers<[1], [0], [0], [1], [0, 0, 1, 1], [], []>} : vector<16x512xf32>, vector<512x256xf32>, vector<16x256xf32> -> vector<16x256xf32>
    %c0_30 = arith.constant 0 : index
    %c0_31 = arith.constant 0 : index
    %44 = vector.load %arg9[%c0_30, %c0_31] : memref<512x256xf32, #tpu.memory_space<vmem>>, vector<512x256xf32>
    %cst_32 = arith.constant dense<0.000000e+00> : vector<16x256xf32>
    %45 = tpu.matmul %41, %44, %cst_32 {dimension_numbers = #tpu.dot_dimension_numbers<[1], [0], [0], [1], [0, 0, 1, 1], [], []>} : vector<16x512xf32>, vector<512x256xf32>, vector<16x256xf32> -> vector<16x256xf32>
    %46 = arith.maximumf %43, %45 : vector<16x256xf32>
    %c0_33 = arith.constant 0 : index
    %c0_34 = arith.constant 0 : index
    %47 = vector.load %arg10[%c0_33, %c0_34] : memref<16x256xf32, #tpu.memory_space<vmem>>, vector<16x256xf32>
    tpu.vector_store %arg10[%c0_33, %c0_34], %46 {strides = array<i32>} : memref<16x256xf32, #tpu.memory_space<vmem>>, vector<16x256xf32>,
    %c0_35 = arith.constant 0 : index
    %c0_36 = arith.constant 0 : index
    %48 = vector.load %arg8[%c0_35, %c0_36] : memref<512x256xf32, #tpu.memory_space<vmem>>, vector<512x256xf32>
    %cst_37 = arith.constant dense<0.000000e+00> : vector<16x256xf32>
    %49 = tpu.matmul %38, %48, %cst_37 {dimension_numbers = #tpu.dot_dimension_numbers<[1], [0], [0], [1], [0, 0, 1, 1], [], []>} : vector<16x512xf32>, vector<512x256xf32>, vector<16x256xf32> -> vector<16x256xf32>
    %c0_38 = arith.constant 0 : index
    %c0_39 = arith.constant 0 : index
    %50 = vector.load %arg11[%c0_38, %c0_39] : memref<16x256xf32, #tpu.memory_space<vmem>>, vector<16x256xf32>
    tpu.vector_store %arg11[%c0_38, %c0_39], %49 {strides = array<i32>} : memref<16x256xf32, #tpu.memory_space<vmem>>, vector<16x256xf32>,
    return
  }
  func.func @transform_0(%arg0: i32) -> (i32, i32) {
    %c0_i32 = arith.constant 0 : i32
    %c0_i32_0 = arith.constant 0 : i32
    %c0_i32_1 = arith.constant 0 : i32
    return %c0_i32, %c0_i32_0 : i32, i32
  }
  func.func @transform_1(%arg0: i32) -> (i32, i32, i32) {
    %c0_i32 = arith.constant 0 : i32
    %c0_i32_0 = arith.constant 0 : i32
    %c0_i32_1 = arith.constant 0 : i32
    %c0_i32_2 = arith.constant 0 : i32
    return %c0_i32, %c0_i32_0, %c0_i32_1 : i32, i32, i32
  }
  func.func @transform_2(%arg0: i32) -> (i32, i32) {
    %c0_i32 = arith.constant 0 : i32
    %c0_i32_0 = arith.constant 0 : i32
    %c0_i32_1 = arith.constant 0 : i32
    return %c0_i32, %c0_i32_0 : i32, i32
  }
  func.func @transform_3(%arg0: i32) -> (i32, i32) {
    %c0_i32 = arith.constant 0 : i32
    %c0_i32_0 = arith.constant 0 : i32
    %c0_i32_1 = arith.constant 0 : i32
    return %c0_i32, %c0_i32_0 : i32, i32
  }
  func.func @transform_4(%arg0: i32) -> (i32, i32) {
    %c0_i32 = arith.constant 0 : i32
    %c0_i32_0 = arith.constant 0 : i32
    %c0_i32_1 = arith.constant 0 : i32
    return %c0_i32, %c0_i32_0 : i32, i32
  }
  func.func @transform_5(%arg0: i32) -> (i32, i32) {
    %c0_i32 = arith.constant 0 : i32
    %c0_i32_0 = arith.constant 0 : i32
    %c0_i32_1 = arith.constant 0 : i32
    return %c0_i32, %c0_i32_0 : i32, i32
  }
  func.func @transform_6(%arg0: i32) -> (i32, i32) {
    %c0_i32 = arith.constant 0 : i32
    %c0_i32_0 = arith.constant 0 : i32
    %c0_i32_1 = arith.constant 0 : i32
    return %c0_i32, %c0_i32_0 : i32, i32
  }
  func.func @transform_7(%arg0: i32) -> (i32, i32) {
    %c0_i32 = arith.constant 0 : i32
    %c0_i32_0 = arith.constant 0 : i32
    %c0_i32_1 = arith.constant 0 : i32
    return %c0_i32, %c0_i32_0 : i32, i32
  }
  func.func @transform_8(%arg0: i32) -> (i32, i32) {
    %c0_i32 = arith.constant 0 : i32
    %c0_i32_0 = arith.constant 0 : i32
    %c0_i32_1 = arith.constant 0 : i32
    return %c0_i32, %c0_i32_0 : i32, i32
  }
  func.func @transform_9(%arg0: i32) -> (i32, i32) {
    %c0_i32 = arith.constant 0 : i32
    %c0_i32_0 = arith.constant 0 : i32
    %c0_i32_1 = arith.constant 0 : i32
    return %c0_i32, %c0_i32_0 : i32, i32
  }
  func.func @transform_10(%arg0: i32) -> (i32, i32) {
    %c0_i32 = arith.constant 0 : i32
    %c0_i32_0 = arith.constant 0 : i32
    %c0_i32_1 = arith.constant 0 : i32
    return %c0_i32, %c0_i32_0 : i32, i32
  }
}

module attributes {stable_mosaic.version = 11 : i64} {
  func.func @kernel(%arg0: i32, %arg1: memref<16x256xf32, #tpu.memory_space<vmem>>, %arg2: memref<3x256x256xbf16, #tpu.memory_space<vmem>>, %arg3: memref<1x256xf32, #tpu.memory_space<vmem>>, %arg4: memref<16x1xf32, #tpu.memory_space<vmem>>, %arg5: memref<16x1xf32, #tpu.memory_space<vmem>>, %arg6: memref<1x256xf32, #tpu.memory_space<vmem>>, %arg7: memref<1x256xf32, #tpu.memory_space<vmem>>, %arg8: memref<16x256xf32, #tpu.memory_space<vmem>>, %arg9: memref<8x16xf32, #tpu.memory_space<vmem>>, %arg10: memref<8x16xf32, #tpu.memory_space<vmem>>, %arg11: memref<256x128xf32, #tpu.memory_space<vmem>>, %arg12: memref<256x128xf32, #tpu.memory_space<vmem>>, %arg13: memref<8x128xf32, #tpu.memory_space<vmem>>, %arg14: memref<8x128xf32, #tpu.memory_space<vmem>>) attributes {dimension_semantics = [#tpu.dimension_semantics<arbitrary>], iteration_bounds = array<i64: 1>, scalar_prefetch = 0 : i64, scratch_operands = 0 : i64, tpu.core_type = #tpu.core_type<tc>, window_params = [{pipeline_mode = #tpu.pipeline_mode<synchronous>, transform_indices = @transform_0, window_bounds = array<i64: 16, 256>}, {pipeline_mode = #tpu.pipeline_mode<synchronous>, transform_indices = @transform_1, window_bounds = array<i64: 3, 256, 256>}, {pipeline_mode = #tpu.pipeline_mode<synchronous>, transform_indices = @transform_2, window_bounds = array<i64: 1, 256>}, {pipeline_mode = #tpu.pipeline_mode<synchronous>, transform_indices = @transform_3, window_bounds = array<i64: 16, 1>}, {pipeline_mode = #tpu.pipeline_mode<synchronous>, transform_indices = @transform_4, window_bounds = array<i64: 16, 1>}, {pipeline_mode = #tpu.pipeline_mode<synchronous>, transform_indices = @transform_5, window_bounds = array<i64: 1, 256>}, {pipeline_mode = #tpu.pipeline_mode<synchronous>, transform_indices = @transform_6, window_bounds = array<i64: 1, 256>}, {pipeline_mode = #tpu.pipeline_mode<synchronous>, transform_indices = @transform_7, window_bounds = array<i64: 16, 256>}, {pipeline_mode = #tpu.pipeline_mode<synchronous>, transform_indices = @transform_8, window_bounds = array<i64: 8, 16>}, {pipeline_mode = #tpu.pipeline_mode<synchronous>, transform_indices = @transform_9, window_bounds = array<i64: 8, 16>}, {pipeline_mode = #tpu.pipeline_mode<synchronous>, transform_indices = @transform_10, window_bounds = array<i64: 256, 128>}, {pipeline_mode = #tpu.pipeline_mode<synchronous>, transform_indices = @transform_11, window_bounds = array<i64: 256, 128>}, {pipeline_mode = #tpu.pipeline_mode<synchronous>, transform_indices = @transform_12, window_bounds = array<i64: 8, 128>}, {pipeline_mode = #tpu.pipeline_mode<synchronous>, transform_indices = @transform_13, window_bounds = array<i64: 8, 128>}]} {
    %c0 = arith.constant 0 : index
    %c0_0 = arith.constant 0 : index
    %0 = vector.load %arg1[%c0, %c0_0] : memref<16x256xf32, #tpu.memory_space<vmem>>, vector<16x256xf32>
    %c0_1 = arith.constant 0 : index
    %c0_2 = arith.constant 0 : index
    %1 = vector.load %arg6[%c0_1, %c0_2] : memref<1x256xf32, #tpu.memory_space<vmem>>, vector<1x256xf32>
    %2 = vector.broadcast %1 : vector<1x256xf32> to vector<16x256xf32>
    %3 = arith.mulf %0, %2 : vector<16x256xf32>
    %c0_3 = arith.constant 0 : index
    %c0_4 = arith.constant 0 : index
    %4 = vector.load %arg7[%c0_3, %c0_4] : memref<1x256xf32, #tpu.memory_space<vmem>>, vector<1x256xf32>
    %5 = vector.broadcast %4 : vector<1x256xf32> to vector<16x256xf32>
    %6 = arith.addf %3, %5 : vector<16x256xf32>
    %cst = arith.constant 0.000000e+00 : f32
    %7 = vector.broadcast %cst : f32 to vector<16x256xf32>
    %8 = arith.maximumf %6, %7 : vector<16x256xf32>
    %9 = arith.truncf %8 : vector<16x256xf32> to vector<16x256xbf16>
    %cst_5 = arith.constant 0.000000e+00 : bf16
    %10 = vector.broadcast %cst_5 : bf16 to vector<1x256xbf16>
    %11 = vector.extract_strided_slice %9 {offsets = [0, 0], sizes = [15, 256], strides = [1, 1]} : vector<16x256xbf16> to vector<15x256xbf16>
    %12 = tpu.concatenate %10, %11 in 0 : vector<1x256xbf16>, vector<15x256xbf16> -> vector<16x256xbf16>
    %13 = vector.extract_strided_slice %9 {offsets = [1, 0], sizes = [15, 256], strides = [1, 1]} : vector<16x256xbf16> to vector<15x256xbf16>
    %14 = tpu.concatenate %13, %10 in 0 : vector<15x256xbf16>, vector<1x256xbf16> -> vector<16x256xbf16>
    %c0_6 = arith.constant 0 : index
    %c0_7 = arith.constant 0 : index
    %15 = vector.load %arg4[%c0_6, %c0_7] : memref<16x1xf32, #tpu.memory_space<vmem>>, vector<16x1xf32>
    %cst_8 = arith.constant 0.000000e+00 : f32
    %16 = vector.broadcast %cst_8 : f32 to vector<16x1xf32>
    %17 = arith.cmpf ogt, %15, %16 : vector<16x1xf32>
    %cst_9 = arith.constant 0.000000e+00 : f32
    %18 = arith.truncf %cst_9 : f32 to bf16
    %19 = vector.shape_cast %17 : vector<16x1xi1> to vector<16x1xi1>
    %20 = vector.broadcast %19 : vector<16x1xi1> to vector<16x256xi1>
    %21 = vector.broadcast %18 : bf16 to vector<16x256xbf16>
    %22 = arith.select %20, %12, %21 : vector<16x256xi1>, vector<16x256xbf16>
    %c0_10 = arith.constant 0 : index
    %c0_11 = arith.constant 0 : index
    %23 = vector.load %arg5[%c0_10, %c0_11] : memref<16x1xf32, #tpu.memory_space<vmem>>, vector<16x1xf32>
    %cst_12 = arith.constant 0.000000e+00 : f32
    %24 = vector.broadcast %cst_12 : f32 to vector<16x1xf32>
    %25 = arith.cmpf ogt, %23, %24 : vector<16x1xf32>
    %cst_13 = arith.constant 0.000000e+00 : f32
    %26 = arith.truncf %cst_13 : f32 to bf16
    %27 = vector.shape_cast %25 : vector<16x1xi1> to vector<16x1xi1>
    %28 = vector.broadcast %27 : vector<16x1xi1> to vector<16x256xi1>
    %29 = vector.broadcast %26 : bf16 to vector<16x256xbf16>
    %30 = arith.select %28, %14, %29 : vector<16x256xi1>, vector<16x256xbf16>
    %c0_14 = arith.constant 0 : index
    %c0_15 = arith.constant 0 : index
    %c0_16 = arith.constant 0 : index
    %31 = vector.load %arg2[%c0_14, %c0_15, %c0_16] : memref<3x256x256xbf16, #tpu.memory_space<vmem>>, vector<1x256x256xbf16>
    %32 = vector.shape_cast %31 : vector<1x256x256xbf16> to vector<256x256xbf16>
    %cst_17 = arith.constant dense<0.000000e+00> : vector<16x256xf32>
    %33 = tpu.matmul %22, %32, %cst_17 {dimension_numbers = #tpu.dot_dimension_numbers<[1], [0], [0], [1], [0, 0, 1, 1], [], []>} : vector<16x256xbf16>, vector<256x256xbf16>, vector<16x256xf32> -> vector<16x256xf32>
    %c1 = arith.constant 1 : index
    %c0_18 = arith.constant 0 : index
    %c0_19 = arith.constant 0 : index
    %34 = vector.load %arg2[%c1, %c0_18, %c0_19] : memref<3x256x256xbf16, #tpu.memory_space<vmem>>, vector<1x256x256xbf16>
    %35 = vector.shape_cast %34 : vector<1x256x256xbf16> to vector<256x256xbf16>
    %cst_20 = arith.constant dense<0.000000e+00> : vector<16x256xf32>
    %36 = tpu.matmul %9, %35, %cst_20 {dimension_numbers = #tpu.dot_dimension_numbers<[1], [0], [0], [1], [0, 0, 1, 1], [], []>} : vector<16x256xbf16>, vector<256x256xbf16>, vector<16x256xf32> -> vector<16x256xf32>
    %37 = arith.addf %33, %36 : vector<16x256xf32>
    %c2 = arith.constant 2 : index
    %c0_21 = arith.constant 0 : index
    %c0_22 = arith.constant 0 : index
    %38 = vector.load %arg2[%c2, %c0_21, %c0_22] : memref<3x256x256xbf16, #tpu.memory_space<vmem>>, vector<1x256x256xbf16>
    %39 = vector.shape_cast %38 : vector<1x256x256xbf16> to vector<256x256xbf16>
    %cst_23 = arith.constant dense<0.000000e+00> : vector<16x256xf32>
    %40 = tpu.matmul %30, %39, %cst_23 {dimension_numbers = #tpu.dot_dimension_numbers<[1], [0], [0], [1], [0, 0, 1, 1], [], []>} : vector<16x256xbf16>, vector<256x256xbf16>, vector<16x256xf32> -> vector<16x256xf32>
    %41 = arith.addf %37, %40 : vector<16x256xf32>
    %c0_24 = arith.constant 0 : index
    %c0_25 = arith.constant 0 : index
    %42 = vector.load %arg3[%c0_24, %c0_25] : memref<1x256xf32, #tpu.memory_space<vmem>>, vector<1x256xf32>
    %43 = vector.broadcast %42 : vector<1x256xf32> to vector<16x256xf32>
    %44 = arith.addf %41, %43 : vector<16x256xf32>
    %c0_26 = arith.constant 0 : index
    %c0_27 = arith.constant 0 : index
    %45 = vector.load %arg8[%c0_26, %c0_27] : memref<16x256xf32, #tpu.memory_space<vmem>>, vector<16x256xf32>
    %46 = arith.addf %44, %45 : vector<16x256xf32>
    %c0_28 = arith.constant 0 : index
    %c0_29 = arith.constant 0 : index
    %47 = vector.load %arg9[%c0_28, %c0_29] : memref<8x16xf32, #tpu.memory_space<vmem>>, vector<8x16xf32>
    %cst_30 = arith.constant dense<0.000000e+00> : vector<8x256xf32>
    %48 = tpu.matmul %47, %46, %cst_30 {dimension_numbers = #tpu.dot_dimension_numbers<[1], [0], [0], [1], [0, 0, 1, 1], [], []>} : vector<8x16xf32>, vector<16x256xf32>, vector<8x256xf32> -> vector<8x256xf32>
    %c0_31 = arith.constant 0 : index
    %c0_32 = arith.constant 0 : index
    %49 = vector.load %arg10[%c0_31, %c0_32] : memref<8x16xf32, #tpu.memory_space<vmem>>, vector<8x16xf32>
    %cst_33 = arith.constant dense<0.000000e+00> : vector<8x256xf32>
    %50 = tpu.matmul %49, %46, %cst_33 {dimension_numbers = #tpu.dot_dimension_numbers<[1], [0], [0], [1], [0, 0, 1, 1], [], []>} : vector<8x16xf32>, vector<16x256xf32>, vector<8x256xf32> -> vector<8x256xf32>
    %51 = arith.maximumf %48, %50 : vector<8x256xf32>
    %c0_34 = arith.constant 0 : index
    %c0_35 = arith.constant 0 : index
    %52 = vector.load %arg11[%c0_34, %c0_35] : memref<256x128xf32, #tpu.memory_space<vmem>>, vector<256x128xf32>
    %cst_36 = arith.constant dense<0.000000e+00> : vector<8x128xf32>
    %53 = tpu.matmul %51, %52, %cst_36 {dimension_numbers = #tpu.dot_dimension_numbers<[1], [0], [0], [1], [0, 0, 1, 1], [], []>} : vector<8x256xf32>, vector<256x128xf32>, vector<8x128xf32> -> vector<8x128xf32>
    %c0_37 = arith.constant 0 : index
    %c0_38 = arith.constant 0 : index
    %54 = vector.load %arg12[%c0_37, %c0_38] : memref<256x128xf32, #tpu.memory_space<vmem>>, vector<256x128xf32>
    %cst_39 = arith.constant dense<0.000000e+00> : vector<8x128xf32>
    %55 = tpu.matmul %51, %54, %cst_39 {dimension_numbers = #tpu.dot_dimension_numbers<[1], [0], [0], [1], [0, 0, 1, 1], [], []>} : vector<8x256xf32>, vector<256x128xf32>, vector<8x128xf32> -> vector<8x128xf32>
    %56 = arith.maximumf %53, %55 : vector<8x128xf32>
    %c0_40 = arith.constant 0 : index
    %c0_41 = arith.constant 0 : index
    %57 = vector.load %arg13[%c0_40, %c0_41] : memref<8x128xf32, #tpu.memory_space<vmem>>, vector<8x128xf32>
    tpu.vector_store %arg13[%c0_40, %c0_41], %56 {strides = array<i32>} : memref<8x128xf32, #tpu.memory_space<vmem>>, vector<8x128xf32>,
    %c0_42 = arith.constant 0 : index
    %c0_43 = arith.constant 0 : index
    %58 = vector.load %arg11[%c0_42, %c0_43] : memref<256x128xf32, #tpu.memory_space<vmem>>, vector<256x128xf32>
    %cst_44 = arith.constant dense<0.000000e+00> : vector<8x128xf32>
    %59 = tpu.matmul %48, %58, %cst_44 {dimension_numbers = #tpu.dot_dimension_numbers<[1], [0], [0], [1], [0, 0, 1, 1], [], []>} : vector<8x256xf32>, vector<256x128xf32>, vector<8x128xf32> -> vector<8x128xf32>
    %c0_45 = arith.constant 0 : index
    %c0_46 = arith.constant 0 : index
    %60 = vector.load %arg14[%c0_45, %c0_46] : memref<8x128xf32, #tpu.memory_space<vmem>>, vector<8x128xf32>
    tpu.vector_store %arg14[%c0_45, %c0_46], %59 {strides = array<i32>} : memref<8x128xf32, #tpu.memory_space<vmem>>, vector<8x128xf32>,
    return
  }
  func.func @transform_0(%arg0: i32) -> (i32, i32) {
    %c0_i32 = arith.constant 0 : i32
    %c0_i32_0 = arith.constant 0 : i32
    %c0_i32_1 = arith.constant 0 : i32
    return %c0_i32, %c0_i32_0 : i32, i32
  }
  func.func @transform_1(%arg0: i32) -> (i32, i32, i32) {
    %c0_i32 = arith.constant 0 : i32
    %c0_i32_0 = arith.constant 0 : i32
    %c0_i32_1 = arith.constant 0 : i32
    %c0_i32_2 = arith.constant 0 : i32
    return %c0_i32, %c0_i32_0, %c0_i32_1 : i32, i32, i32
  }
  func.func @transform_2(%arg0: i32) -> (i32, i32) {
    %c0_i32 = arith.constant 0 : i32
    %c0_i32_0 = arith.constant 0 : i32
    %c0_i32_1 = arith.constant 0 : i32
    return %c0_i32, %c0_i32_0 : i32, i32
  }
  func.func @transform_3(%arg0: i32) -> (i32, i32) {
    %c0_i32 = arith.constant 0 : i32
    %c0_i32_0 = arith.constant 0 : i32
    %c0_i32_1 = arith.constant 0 : i32
    return %c0_i32, %c0_i32_0 : i32, i32
  }
  func.func @transform_4(%arg0: i32) -> (i32, i32) {
    %c0_i32 = arith.constant 0 : i32
    %c0_i32_0 = arith.constant 0 : i32
    %c0_i32_1 = arith.constant 0 : i32
    return %c0_i32, %c0_i32_0 : i32, i32
  }
  func.func @transform_5(%arg0: i32) -> (i32, i32) {
    %c0_i32 = arith.constant 0 : i32
    %c0_i32_0 = arith.constant 0 : i32
    %c0_i32_1 = arith.constant 0 : i32
    return %c0_i32, %c0_i32_0 : i32, i32
  }
  func.func @transform_6(%arg0: i32) -> (i32, i32) {
    %c0_i32 = arith.constant 0 : i32
    %c0_i32_0 = arith.constant 0 : i32
    %c0_i32_1 = arith.constant 0 : i32
    return %c0_i32, %c0_i32_0 : i32, i32
  }
  func.func @transform_7(%arg0: i32) -> (i32, i32) {
    %c0_i32 = arith.constant 0 : i32
    %c0_i32_0 = arith.constant 0 : i32
    %c0_i32_1 = arith.constant 0 : i32
    return %c0_i32, %c0_i32_0 : i32, i32
  }
  func.func @transform_8(%arg0: i32) -> (i32, i32) {
    %c0_i32 = arith.constant 0 : i32
    %c0_i32_0 = arith.constant 0 : i32
    %c0_i32_1 = arith.constant 0 : i32
    return %c0_i32, %c0_i32_0 : i32, i32
  }
  func.func @transform_9(%arg0: i32) -> (i32, i32) {
    %c0_i32 = arith.constant 0 : i32
    %c0_i32_0 = arith.constant 0 : i32
    %c0_i32_1 = arith.constant 0 : i32
    return %c0_i32, %c0_i32_0 : i32, i32
  }
  func.func @transform_10(%arg0: i32) -> (i32, i32) {
    %c0_i32 = arith.constant 0 : i32
    %c0_i32_0 = arith.constant 0 : i32
    %c0_i32_1 = arith.constant 0 : i32
    return %c0_i32, %c0_i32_0 : i32, i32
  }
  func.func @transform_11(%arg0: i32) -> (i32, i32) {
    %c0_i32 = arith.constant 0 : i32
    %c0_i32_0 = arith.constant 0 : i32
    %c0_i32_1 = arith.constant 0 : i32
    return %c0_i32, %c0_i32_0 : i32, i32
  }
  func.func @transform_12(%arg0: i32) -> (i32, i32) {
    %c0_i32 = arith.constant 0 : i32
    %c0_i32_0 = arith.constant 0 : i32
    %c0_i32_1 = arith.constant 0 : i32
    return %c0_i32, %c0_i32_0 : i32, i32
  }
  func.func @transform_13(%arg0: i32) -> (i32, i32) {
    %c0_i32 = arith.constant 0 : i32
    %c0_i32_0 = arith.constant 0 : i32
    %c0_i32_1 = arith.constant 0 : i32
    return %c0_i32, %c0_i32_0 : i32, i32
  }
}

module attributes {stable_mosaic.version = 11 : i64} {
  func.func @kernel(%arg0: i32, %arg1: memref<8x128xf32, #tpu.memory_space<vmem>>, %arg2: memref<3x128x128xbf16, #tpu.memory_space<vmem>>, %arg3: memref<1x128xf32, #tpu.memory_space<vmem>>, %arg4: memref<8x1xf32, #tpu.memory_space<vmem>>, %arg5: memref<8x1xf32, #tpu.memory_space<vmem>>, %arg6: memref<1x128xf32, #tpu.memory_space<vmem>>, %arg7: memref<1x128xf32, #tpu.memory_space<vmem>>, %arg8: memref<8x128xf32, #tpu.memory_space<vmem>>, %arg9: memref<4x8xf32, #tpu.memory_space<vmem>>, %arg10: memref<4x8xf32, #tpu.memory_space<vmem>>, %arg11: memref<128x64xf32, #tpu.memory_space<vmem>>, %arg12: memref<128x64xf32, #tpu.memory_space<vmem>>, %arg13: memref<4x64xf32, #tpu.memory_space<vmem>>, %arg14: memref<4x64xf32, #tpu.memory_space<vmem>>) attributes {dimension_semantics = [#tpu.dimension_semantics<arbitrary>], iteration_bounds = array<i64: 1>, scalar_prefetch = 0 : i64, scratch_operands = 0 : i64, tpu.core_type = #tpu.core_type<tc>, window_params = [{pipeline_mode = #tpu.pipeline_mode<synchronous>, transform_indices = @transform_0, window_bounds = array<i64: 8, 128>}, {pipeline_mode = #tpu.pipeline_mode<synchronous>, transform_indices = @transform_1, window_bounds = array<i64: 3, 128, 128>}, {pipeline_mode = #tpu.pipeline_mode<synchronous>, transform_indices = @transform_2, window_bounds = array<i64: 1, 128>}, {pipeline_mode = #tpu.pipeline_mode<synchronous>, transform_indices = @transform_3, window_bounds = array<i64: 8, 1>}, {pipeline_mode = #tpu.pipeline_mode<synchronous>, transform_indices = @transform_4, window_bounds = array<i64: 8, 1>}, {pipeline_mode = #tpu.pipeline_mode<synchronous>, transform_indices = @transform_5, window_bounds = array<i64: 1, 128>}, {pipeline_mode = #tpu.pipeline_mode<synchronous>, transform_indices = @transform_6, window_bounds = array<i64: 1, 128>}, {pipeline_mode = #tpu.pipeline_mode<synchronous>, transform_indices = @transform_7, window_bounds = array<i64: 8, 128>}, {pipeline_mode = #tpu.pipeline_mode<synchronous>, transform_indices = @transform_8, window_bounds = array<i64: 4, 8>}, {pipeline_mode = #tpu.pipeline_mode<synchronous>, transform_indices = @transform_9, window_bounds = array<i64: 4, 8>}, {pipeline_mode = #tpu.pipeline_mode<synchronous>, transform_indices = @transform_10, window_bounds = array<i64: 128, 64>}, {pipeline_mode = #tpu.pipeline_mode<synchronous>, transform_indices = @transform_11, window_bounds = array<i64: 128, 64>}, {pipeline_mode = #tpu.pipeline_mode<synchronous>, transform_indices = @transform_12, window_bounds = array<i64: 4, 64>}, {pipeline_mode = #tpu.pipeline_mode<synchronous>, transform_indices = @transform_13, window_bounds = array<i64: 4, 64>}]} {
    %c0 = arith.constant 0 : index
    %c0_0 = arith.constant 0 : index
    %0 = vector.load %arg1[%c0, %c0_0] : memref<8x128xf32, #tpu.memory_space<vmem>>, vector<8x128xf32>
    %c0_1 = arith.constant 0 : index
    %c0_2 = arith.constant 0 : index
    %1 = vector.load %arg6[%c0_1, %c0_2] : memref<1x128xf32, #tpu.memory_space<vmem>>, vector<1x128xf32>
    %2 = vector.broadcast %1 : vector<1x128xf32> to vector<8x128xf32>
    %3 = arith.mulf %0, %2 : vector<8x128xf32>
    %c0_3 = arith.constant 0 : index
    %c0_4 = arith.constant 0 : index
    %4 = vector.load %arg7[%c0_3, %c0_4] : memref<1x128xf32, #tpu.memory_space<vmem>>, vector<1x128xf32>
    %5 = vector.broadcast %4 : vector<1x128xf32> to vector<8x128xf32>
    %6 = arith.addf %3, %5 : vector<8x128xf32>
    %cst = arith.constant 0.000000e+00 : f32
    %7 = vector.broadcast %cst : f32 to vector<8x128xf32>
    %8 = arith.maximumf %6, %7 : vector<8x128xf32>
    %9 = arith.truncf %8 : vector<8x128xf32> to vector<8x128xbf16>
    %cst_5 = arith.constant 0.000000e+00 : bf16
    %10 = vector.broadcast %cst_5 : bf16 to vector<1x128xbf16>
    %11 = vector.extract_strided_slice %9 {offsets = [0, 0], sizes = [7, 128], strides = [1, 1]} : vector<8x128xbf16> to vector<7x128xbf16>
    %12 = tpu.concatenate %10, %11 in 0 : vector<1x128xbf16>, vector<7x128xbf16> -> vector<8x128xbf16>
    %13 = vector.extract_strided_slice %9 {offsets = [1, 0], sizes = [7, 128], strides = [1, 1]} : vector<8x128xbf16> to vector<7x128xbf16>
    %14 = tpu.concatenate %13, %10 in 0 : vector<7x128xbf16>, vector<1x128xbf16> -> vector<8x128xbf16>
    %c0_6 = arith.constant 0 : index
    %c0_7 = arith.constant 0 : index
    %15 = vector.load %arg4[%c0_6, %c0_7] : memref<8x1xf32, #tpu.memory_space<vmem>>, vector<8x1xf32>
    %cst_8 = arith.constant 0.000000e+00 : f32
    %16 = vector.broadcast %cst_8 : f32 to vector<8x1xf32>
    %17 = arith.cmpf ogt, %15, %16 : vector<8x1xf32>
    %cst_9 = arith.constant 0.000000e+00 : f32
    %18 = arith.truncf %cst_9 : f32 to bf16
    %19 = vector.shape_cast %17 : vector<8x1xi1> to vector<8x1xi1>
    %20 = vector.broadcast %19 : vector<8x1xi1> to vector<8x128xi1>
    %21 = vector.broadcast %18 : bf16 to vector<8x128xbf16>
    %22 = arith.select %20, %12, %21 : vector<8x128xi1>, vector<8x128xbf16>
    %c0_10 = arith.constant 0 : index
    %c0_11 = arith.constant 0 : index
    %23 = vector.load %arg5[%c0_10, %c0_11] : memref<8x1xf32, #tpu.memory_space<vmem>>, vector<8x1xf32>
    %cst_12 = arith.constant 0.000000e+00 : f32
    %24 = vector.broadcast %cst_12 : f32 to vector<8x1xf32>
    %25 = arith.cmpf ogt, %23, %24 : vector<8x1xf32>
    %cst_13 = arith.constant 0.000000e+00 : f32
    %26 = arith.truncf %cst_13 : f32 to bf16
    %27 = vector.shape_cast %25 : vector<8x1xi1> to vector<8x1xi1>
    %28 = vector.broadcast %27 : vector<8x1xi1> to vector<8x128xi1>
    %29 = vector.broadcast %26 : bf16 to vector<8x128xbf16>
    %30 = arith.select %28, %14, %29 : vector<8x128xi1>, vector<8x128xbf16>
    %c0_14 = arith.constant 0 : index
    %c0_15 = arith.constant 0 : index
    %c0_16 = arith.constant 0 : index
    %31 = vector.load %arg2[%c0_14, %c0_15, %c0_16] : memref<3x128x128xbf16, #tpu.memory_space<vmem>>, vector<1x128x128xbf16>
    %32 = vector.shape_cast %31 : vector<1x128x128xbf16> to vector<128x128xbf16>
    %cst_17 = arith.constant dense<0.000000e+00> : vector<8x128xf32>
    %33 = tpu.matmul %22, %32, %cst_17 {dimension_numbers = #tpu.dot_dimension_numbers<[1], [0], [0], [1], [0, 0, 1, 1], [], []>} : vector<8x128xbf16>, vector<128x128xbf16>, vector<8x128xf32> -> vector<8x128xf32>
    %c1 = arith.constant 1 : index
    %c0_18 = arith.constant 0 : index
    %c0_19 = arith.constant 0 : index
    %34 = vector.load %arg2[%c1, %c0_18, %c0_19] : memref<3x128x128xbf16, #tpu.memory_space<vmem>>, vector<1x128x128xbf16>
    %35 = vector.shape_cast %34 : vector<1x128x128xbf16> to vector<128x128xbf16>
    %cst_20 = arith.constant dense<0.000000e+00> : vector<8x128xf32>
    %36 = tpu.matmul %9, %35, %cst_20 {dimension_numbers = #tpu.dot_dimension_numbers<[1], [0], [0], [1], [0, 0, 1, 1], [], []>} : vector<8x128xbf16>, vector<128x128xbf16>, vector<8x128xf32> -> vector<8x128xf32>
    %37 = arith.addf %33, %36 : vector<8x128xf32>
    %c2 = arith.constant 2 : index
    %c0_21 = arith.constant 0 : index
    %c0_22 = arith.constant 0 : index
    %38 = vector.load %arg2[%c2, %c0_21, %c0_22] : memref<3x128x128xbf16, #tpu.memory_space<vmem>>, vector<1x128x128xbf16>
    %39 = vector.shape_cast %38 : vector<1x128x128xbf16> to vector<128x128xbf16>
    %cst_23 = arith.constant dense<0.000000e+00> : vector<8x128xf32>
    %40 = tpu.matmul %30, %39, %cst_23 {dimension_numbers = #tpu.dot_dimension_numbers<[1], [0], [0], [1], [0, 0, 1, 1], [], []>} : vector<8x128xbf16>, vector<128x128xbf16>, vector<8x128xf32> -> vector<8x128xf32>
    %41 = arith.addf %37, %40 : vector<8x128xf32>
    %c0_24 = arith.constant 0 : index
    %c0_25 = arith.constant 0 : index
    %42 = vector.load %arg3[%c0_24, %c0_25] : memref<1x128xf32, #tpu.memory_space<vmem>>, vector<1x128xf32>
    %43 = vector.broadcast %42 : vector<1x128xf32> to vector<8x128xf32>
    %44 = arith.addf %41, %43 : vector<8x128xf32>
    %c0_26 = arith.constant 0 : index
    %c0_27 = arith.constant 0 : index
    %45 = vector.load %arg8[%c0_26, %c0_27] : memref<8x128xf32, #tpu.memory_space<vmem>>, vector<8x128xf32>
    %46 = arith.addf %44, %45 : vector<8x128xf32>
    %c0_28 = arith.constant 0 : index
    %c0_29 = arith.constant 0 : index
    %47 = vector.load %arg9[%c0_28, %c0_29] : memref<4x8xf32, #tpu.memory_space<vmem>>, vector<4x8xf32>
    %cst_30 = arith.constant dense<0.000000e+00> : vector<4x128xf32>
    %48 = tpu.matmul %47, %46, %cst_30 {dimension_numbers = #tpu.dot_dimension_numbers<[1], [0], [0], [1], [0, 0, 1, 1], [], []>} : vector<4x8xf32>, vector<8x128xf32>, vector<4x128xf32> -> vector<4x128xf32>
    %c0_31 = arith.constant 0 : index
    %c0_32 = arith.constant 0 : index
    %49 = vector.load %arg10[%c0_31, %c0_32] : memref<4x8xf32, #tpu.memory_space<vmem>>, vector<4x8xf32>
    %cst_33 = arith.constant dense<0.000000e+00> : vector<4x128xf32>
    %50 = tpu.matmul %49, %46, %cst_33 {dimension_numbers = #tpu.dot_dimension_numbers<[1], [0], [0], [1], [0, 0, 1, 1], [], []>} : vector<4x8xf32>, vector<8x128xf32>, vector<4x128xf32> -> vector<4x128xf32>
    %51 = arith.maximumf %48, %50 : vector<4x128xf32>
    %c0_34 = arith.constant 0 : index
    %c0_35 = arith.constant 0 : index
    %52 = vector.load %arg11[%c0_34, %c0_35] : memref<128x64xf32, #tpu.memory_space<vmem>>, vector<128x64xf32>
    %cst_36 = arith.constant dense<0.000000e+00> : vector<4x64xf32>
    %53 = tpu.matmul %51, %52, %cst_36 {dimension_numbers = #tpu.dot_dimension_numbers<[1], [0], [0], [1], [0, 0, 1, 1], [], []>} : vector<4x128xf32>, vector<128x64xf32>, vector<4x64xf32> -> vector<4x64xf32>
    %c0_37 = arith.constant 0 : index
    %c0_38 = arith.constant 0 : index
    %54 = vector.load %arg12[%c0_37, %c0_38] : memref<128x64xf32, #tpu.memory_space<vmem>>, vector<128x64xf32>
    %cst_39 = arith.constant dense<0.000000e+00> : vector<4x64xf32>
    %55 = tpu.matmul %51, %54, %cst_39 {dimension_numbers = #tpu.dot_dimension_numbers<[1], [0], [0], [1], [0, 0, 1, 1], [], []>} : vector<4x128xf32>, vector<128x64xf32>, vector<4x64xf32> -> vector<4x64xf32>
    %56 = arith.maximumf %53, %55 : vector<4x64xf32>
    %c0_40 = arith.constant 0 : index
    %c0_41 = arith.constant 0 : index
    %57 = vector.load %arg13[%c0_40, %c0_41] : memref<4x64xf32, #tpu.memory_space<vmem>>, vector<4x64xf32>
    tpu.vector_store %arg13[%c0_40, %c0_41], %56 {strides = array<i32>} : memref<4x64xf32, #tpu.memory_space<vmem>>, vector<4x64xf32>,
    %c0_42 = arith.constant 0 : index
    %c0_43 = arith.constant 0 : index
    %58 = vector.load %arg11[%c0_42, %c0_43] : memref<128x64xf32, #tpu.memory_space<vmem>>, vector<128x64xf32>
    %cst_44 = arith.constant dense<0.000000e+00> : vector<4x64xf32>
    %59 = tpu.matmul %48, %58, %cst_44 {dimension_numbers = #tpu.dot_dimension_numbers<[1], [0], [0], [1], [0, 0, 1, 1], [], []>} : vector<4x128xf32>, vector<128x64xf32>, vector<4x64xf32> -> vector<4x64xf32>
    %c0_45 = arith.constant 0 : index
    %c0_46 = arith.constant 0 : index
    %60 = vector.load %arg14[%c0_45, %c0_46] : memref<4x64xf32, #tpu.memory_space<vmem>>, vector<4x64xf32>
    tpu.vector_store %arg14[%c0_45, %c0_46], %59 {strides = array<i32>} : memref<4x64xf32, #tpu.memory_space<vmem>>, vector<4x64xf32>,
    return
  }
  func.func @transform_0(%arg0: i32) -> (i32, i32) {
    %c0_i32 = arith.constant 0 : i32
    %c0_i32_0 = arith.constant 0 : i32
    %c0_i32_1 = arith.constant 0 : i32
    return %c0_i32, %c0_i32_0 : i32, i32
  }
  func.func @transform_1(%arg0: i32) -> (i32, i32, i32) {
    %c0_i32 = arith.constant 0 : i32
    %c0_i32_0 = arith.constant 0 : i32
    %c0_i32_1 = arith.constant 0 : i32
    %c0_i32_2 = arith.constant 0 : i32
    return %c0_i32, %c0_i32_0, %c0_i32_1 : i32, i32, i32
  }
  func.func @transform_2(%arg0: i32) -> (i32, i32) {
    %c0_i32 = arith.constant 0 : i32
    %c0_i32_0 = arith.constant 0 : i32
    %c0_i32_1 = arith.constant 0 : i32
    return %c0_i32, %c0_i32_0 : i32, i32
  }
  func.func @transform_3(%arg0: i32) -> (i32, i32) {
    %c0_i32 = arith.constant 0 : i32
    %c0_i32_0 = arith.constant 0 : i32
    %c0_i32_1 = arith.constant 0 : i32
    return %c0_i32, %c0_i32_0 : i32, i32
  }
  func.func @transform_4(%arg0: i32) -> (i32, i32) {
    %c0_i32 = arith.constant 0 : i32
    %c0_i32_0 = arith.constant 0 : i32
    %c0_i32_1 = arith.constant 0 : i32
    return %c0_i32, %c0_i32_0 : i32, i32
  }
  func.func @transform_5(%arg0: i32) -> (i32, i32) {
    %c0_i32 = arith.constant 0 : i32
    %c0_i32_0 = arith.constant 0 : i32
    %c0_i32_1 = arith.constant 0 : i32
    return %c0_i32, %c0_i32_0 : i32, i32
  }
  func.func @transform_6(%arg0: i32) -> (i32, i32) {
    %c0_i32 = arith.constant 0 : i32
    %c0_i32_0 = arith.constant 0 : i32
    %c0_i32_1 = arith.constant 0 : i32
    return %c0_i32, %c0_i32_0 : i32, i32
  }
  func.func @transform_7(%arg0: i32) -> (i32, i32) {
    %c0_i32 = arith.constant 0 : i32
    %c0_i32_0 = arith.constant 0 : i32
    %c0_i32_1 = arith.constant 0 : i32
    return %c0_i32, %c0_i32_0 : i32, i32
  }
  func.func @transform_8(%arg0: i32) -> (i32, i32) {
    %c0_i32 = arith.constant 0 : i32
    %c0_i32_0 = arith.constant 0 : i32
    %c0_i32_1 = arith.constant 0 : i32
    return %c0_i32, %c0_i32_0 : i32, i32
  }
  func.func @transform_9(%arg0: i32) -> (i32, i32) {
    %c0_i32 = arith.constant 0 : i32
    %c0_i32_0 = arith.constant 0 : i32
    %c0_i32_1 = arith.constant 0 : i32
    return %c0_i32, %c0_i32_0 : i32, i32
  }
  func.func @transform_10(%arg0: i32) -> (i32, i32) {
    %c0_i32 = arith.constant 0 : i32
    %c0_i32_0 = arith.constant 0 : i32
    %c0_i32_1 = arith.constant 0 : i32
    return %c0_i32, %c0_i32_0 : i32, i32
  }
  func.func @transform_11(%arg0: i32) -> (i32, i32) {
    %c0_i32 = arith.constant 0 : i32
    %c0_i32_0 = arith.constant 0 : i32
    %c0_i32_1 = arith.constant 0 : i32
    return %c0_i32, %c0_i32_0 : i32, i32
  }
  func.func @transform_12(%arg0: i32) -> (i32, i32) {
    %c0_i32 = arith.constant 0 : i32
    %c0_i32_0 = arith.constant 0 : i32
    %c0_i32_1 = arith.constant 0 : i32
    return %c0_i32, %c0_i32_0 : i32, i32
  }
  func.func @transform_13(%arg0: i32) -> (i32, i32) {
    %c0_i32 = arith.constant 0 : i32
    %c0_i32_0 = arith.constant 0 : i32
    %c0_i32_1 = arith.constant 0 : i32
    return %c0_i32, %c0_i32_0 : i32, i32
  }
}

module attributes {stable_mosaic.version = 11 : i64} {
  func.func @kernel(%arg0: i32, %arg1: memref<4x64xf32, #tpu.memory_space<vmem>>, %arg2: memref<3x64x64xbf16, #tpu.memory_space<vmem>>, %arg3: memref<1x64xf32, #tpu.memory_space<vmem>>, %arg4: memref<4x1xf32, #tpu.memory_space<vmem>>, %arg5: memref<4x1xf32, #tpu.memory_space<vmem>>, %arg6: memref<1x64xf32, #tpu.memory_space<vmem>>, %arg7: memref<1x64xf32, #tpu.memory_space<vmem>>, %arg8: memref<4x64xf32, #tpu.memory_space<vmem>>, %arg9: memref<4x64xf32, #tpu.memory_space<vmem>>) attributes {dimension_semantics = [#tpu.dimension_semantics<arbitrary>], iteration_bounds = array<i64: 1>, scalar_prefetch = 0 : i64, scratch_operands = 0 : i64, tpu.core_type = #tpu.core_type<tc>, window_params = [{pipeline_mode = #tpu.pipeline_mode<synchronous>, transform_indices = @transform_0, window_bounds = array<i64: 4, 64>}, {pipeline_mode = #tpu.pipeline_mode<synchronous>, transform_indices = @transform_1, window_bounds = array<i64: 3, 64, 64>}, {pipeline_mode = #tpu.pipeline_mode<synchronous>, transform_indices = @transform_2, window_bounds = array<i64: 1, 64>}, {pipeline_mode = #tpu.pipeline_mode<synchronous>, transform_indices = @transform_3, window_bounds = array<i64: 4, 1>}, {pipeline_mode = #tpu.pipeline_mode<synchronous>, transform_indices = @transform_4, window_bounds = array<i64: 4, 1>}, {pipeline_mode = #tpu.pipeline_mode<synchronous>, transform_indices = @transform_5, window_bounds = array<i64: 1, 64>}, {pipeline_mode = #tpu.pipeline_mode<synchronous>, transform_indices = @transform_6, window_bounds = array<i64: 1, 64>}, {pipeline_mode = #tpu.pipeline_mode<synchronous>, transform_indices = @transform_7, window_bounds = array<i64: 4, 64>}, {pipeline_mode = #tpu.pipeline_mode<synchronous>, transform_indices = @transform_8, window_bounds = array<i64: 4, 64>}]} {
    %c0 = arith.constant 0 : index
    %c0_0 = arith.constant 0 : index
    %0 = vector.load %arg1[%c0, %c0_0] : memref<4x64xf32, #tpu.memory_space<vmem>>, vector<4x64xf32>
    %c0_1 = arith.constant 0 : index
    %c0_2 = arith.constant 0 : index
    %1 = vector.load %arg6[%c0_1, %c0_2] : memref<1x64xf32, #tpu.memory_space<vmem>>, vector<1x64xf32>
    %2 = vector.broadcast %1 : vector<1x64xf32> to vector<4x64xf32>
    %3 = arith.mulf %0, %2 : vector<4x64xf32>
    %c0_3 = arith.constant 0 : index
    %c0_4 = arith.constant 0 : index
    %4 = vector.load %arg7[%c0_3, %c0_4] : memref<1x64xf32, #tpu.memory_space<vmem>>, vector<1x64xf32>
    %5 = vector.broadcast %4 : vector<1x64xf32> to vector<4x64xf32>
    %6 = arith.addf %3, %5 : vector<4x64xf32>
    %cst = arith.constant 0.000000e+00 : f32
    %7 = vector.broadcast %cst : f32 to vector<4x64xf32>
    %8 = arith.maximumf %6, %7 : vector<4x64xf32>
    %9 = arith.truncf %8 : vector<4x64xf32> to vector<4x64xbf16>
    %cst_5 = arith.constant 0.000000e+00 : bf16
    %10 = vector.broadcast %cst_5 : bf16 to vector<1x64xbf16>
    %11 = vector.extract_strided_slice %9 {offsets = [0, 0], sizes = [3, 64], strides = [1, 1]} : vector<4x64xbf16> to vector<3x64xbf16>
    %12 = tpu.concatenate %10, %11 in 0 : vector<1x64xbf16>, vector<3x64xbf16> -> vector<4x64xbf16>
    %13 = vector.extract_strided_slice %9 {offsets = [1, 0], sizes = [3, 64], strides = [1, 1]} : vector<4x64xbf16> to vector<3x64xbf16>
    %14 = tpu.concatenate %13, %10 in 0 : vector<3x64xbf16>, vector<1x64xbf16> -> vector<4x64xbf16>
    %c0_6 = arith.constant 0 : index
    %c0_7 = arith.constant 0 : index
    %15 = vector.load %arg4[%c0_6, %c0_7] : memref<4x1xf32, #tpu.memory_space<vmem>>, vector<4x1xf32>
    %cst_8 = arith.constant 0.000000e+00 : f32
    %16 = vector.broadcast %cst_8 : f32 to vector<4x1xf32>
    %17 = arith.cmpf ogt, %15, %16 : vector<4x1xf32>
    %cst_9 = arith.constant 0.000000e+00 : f32
    %18 = arith.truncf %cst_9 : f32 to bf16
    %19 = vector.shape_cast %17 : vector<4x1xi1> to vector<4x1xi1>
    %20 = vector.broadcast %19 : vector<4x1xi1> to vector<4x64xi1>
    %21 = vector.broadcast %18 : bf16 to vector<4x64xbf16>
    %22 = arith.select %20, %12, %21 : vector<4x64xi1>, vector<4x64xbf16>
    %c0_10 = arith.constant 0 : index
    %c0_11 = arith.constant 0 : index
    %23 = vector.load %arg5[%c0_10, %c0_11] : memref<4x1xf32, #tpu.memory_space<vmem>>, vector<4x1xf32>
    %cst_12 = arith.constant 0.000000e+00 : f32
    %24 = vector.broadcast %cst_12 : f32 to vector<4x1xf32>
    %25 = arith.cmpf ogt, %23, %24 : vector<4x1xf32>
    %cst_13 = arith.constant 0.000000e+00 : f32
    %26 = arith.truncf %cst_13 : f32 to bf16
    %27 = vector.shape_cast %25 : vector<4x1xi1> to vector<4x1xi1>
    %28 = vector.broadcast %27 : vector<4x1xi1> to vector<4x64xi1>
    %29 = vector.broadcast %26 : bf16 to vector<4x64xbf16>
    %30 = arith.select %28, %14, %29 : vector<4x64xi1>, vector<4x64xbf16>
    %c0_14 = arith.constant 0 : index
    %c0_15 = arith.constant 0 : index
    %c0_16 = arith.constant 0 : index
    %31 = vector.load %arg2[%c0_14, %c0_15, %c0_16] : memref<3x64x64xbf16, #tpu.memory_space<vmem>>, vector<1x64x64xbf16>
    %32 = vector.shape_cast %31 : vector<1x64x64xbf16> to vector<64x64xbf16>
    %cst_17 = arith.constant dense<0.000000e+00> : vector<4x64xf32>
    %33 = tpu.matmul %22, %32, %cst_17 {dimension_numbers = #tpu.dot_dimension_numbers<[1], [0], [0], [1], [0, 0, 1, 1], [], []>} : vector<4x64xbf16>, vector<64x64xbf16>, vector<4x64xf32> -> vector<4x64xf32>
    %c1 = arith.constant 1 : index
    %c0_18 = arith.constant 0 : index
    %c0_19 = arith.constant 0 : index
    %34 = vector.load %arg2[%c1, %c0_18, %c0_19] : memref<3x64x64xbf16, #tpu.memory_space<vmem>>, vector<1x64x64xbf16>
    %35 = vector.shape_cast %34 : vector<1x64x64xbf16> to vector<64x64xbf16>
    %cst_20 = arith.constant dense<0.000000e+00> : vector<4x64xf32>
    %36 = tpu.matmul %9, %35, %cst_20 {dimension_numbers = #tpu.dot_dimension_numbers<[1], [0], [0], [1], [0, 0, 1, 1], [], []>} : vector<4x64xbf16>, vector<64x64xbf16>, vector<4x64xf32> -> vector<4x64xf32>
    %37 = arith.addf %33, %36 : vector<4x64xf32>
    %c2 = arith.constant 2 : index
    %c0_21 = arith.constant 0 : index
    %c0_22 = arith.constant 0 : index
    %38 = vector.load %arg2[%c2, %c0_21, %c0_22] : memref<3x64x64xbf16, #tpu.memory_space<vmem>>, vector<1x64x64xbf16>
    %39 = vector.shape_cast %38 : vector<1x64x64xbf16> to vector<64x64xbf16>
    %cst_23 = arith.constant dense<0.000000e+00> : vector<4x64xf32>
    %40 = tpu.matmul %30, %39, %cst_23 {dimension_numbers = #tpu.dot_dimension_numbers<[1], [0], [0], [1], [0, 0, 1, 1], [], []>} : vector<4x64xbf16>, vector<64x64xbf16>, vector<4x64xf32> -> vector<4x64xf32>
    %41 = arith.addf %37, %40 : vector<4x64xf32>
    %c0_24 = arith.constant 0 : index
    %c0_25 = arith.constant 0 : index
    %42 = vector.load %arg3[%c0_24, %c0_25] : memref<1x64xf32, #tpu.memory_space<vmem>>, vector<1x64xf32>
    %43 = vector.broadcast %42 : vector<1x64xf32> to vector<4x64xf32>
    %44 = arith.addf %41, %43 : vector<4x64xf32>
    %c0_26 = arith.constant 0 : index
    %c0_27 = arith.constant 0 : index
    %45 = vector.load %arg8[%c0_26, %c0_27] : memref<4x64xf32, #tpu.memory_space<vmem>>, vector<4x64xf32>
    %46 = arith.addf %44, %45 : vector<4x64xf32>
    %c0_28 = arith.constant 0 : index
    %c0_29 = arith.constant 0 : index
    %47 = vector.load %arg9[%c0_28, %c0_29] : memref<4x64xf32, #tpu.memory_space<vmem>>, vector<4x64xf32>
    tpu.vector_store %arg9[%c0_28, %c0_29], %46 {strides = array<i32>} : memref<4x64xf32, #tpu.memory_space<vmem>>, vector<4x64xf32>,
    return
  }
  func.func @transform_0(%arg0: i32) -> (i32, i32) {
    %c0_i32 = arith.constant 0 : i32
    %c0_i32_0 = arith.constant 0 : i32
    %c0_i32_1 = arith.constant 0 : i32
    return %c0_i32, %c0_i32_0 : i32, i32
  }
  func.func @transform_1(%arg0: i32) -> (i32, i32, i32) {
    %c0_i32 = arith.constant 0 : i32
    %c0_i32_0 = arith.constant 0 : i32
    %c0_i32_1 = arith.constant 0 : i32
    %c0_i32_2 = arith.constant 0 : i32
    return %c0_i32, %c0_i32_0, %c0_i32_1 : i32, i32, i32
  }
  func.func @transform_2(%arg0: i32) -> (i32, i32) {
    %c0_i32 = arith.constant 0 : i32
    %c0_i32_0 = arith.constant 0 : i32
    %c0_i32_1 = arith.constant 0 : i32
    return %c0_i32, %c0_i32_0 : i32, i32
  }
  func.func @transform_3(%arg0: i32) -> (i32, i32) {
    %c0_i32 = arith.constant 0 : i32
    %c0_i32_0 = arith.constant 0 : i32
    %c0_i32_1 = arith.constant 0 : i32
    return %c0_i32, %c0_i32_0 : i32, i32
  }
  func.func @transform_4(%arg0: i32) -> (i32, i32) {
    %c0_i32 = arith.constant 0 : i32
    %c0_i32_0 = arith.constant 0 : i32
    %c0_i32_1 = arith.constant 0 : i32
    return %c0_i32, %c0_i32_0 : i32, i32
  }
  func.func @transform_5(%arg0: i32) -> (i32, i32) {
    %c0_i32 = arith.constant 0 : i32
    %c0_i32_0 = arith.constant 0 : i32
    %c0_i32_1 = arith.constant 0 : i32
    return %c0_i32, %c0_i32_0 : i32, i32
  }
  func.func @transform_6(%arg0: i32) -> (i32, i32) {
    %c0_i32 = arith.constant 0 : i32
    %c0_i32_0 = arith.constant 0 : i32
    %c0_i32_1 = arith.constant 0 : i32
    return %c0_i32, %c0_i32_0 : i32, i32
  }
  func.func @transform_7(%arg0: i32) -> (i32, i32) {
    %c0_i32 = arith.constant 0 : i32
    %c0_i32_0 = arith.constant 0 : i32
    %c0_i32_1 = arith.constant 0 : i32
    return %c0_i32, %c0_i32_0 : i32, i32
  }
  func.func @transform_8(%arg0: i32) -> (i32, i32) {
    %c0_i32 = arith.constant 0 : i32
    %c0_i32_0 = arith.constant 0 : i32
    %c0_i32_1 = arith.constant 0 : i32
    return %c0_i32, %c0_i32_0 : i32, i32
  }
}

module attributes {stable_mosaic.version = 11 : i64} {
  func.func @kernel(%arg0: i32, %arg1: memref<4x64xf32, #tpu.memory_space<vmem>>, %arg2: memref<3x64x2xbf16, #tpu.memory_space<vmem>>, %arg3: memref<1x2xf32, #tpu.memory_space<vmem>>, %arg4: memref<4x1xf32, #tpu.memory_space<vmem>>, %arg5: memref<4x1xf32, #tpu.memory_space<vmem>>, %arg6: memref<4x2xf32, #tpu.memory_space<vmem>>) attributes {dimension_semantics = [#tpu.dimension_semantics<arbitrary>], iteration_bounds = array<i64: 1>, scalar_prefetch = 0 : i64, scratch_operands = 0 : i64, tpu.core_type = #tpu.core_type<tc>, window_params = [{pipeline_mode = #tpu.pipeline_mode<synchronous>, transform_indices = @transform_0, window_bounds = array<i64: 4, 64>}, {pipeline_mode = #tpu.pipeline_mode<synchronous>, transform_indices = @transform_1, window_bounds = array<i64: 3, 64, 2>}, {pipeline_mode = #tpu.pipeline_mode<synchronous>, transform_indices = @transform_2, window_bounds = array<i64: 1, 2>}, {pipeline_mode = #tpu.pipeline_mode<synchronous>, transform_indices = @transform_3, window_bounds = array<i64: 4, 1>}, {pipeline_mode = #tpu.pipeline_mode<synchronous>, transform_indices = @transform_4, window_bounds = array<i64: 4, 1>}, {pipeline_mode = #tpu.pipeline_mode<synchronous>, transform_indices = @transform_5, window_bounds = array<i64: 4, 2>}]} {
    %c0 = arith.constant 0 : index
    %c0_0 = arith.constant 0 : index
    %0 = vector.load %arg1[%c0, %c0_0] : memref<4x64xf32, #tpu.memory_space<vmem>>, vector<4x64xf32>
    %cst = arith.constant 0.000000e+00 : f32
    %1 = vector.broadcast %cst : f32 to vector<4x64xf32>
    %2 = arith.maximumf %0, %1 : vector<4x64xf32>
    %3 = arith.truncf %2 : vector<4x64xf32> to vector<4x64xbf16>
    %cst_1 = arith.constant 0.000000e+00 : bf16
    %4 = vector.broadcast %cst_1 : bf16 to vector<1x64xbf16>
    %5 = vector.extract_strided_slice %3 {offsets = [0, 0], sizes = [3, 64], strides = [1, 1]} : vector<4x64xbf16> to vector<3x64xbf16>
    %6 = tpu.concatenate %4, %5 in 0 : vector<1x64xbf16>, vector<3x64xbf16> -> vector<4x64xbf16>
    %7 = vector.extract_strided_slice %3 {offsets = [1, 0], sizes = [3, 64], strides = [1, 1]} : vector<4x64xbf16> to vector<3x64xbf16>
    %8 = tpu.concatenate %7, %4 in 0 : vector<3x64xbf16>, vector<1x64xbf16> -> vector<4x64xbf16>
    %c0_2 = arith.constant 0 : index
    %c0_3 = arith.constant 0 : index
    %9 = vector.load %arg4[%c0_2, %c0_3] : memref<4x1xf32, #tpu.memory_space<vmem>>, vector<4x1xf32>
    %cst_4 = arith.constant 0.000000e+00 : f32
    %10 = vector.broadcast %cst_4 : f32 to vector<4x1xf32>
    %11 = arith.cmpf ogt, %9, %10 : vector<4x1xf32>
    %cst_5 = arith.constant 0.000000e+00 : f32
    %12 = arith.truncf %cst_5 : f32 to bf16
    %13 = vector.shape_cast %11 : vector<4x1xi1> to vector<4x1xi1>
    %14 = vector.broadcast %13 : vector<4x1xi1> to vector<4x64xi1>
    %15 = vector.broadcast %12 : bf16 to vector<4x64xbf16>
    %16 = arith.select %14, %6, %15 : vector<4x64xi1>, vector<4x64xbf16>
    %c0_6 = arith.constant 0 : index
    %c0_7 = arith.constant 0 : index
    %17 = vector.load %arg5[%c0_6, %c0_7] : memref<4x1xf32, #tpu.memory_space<vmem>>, vector<4x1xf32>
    %cst_8 = arith.constant 0.000000e+00 : f32
    %18 = vector.broadcast %cst_8 : f32 to vector<4x1xf32>
    %19 = arith.cmpf ogt, %17, %18 : vector<4x1xf32>
    %cst_9 = arith.constant 0.000000e+00 : f32
    %20 = arith.truncf %cst_9 : f32 to bf16
    %21 = vector.shape_cast %19 : vector<4x1xi1> to vector<4x1xi1>
    %22 = vector.broadcast %21 : vector<4x1xi1> to vector<4x64xi1>
    %23 = vector.broadcast %20 : bf16 to vector<4x64xbf16>
    %24 = arith.select %22, %8, %23 : vector<4x64xi1>, vector<4x64xbf16>
    %c0_10 = arith.constant 0 : index
    %c0_11 = arith.constant 0 : index
    %c0_12 = arith.constant 0 : index
    %25 = vector.load %arg2[%c0_10, %c0_11, %c0_12] : memref<3x64x2xbf16, #tpu.memory_space<vmem>>, vector<1x64x2xbf16>
    %26 = vector.shape_cast %25 : vector<1x64x2xbf16> to vector<64x2xbf16>
    %cst_13 = arith.constant dense<0.000000e+00> : vector<4x2xf32>
    %27 = tpu.matmul %16, %26, %cst_13 {dimension_numbers = #tpu.dot_dimension_numbers<[1], [0], [0], [1], [0, 0, 1, 1], [], []>} : vector<4x64xbf16>, vector<64x2xbf16>, vector<4x2xf32> -> vector<4x2xf32>
    %c1 = arith.constant 1 : index
    %c0_14 = arith.constant 0 : index
    %c0_15 = arith.constant 0 : index
    %28 = vector.load %arg2[%c1, %c0_14, %c0_15] : memref<3x64x2xbf16, #tpu.memory_space<vmem>>, vector<1x64x2xbf16>
    %29 = vector.shape_cast %28 : vector<1x64x2xbf16> to vector<64x2xbf16>
    %cst_16 = arith.constant dense<0.000000e+00> : vector<4x2xf32>
    %30 = tpu.matmul %3, %29, %cst_16 {dimension_numbers = #tpu.dot_dimension_numbers<[1], [0], [0], [1], [0, 0, 1, 1], [], []>} : vector<4x64xbf16>, vector<64x2xbf16>, vector<4x2xf32> -> vector<4x2xf32>
    %31 = arith.addf %27, %30 : vector<4x2xf32>
    %c2 = arith.constant 2 : index
    %c0_17 = arith.constant 0 : index
    %c0_18 = arith.constant 0 : index
    %32 = vector.load %arg2[%c2, %c0_17, %c0_18] : memref<3x64x2xbf16, #tpu.memory_space<vmem>>, vector<1x64x2xbf16>
    %33 = vector.shape_cast %32 : vector<1x64x2xbf16> to vector<64x2xbf16>
    %cst_19 = arith.constant dense<0.000000e+00> : vector<4x2xf32>
    %34 = tpu.matmul %24, %33, %cst_19 {dimension_numbers = #tpu.dot_dimension_numbers<[1], [0], [0], [1], [0, 0, 1, 1], [], []>} : vector<4x64xbf16>, vector<64x2xbf16>, vector<4x2xf32> -> vector<4x2xf32>
    %35 = arith.addf %31, %34 : vector<4x2xf32>
    %c0_20 = arith.constant 0 : index
    %c0_21 = arith.constant 0 : index
    %36 = vector.load %arg3[%c0_20, %c0_21] : memref<1x2xf32, #tpu.memory_space<vmem>>, vector<1x2xf32>
    %37 = vector.broadcast %36 : vector<1x2xf32> to vector<4x2xf32>
    %38 = arith.addf %35, %37 : vector<4x2xf32>
    %39 = arith.negf %38 : vector<4x2xf32>
    %40 = math.exp %39 : vector<4x2xf32>
    %cst_22 = arith.constant 1.000000e+00 : f32
    %41 = vector.broadcast %cst_22 : f32 to vector<4x2xf32>
    %42 = arith.addf %41, %40 : vector<4x2xf32>
    %43 = arith.divf %41, %42 : vector<4x2xf32>
    %c0_23 = arith.constant 0 : index
    %c0_24 = arith.constant 0 : index
    %44 = vector.load %arg6[%c0_23, %c0_24] : memref<4x2xf32, #tpu.memory_space<vmem>>, vector<4x2xf32>
    tpu.vector_store %arg6[%c0_23, %c0_24], %43 {strides = array<i32>} : memref<4x2xf32, #tpu.memory_space<vmem>>, vector<4x2xf32>,
    return
  }
  func.func @transform_0(%arg0: i32) -> (i32, i32) {
    %c0_i32 = arith.constant 0 : i32
    %c0_i32_0 = arith.constant 0 : i32
    %c0_i32_1 = arith.constant 0 : i32
    return %c0_i32, %c0_i32_0 : i32, i32
  }
  func.func @transform_1(%arg0: i32) -> (i32, i32, i32) {
    %c0_i32 = arith.constant 0 : i32
    %c0_i32_0 = arith.constant 0 : i32
    %c0_i32_1 = arith.constant 0 : i32
    %c0_i32_2 = arith.constant 0 : i32
    return %c0_i32, %c0_i32_0, %c0_i32_1 : i32, i32, i32
  }
  func.func @transform_2(%arg0: i32) -> (i32, i32) {
    %c0_i32 = arith.constant 0 : i32
    %c0_i32_0 = arith.constant 0 : i32
    %c0_i32_1 = arith.constant 0 : i32
    return %c0_i32, %c0_i32_0 : i32, i32
  }
  func.func @transform_3(%arg0: i32) -> (i32, i32) {
    %c0_i32 = arith.constant 0 : i32
    %c0_i32_0 = arith.constant 0 : i32
    %c0_i32_1 = arith.constant 0 : i32
    return %c0_i32, %c0_i32_0 : i32, i32
  }
  func.func @transform_4(%arg0: i32) -> (i32, i32) {
    %c0_i32 = arith.constant 0 : i32
    %c0_i32_0 = arith.constant 0 : i32
    %c0_i32_1 = arith.constant 0 : i32
    return %c0_i32, %c0_i32_0 : i32, i32
  }
  func.func @transform_5(%arg0: i32) -> (i32, i32) {
    %c0_i32 = arith.constant 0 : i32
    %c0_i32_0 = arith.constant 0 : i32
    %c0_i32_1 = arith.constant 0 : i32
    return %c0_i32, %c0_i32_0 : i32, i32
  }
}

module attributes {stable_mosaic.version = 11 : i64} {
  func.func @kernel(%arg0: i32, %arg1: memref<4x2xf32, #tpu.memory_space<vmem>>, %arg2: memref<3x2x64xbf16, #tpu.memory_space<vmem>>, %arg3: memref<1x64xf32, #tpu.memory_space<vmem>>, %arg4: memref<4x1xf32, #tpu.memory_space<vmem>>, %arg5: memref<4x1xf32, #tpu.memory_space<vmem>>, %arg6: memref<4x64xf32, #tpu.memory_space<vmem>>) attributes {dimension_semantics = [#tpu.dimension_semantics<arbitrary>], iteration_bounds = array<i64: 1>, scalar_prefetch = 0 : i64, scratch_operands = 0 : i64, tpu.core_type = #tpu.core_type<tc>, window_params = [{pipeline_mode = #tpu.pipeline_mode<synchronous>, transform_indices = @transform_0, window_bounds = array<i64: 4, 2>}, {pipeline_mode = #tpu.pipeline_mode<synchronous>, transform_indices = @transform_1, window_bounds = array<i64: 3, 2, 64>}, {pipeline_mode = #tpu.pipeline_mode<synchronous>, transform_indices = @transform_2, window_bounds = array<i64: 1, 64>}, {pipeline_mode = #tpu.pipeline_mode<synchronous>, transform_indices = @transform_3, window_bounds = array<i64: 4, 1>}, {pipeline_mode = #tpu.pipeline_mode<synchronous>, transform_indices = @transform_4, window_bounds = array<i64: 4, 1>}, {pipeline_mode = #tpu.pipeline_mode<synchronous>, transform_indices = @transform_5, window_bounds = array<i64: 4, 64>}]} {
    %c0 = arith.constant 0 : index
    %c0_0 = arith.constant 0 : index
    %0 = vector.load %arg1[%c0, %c0_0] : memref<4x2xf32, #tpu.memory_space<vmem>>, vector<4x2xf32>
    %1 = arith.truncf %0 : vector<4x2xf32> to vector<4x2xbf16>
    %cst = arith.constant 0.000000e+00 : bf16
    %2 = vector.broadcast %cst : bf16 to vector<1x2xbf16>
    %3 = vector.extract_strided_slice %1 {offsets = [0, 0], sizes = [3, 2], strides = [1, 1]} : vector<4x2xbf16> to vector<3x2xbf16>
    %4 = tpu.concatenate %2, %3 in 0 : vector<1x2xbf16>, vector<3x2xbf16> -> vector<4x2xbf16>
    %5 = vector.extract_strided_slice %1 {offsets = [1, 0], sizes = [3, 2], strides = [1, 1]} : vector<4x2xbf16> to vector<3x2xbf16>
    %6 = tpu.concatenate %5, %2 in 0 : vector<3x2xbf16>, vector<1x2xbf16> -> vector<4x2xbf16>
    %c0_1 = arith.constant 0 : index
    %c0_2 = arith.constant 0 : index
    %7 = vector.load %arg4[%c0_1, %c0_2] : memref<4x1xf32, #tpu.memory_space<vmem>>, vector<4x1xf32>
    %cst_3 = arith.constant 0.000000e+00 : f32
    %8 = vector.broadcast %cst_3 : f32 to vector<4x1xf32>
    %9 = arith.cmpf ogt, %7, %8 : vector<4x1xf32>
    %cst_4 = arith.constant 0.000000e+00 : f32
    %10 = arith.truncf %cst_4 : f32 to bf16
    %11 = vector.shape_cast %9 : vector<4x1xi1> to vector<4x1xi1>
    %12 = vector.broadcast %11 : vector<4x1xi1> to vector<4x2xi1>
    %13 = vector.broadcast %10 : bf16 to vector<4x2xbf16>
    %14 = arith.select %12, %4, %13 : vector<4x2xi1>, vector<4x2xbf16>
    %c0_5 = arith.constant 0 : index
    %c0_6 = arith.constant 0 : index
    %15 = vector.load %arg5[%c0_5, %c0_6] : memref<4x1xf32, #tpu.memory_space<vmem>>, vector<4x1xf32>
    %cst_7 = arith.constant 0.000000e+00 : f32
    %16 = vector.broadcast %cst_7 : f32 to vector<4x1xf32>
    %17 = arith.cmpf ogt, %15, %16 : vector<4x1xf32>
    %cst_8 = arith.constant 0.000000e+00 : f32
    %18 = arith.truncf %cst_8 : f32 to bf16
    %19 = vector.shape_cast %17 : vector<4x1xi1> to vector<4x1xi1>
    %20 = vector.broadcast %19 : vector<4x1xi1> to vector<4x2xi1>
    %21 = vector.broadcast %18 : bf16 to vector<4x2xbf16>
    %22 = arith.select %20, %6, %21 : vector<4x2xi1>, vector<4x2xbf16>
    %c0_9 = arith.constant 0 : index
    %c0_10 = arith.constant 0 : index
    %c0_11 = arith.constant 0 : index
    %23 = vector.load %arg2[%c0_9, %c0_10, %c0_11] : memref<3x2x64xbf16, #tpu.memory_space<vmem>>, vector<1x2x64xbf16>
    %24 = vector.shape_cast %23 : vector<1x2x64xbf16> to vector<2x64xbf16>
    %cst_12 = arith.constant dense<0.000000e+00> : vector<4x64xf32>
    %25 = tpu.matmul %14, %24, %cst_12 {dimension_numbers = #tpu.dot_dimension_numbers<[1], [0], [0], [1], [0, 0, 1, 1], [], []>} : vector<4x2xbf16>, vector<2x64xbf16>, vector<4x64xf32> -> vector<4x64xf32>
    %c1 = arith.constant 1 : index
    %c0_13 = arith.constant 0 : index
    %c0_14 = arith.constant 0 : index
    %26 = vector.load %arg2[%c1, %c0_13, %c0_14] : memref<3x2x64xbf16, #tpu.memory_space<vmem>>, vector<1x2x64xbf16>
    %27 = vector.shape_cast %26 : vector<1x2x64xbf16> to vector<2x64xbf16>
    %cst_15 = arith.constant dense<0.000000e+00> : vector<4x64xf32>
    %28 = tpu.matmul %1, %27, %cst_15 {dimension_numbers = #tpu.dot_dimension_numbers<[1], [0], [0], [1], [0, 0, 1, 1], [], []>} : vector<4x2xbf16>, vector<2x64xbf16>, vector<4x64xf32> -> vector<4x64xf32>
    %29 = arith.addf %25, %28 : vector<4x64xf32>
    %c2 = arith.constant 2 : index
    %c0_16 = arith.constant 0 : index
    %c0_17 = arith.constant 0 : index
    %30 = vector.load %arg2[%c2, %c0_16, %c0_17] : memref<3x2x64xbf16, #tpu.memory_space<vmem>>, vector<1x2x64xbf16>
    %31 = vector.shape_cast %30 : vector<1x2x64xbf16> to vector<2x64xbf16>
    %cst_18 = arith.constant dense<0.000000e+00> : vector<4x64xf32>
    %32 = tpu.matmul %22, %31, %cst_18 {dimension_numbers = #tpu.dot_dimension_numbers<[1], [0], [0], [1], [0, 0, 1, 1], [], []>} : vector<4x2xbf16>, vector<2x64xbf16>, vector<4x64xf32> -> vector<4x64xf32>
    %33 = arith.addf %29, %32 : vector<4x64xf32>
    %c0_19 = arith.constant 0 : index
    %c0_20 = arith.constant 0 : index
    %34 = vector.load %arg3[%c0_19, %c0_20] : memref<1x64xf32, #tpu.memory_space<vmem>>, vector<1x64xf32>
    %35 = vector.broadcast %34 : vector<1x64xf32> to vector<4x64xf32>
    %36 = arith.addf %33, %35 : vector<4x64xf32>
    %c0_21 = arith.constant 0 : index
    %c0_22 = arith.constant 0 : index
    %37 = vector.load %arg6[%c0_21, %c0_22] : memref<4x64xf32, #tpu.memory_space<vmem>>, vector<4x64xf32>
    tpu.vector_store %arg6[%c0_21, %c0_22], %36 {strides = array<i32>} : memref<4x64xf32, #tpu.memory_space<vmem>>, vector<4x64xf32>,
    return
  }
  func.func @transform_0(%arg0: i32) -> (i32, i32) {
    %c0_i32 = arith.constant 0 : i32
    %c0_i32_0 = arith.constant 0 : i32
    %c0_i32_1 = arith.constant 0 : i32
    return %c0_i32, %c0_i32_0 : i32, i32
  }
  func.func @transform_1(%arg0: i32) -> (i32, i32, i32) {
    %c0_i32 = arith.constant 0 : i32
    %c0_i32_0 = arith.constant 0 : i32
    %c0_i32_1 = arith.constant 0 : i32
    %c0_i32_2 = arith.constant 0 : i32
    return %c0_i32, %c0_i32_0, %c0_i32_1 : i32, i32, i32
  }
  func.func @transform_2(%arg0: i32) -> (i32, i32) {
    %c0_i32 = arith.constant 0 : i32
    %c0_i32_0 = arith.constant 0 : i32
    %c0_i32_1 = arith.constant 0 : i32
    return %c0_i32, %c0_i32_0 : i32, i32
  }
  func.func @transform_3(%arg0: i32) -> (i32, i32) {
    %c0_i32 = arith.constant 0 : i32
    %c0_i32_0 = arith.constant 0 : i32
    %c0_i32_1 = arith.constant 0 : i32
    return %c0_i32, %c0_i32_0 : i32, i32
  }
  func.func @transform_4(%arg0: i32) -> (i32, i32) {
    %c0_i32 = arith.constant 0 : i32
    %c0_i32_0 = arith.constant 0 : i32
    %c0_i32_1 = arith.constant 0 : i32
    return %c0_i32, %c0_i32_0 : i32, i32
  }
  func.func @transform_5(%arg0: i32) -> (i32, i32) {
    %c0_i32 = arith.constant 0 : i32
    %c0_i32_0 = arith.constant 0 : i32
    %c0_i32_1 = arith.constant 0 : i32
    return %c0_i32, %c0_i32_0 : i32, i32
  }
}

module attributes {stable_mosaic.version = 11 : i64} {
  func.func @kernel(%arg0: i32, %arg1: memref<4x64xf32, #tpu.memory_space<vmem>>, %arg2: memref<3x64x128xbf16, #tpu.memory_space<vmem>>, %arg3: memref<1x128xf32, #tpu.memory_space<vmem>>, %arg4: memref<8x1xf32, #tpu.memory_space<vmem>>, %arg5: memref<8x1xf32, #tpu.memory_space<vmem>>, %arg6: memref<1x64xf32, #tpu.memory_space<vmem>>, %arg7: memref<1x64xf32, #tpu.memory_space<vmem>>, %arg8: memref<8x4xbf16, #tpu.memory_space<vmem>>, %arg9: memref<64x128xf32, #tpu.memory_space<vmem>>, %arg10: memref<8x128xf32, #tpu.memory_space<vmem>>) attributes {dimension_semantics = [#tpu.dimension_semantics<arbitrary>], iteration_bounds = array<i64: 1>, scalar_prefetch = 0 : i64, scratch_operands = 0 : i64, tpu.core_type = #tpu.core_type<tc>, window_params = [{pipeline_mode = #tpu.pipeline_mode<synchronous>, transform_indices = @transform_0, window_bounds = array<i64: 4, 64>}, {pipeline_mode = #tpu.pipeline_mode<synchronous>, transform_indices = @transform_1, window_bounds = array<i64: 3, 64, 128>}, {pipeline_mode = #tpu.pipeline_mode<synchronous>, transform_indices = @transform_2, window_bounds = array<i64: 1, 128>}, {pipeline_mode = #tpu.pipeline_mode<synchronous>, transform_indices = @transform_3, window_bounds = array<i64: 8, 1>}, {pipeline_mode = #tpu.pipeline_mode<synchronous>, transform_indices = @transform_4, window_bounds = array<i64: 8, 1>}, {pipeline_mode = #tpu.pipeline_mode<synchronous>, transform_indices = @transform_5, window_bounds = array<i64: 1, 64>}, {pipeline_mode = #tpu.pipeline_mode<synchronous>, transform_indices = @transform_6, window_bounds = array<i64: 1, 64>}, {pipeline_mode = #tpu.pipeline_mode<synchronous>, transform_indices = @transform_7, window_bounds = array<i64: 8, 4>}, {pipeline_mode = #tpu.pipeline_mode<synchronous>, transform_indices = @transform_8, window_bounds = array<i64: 64, 128>}, {pipeline_mode = #tpu.pipeline_mode<synchronous>, transform_indices = @transform_9, window_bounds = array<i64: 8, 128>}]} {
    %c0 = arith.constant 0 : index
    %c0_0 = arith.constant 0 : index
    %0 = vector.load %arg1[%c0, %c0_0] : memref<4x64xf32, #tpu.memory_space<vmem>>, vector<4x64xf32>
    %c0_1 = arith.constant 0 : index
    %c0_2 = arith.constant 0 : index
    %1 = vector.load %arg6[%c0_1, %c0_2] : memref<1x64xf32, #tpu.memory_space<vmem>>, vector<1x64xf32>
    %2 = vector.broadcast %1 : vector<1x64xf32> to vector<4x64xf32>
    %3 = arith.mulf %0, %2 : vector<4x64xf32>
    %c0_3 = arith.constant 0 : index
    %c0_4 = arith.constant 0 : index
    %4 = vector.load %arg7[%c0_3, %c0_4] : memref<1x64xf32, #tpu.memory_space<vmem>>, vector<1x64xf32>
    %5 = vector.broadcast %4 : vector<1x64xf32> to vector<4x64xf32>
    %6 = arith.addf %3, %5 : vector<4x64xf32>
    %cst = arith.constant 0.000000e+00 : f32
    %7 = vector.broadcast %cst : f32 to vector<4x64xf32>
    %8 = arith.maximumf %6, %7 : vector<4x64xf32>
    %9 = arith.truncf %8 : vector<4x64xf32> to vector<4x64xbf16>
    %c0_5 = arith.constant 0 : index
    %c0_6 = arith.constant 0 : index
    %10 = vector.load %arg8[%c0_5, %c0_6] : memref<8x4xbf16, #tpu.memory_space<vmem>>, vector<8x4xbf16>
    %cst_7 = arith.constant dense<0.000000e+00> : vector<8x64xf32>
    %11 = tpu.matmul %10, %9, %cst_7 {dimension_numbers = #tpu.dot_dimension_numbers<[1], [0], [0], [1], [0, 0, 1, 1], [], []>} : vector<8x4xbf16>, vector<4x64xbf16>, vector<8x64xf32> -> vector<8x64xf32>
    %12 = arith.truncf %11 : vector<8x64xf32> to vector<8x64xbf16>
    %cst_8 = arith.constant 0.000000e+00 : bf16
    %13 = vector.broadcast %cst_8 : bf16 to vector<1x64xbf16>
    %14 = vector.extract_strided_slice %12 {offsets = [0, 0], sizes = [7, 64], strides = [1, 1]} : vector<8x64xbf16> to vector<7x64xbf16>
    %15 = tpu.concatenate %13, %14 in 0 : vector<1x64xbf16>, vector<7x64xbf16> -> vector<8x64xbf16>
    %16 = vector.extract_strided_slice %12 {offsets = [1, 0], sizes = [7, 64], strides = [1, 1]} : vector<8x64xbf16> to vector<7x64xbf16>
    %17 = tpu.concatenate %16, %13 in 0 : vector<7x64xbf16>, vector<1x64xbf16> -> vector<8x64xbf16>
    %c0_9 = arith.constant 0 : index
    %c0_10 = arith.constant 0 : index
    %18 = vector.load %arg4[%c0_9, %c0_10] : memref<8x1xf32, #tpu.memory_space<vmem>>, vector<8x1xf32>
    %cst_11 = arith.constant 0.000000e+00 : f32
    %19 = vector.broadcast %cst_11 : f32 to vector<8x1xf32>
    %20 = arith.cmpf ogt, %18, %19 : vector<8x1xf32>
    %cst_12 = arith.constant 0.000000e+00 : f32
    %21 = arith.truncf %cst_12 : f32 to bf16
    %22 = vector.shape_cast %20 : vector<8x1xi1> to vector<8x1xi1>
    %23 = vector.broadcast %22 : vector<8x1xi1> to vector<8x64xi1>
    %24 = vector.broadcast %21 : bf16 to vector<8x64xbf16>
    %25 = arith.select %23, %15, %24 : vector<8x64xi1>, vector<8x64xbf16>
    %c0_13 = arith.constant 0 : index
    %c0_14 = arith.constant 0 : index
    %26 = vector.load %arg5[%c0_13, %c0_14] : memref<8x1xf32, #tpu.memory_space<vmem>>, vector<8x1xf32>
    %cst_15 = arith.constant 0.000000e+00 : f32
    %27 = vector.broadcast %cst_15 : f32 to vector<8x1xf32>
    %28 = arith.cmpf ogt, %26, %27 : vector<8x1xf32>
    %cst_16 = arith.constant 0.000000e+00 : f32
    %29 = arith.truncf %cst_16 : f32 to bf16
    %30 = vector.shape_cast %28 : vector<8x1xi1> to vector<8x1xi1>
    %31 = vector.broadcast %30 : vector<8x1xi1> to vector<8x64xi1>
    %32 = vector.broadcast %29 : bf16 to vector<8x64xbf16>
    %33 = arith.select %31, %17, %32 : vector<8x64xi1>, vector<8x64xbf16>
    %c0_17 = arith.constant 0 : index
    %c0_18 = arith.constant 0 : index
    %c0_19 = arith.constant 0 : index
    %34 = vector.load %arg2[%c0_17, %c0_18, %c0_19] : memref<3x64x128xbf16, #tpu.memory_space<vmem>>, vector<1x64x128xbf16>
    %35 = vector.shape_cast %34 : vector<1x64x128xbf16> to vector<64x128xbf16>
    %cst_20 = arith.constant dense<0.000000e+00> : vector<8x128xf32>
    %36 = tpu.matmul %25, %35, %cst_20 {dimension_numbers = #tpu.dot_dimension_numbers<[1], [0], [0], [1], [0, 0, 1, 1], [], []>} : vector<8x64xbf16>, vector<64x128xbf16>, vector<8x128xf32> -> vector<8x128xf32>
    %c1 = arith.constant 1 : index
    %c0_21 = arith.constant 0 : index
    %c0_22 = arith.constant 0 : index
    %37 = vector.load %arg2[%c1, %c0_21, %c0_22] : memref<3x64x128xbf16, #tpu.memory_space<vmem>>, vector<1x64x128xbf16>
    %38 = vector.shape_cast %37 : vector<1x64x128xbf16> to vector<64x128xbf16>
    %cst_23 = arith.constant dense<0.000000e+00> : vector<8x128xf32>
    %39 = tpu.matmul %12, %38, %cst_23 {dimension_numbers = #tpu.dot_dimension_numbers<[1], [0], [0], [1], [0, 0, 1, 1], [], []>} : vector<8x64xbf16>, vector<64x128xbf16>, vector<8x128xf32> -> vector<8x128xf32>
    %40 = arith.addf %36, %39 : vector<8x128xf32>
    %c2 = arith.constant 2 : index
    %c0_24 = arith.constant 0 : index
    %c0_25 = arith.constant 0 : index
    %41 = vector.load %arg2[%c2, %c0_24, %c0_25] : memref<3x64x128xbf16, #tpu.memory_space<vmem>>, vector<1x64x128xbf16>
    %42 = vector.shape_cast %41 : vector<1x64x128xbf16> to vector<64x128xbf16>
    %cst_26 = arith.constant dense<0.000000e+00> : vector<8x128xf32>
    %43 = tpu.matmul %33, %42, %cst_26 {dimension_numbers = #tpu.dot_dimension_numbers<[1], [0], [0], [1], [0, 0, 1, 1], [], []>} : vector<8x64xbf16>, vector<64x128xbf16>, vector<8x128xf32> -> vector<8x128xf32>
    %44 = arith.addf %40, %43 : vector<8x128xf32>
    %c0_27 = arith.constant 0 : index
    %c0_28 = arith.constant 0 : index
    %45 = vector.load %arg3[%c0_27, %c0_28] : memref<1x128xf32, #tpu.memory_space<vmem>>, vector<1x128xf32>
    %46 = vector.broadcast %45 : vector<1x128xf32> to vector<8x128xf32>
    %47 = arith.addf %44, %46 : vector<8x128xf32>
    %c0_29 = arith.constant 0 : index
    %c0_30 = arith.constant 0 : index
    %48 = vector.load %arg8[%c0_29, %c0_30] : memref<8x4xbf16, #tpu.memory_space<vmem>>, vector<8x4xbf16>
    %49 = arith.extf %48 : vector<8x4xbf16> to vector<8x4xf32>
    %cst_31 = arith.constant dense<0.000000e+00> : vector<8x64xf32>
    %50 = tpu.matmul %49, %0, %cst_31 {dimension_numbers = #tpu.dot_dimension_numbers<[1], [0], [0], [1], [0, 0, 1, 1], [], []>} : vector<8x4xf32>, vector<4x64xf32>, vector<8x64xf32> -> vector<8x64xf32>
    %c0_32 = arith.constant 0 : index
    %c0_33 = arith.constant 0 : index
    %51 = vector.load %arg9[%c0_32, %c0_33] : memref<64x128xf32, #tpu.memory_space<vmem>>, vector<64x128xf32>
    %cst_34 = arith.constant dense<0.000000e+00> : vector<8x128xf32>
    %52 = tpu.matmul %50, %51, %cst_34 {dimension_numbers = #tpu.dot_dimension_numbers<[1], [0], [0], [1], [0, 0, 1, 1], [], []>} : vector<8x64xf32>, vector<64x128xf32>, vector<8x128xf32> -> vector<8x128xf32>
    %53 = arith.addf %47, %52 : vector<8x128xf32>
    %c0_35 = arith.constant 0 : index
    %c0_36 = arith.constant 0 : index
    %54 = vector.load %arg10[%c0_35, %c0_36] : memref<8x128xf32, #tpu.memory_space<vmem>>, vector<8x128xf32>
    tpu.vector_store %arg10[%c0_35, %c0_36], %53 {strides = array<i32>} : memref<8x128xf32, #tpu.memory_space<vmem>>, vector<8x128xf32>,
    return
  }
  func.func @transform_0(%arg0: i32) -> (i32, i32) {
    %c0_i32 = arith.constant 0 : i32
    %c0_i32_0 = arith.constant 0 : i32
    %c0_i32_1 = arith.constant 0 : i32
    return %c0_i32, %c0_i32_0 : i32, i32
  }
  func.func @transform_1(%arg0: i32) -> (i32, i32, i32) {
    %c0_i32 = arith.constant 0 : i32
    %c0_i32_0 = arith.constant 0 : i32
    %c0_i32_1 = arith.constant 0 : i32
    %c0_i32_2 = arith.constant 0 : i32
    return %c0_i32, %c0_i32_0, %c0_i32_1 : i32, i32, i32
  }
  func.func @transform_2(%arg0: i32) -> (i32, i32) {
    %c0_i32 = arith.constant 0 : i32
    %c0_i32_0 = arith.constant 0 : i32
    %c0_i32_1 = arith.constant 0 : i32
    return %c0_i32, %c0_i32_0 : i32, i32
  }
  func.func @transform_3(%arg0: i32) -> (i32, i32) {
    %c0_i32 = arith.constant 0 : i32
    %c0_i32_0 = arith.constant 0 : i32
    %c0_i32_1 = arith.constant 0 : i32
    return %c0_i32, %c0_i32_0 : i32, i32
  }
  func.func @transform_4(%arg0: i32) -> (i32, i32) {
    %c0_i32 = arith.constant 0 : i32
    %c0_i32_0 = arith.constant 0 : i32
    %c0_i32_1 = arith.constant 0 : i32
    return %c0_i32, %c0_i32_0 : i32, i32
  }
  func.func @transform_5(%arg0: i32) -> (i32, i32) {
    %c0_i32 = arith.constant 0 : i32
    %c0_i32_0 = arith.constant 0 : i32
    %c0_i32_1 = arith.constant 0 : i32
    return %c0_i32, %c0_i32_0 : i32, i32
  }
  func.func @transform_6(%arg0: i32) -> (i32, i32) {
    %c0_i32 = arith.constant 0 : i32
    %c0_i32_0 = arith.constant 0 : i32
    %c0_i32_1 = arith.constant 0 : i32
    return %c0_i32, %c0_i32_0 : i32, i32
  }
  func.func @transform_7(%arg0: i32) -> (i32, i32) {
    %c0_i32 = arith.constant 0 : i32
    %c0_i32_0 = arith.constant 0 : i32
    %c0_i32_1 = arith.constant 0 : i32
    return %c0_i32, %c0_i32_0 : i32, i32
  }
  func.func @transform_8(%arg0: i32) -> (i32, i32) {
    %c0_i32 = arith.constant 0 : i32
    %c0_i32_0 = arith.constant 0 : i32
    %c0_i32_1 = arith.constant 0 : i32
    return %c0_i32, %c0_i32_0 : i32, i32
  }
  func.func @transform_9(%arg0: i32) -> (i32, i32) {
    %c0_i32 = arith.constant 0 : i32
    %c0_i32_0 = arith.constant 0 : i32
    %c0_i32_1 = arith.constant 0 : i32
    return %c0_i32, %c0_i32_0 : i32, i32
  }
}

module attributes {stable_mosaic.version = 11 : i64} {
  func.func @kernel(%arg0: i32, %arg1: memref<8x128xf32, #tpu.memory_space<vmem>>, %arg2: memref<3x128x256xbf16, #tpu.memory_space<vmem>>, %arg3: memref<1x256xf32, #tpu.memory_space<vmem>>, %arg4: memref<16x1xf32, #tpu.memory_space<vmem>>, %arg5: memref<16x1xf32, #tpu.memory_space<vmem>>, %arg6: memref<1x128xf32, #tpu.memory_space<vmem>>, %arg7: memref<1x128xf32, #tpu.memory_space<vmem>>, %arg8: memref<16x8xbf16, #tpu.memory_space<vmem>>, %arg9: memref<128x256xf32, #tpu.memory_space<vmem>>, %arg10: memref<16x256xf32, #tpu.memory_space<vmem>>) attributes {dimension_semantics = [#tpu.dimension_semantics<arbitrary>], iteration_bounds = array<i64: 1>, scalar_prefetch = 0 : i64, scratch_operands = 0 : i64, tpu.core_type = #tpu.core_type<tc>, window_params = [{pipeline_mode = #tpu.pipeline_mode<synchronous>, transform_indices = @transform_0, window_bounds = array<i64: 8, 128>}, {pipeline_mode = #tpu.pipeline_mode<synchronous>, transform_indices = @transform_1, window_bounds = array<i64: 3, 128, 256>}, {pipeline_mode = #tpu.pipeline_mode<synchronous>, transform_indices = @transform_2, window_bounds = array<i64: 1, 256>}, {pipeline_mode = #tpu.pipeline_mode<synchronous>, transform_indices = @transform_3, window_bounds = array<i64: 16, 1>}, {pipeline_mode = #tpu.pipeline_mode<synchronous>, transform_indices = @transform_4, window_bounds = array<i64: 16, 1>}, {pipeline_mode = #tpu.pipeline_mode<synchronous>, transform_indices = @transform_5, window_bounds = array<i64: 1, 128>}, {pipeline_mode = #tpu.pipeline_mode<synchronous>, transform_indices = @transform_6, window_bounds = array<i64: 1, 128>}, {pipeline_mode = #tpu.pipeline_mode<synchronous>, transform_indices = @transform_7, window_bounds = array<i64: 16, 8>}, {pipeline_mode = #tpu.pipeline_mode<synchronous>, transform_indices = @transform_8, window_bounds = array<i64: 128, 256>}, {pipeline_mode = #tpu.pipeline_mode<synchronous>, transform_indices = @transform_9, window_bounds = array<i64: 16, 256>}]} {
    %c0 = arith.constant 0 : index
    %c0_0 = arith.constant 0 : index
    %0 = vector.load %arg1[%c0, %c0_0] : memref<8x128xf32, #tpu.memory_space<vmem>>, vector<8x128xf32>
    %c0_1 = arith.constant 0 : index
    %c0_2 = arith.constant 0 : index
    %1 = vector.load %arg6[%c0_1, %c0_2] : memref<1x128xf32, #tpu.memory_space<vmem>>, vector<1x128xf32>
    %2 = vector.broadcast %1 : vector<1x128xf32> to vector<8x128xf32>
    %3 = arith.mulf %0, %2 : vector<8x128xf32>
    %c0_3 = arith.constant 0 : index
    %c0_4 = arith.constant 0 : index
    %4 = vector.load %arg7[%c0_3, %c0_4] : memref<1x128xf32, #tpu.memory_space<vmem>>, vector<1x128xf32>
    %5 = vector.broadcast %4 : vector<1x128xf32> to vector<8x128xf32>
    %6 = arith.addf %3, %5 : vector<8x128xf32>
    %cst = arith.constant 0.000000e+00 : f32
    %7 = vector.broadcast %cst : f32 to vector<8x128xf32>
    %8 = arith.maximumf %6, %7 : vector<8x128xf32>
    %9 = arith.truncf %8 : vector<8x128xf32> to vector<8x128xbf16>
    %c0_5 = arith.constant 0 : index
    %c0_6 = arith.constant 0 : index
    %10 = vector.load %arg8[%c0_5, %c0_6] : memref<16x8xbf16, #tpu.memory_space<vmem>>, vector<16x8xbf16>
    %cst_7 = arith.constant dense<0.000000e+00> : vector<16x128xf32>
    %11 = tpu.matmul %10, %9, %cst_7 {dimension_numbers = #tpu.dot_dimension_numbers<[1], [0], [0], [1], [0, 0, 1, 1], [], []>} : vector<16x8xbf16>, vector<8x128xbf16>, vector<16x128xf32> -> vector<16x128xf32>
    %12 = arith.truncf %11 : vector<16x128xf32> to vector<16x128xbf16>
    %cst_8 = arith.constant 0.000000e+00 : bf16
    %13 = vector.broadcast %cst_8 : bf16 to vector<1x128xbf16>
    %14 = vector.extract_strided_slice %12 {offsets = [0, 0], sizes = [15, 128], strides = [1, 1]} : vector<16x128xbf16> to vector<15x128xbf16>
    %15 = tpu.concatenate %13, %14 in 0 : vector<1x128xbf16>, vector<15x128xbf16> -> vector<16x128xbf16>
    %16 = vector.extract_strided_slice %12 {offsets = [1, 0], sizes = [15, 128], strides = [1, 1]} : vector<16x128xbf16> to vector<15x128xbf16>
    %17 = tpu.concatenate %16, %13 in 0 : vector<15x128xbf16>, vector<1x128xbf16> -> vector<16x128xbf16>
    %c0_9 = arith.constant 0 : index
    %c0_10 = arith.constant 0 : index
    %18 = vector.load %arg4[%c0_9, %c0_10] : memref<16x1xf32, #tpu.memory_space<vmem>>, vector<16x1xf32>
    %cst_11 = arith.constant 0.000000e+00 : f32
    %19 = vector.broadcast %cst_11 : f32 to vector<16x1xf32>
    %20 = arith.cmpf ogt, %18, %19 : vector<16x1xf32>
    %cst_12 = arith.constant 0.000000e+00 : f32
    %21 = arith.truncf %cst_12 : f32 to bf16
    %22 = vector.shape_cast %20 : vector<16x1xi1> to vector<16x1xi1>
    %23 = vector.broadcast %22 : vector<16x1xi1> to vector<16x128xi1>
    %24 = vector.broadcast %21 : bf16 to vector<16x128xbf16>
    %25 = arith.select %23, %15, %24 : vector<16x128xi1>, vector<16x128xbf16>
    %c0_13 = arith.constant 0 : index
    %c0_14 = arith.constant 0 : index
    %26 = vector.load %arg5[%c0_13, %c0_14] : memref<16x1xf32, #tpu.memory_space<vmem>>, vector<16x1xf32>
    %cst_15 = arith.constant 0.000000e+00 : f32
    %27 = vector.broadcast %cst_15 : f32 to vector<16x1xf32>
    %28 = arith.cmpf ogt, %26, %27 : vector<16x1xf32>
    %cst_16 = arith.constant 0.000000e+00 : f32
    %29 = arith.truncf %cst_16 : f32 to bf16
    %30 = vector.shape_cast %28 : vector<16x1xi1> to vector<16x1xi1>
    %31 = vector.broadcast %30 : vector<16x1xi1> to vector<16x128xi1>
    %32 = vector.broadcast %29 : bf16 to vector<16x128xbf16>
    %33 = arith.select %31, %17, %32 : vector<16x128xi1>, vector<16x128xbf16>
    %c0_17 = arith.constant 0 : index
    %c0_18 = arith.constant 0 : index
    %c0_19 = arith.constant 0 : index
    %34 = vector.load %arg2[%c0_17, %c0_18, %c0_19] : memref<3x128x256xbf16, #tpu.memory_space<vmem>>, vector<1x128x256xbf16>
    %35 = vector.shape_cast %34 : vector<1x128x256xbf16> to vector<128x256xbf16>
    %cst_20 = arith.constant dense<0.000000e+00> : vector<16x256xf32>
    %36 = tpu.matmul %25, %35, %cst_20 {dimension_numbers = #tpu.dot_dimension_numbers<[1], [0], [0], [1], [0, 0, 1, 1], [], []>} : vector<16x128xbf16>, vector<128x256xbf16>, vector<16x256xf32> -> vector<16x256xf32>
    %c1 = arith.constant 1 : index
    %c0_21 = arith.constant 0 : index
    %c0_22 = arith.constant 0 : index
    %37 = vector.load %arg2[%c1, %c0_21, %c0_22] : memref<3x128x256xbf16, #tpu.memory_space<vmem>>, vector<1x128x256xbf16>
    %38 = vector.shape_cast %37 : vector<1x128x256xbf16> to vector<128x256xbf16>
    %cst_23 = arith.constant dense<0.000000e+00> : vector<16x256xf32>
    %39 = tpu.matmul %12, %38, %cst_23 {dimension_numbers = #tpu.dot_dimension_numbers<[1], [0], [0], [1], [0, 0, 1, 1], [], []>} : vector<16x128xbf16>, vector<128x256xbf16>, vector<16x256xf32> -> vector<16x256xf32>
    %40 = arith.addf %36, %39 : vector<16x256xf32>
    %c2 = arith.constant 2 : index
    %c0_24 = arith.constant 0 : index
    %c0_25 = arith.constant 0 : index
    %41 = vector.load %arg2[%c2, %c0_24, %c0_25] : memref<3x128x256xbf16, #tpu.memory_space<vmem>>, vector<1x128x256xbf16>
    %42 = vector.shape_cast %41 : vector<1x128x256xbf16> to vector<128x256xbf16>
    %cst_26 = arith.constant dense<0.000000e+00> : vector<16x256xf32>
    %43 = tpu.matmul %33, %42, %cst_26 {dimension_numbers = #tpu.dot_dimension_numbers<[1], [0], [0], [1], [0, 0, 1, 1], [], []>} : vector<16x128xbf16>, vector<128x256xbf16>, vector<16x256xf32> -> vector<16x256xf32>
    %44 = arith.addf %40, %43 : vector<16x256xf32>
    %c0_27 = arith.constant 0 : index
    %c0_28 = arith.constant 0 : index
    %45 = vector.load %arg3[%c0_27, %c0_28] : memref<1x256xf32, #tpu.memory_space<vmem>>, vector<1x256xf32>
    %46 = vector.broadcast %45 : vector<1x256xf32> to vector<16x256xf32>
    %47 = arith.addf %44, %46 : vector<16x256xf32>
    %c0_29 = arith.constant 0 : index
    %c0_30 = arith.constant 0 : index
    %48 = vector.load %arg8[%c0_29, %c0_30] : memref<16x8xbf16, #tpu.memory_space<vmem>>, vector<16x8xbf16>
    %49 = arith.extf %48 : vector<16x8xbf16> to vector<16x8xf32>
    %cst_31 = arith.constant dense<0.000000e+00> : vector<16x128xf32>
    %50 = tpu.matmul %49, %0, %cst_31 {dimension_numbers = #tpu.dot_dimension_numbers<[1], [0], [0], [1], [0, 0, 1, 1], [], []>} : vector<16x8xf32>, vector<8x128xf32>, vector<16x128xf32> -> vector<16x128xf32>
    %c0_32 = arith.constant 0 : index
    %c0_33 = arith.constant 0 : index
    %51 = vector.load %arg9[%c0_32, %c0_33] : memref<128x256xf32, #tpu.memory_space<vmem>>, vector<128x256xf32>
    %cst_34 = arith.constant dense<0.000000e+00> : vector<16x256xf32>
    %52 = tpu.matmul %50, %51, %cst_34 {dimension_numbers = #tpu.dot_dimension_numbers<[1], [0], [0], [1], [0, 0, 1, 1], [], []>} : vector<16x128xf32>, vector<128x256xf32>, vector<16x256xf32> -> vector<16x256xf32>
    %53 = arith.addf %47, %52 : vector<16x256xf32>
    %c0_35 = arith.constant 0 : index
    %c0_36 = arith.constant 0 : index
    %54 = vector.load %arg10[%c0_35, %c0_36] : memref<16x256xf32, #tpu.memory_space<vmem>>, vector<16x256xf32>
    tpu.vector_store %arg10[%c0_35, %c0_36], %53 {strides = array<i32>} : memref<16x256xf32, #tpu.memory_space<vmem>>, vector<16x256xf32>,
    return
  }
  func.func @transform_0(%arg0: i32) -> (i32, i32) {
    %c0_i32 = arith.constant 0 : i32
    %c0_i32_0 = arith.constant 0 : i32
    %c0_i32_1 = arith.constant 0 : i32
    return %c0_i32, %c0_i32_0 : i32, i32
  }
  func.func @transform_1(%arg0: i32) -> (i32, i32, i32) {
    %c0_i32 = arith.constant 0 : i32
    %c0_i32_0 = arith.constant 0 : i32
    %c0_i32_1 = arith.constant 0 : i32
    %c0_i32_2 = arith.constant 0 : i32
    return %c0_i32, %c0_i32_0, %c0_i32_1 : i32, i32, i32
  }
  func.func @transform_2(%arg0: i32) -> (i32, i32) {
    %c0_i32 = arith.constant 0 : i32
    %c0_i32_0 = arith.constant 0 : i32
    %c0_i32_1 = arith.constant 0 : i32
    return %c0_i32, %c0_i32_0 : i32, i32
  }
  func.func @transform_3(%arg0: i32) -> (i32, i32) {
    %c0_i32 = arith.constant 0 : i32
    %c0_i32_0 = arith.constant 0 : i32
    %c0_i32_1 = arith.constant 0 : i32
    return %c0_i32, %c0_i32_0 : i32, i32
  }
  func.func @transform_4(%arg0: i32) -> (i32, i32) {
    %c0_i32 = arith.constant 0 : i32
    %c0_i32_0 = arith.constant 0 : i32
    %c0_i32_1 = arith.constant 0 : i32
    return %c0_i32, %c0_i32_0 : i32, i32
  }
  func.func @transform_5(%arg0: i32) -> (i32, i32) {
    %c0_i32 = arith.constant 0 : i32
    %c0_i32_0 = arith.constant 0 : i32
    %c0_i32_1 = arith.constant 0 : i32
    return %c0_i32, %c0_i32_0 : i32, i32
  }
  func.func @transform_6(%arg0: i32) -> (i32, i32) {
    %c0_i32 = arith.constant 0 : i32
    %c0_i32_0 = arith.constant 0 : i32
    %c0_i32_1 = arith.constant 0 : i32
    return %c0_i32, %c0_i32_0 : i32, i32
  }
  func.func @transform_7(%arg0: i32) -> (i32, i32) {
    %c0_i32 = arith.constant 0 : i32
    %c0_i32_0 = arith.constant 0 : i32
    %c0_i32_1 = arith.constant 0 : i32
    return %c0_i32, %c0_i32_0 : i32, i32
  }
  func.func @transform_8(%arg0: i32) -> (i32, i32) {
    %c0_i32 = arith.constant 0 : i32
    %c0_i32_0 = arith.constant 0 : i32
    %c0_i32_1 = arith.constant 0 : i32
    return %c0_i32, %c0_i32_0 : i32, i32
  }
  func.func @transform_9(%arg0: i32) -> (i32, i32) {
    %c0_i32 = arith.constant 0 : i32
    %c0_i32_0 = arith.constant 0 : i32
    %c0_i32_1 = arith.constant 0 : i32
    return %c0_i32, %c0_i32_0 : i32, i32
  }
}

module attributes {stable_mosaic.version = 11 : i64} {
  func.func @kernel(%arg0: i32, %arg1: memref<16x256xf32, #tpu.memory_space<vmem>>, %arg2: memref<3x256x512xbf16, #tpu.memory_space<vmem>>, %arg3: memref<1x512xf32, #tpu.memory_space<vmem>>, %arg4: memref<32x1xf32, #tpu.memory_space<vmem>>, %arg5: memref<32x1xf32, #tpu.memory_space<vmem>>, %arg6: memref<1x256xf32, #tpu.memory_space<vmem>>, %arg7: memref<1x256xf32, #tpu.memory_space<vmem>>, %arg8: memref<32x16xbf16, #tpu.memory_space<vmem>>, %arg9: memref<256x512xf32, #tpu.memory_space<vmem>>, %arg10: memref<32x512xf32, #tpu.memory_space<vmem>>) attributes {dimension_semantics = [#tpu.dimension_semantics<arbitrary>], iteration_bounds = array<i64: 1>, scalar_prefetch = 0 : i64, scratch_operands = 0 : i64, tpu.core_type = #tpu.core_type<tc>, window_params = [{pipeline_mode = #tpu.pipeline_mode<synchronous>, transform_indices = @transform_0, window_bounds = array<i64: 16, 256>}, {pipeline_mode = #tpu.pipeline_mode<synchronous>, transform_indices = @transform_1, window_bounds = array<i64: 3, 256, 512>}, {pipeline_mode = #tpu.pipeline_mode<synchronous>, transform_indices = @transform_2, window_bounds = array<i64: 1, 512>}, {pipeline_mode = #tpu.pipeline_mode<synchronous>, transform_indices = @transform_3, window_bounds = array<i64: 32, 1>}, {pipeline_mode = #tpu.pipeline_mode<synchronous>, transform_indices = @transform_4, window_bounds = array<i64: 32, 1>}, {pipeline_mode = #tpu.pipeline_mode<synchronous>, transform_indices = @transform_5, window_bounds = array<i64: 1, 256>}, {pipeline_mode = #tpu.pipeline_mode<synchronous>, transform_indices = @transform_6, window_bounds = array<i64: 1, 256>}, {pipeline_mode = #tpu.pipeline_mode<synchronous>, transform_indices = @transform_7, window_bounds = array<i64: 32, 16>}, {pipeline_mode = #tpu.pipeline_mode<synchronous>, transform_indices = @transform_8, window_bounds = array<i64: 256, 512>}, {pipeline_mode = #tpu.pipeline_mode<synchronous>, transform_indices = @transform_9, window_bounds = array<i64: 32, 512>}]} {
    %c0 = arith.constant 0 : index
    %c0_0 = arith.constant 0 : index
    %0 = vector.load %arg1[%c0, %c0_0] : memref<16x256xf32, #tpu.memory_space<vmem>>, vector<16x256xf32>
    %c0_1 = arith.constant 0 : index
    %c0_2 = arith.constant 0 : index
    %1 = vector.load %arg6[%c0_1, %c0_2] : memref<1x256xf32, #tpu.memory_space<vmem>>, vector<1x256xf32>
    %2 = vector.broadcast %1 : vector<1x256xf32> to vector<16x256xf32>
    %3 = arith.mulf %0, %2 : vector<16x256xf32>
    %c0_3 = arith.constant 0 : index
    %c0_4 = arith.constant 0 : index
    %4 = vector.load %arg7[%c0_3, %c0_4] : memref<1x256xf32, #tpu.memory_space<vmem>>, vector<1x256xf32>
    %5 = vector.broadcast %4 : vector<1x256xf32> to vector<16x256xf32>
    %6 = arith.addf %3, %5 : vector<16x256xf32>
    %cst = arith.constant 0.000000e+00 : f32
    %7 = vector.broadcast %cst : f32 to vector<16x256xf32>
    %8 = arith.maximumf %6, %7 : vector<16x256xf32>
    %9 = arith.truncf %8 : vector<16x256xf32> to vector<16x256xbf16>
    %c0_5 = arith.constant 0 : index
    %c0_6 = arith.constant 0 : index
    %10 = vector.load %arg8[%c0_5, %c0_6] : memref<32x16xbf16, #tpu.memory_space<vmem>>, vector<32x16xbf16>
    %cst_7 = arith.constant dense<0.000000e+00> : vector<32x256xf32>
    %11 = tpu.matmul %10, %9, %cst_7 {dimension_numbers = #tpu.dot_dimension_numbers<[1], [0], [0], [1], [0, 0, 1, 1], [], []>} : vector<32x16xbf16>, vector<16x256xbf16>, vector<32x256xf32> -> vector<32x256xf32>
    %12 = arith.truncf %11 : vector<32x256xf32> to vector<32x256xbf16>
    %cst_8 = arith.constant 0.000000e+00 : bf16
    %13 = vector.broadcast %cst_8 : bf16 to vector<1x256xbf16>
    %14 = vector.extract_strided_slice %12 {offsets = [0, 0], sizes = [31, 256], strides = [1, 1]} : vector<32x256xbf16> to vector<31x256xbf16>
    %15 = tpu.concatenate %13, %14 in 0 : vector<1x256xbf16>, vector<31x256xbf16> -> vector<32x256xbf16>
    %16 = vector.extract_strided_slice %12 {offsets = [1, 0], sizes = [31, 256], strides = [1, 1]} : vector<32x256xbf16> to vector<31x256xbf16>
    %17 = tpu.concatenate %16, %13 in 0 : vector<31x256xbf16>, vector<1x256xbf16> -> vector<32x256xbf16>
    %c0_9 = arith.constant 0 : index
    %c0_10 = arith.constant 0 : index
    %18 = vector.load %arg4[%c0_9, %c0_10] : memref<32x1xf32, #tpu.memory_space<vmem>>, vector<32x1xf32>
    %cst_11 = arith.constant 0.000000e+00 : f32
    %19 = vector.broadcast %cst_11 : f32 to vector<32x1xf32>
    %20 = arith.cmpf ogt, %18, %19 : vector<32x1xf32>
    %cst_12 = arith.constant 0.000000e+00 : f32
    %21 = arith.truncf %cst_12 : f32 to bf16
    %22 = vector.shape_cast %20 : vector<32x1xi1> to vector<32x1xi1>
    %23 = vector.broadcast %22 : vector<32x1xi1> to vector<32x256xi1>
    %24 = vector.broadcast %21 : bf16 to vector<32x256xbf16>
    %25 = arith.select %23, %15, %24 : vector<32x256xi1>, vector<32x256xbf16>
    %c0_13 = arith.constant 0 : index
    %c0_14 = arith.constant 0 : index
    %26 = vector.load %arg5[%c0_13, %c0_14] : memref<32x1xf32, #tpu.memory_space<vmem>>, vector<32x1xf32>
    %cst_15 = arith.constant 0.000000e+00 : f32
    %27 = vector.broadcast %cst_15 : f32 to vector<32x1xf32>
    %28 = arith.cmpf ogt, %26, %27 : vector<32x1xf32>
    %cst_16 = arith.constant 0.000000e+00 : f32
    %29 = arith.truncf %cst_16 : f32 to bf16
    %30 = vector.shape_cast %28 : vector<32x1xi1> to vector<32x1xi1>
    %31 = vector.broadcast %30 : vector<32x1xi1> to vector<32x256xi1>
    %32 = vector.broadcast %29 : bf16 to vector<32x256xbf16>
    %33 = arith.select %31, %17, %32 : vector<32x256xi1>, vector<32x256xbf16>
    %c0_17 = arith.constant 0 : index
    %c0_18 = arith.constant 0 : index
    %c0_19 = arith.constant 0 : index
    %34 = vector.load %arg2[%c0_17, %c0_18, %c0_19] : memref<3x256x512xbf16, #tpu.memory_space<vmem>>, vector<1x256x512xbf16>
    %35 = vector.shape_cast %34 : vector<1x256x512xbf16> to vector<256x512xbf16>
    %cst_20 = arith.constant dense<0.000000e+00> : vector<32x512xf32>
    %36 = tpu.matmul %25, %35, %cst_20 {dimension_numbers = #tpu.dot_dimension_numbers<[1], [0], [0], [1], [0, 0, 1, 1], [], []>} : vector<32x256xbf16>, vector<256x512xbf16>, vector<32x512xf32> -> vector<32x512xf32>
    %c1 = arith.constant 1 : index
    %c0_21 = arith.constant 0 : index
    %c0_22 = arith.constant 0 : index
    %37 = vector.load %arg2[%c1, %c0_21, %c0_22] : memref<3x256x512xbf16, #tpu.memory_space<vmem>>, vector<1x256x512xbf16>
    %38 = vector.shape_cast %37 : vector<1x256x512xbf16> to vector<256x512xbf16>
    %cst_23 = arith.constant dense<0.000000e+00> : vector<32x512xf32>
    %39 = tpu.matmul %12, %38, %cst_23 {dimension_numbers = #tpu.dot_dimension_numbers<[1], [0], [0], [1], [0, 0, 1, 1], [], []>} : vector<32x256xbf16>, vector<256x512xbf16>, vector<32x512xf32> -> vector<32x512xf32>
    %40 = arith.addf %36, %39 : vector<32x512xf32>
    %c2 = arith.constant 2 : index
    %c0_24 = arith.constant 0 : index
    %c0_25 = arith.constant 0 : index
    %41 = vector.load %arg2[%c2, %c0_24, %c0_25] : memref<3x256x512xbf16, #tpu.memory_space<vmem>>, vector<1x256x512xbf16>
    %42 = vector.shape_cast %41 : vector<1x256x512xbf16> to vector<256x512xbf16>
    %cst_26 = arith.constant dense<0.000000e+00> : vector<32x512xf32>
    %43 = tpu.matmul %33, %42, %cst_26 {dimension_numbers = #tpu.dot_dimension_numbers<[1], [0], [0], [1], [0, 0, 1, 1], [], []>} : vector<32x256xbf16>, vector<256x512xbf16>, vector<32x512xf32> -> vector<32x512xf32>
    %44 = arith.addf %40, %43 : vector<32x512xf32>
    %c0_27 = arith.constant 0 : index
    %c0_28 = arith.constant 0 : index
    %45 = vector.load %arg3[%c0_27, %c0_28] : memref<1x512xf32, #tpu.memory_space<vmem>>, vector<1x512xf32>
    %46 = vector.broadcast %45 : vector<1x512xf32> to vector<32x512xf32>
    %47 = arith.addf %44, %46 : vector<32x512xf32>
    %c0_29 = arith.constant 0 : index
    %c0_30 = arith.constant 0 : index
    %48 = vector.load %arg8[%c0_29, %c0_30] : memref<32x16xbf16, #tpu.memory_space<vmem>>, vector<32x16xbf16>
    %49 = arith.extf %48 : vector<32x16xbf16> to vector<32x16xf32>
    %cst_31 = arith.constant dense<0.000000e+00> : vector<32x256xf32>
    %50 = tpu.matmul %49, %0, %cst_31 {dimension_numbers = #tpu.dot_dimension_numbers<[1], [0], [0], [1], [0, 0, 1, 1], [], []>} : vector<32x16xf32>, vector<16x256xf32>, vector<32x256xf32> -> vector<32x256xf32>
    %c0_32 = arith.constant 0 : index
    %c0_33 = arith.constant 0 : index
    %51 = vector.load %arg9[%c0_32, %c0_33] : memref<256x512xf32, #tpu.memory_space<vmem>>, vector<256x512xf32>
    %cst_34 = arith.constant dense<0.000000e+00> : vector<32x512xf32>
    %52 = tpu.matmul %50, %51, %cst_34 {dimension_numbers = #tpu.dot_dimension_numbers<[1], [0], [0], [1], [0, 0, 1, 1], [], []>} : vector<32x256xf32>, vector<256x512xf32>, vector<32x512xf32> -> vector<32x512xf32>
    %53 = arith.addf %47, %52 : vector<32x512xf32>
    %c0_35 = arith.constant 0 : index
    %c0_36 = arith.constant 0 : index
    %54 = vector.load %arg10[%c0_35, %c0_36] : memref<32x512xf32, #tpu.memory_space<vmem>>, vector<32x512xf32>
    tpu.vector_store %arg10[%c0_35, %c0_36], %53 {strides = array<i32>} : memref<32x512xf32, #tpu.memory_space<vmem>>, vector<32x512xf32>,
    return
  }
  func.func @transform_0(%arg0: i32) -> (i32, i32) {
    %c0_i32 = arith.constant 0 : i32
    %c0_i32_0 = arith.constant 0 : i32
    %c0_i32_1 = arith.constant 0 : i32
    return %c0_i32, %c0_i32_0 : i32, i32
  }
  func.func @transform_1(%arg0: i32) -> (i32, i32, i32) {
    %c0_i32 = arith.constant 0 : i32
    %c0_i32_0 = arith.constant 0 : i32
    %c0_i32_1 = arith.constant 0 : i32
    %c0_i32_2 = arith.constant 0 : i32
    return %c0_i32, %c0_i32_0, %c0_i32_1 : i32, i32, i32
  }
  func.func @transform_2(%arg0: i32) -> (i32, i32) {
    %c0_i32 = arith.constant 0 : i32
    %c0_i32_0 = arith.constant 0 : i32
    %c0_i32_1 = arith.constant 0 : i32
    return %c0_i32, %c0_i32_0 : i32, i32
  }
  func.func @transform_3(%arg0: i32) -> (i32, i32) {
    %c0_i32 = arith.constant 0 : i32
    %c0_i32_0 = arith.constant 0 : i32
    %c0_i32_1 = arith.constant 0 : i32
    return %c0_i32, %c0_i32_0 : i32, i32
  }
  func.func @transform_4(%arg0: i32) -> (i32, i32) {
    %c0_i32 = arith.constant 0 : i32
    %c0_i32_0 = arith.constant 0 : i32
    %c0_i32_1 = arith.constant 0 : i32
    return %c0_i32, %c0_i32_0 : i32, i32
  }
  func.func @transform_5(%arg0: i32) -> (i32, i32) {
    %c0_i32 = arith.constant 0 : i32
    %c0_i32_0 = arith.constant 0 : i32
    %c0_i32_1 = arith.constant 0 : i32
    return %c0_i32, %c0_i32_0 : i32, i32
  }
  func.func @transform_6(%arg0: i32) -> (i32, i32) {
    %c0_i32 = arith.constant 0 : i32
    %c0_i32_0 = arith.constant 0 : i32
    %c0_i32_1 = arith.constant 0 : i32
    return %c0_i32, %c0_i32_0 : i32, i32
  }
  func.func @transform_7(%arg0: i32) -> (i32, i32) {
    %c0_i32 = arith.constant 0 : i32
    %c0_i32_0 = arith.constant 0 : i32
    %c0_i32_1 = arith.constant 0 : i32
    return %c0_i32, %c0_i32_0 : i32, i32
  }
  func.func @transform_8(%arg0: i32) -> (i32, i32) {
    %c0_i32 = arith.constant 0 : i32
    %c0_i32_0 = arith.constant 0 : i32
    %c0_i32_1 = arith.constant 0 : i32
    return %c0_i32, %c0_i32_0 : i32, i32
  }
  func.func @transform_9(%arg0: i32) -> (i32, i32) {
    %c0_i32 = arith.constant 0 : i32
    %c0_i32_0 = arith.constant 0 : i32
    %c0_i32_1 = arith.constant 0 : i32
    return %c0_i32, %c0_i32_0 : i32, i32
  }
}

module attributes {stable_mosaic.version = 11 : i64} {
  func.func @kernel(%arg0: i32, %arg1: memref<32x512xf32, #tpu.memory_space<vmem>>, %arg2: memref<3x512x16xbf16, #tpu.memory_space<vmem>>, %arg3: memref<1x16xf32, #tpu.memory_space<vmem>>, %arg4: memref<32x1xf32, #tpu.memory_space<vmem>>, %arg5: memref<32x1xf32, #tpu.memory_space<vmem>>, %arg6: memref<32x16xf32, #tpu.memory_space<vmem>>) attributes {dimension_semantics = [#tpu.dimension_semantics<arbitrary>], iteration_bounds = array<i64: 1>, scalar_prefetch = 0 : i64, scratch_operands = 0 : i64, tpu.core_type = #tpu.core_type<tc>, window_params = [{pipeline_mode = #tpu.pipeline_mode<synchronous>, transform_indices = @transform_0, window_bounds = array<i64: 32, 512>}, {pipeline_mode = #tpu.pipeline_mode<synchronous>, transform_indices = @transform_1, window_bounds = array<i64: 3, 512, 16>}, {pipeline_mode = #tpu.pipeline_mode<synchronous>, transform_indices = @transform_2, window_bounds = array<i64: 1, 16>}, {pipeline_mode = #tpu.pipeline_mode<synchronous>, transform_indices = @transform_3, window_bounds = array<i64: 32, 1>}, {pipeline_mode = #tpu.pipeline_mode<synchronous>, transform_indices = @transform_4, window_bounds = array<i64: 32, 1>}, {pipeline_mode = #tpu.pipeline_mode<synchronous>, transform_indices = @transform_5, window_bounds = array<i64: 32, 16>}]} {
    %c0 = arith.constant 0 : index
    %c0_0 = arith.constant 0 : index
    %0 = vector.load %arg1[%c0, %c0_0] : memref<32x512xf32, #tpu.memory_space<vmem>>, vector<32x512xf32>
    %cst = arith.constant 0.000000e+00 : f32
    %1 = vector.broadcast %cst : f32 to vector<32x512xf32>
    %2 = arith.maximumf %0, %1 : vector<32x512xf32>
    %3 = arith.truncf %2 : vector<32x512xf32> to vector<32x512xbf16>
    %cst_1 = arith.constant 0.000000e+00 : bf16
    %4 = vector.broadcast %cst_1 : bf16 to vector<1x512xbf16>
    %5 = vector.extract_strided_slice %3 {offsets = [0, 0], sizes = [31, 512], strides = [1, 1]} : vector<32x512xbf16> to vector<31x512xbf16>
    %6 = tpu.concatenate %4, %5 in 0 : vector<1x512xbf16>, vector<31x512xbf16> -> vector<32x512xbf16>
    %7 = vector.extract_strided_slice %3 {offsets = [1, 0], sizes = [31, 512], strides = [1, 1]} : vector<32x512xbf16> to vector<31x512xbf16>
    %8 = tpu.concatenate %7, %4 in 0 : vector<31x512xbf16>, vector<1x512xbf16> -> vector<32x512xbf16>
    %c0_2 = arith.constant 0 : index
    %c0_3 = arith.constant 0 : index
    %9 = vector.load %arg4[%c0_2, %c0_3] : memref<32x1xf32, #tpu.memory_space<vmem>>, vector<32x1xf32>
    %cst_4 = arith.constant 0.000000e+00 : f32
    %10 = vector.broadcast %cst_4 : f32 to vector<32x1xf32>
    %11 = arith.cmpf ogt, %9, %10 : vector<32x1xf32>
    %cst_5 = arith.constant 0.000000e+00 : f32
    %12 = arith.truncf %cst_5 : f32 to bf16
    %13 = vector.shape_cast %11 : vector<32x1xi1> to vector<32x1xi1>
    %14 = vector.broadcast %13 : vector<32x1xi1> to vector<32x512xi1>
    %15 = vector.broadcast %12 : bf16 to vector<32x512xbf16>
    %16 = arith.select %14, %6, %15 : vector<32x512xi1>, vector<32x512xbf16>
    %c0_6 = arith.constant 0 : index
    %c0_7 = arith.constant 0 : index
    %17 = vector.load %arg5[%c0_6, %c0_7] : memref<32x1xf32, #tpu.memory_space<vmem>>, vector<32x1xf32>
    %cst_8 = arith.constant 0.000000e+00 : f32
    %18 = vector.broadcast %cst_8 : f32 to vector<32x1xf32>
    %19 = arith.cmpf ogt, %17, %18 : vector<32x1xf32>
    %cst_9 = arith.constant 0.000000e+00 : f32
    %20 = arith.truncf %cst_9 : f32 to bf16
    %21 = vector.shape_cast %19 : vector<32x1xi1> to vector<32x1xi1>
    %22 = vector.broadcast %21 : vector<32x1xi1> to vector<32x512xi1>
    %23 = vector.broadcast %20 : bf16 to vector<32x512xbf16>
    %24 = arith.select %22, %8, %23 : vector<32x512xi1>, vector<32x512xbf16>
    %c0_10 = arith.constant 0 : index
    %c0_11 = arith.constant 0 : index
    %c0_12 = arith.constant 0 : index
    %25 = vector.load %arg2[%c0_10, %c0_11, %c0_12] : memref<3x512x16xbf16, #tpu.memory_space<vmem>>, vector<1x512x16xbf16>
    %26 = vector.shape_cast %25 : vector<1x512x16xbf16> to vector<512x16xbf16>
    %cst_13 = arith.constant dense<0.000000e+00> : vector<32x16xf32>
    %27 = tpu.matmul %16, %26, %cst_13 {dimension_numbers = #tpu.dot_dimension_numbers<[1], [0], [0], [1], [0, 0, 1, 1], [], []>} : vector<32x512xbf16>, vector<512x16xbf16>, vector<32x16xf32> -> vector<32x16xf32>
    %c1 = arith.constant 1 : index
    %c0_14 = arith.constant 0 : index
    %c0_15 = arith.constant 0 : index
    %28 = vector.load %arg2[%c1, %c0_14, %c0_15] : memref<3x512x16xbf16, #tpu.memory_space<vmem>>, vector<1x512x16xbf16>
    %29 = vector.shape_cast %28 : vector<1x512x16xbf16> to vector<512x16xbf16>
    %cst_16 = arith.constant dense<0.000000e+00> : vector<32x16xf32>
    %30 = tpu.matmul %3, %29, %cst_16 {dimension_numbers = #tpu.dot_dimension_numbers<[1], [0], [0], [1], [0, 0, 1, 1], [], []>} : vector<32x512xbf16>, vector<512x16xbf16>, vector<32x16xf32> -> vector<32x16xf32>
    %31 = arith.addf %27, %30 : vector<32x16xf32>
    %c2 = arith.constant 2 : index
    %c0_17 = arith.constant 0 : index
    %c0_18 = arith.constant 0 : index
    %32 = vector.load %arg2[%c2, %c0_17, %c0_18] : memref<3x512x16xbf16, #tpu.memory_space<vmem>>, vector<1x512x16xbf16>
    %33 = vector.shape_cast %32 : vector<1x512x16xbf16> to vector<512x16xbf16>
    %cst_19 = arith.constant dense<0.000000e+00> : vector<32x16xf32>
    %34 = tpu.matmul %24, %33, %cst_19 {dimension_numbers = #tpu.dot_dimension_numbers<[1], [0], [0], [1], [0, 0, 1, 1], [], []>} : vector<32x512xbf16>, vector<512x16xbf16>, vector<32x16xf32> -> vector<32x16xf32>
    %35 = arith.addf %31, %34 : vector<32x16xf32>
    %c0_20 = arith.constant 0 : index
    %c0_21 = arith.constant 0 : index
    %36 = vector.load %arg3[%c0_20, %c0_21] : memref<1x16xf32, #tpu.memory_space<vmem>>, vector<1x16xf32>
    %37 = vector.broadcast %36 : vector<1x16xf32> to vector<32x16xf32>
    %38 = arith.addf %35, %37 : vector<32x16xf32>
    %c0_22 = arith.constant 0 : index
    %c0_23 = arith.constant 0 : index
    %39 = vector.load %arg6[%c0_22, %c0_23] : memref<32x16xf32, #tpu.memory_space<vmem>>, vector<32x16xf32>
    tpu.vector_store %arg6[%c0_22, %c0_23], %38 {strides = array<i32>} : memref<32x16xf32, #tpu.memory_space<vmem>>, vector<32x16xf32>,
    return
  }
  func.func @transform_0(%arg0: i32) -> (i32, i32) {
    %c0_i32 = arith.constant 0 : i32
    %c0_i32_0 = arith.constant 0 : i32
    %c0_i32_1 = arith.constant 0 : i32
    return %c0_i32, %c0_i32_0 : i32, i32
  }
  func.func @transform_1(%arg0: i32) -> (i32, i32, i32) {
    %c0_i32 = arith.constant 0 : i32
    %c0_i32_0 = arith.constant 0 : i32
    %c0_i32_1 = arith.constant 0 : i32
    %c0_i32_2 = arith.constant 0 : i32
    return %c0_i32, %c0_i32_0, %c0_i32_1 : i32, i32, i32
  }
  func.func @transform_2(%arg0: i32) -> (i32, i32) {
    %c0_i32 = arith.constant 0 : i32
    %c0_i32_0 = arith.constant 0 : i32
    %c0_i32_1 = arith.constant 0 : i32
    return %c0_i32, %c0_i32_0 : i32, i32
  }
  func.func @transform_3(%arg0: i32) -> (i32, i32) {
    %c0_i32 = arith.constant 0 : i32
    %c0_i32_0 = arith.constant 0 : i32
    %c0_i32_1 = arith.constant 0 : i32
    return %c0_i32, %c0_i32_0 : i32, i32
  }
  func.func @transform_4(%arg0: i32) -> (i32, i32) {
    %c0_i32 = arith.constant 0 : i32
    %c0_i32_0 = arith.constant 0 : i32
    %c0_i32_1 = arith.constant 0 : i32
    return %c0_i32, %c0_i32_0 : i32, i32
  }
  func.func @transform_5(%arg0: i32) -> (i32, i32) {
    %c0_i32 = arith.constant 0 : i32
    %c0_i32_0 = arith.constant 0 : i32
    %c0_i32_1 = arith.constant 0 : i32
    return %c0_i32, %c0_i32_0 : i32, i32
  }
}

</mosaic_0001>

<bundles_post_ra>
// kernel: autoencoder_forward.10
= control target key start
LH: loop header
LB: loop body
LE: loop exit
PB: predicated region body
PF: predicated region fallthrough
CT: control target
= control target key end

     0   :  { %v1849_v0 = vmov 0   ;;  %vm232_vm6 = vcmask 130048   ;;  %vm55_vm13 = vsmask.f32 256  ;;  %vm73_vm14 = vcmask 1040384   ;;  %s3436_s3 = inlined_call_operand.vmem [shape: f32[32,1], index: 3, kind: input, shape index: {}]   ;;  %s3437_s1 = inlined_call_operand.vmem [shape: bf16[3,16,512], index: 1, kind: input, shape index: {}]   ;;  %s3438_s4 = inlined_call_operand.vmem [shape: f32[32,1], index: 4, kind: input, shape index: {}]   ;;  %s3439_s0 = inlined_call_operand.vmem [shape: f32[32,16], index: 0, kind: input, shape index: {}]   ;;  %s3440_s2 = inlined_call_operand.vmem [shape: f32[1,512], index: 2, kind: input, shape index: {}]   ;;  %s3441_s5 = inlined_call_operand.vmem [shape: f32[16,32], index: 5, kind: input, shape index: {}]   ;;  %s3442_s7 = inlined_call_operand.vmem [shape: f32[512,256], index: 7, kind: input, shape index: {}]   ;;  %s3443_s6 = inlined_call_operand.vmem [shape: f32[16,32], index: 6, kind: input, shape index: {}]   ;;  %s3444_s8 = inlined_call_operand.vmem [shape: f32[512,256], index: 8, kind: input, shape index: {}]   ;;  %s3445_s9 = inlined_call_operand.vmem [shape: f32[16,256], index: 9, kind: output, shape index: {0}]   ;;  %s3446_s10 = inlined_call_operand.vmem [shape: f32[16,256], index: 10, kind: output, shape index: {1}]  }
   0x1   :  { %1847 = vset.pattern.permute.xlu1 %v1849_v0  ;;  %1846 = vset.pattern.permute.xlu0 %v1849_v0  ;;  %v89_v1 = vld [vmem:[%s3436_s3 + $0x10] sm:$0xff]  ;;  %v87_v2 = vld [vmem:[%s3436_s3] sm:$0xff]  ;;  %v90_v3 = vld [vmem:[%s3436_s3 + $0x18] sm:$0xff] }
   0x2   :  { %vm93_vm0 = vcmp.gt.f32.partialorder %v89_v1, 0.0  ;;  %vm91_vm1 = vcmp.gt.f32.partialorder %v87_v2, 0.0  ;;  %1848 = vset.pattern.permute.xlu2 %v1849_v0  ;;  %v88_v6 = vld [vmem:[%s3436_s3 + $0x8] sm:$0xff]  ;;  %v145_v7 = vld [vmem:[%s3438_s4] sm:$0xff]  ;;  %vm94_vm3 = vcmp.gt.f32.partialorder %v90_v3, 0.0  ;;  %v148_v30 = vld [vmem:[%s3438_s4 + $0x18] sm:$0xff] }
   0x3   :  { %v97_v4 = vsel %vm93_vm0, 1, %v1849_v0  ;;  %v95_v5 = vsel %vm91_vm1, 1, %v1849_v0  ;;  %vm149_vm2 = vcmp.gt.f32.partialorder %v145_v7, 0.0  ;;  %v1751_v8 = vld [vmem:[%s3437_s1 + $0x28] sm:$0xf]  ;;  %vm92_vm4 = vcmp.gt.f32.partialorder %v88_v6, 0.0  ;;  %vm74_vm1 = vmand %vm73_vm14, %vm55_vm13 }
   0x4   :  { %106 = vperm.xlu1 %1847, %v97_v4   ;;  %100 = vperm.xlu0 %1846, %v95_v5   ;;  %v153_v9 = vsel %vm149_vm2, 1, %v1849_v0  ;;  %v146_v10 = vld [vmem:[%s3438_s4 + $0x8] sm:$0xff]  ;;  %v1840_v11 = vld [vmem:[%s3437_s1 + $0x34] sm:$0xf0]  ;;  %v1753_v14 = vld [vmem:[%s3437_s1 + $0x38] sm:$0xf0] }
   0x5   :  { %158 = vperm.xlu2 %1848, %v153_v9   ;;  %v1752_v12 = vor.u32 %v1840_v11, %v1751_v8  ;;  %v1838_v13 = vld [vmem:[%s3437_s1 + $0x2c] sm:$0xf]  ;;  %v37_v15 = vld [vmem:[%s3439_s0] sm:$0xff]  ;;  %v1839_v20 = vld [vmem:[%s3437_s1 + $0x2c] sm:$0xf0]  ;;  %vm150_vm5 = vcmp.gt.f32.partialorder %v146_v10, 0.0 }
   0x6   :  { %v1756_v16 = vor.u32 %v1838_v13, %v1753_v14  ;;  %v38_v17 = vld [vmem:[%s3439_s0 + $0x8] sm:$0xff]  ;;  %v41_v18 = vpack.c.bf16 %v37_v15, %v37_v15  ;;  %v1743_v19 = vld [vmem:[%s3437_s1 + $0x20] sm:$0xf]  ;;  %v1837_v23 = vld [vmem:[%s3437_s1 + $0x24] sm:$0xf]  ;;  %v98_v25 = vsel %vm94_vm3, 1, %v1849_v0  ;;  %v2053_v13 = vunpack.c.h.b16 %v1849_v0 }
   0x7   :  { %282 = vmatpush.bf16.msra.mxu2 %v1752_v12  ;;  %v42_v21 = vpack.c.bf16 %v38_v17, %v38_v17  ;;  %v1744_v22 = vor.u32 %v1839_v20, %v1743_v19  ;;  %v1745_v24 = vld [vmem:[%s3437_s1 + $0x30] sm:$0xf0]  ;;  %v96_v26 = vsel %vm92_vm4, 1, %v1849_v0  ;;  %v154_v32 = vsel %vm150_vm5, 1, %v1849_v0  ;;  %v40_v35 = vld [vmem:[%s3439_s0 + $0x18] sm:$0xff] }
   0x8   :  { %301 = vmatpush.bf16.msra.mxu3 %v1756_v16  ;;  %v49_v27 = vunpack.c.l.b16 %v41_v18  ;;  %v1748_v28 = vor.u32 %v1837_v23, %v1745_v24  ;;  %v147_v31 = vld [vmem:[%s3438_s4 + $0x10] sm:$0xff]  ;;  %vm152_vm7 = vcmp.gt.f32.partialorder %v148_v30, 0.0  ;;  %v44_v39 = vpack.c.bf16 %v40_v35, %v40_v35  ;;  %v1767_v43 = vld [vmem:[%s3437_s1] sm:$0xf]  ;;  %v1833_v45 = vld [vmem:[%s3437_s1 + $0x4] sm:$0xf] }
   0x9   :  { %v50_v29 = vunpack.c.l.b16 %v42_v21  ;;  %244 = vmatpush.bf16.msra.mxu0 %v1744_v22  ;;  %vm151_vm8 = vcmp.gt.f32.partialorder %v147_v31, 0.0  ;;  %v39_v34 = vld [vmem:[%s3439_s0 + $0x10] sm:$0xff]  ;;  %v156_v36 = vsel %vm152_vm7, 1, %v1849_v0  ;;  %v1775_v48 = vld [vmem:[%s3437_s1 + $0x8] sm:$0xf]  ;;  %v2056_v17 = vunpack.c.l.b16 %v1849_v0 }
   0xa   :  { %263 = vmatpush.bf16.msra.mxu1 %v1748_v28  ;;  %v155_v37 = vsel %vm151_vm8, 1, %v1849_v0  ;;  %v43_v38 = vpack.c.bf16 %v39_v34, %v39_v34  ;;  %v52_v41 = vunpack.c.l.b16 %v44_v39  ;;  %v1835_v44 = vld [vmem:[%s3437_s1 + $0xc] sm:$0xf0]  ;;  %v1769_v47 = vld [vmem:[%s3437_s1 + $0x10] sm:$0xf0] }
   0xb   :  { %v1970_v33 = vpack.c.b16 %v50_v29, %v49_v27  ;;  %v1768_v46 = vor.u32 %v1835_v44, %v1767_v43  ;;  %v1836_v49 = vld [vmem:[%s3437_s1 + $0x14] sm:$0xf0]  ;;  %v1772_v50 = vor.u32 %v1833_v45, %v1769_v47  ;;  %v1834_v52 = vld [vmem:[%s3437_s1 + $0xc] sm:$0xf]  ;;  %v1777_v53 = vld [vmem:[%s3437_s1 + $0x18] sm:$0xf0] }
   0xc   :  { %109 = vperm.xlu1 %1847, %v98_v25   ;;  %103 = vperm.xlu0 %1846, %v96_v26   ;;  %v51_v40 = vunpack.c.l.b16 %v43_v38  ;;  %v1776_v51 = vor.u32 %v1836_v49, %v1775_v48  ;;  %v1780_v54 = vor.u32 %v1834_v52, %v1777_v53  ;;  %v1795_v59 = vld [vmem:[%s3437_s1 + $0x40] sm:$0xf]  ;;  %v1843_v60 = vld [vmem:[%s3437_s1 + $0x4c] sm:$0xf0]  ;;  %v1841_v61 = vld [vmem:[%s3437_s1 + $0x44] sm:$0xf] }
   0xd   :  { %161 = vperm.xlu2 %1848, %v154_v32   ;;  %1761 = vmatmul.msk.bf16.vlgmr.msra.gmra.mxu2 %vm232_vm6, %v1970_v33  ;;  %v57_v58 = vshrl.u32 %v1970_v33, 16  ;;  %v1796_v63 = vor.u32 %v1843_v60, %v1795_v59  ;;  %v1797_v1 = vld [vmem:[%s3437_s1 + $0x50] sm:$0xf0]  ;;  %v1803_v2 = vld [vmem:[%s3437_s1 + $0x48] sm:$0xf]  ;;  %v60_v8 = vshll.u32 %v1970_v33, 16 }
   0xe   :  { %1763 = vmatmul.msk.bf16.vlgmr.msra.gmra.mxu3 %vm232_vm6, %v1970_v33  ;;  %1757 = vmatmul.msk.bf16.vlgmr.msra.gmra.mxu0 %vm232_vm6, %v1970_v33  ;;  %v1988_v42 = vpack.c.b16 %v52_v41, %v51_v40  ;;  %v1844_v3 = vld [vmem:[%s3437_s1 + $0x54] sm:$0xf0]  ;;  %v1800_v4 = vor.u32 %v1841_v61, %v1797_v1  ;;  %v1842_v5 = vld [vmem:[%s3437_s1 + $0x4c] sm:$0xf]  ;;  %v1805_v6 = vld [vmem:[%s3437_s1 + $0x58] sm:$0xf0] }
   0xf   :  { %1759 = vmatmul.msk.bf16.vlgmr.msra.gmra.mxu1 %vm232_vm6, %v1970_v33  ;;  %346 = vmatpush.bf16.msrb.mxu0 %v1768_v46  ;;  %v59_v7 = vrot.slane %v57_v58, 7  ;;  %v1804_v9 = vor.u32 %v1844_v3, %v1803_v2  ;;  %v1808_v10 = vor.u32 %v1842_v5, %v1805_v6 }
  0x10   :  { %365 = vmatpush.bf16.msrb.mxu1 %v1772_v50  ;;  %384 = vmatpush.bf16.msrb.mxu2 %v1776_v51  ;;  %v64_v25 = vshrl.u32 %v1988_v42, 16  ;;  %v67_v32 = vshll.u32 %v1988_v42, 16 }
  0x11   :  { %403 = vmatpush.bf16.msrb.mxu3 %v1780_v54  ;;  %v62_v16 = vor.u32 %v60_v8, %v59_v7 }
  0x12   :  { %v66_v28 = vrot.slane %v64_v25, 7  ;;  %v79_v47 = vrot.slane %v67_v32, 1 }
  0x13   :  { %453 = vmatpush.bf16.msra.mxu0 %v1796_v63  ;;  %v75_v21 = vsel %vm74_vm1, 0, %v62_v16 }
  0x14   :  { %167 = vperm.xlu1 %1847, %v156_v36   ;;  %164 = vperm.xlu0 %1846, %v155_v37   ;;  %v69_v34 = vor.u32 %v67_v32, %v66_v28 }
  0x15   :  { %472 = vmatpush.bf16.msra.mxu1 %v1800_v4  ;;  %491 = vmatpush.bf16.msra.mxu2 %v1804_v9 }
  0x16   :  { %510 = vmatpush.bf16.msra.mxu3 %v1808_v10  ;;  %v70_v35 = vsel %vm55_vm13, %v59_v7, %v69_v34 }
  0x1d   :  { %1762 = vmatmul.msk.bf16.gmra.mxu2 %vm232_vm6, %v1988_v42 }
  0x1e   :  { %1764 = vmatmul.msk.bf16.gmra.mxu3 %vm232_vm6, %v1988_v42  ;;  %1758 = vmatmul.msk.bf16.gmra.mxu0 %vm232_vm6, %v1988_v42 }
  0x1f   :  { %1760 = vmatmul.msk.bf16.gmra.mxu1 %vm232_vm6, %v1988_v42  ;;  %v77_v42 = vrot.slane %v60_v8, 1 }
  0x21   :  { %v78_v46 = vor.u32 %v77_v42, %v57_v58 }
  0x5f   :  { %v159_v20 = vpop.permute.xlu2 %158 }
  0x60   :  { %vm169_vm8 = vcmp.eq.s32.totalorder %v159_v20, 1 }
  0x67   :  { %v162_v31 = vpop.permute.xlu2 %161 }
  0x76   :  { %v101_v55 = vpop.permute.xlu0 %100  ;;  %v107_v56 = vpop.permute.xlu1 %106 }
  0x77   :  { %vm111_vm9 = vcmp.eq.s32.totalorder %v101_v55, 1  ;;  %vm113_vm15 = vcmp.eq.s32.totalorder %v107_v56, 1  ;;  %v81_v55 = vor.u32 %v79_v47, %v64_v25 }
  0x78   :  { %vm115_vm10 = vmpackc.low %vm111_vm9, %vm111_vm9  ;;  %vm170_vm9 = vcmp.eq.s32.totalorder %v162_v31, 1 }
  0x79   :  { %v119_v57 = vsel %vm115_vm10, 65537, %v1849_v0  ;;  %vm117_vm2 = vmpackc.low %vm113_vm15, %vm113_vm15 }
  0x7a   :  { %v123_v11 = vunpack.c.l.b16 %v119_v57  ;;  %v121_v22 = vsel %vm117_vm2, 65537, %v1849_v0  ;;  %vm174_vm14 = vmpackc.low %vm170_vm9, %vm170_vm9 }
  0x7b   :  { %v125_v26 = vunpack.c.l.b16 %v121_v22  ;;  %v178_v37 = vsel %vm174_vm14, 65537, %v1849_v0 }
  0x7c   :  { %v1729_v18 = vunpack.i.l.s16 %v123_v11  ;;  %v182_v40 = vunpack.c.l.b16 %v178_v37  ;;  %v538_v37 = vld [vmem:[%s3440_s2] sm:$0xf] }
  0x7d   :  { %v1731_v29 = vunpack.i.l.s16 %v125_v26 }
  0x7e   :  { %v104_v62 = vpop.permute.xlu0 %103  ;;  %v110_v14 = vpop.permute.xlu1 %109  ;;  %vm133_vm5 = vcmp.ne.s32.totalorder %v1729_v18, %v2056_v17  ;;  %v1734_v45 = vunpack.i.l.s16 %v182_v40 }
  0x7f   :  { %vm112_vm11 = vcmp.eq.s32.totalorder %v104_v62, 1  ;;  %vm114_vm0 = vcmp.eq.s32.totalorder %v110_v14, 1  ;;  %vm140_vm10 = vcmp.ne.s32.totalorder %v1731_v29, %v2056_v17 }
  0x80   :  { %vm116_vm12 = vmpackc.low %vm112_vm11, %vm112_vm11  ;;  %vm192_vm2 = vcmp.ne.s32.totalorder %v1734_v45, %v2053_v13 }
  0x81   :  { %v120_v12 = vsel %vm116_vm12, 65537, %v1849_v0  ;;  %vm118_vm3 = vmpackc.low %vm114_vm0, %vm114_vm0 }
  0x82   :  { %v124_v15 = vunpack.c.l.b16 %v120_v12  ;;  %v122_v23 = vsel %vm118_vm3, 65537, %v1849_v0  ;;  %vm173_vm12 = vmpackc.low %vm169_vm8, %vm169_vm8  ;;  %vm84_vm8 = vcmask 1047552  }
  0x83   :  { %v126_v27 = vunpack.c.l.b16 %v122_v23  ;;  %v177_v36 = vsel %vm173_vm12, 65537, %v1849_v0 }
  0x84   :  { %v1730_v19 = vunpack.i.l.s16 %v124_v15  ;;  %v181_v39 = vunpack.c.l.b16 %v177_v36 }
  0x85   :  { %v1732_v30 = vunpack.i.l.s16 %v126_v27 }
  0x86   :  { %vm134_vm4 = vcmp.ne.s32.totalorder %v1730_v19, %v2053_v13  ;;  %v168_v41 = vpop.permute.xlu1 %167  ;;  %v165_v43 = vpop.permute.xlu0 %164  ;;  %v1733_v44 = vunpack.i.l.s16 %v181_v39 }
  0x87   :  { %vm135_vm7 = vmpackc.low %vm134_vm4, %vm133_vm5  ;;  %vm141_vm11 = vcmp.ne.s32.totalorder %v1732_v30, %v2053_v13  ;;  %vm172_vm13 = vcmp.eq.s32.totalorder %v168_v41, 1  ;;  %vm171_vm0 = vcmp.eq.s32.totalorder %v165_v43, 1  ;;  %vm76_vm5 = vsmask.f32 7424 }
  0x88   :  { %v143_v24 = vsel %vm135_vm7, %v75_v21, 0  ;;  %vm142_vm15 = vmpackc.low %vm141_vm11, %vm140_vm10  ;;  %vm191_vm1 = vcmp.ne.s32.totalorder %v1733_v44, %v2056_v17  ;;  %v80_v48 = vsel %vm76_vm5, %v78_v46, %v79_v47  ;;  %v540_v46 = vperm.slane %v538_v37, 0 }
  0x89   :  { %1781 = vmatmul.msk.bf16.vlgmr.msrb.gmra.mxu0 %vm232_vm6, %v143_v24  ;;  %1783 = vmatmul.msk.bf16.vlgmr.msrb.gmra.mxu1 %vm232_vm6, %v143_v24  ;;  %v144_v38 = vsel %vm142_vm15, %v70_v35, 0  ;;  %vm176_vm3 = vmpackc.low %vm172_vm13, %vm172_vm13  ;;  %v541_v47 = vperm.slane %v538_v37, 1 }
  0x8a   :  { %1785 = vmatmul.msk.bf16.vlgmr.msrb.gmra.mxu2 %vm232_vm6, %v143_v24  ;;  %1787 = vmatmul.msk.bf16.vlgmr.msrb.gmra.mxu3 %vm232_vm6, %v143_v24  ;;  %vm175_vm4 = vmpackc.low %vm171_vm0, %vm171_vm0  ;;  %v180_v49 = vsel %vm176_vm3, 65537, %v1849_v0 }
  0x8b   :  { %vm193_vm7 = vmpackc.low %vm192_vm2, %vm191_vm1  ;;  %v179_v50 = vsel %vm175_vm4, 65537, %v1849_v0  ;;  %v184_v33 = vunpack.c.l.b16 %v180_v49  ;;  %v246_v57 = vpop.f32.mrf.mxu0 }
  0x8c   :  { %v201_v51 = vsel %vm193_vm7, %v80_v48, 0  ;;  %v183_v52 = vunpack.c.l.b16 %v179_v50  ;;  %vm85_vm11 = vmand %vm84_vm8, %vm76_vm5  ;;  %v265_v58 = vpop.f32.mrf.mxu1 }
  0x8d   :  { %v1736_v53 = vunpack.i.l.s16 %v184_v33  ;;  %v86_v0 = vsel %vm85_vm11, %v81_v55, 0 }
  0x8e   :  { %v1735_v54 = vunpack.i.l.s16 %v183_v52 }
  0x8f   :  { %vm199_vm9 = vcmp.ne.s32.totalorder %v1736_v53, %v2053_v13 }
  0x90   :  { %vm198_vm10 = vcmp.ne.s32.totalorder %v1735_v54, %v2056_v17  ;;  %v2096_v59 = vpop.f32.mrf.mxu2 }
  0x91   :  { %vm200_vm12 = vmpackc.low %vm199_vm9, %vm198_vm10  ;;  %v2098_v60 = vpop.f32.mrf.mxu3 }
  0x92   :  { %v202_v56 = vsel %vm200_vm12, %v86_v0, 0 }
  0x93   :  { %v248_v61 = vpop.f32.mrf.mxu0 }
  0x94   :  { %v267_v62 = vpop.f32.mrf.mxu1 }
  0x98   :  { %v2100_v63 = vpop.f32.mrf.mxu2 }
  0x99   :  { %1782 = vmatmul.msk.bf16.gmra.mxu0 %vm232_vm6, %v144_v38  ;;  %1784 = vmatmul.msk.bf16.gmra.mxu1 %vm232_vm6, %v144_v38  ;;  %v2102_v1 = vpop.f32.mrf.mxu3 }
  0x9a   :  { %1786 = vmatmul.msk.bf16.gmra.mxu2 %vm232_vm6, %v144_v38  ;;  %1788 = vmatmul.msk.bf16.gmra.mxu3 %vm232_vm6, %v144_v38 }
  0x9b   :  { %v251_v2 = vpop.f32.mrf.mxu0 }
  0x9c   :  { %v270_v3 = vpop.f32.mrf.mxu1 }
  0xa0   :  { %v2104_v4 = vpop.f32.mrf.mxu2 }
  0xa1   :  { %v2106_v5 = vpop.f32.mrf.mxu3 }
  0xa3   :  { %v253_v6 = vpop.f32.mrf.mxu0 }
  0xa4   :  { %v272_v7 = vpop.f32.mrf.mxu1 }
  0xa8   :  { %v291_v8 = vpop.f32.mrf.mxu2 }
  0xa9   :  { %1809 = vmatmul.msk.bf16.vlgmr.msra.gmra.mxu0 %vm232_vm6, %v201_v51  ;;  %1811 = vmatmul.msk.bf16.vlgmr.msra.gmra.mxu1 %vm232_vm6, %v201_v51  ;;  %v310_v9 = vpop.f32.mrf.mxu3 }
  0xaa   :  { %1813 = vmatmul.msk.bf16.vlgmr.msra.gmra.mxu2 %vm232_vm6, %v201_v51  ;;  %1815 = vmatmul.msk.bf16.vlgmr.msra.gmra.mxu3 %vm232_vm6, %v201_v51 }
  0xb9   :  { %1810 = vmatmul.msk.bf16.gmra.mxu0 %vm232_vm6, %v202_v56  ;;  %1812 = vmatmul.msk.bf16.gmra.mxu1 %vm232_vm6, %v202_v56 }
  0xba   :  { %1814 = vmatmul.msk.bf16.gmra.mxu2 %vm232_vm6, %v202_v56  ;;  %1816 = vmatmul.msk.bf16.gmra.mxu3 %vm232_vm6, %v202_v56  ;;  %vm566_vm6 = vcmask 261120  }
 0x106   :  { %v348_v10 = vpop.f32.mrf.mxu0  ;;  %v367_v11 = vpop.f32.mrf.mxu1 }
 0x107   :  { %v349_v53 = vadd.f32 %v348_v10, %v246_v57  ;;  %v368_v54 = vadd.f32 %v367_v11, %v265_v58  ;;  %v543_v58 = vperm.slane %v538_v37, 3 }
 0x10d   :  { %v2108_v12 = vpop.f32.mrf.mxu2  ;;  %v2110_v13 = vpop.f32.mrf.mxu3 }
 0x10e   :  { %v350_v14 = vpop.f32.mrf.mxu0  ;;  %v369_v15 = vpop.f32.mrf.mxu1 }
 0x10f   :  { %v351_v44 = vadd.f32 %v350_v14, %v248_v61  ;;  %v370_v45 = vadd.f32 %v369_v15, %v267_v62 }
 0x115   :  { %v388_v16 = vpop.f32.mrf.mxu2  ;;  %v2112_v17 = vpop.f32.mrf.mxu3 }
 0x116   :  { %v353_v18 = vpop.f32.mrf.mxu0  ;;  %v372_v19 = vpop.f32.mrf.mxu1  ;;  %v389_v62 = vadd.f32 %v388_v16, %v2100_v63 }
 0x117   :  { %v354_v38 = vadd.f32 %v353_v18, %v251_v2  ;;  %v373_v39 = vadd.f32 %v372_v19, %v270_v3 }
 0x11d   :  { %v391_v20 = vpop.f32.mrf.mxu2  ;;  %v410_v21 = vpop.f32.mrf.mxu3 }
 0x11e   :  { %v355_v22 = vpop.f32.mrf.mxu0  ;;  %v374_v23 = vpop.f32.mrf.mxu1  ;;  %v392_v14 = vadd.f32 %v391_v20, %v2104_v4  ;;  %v411_v57 = vadd.f32 %v410_v21, %v2106_v5  ;;  %v387_v5 = vadd.f32 %v2108_v12, %v2096_v59  ;;  %v564_v20 = vld [vmem:[%s3441_s5] sm:$0xff] }
 0x11f   :  { %v356_v40 = vadd.f32 %v355_v22, %v253_v6  ;;  %v375_v41 = vadd.f32 %v374_v23, %v272_v7  ;;  %v542_v7 = vperm.slane %v538_v37, 2  ;;  %v833_v37 = vld [vmem:[%s3442_s7 + $0x1e0] sm:$0xff] }
 0x125   :  { %v393_v24 = vpop.f32.mrf.mxu2  ;;  %v412_v25 = vpop.f32.mrf.mxu3 }
 0x126   :  { %v455_v26 = vpop.f32.mrf.mxu0  ;;  %v474_v27 = vpop.f32.mrf.mxu1  ;;  %v394_v15 = vadd.f32 %v393_v24, %v291_v8  ;;  %v413_v19 = vadd.f32 %v412_v25, %v310_v9 }
 0x127   :  { %v522_v3 = vadd.f32 %v455_v26, %v349_v53  ;;  %v523_v6 = vadd.f32 %v474_v27, %v368_v54  ;;  %v408_v26 = vadd.f32 %v2112_v17, %v2102_v1  ;;  %v406_v1 = vadd.f32 %v2110_v13, %v2098_v60  ;;  %v789_v53 = vld [vmem:[%s3442_s7 + $0x80] sm:$0xff] }
 0x128   :  { %v821_v54 = vld [vmem:[%s3442_s7 + $0x180] sm:$0xff] }
 0x129   :  { %v548_v27 = vadd.f32 %v540_v46, %v522_v3  ;;  %v549_v63 = vadd.f32 %v541_v47, %v523_v6  ;;  %v861_v3 = vld [vmem:[%s3442_s7 + $0x2c0] sm:$0xff] }
 0x12a   :  { %v893_v6 = vld [vmem:[%s3442_s7 + $0x3c0] sm:$0xff] }
 0x12d   :  { %v2114_v28 = vpop.f32.mrf.mxu2  ;;  %v2116_v29 = vpop.f32.mrf.mxu3 }
 0x12e   :  { %v457_v30 = vpop.f32.mrf.mxu0  ;;  %v476_v31 = vpop.f32.mrf.mxu1  ;;  %v524_v24 = vadd.f32 %v2114_v28, %v387_v5  ;;  %v525_v59 = vadd.f32 %v2116_v29, %v406_v1  ;;  %v565_v29 = vld [vmem:[%s3441_s5 + $0x8] sm:$0xff]  ;;  %v851_v5 = vld [vmem:[%s3442_s7 + $0x270] sm:$0xff]  ;;  %v849_v1 = vld [vmem:[%s3442_s7 + $0x260] sm:$0xff] }
 0x12f   :  { %v526_v55 = vadd.f32 %v457_v30, %v351_v44  ;;  %v527_v0 = vadd.f32 %v476_v31, %v370_v45  ;;  %v899_v44 = vld [vmem:[%s3442_s7 + $0x3f0] sm:$0xff] }
 0x130   :  { %v551_v28 = vadd.f32 %v543_v58, %v525_v59  ;;  %v795_v45 = vld [vmem:[%s3442_s7 + $0xb0] sm:$0xff] }
 0x131   :  { %v552_v10 = vadd.f32 %v540_v46, %v526_v55  ;;  %v553_v11 = vadd.f32 %v541_v47, %v527_v0  ;;  %v863_v55 = vld [vmem:[%s3442_s7 + $0x2d0] sm:$0xff] }
 0x132   :  { %v895_v0 = vld [vmem:[%s3442_s7 + $0x3d0] sm:$0xff] }
 0x133   :  { %v847_v59 = vld [vmem:[%s3442_s7 + $0x250] sm:$0xff] }
 0x135   :  { %v2118_v32 = vpop.f32.mrf.mxu2  ;;  %v2120_v34 = vpop.f32.mrf.mxu3 }
 0x136   :  { %v460_v35 = vpop.f32.mrf.mxu0  ;;  %v479_v36 = vpop.f32.mrf.mxu1  ;;  %v528_v17 = vadd.f32 %v2118_v32, %v389_v62  ;;  %v529_v21 = vadd.f32 %v2120_v34, %v408_v26  ;;  %v550_v32 = vadd.f32 %v542_v7, %v524_v24  ;;  %v803_v34 = vld [vmem:[%s3442_s7 + $0xf0] sm:$0xff]  ;;  %v836_v24 = vld [vmem:[%s3442_s7 + $0x1f8] sm:$0xff] }
 0x137   :  { %v530_v50 = vadd.f32 %v460_v35, %v354_v38  ;;  %v531_v51 = vadd.f32 %v479_v36, %v373_v39  ;;  %v835_v35 = vld [vmem:[%s3442_s7 + $0x1f0] sm:$0xff]  ;;  %v801_v36 = vld [vmem:[%s3442_s7 + $0xe0] sm:$0xff] }
 0x138   :  { %v554_v60 = vadd.f32 %v542_v7, %v528_v17  ;;  %v555_v13 = vadd.f32 %v543_v58, %v529_v21  ;;  %v799_v38 = vld [vmem:[%s3442_s7 + $0xd0] sm:$0xff]  ;;  %v881_v17 = vld [vmem:[%s3442_s7 + $0x360] sm:$0xff]  ;;  %v804_v21 = vld [vmem:[%s3442_s7 + $0xf8] sm:$0xff] }
 0x139   :  { %v556_v18 = vadd.f32 %v540_v46, %v530_v50  ;;  %v557_v61 = vadd.f32 %v541_v47, %v531_v51  ;;  %v831_v39 = vld [vmem:[%s3442_s7 + $0x1d0] sm:$0xff]  ;;  %v825_v50 = vld [vmem:[%s3442_s7 + $0x1a0] sm:$0xff] }
 0x13a   :  { %v791_v51 = vld [vmem:[%s3442_s7 + $0x90] sm:$0xff] }
 0x13b   :  { %v815_v62 = vld [vmem:[%s3442_s7 + $0x150] sm:$0xff] }
 0x13c   :  { %v887_v26 = vld [vmem:[%s3442_s7 + $0x390] sm:$0xff] }
 0x13d   :  { %v498_v42 = vpop.f32.mrf.mxu2  ;;  %v517_v43 = vpop.f32.mrf.mxu3 }
 0x13e   :  { %v462_v48 = vpop.f32.mrf.mxu0  ;;  %v481_v49 = vpop.f32.mrf.mxu1  ;;  %v532_v16 = vadd.f32 %v498_v42, %v392_v14  ;;  %v533_v4 = vadd.f32 %v517_v43, %v411_v57  ;;  %v829_v42 = vld [vmem:[%s3442_s7 + $0x1c0] sm:$0xff]  ;;  %v867_v43 = vld [vmem:[%s3442_s7 + $0x2f0] sm:$0xff] }
 0x13f   :  { %v534_v33 = vadd.f32 %v462_v48, %v356_v40  ;;  %v535_v52 = vadd.f32 %v481_v49, %v375_v41  ;;  %v665_v40 = vld [vmem:[%s3443_s6] sm:$0xff]  ;;  %v859_v14 = vld [vmem:[%s3442_s7 + $0x2b0] sm:$0xff] }
 0x140   :  { %v558_v12 = vadd.f32 %v542_v7, %v532_v16  ;;  %v559_v25 = vadd.f32 %v543_v58, %v533_v4  ;;  %v797_v41 = vld [vmem:[%s3442_s7 + $0xc0] sm:$0xff]  ;;  %v775_v16 = vld [vmem:[%s3442_s7 + $0x10] sm:$0xff] }
 0x141   :  { %v560_v56 = vadd.f32 %v540_v46, %v534_v33  ;;  %v561_v2 = vadd.f32 %v541_v47, %v535_v52  ;;  %v827_v46 = vld [vmem:[%s3442_s7 + $0x1b0] sm:$0xff]  ;;  %v865_v47 = vld [vmem:[%s3442_s7 + $0x2e0] sm:$0xff]  ;;  %v666_v52 = vld [vmem:[%s3443_s6 + $0x8] sm:$0xff] }
 0x142   :  { %v897_v48 = vld [vmem:[%s3442_s7 + $0x3e0] sm:$0xff]  ;;  %v823_v33 = vld [vmem:[%s3442_s7 + $0x190] sm:$0xff] }
 0x143   :  { %585 = vmatpush.msrb.mxu0 %v560_v56  ;;  %608 = vmatpush.msrb.mxu1 %v561_v2  ;;  %v793_v49 = vld [vmem:[%s3442_s7 + $0xa0] sm:$0xff]  ;;  %v807_v4 = vld [vmem:[%s3442_s7 + $0x110] sm:$0xff] }
 0x144   :  { %v813_v57 = vld [vmem:[%s3442_s7 + $0x140] sm:$0xff] }
 0x145   :  { %v500_v22 = vpop.f32.mrf.mxu2  ;;  %v519_v23 = vpop.f32.mrf.mxu3  ;;  %586 = vmatpush.msrb.mxu0 %v556_v18  ;;  %609 = vmatpush.msrb.mxu1 %v557_v61 }
 0x146   :  { %v536_v30 = vadd.f32 %v500_v22, %v394_v15  ;;  %v537_v31 = vadd.f32 %v519_v23, %v413_v19  ;;  %v891_v15 = vld [vmem:[%s3442_s7 + $0x3b0] sm:$0xff]  ;;  %v781_v19 = vld [vmem:[%s3442_s7 + $0x40] sm:$0xff] }
 0x147   :  { %587 = vmatpush.msrb.mxu0 %v552_v10  ;;  %610 = vmatpush.msrb.mxu1 %v553_v11  ;;  %v811_v22 = vld [vmem:[%s3442_s7 + $0x130] sm:$0xff] }
 0x148   :  { %v562_v8 = vadd.f32 %v542_v7, %v536_v30  ;;  %v563_v9 = vadd.f32 %v543_v58, %v537_v31  ;;  %v785_v7 = vld [vmem:[%s3442_s7 + $0x60] sm:$0xff]  ;;  %v855_v23 = vld [vmem:[%s3442_s7 + $0x290] sm:$0xff] }
 0x149   :  { %588 = vmatpush.msrb.mxu0 %v548_v27  ;;  %611 = vmatpush.msrb.mxu1 %v549_v63  ;;  %v857_v58 = vld [vmem:[%s3442_s7 + $0x2a0] sm:$0xff] }
 0x14a   :  { %631 = vmatpush.msrb.mxu2 %v562_v8  ;;  %654 = vmatpush.msrb.mxu3 %v563_v9  ;;  %v809_v30 = vld [vmem:[%s3442_s7 + $0x120] sm:$0xff] }
 0x14b   :  { %1817 = vmatmul.msk.f32.vlgmr.msrb.gmra.mxu0 %vm566_vm6, %v564_v20  ;;  %1819 = vmatmul.msk.f32.vlgmr.msrb.gmra.mxu1 %vm566_vm6, %v564_v20  ;;  %v853_v31 = vld [vmem:[%s3442_s7 + $0x280] sm:$0xff] }
 0x14c   :  { %685 = vmatpush.msra.mxu0 %v560_v56  ;;  %708 = vmatpush.msra.mxu1 %v561_v2  ;;  %v787_v56 = vld [vmem:[%s3442_s7 + $0x70] sm:$0xff] }
 0x14d   :  { %632 = vmatpush.msrb.mxu2 %v558_v12  ;;  %655 = vmatpush.msrb.mxu3 %v559_v25  ;;  %v819_v2 = vld [vmem:[%s3442_s7 + $0x170] sm:$0xff] }
 0x14e   :  { %686 = vmatpush.msra.mxu0 %v556_v18  ;;  %709 = vmatpush.msra.mxu1 %v557_v61  ;;  %v817_v18 = vld [vmem:[%s3442_s7 + $0x160] sm:$0xff]  ;;  %v783_v61 = vld [vmem:[%s3442_s7 + $0x50] sm:$0xff] }
 0x14f   :  { %633 = vmatpush.msrb.mxu2 %v554_v60  ;;  %656 = vmatpush.msrb.mxu3 %v555_v13 }
 0x150   :  { %687 = vmatpush.msra.mxu0 %v552_v10  ;;  %710 = vmatpush.msra.mxu1 %v553_v11  ;;  %v889_v10 = vld [vmem:[%s3442_s7 + $0x3a0] sm:$0xff]  ;;  %v779_v11 = vld [vmem:[%s3442_s7 + $0x30] sm:$0xff] }
 0x151   :  { %634 = vmatpush.msrb.mxu2 %v550_v32  ;;  %657 = vmatpush.msrb.mxu3 %v551_v28 }
 0x152   :  { %1821 = vmatmul.msk.f32.vlgmr.msrb.gmra.mxu2 %vm566_vm6, %v564_v20  ;;  %1823 = vmatmul.msk.f32.vlgmr.msrb.gmra.mxu3 %vm566_vm6, %v564_v20  ;;  %v805_v20 = vld [vmem:[%s3442_s7 + $0x100] sm:$0xff] }
 0x153   :  { %688 = vmatpush.msra.mxu0 %v548_v27  ;;  %711 = vmatpush.msra.mxu1 %v549_v63  ;;  %v777_v27 = vld [vmem:[%s3442_s7 + $0x20] sm:$0xff] }
 0x154   :  { %731 = vmatpush.msra.mxu2 %v562_v8  ;;  %754 = vmatpush.msra.mxu3 %v563_v9  ;;  %v885_v63 = vld [vmem:[%s3442_s7 + $0x380] sm:$0xff]  ;;  %v883_v8 = vld [vmem:[%s3442_s7 + $0x370] sm:$0xff] }
 0x155   :  { %1818 = vmatmul.msk.f32.gmra.mxu0 %vm566_vm6, %v565_v29  ;;  %1820 = vmatmul.msk.f32.gmra.mxu1 %vm566_vm6, %v565_v29  ;;  %v773_v9 = vld [vmem:[%s3442_s7] sm:$0xff] }
 0x156   :  { %732 = vmatpush.msra.mxu2 %v558_v12  ;;  %755 = vmatpush.msra.mxu3 %v559_v25  ;;  %v879_v12 = vld [vmem:[%s3442_s7 + $0x350] sm:$0xff]  ;;  %v802_v25 = vld [vmem:[%s3442_s7 + $0xe8] sm:$0xff] }
 0x157   :  { %901 = vmatpush.msrb.mxu0 %v803_v34  ;;  %924 = vmatpush.msrb.mxu1 %v835_v35  ;;  %v843_v34 = vld [vmem:[%s3442_s7 + $0x230] sm:$0xff] }
 0x158   :  { %733 = vmatpush.msra.mxu2 %v554_v60  ;;  %756 = vmatpush.msra.mxu3 %v555_v13  ;;  %v834_v60 = vld [vmem:[%s3442_s7 + $0x1e8] sm:$0xff]  ;;  %v845_v13 = vld [vmem:[%s3442_s7 + $0x240] sm:$0xff]  ;;  %v875_v35 = vld [vmem:[%s3442_s7 + $0x330] sm:$0xff] }
 0x159   :  { %902 = vmatpush.msrb.mxu0 %v801_v36  ;;  %925 = vmatpush.msrb.mxu1 %v833_v37  ;;  %v798_v36 = vld [vmem:[%s3442_s7 + $0xc8] sm:$0xff] }
 0x15a   :  { %734 = vmatpush.msra.mxu2 %v550_v32  ;;  %757 = vmatpush.msra.mxu3 %v551_v28  ;;  %v877_v32 = vld [vmem:[%s3442_s7 + $0x340] sm:$0xff]  ;;  %v800_v28 = vld [vmem:[%s3442_s7 + $0xd8] sm:$0xff]  ;;  %v830_v37 = vld [vmem:[%s3442_s7 + $0x1c8] sm:$0xff] }
 0x15b   :  { %1822 = vmatmul.msk.f32.gmra.mxu2 %vm566_vm6, %v565_v29  ;;  %1824 = vmatmul.msk.f32.gmra.mxu3 %vm566_vm6, %v565_v29  ;;  %v832_v29 = vld [vmem:[%s3442_s7 + $0x1d8] sm:$0xff] }
 0x15c   :  { %903 = vmatpush.msrb.mxu0 %v799_v38  ;;  %926 = vmatpush.msrb.mxu1 %v831_v39  ;;  %v841_v38 = vld [vmem:[%s3442_s7 + $0x220] sm:$0xff] }
 0x15d   :  { %1825 = vmatmul.msk.f32.vlgmr.msra.gmra.mxu0 %vm566_vm6, %v665_v40  ;;  %1827 = vmatmul.msk.f32.vlgmr.msra.gmra.mxu1 %vm566_vm6, %v665_v40  ;;  %v873_v39 = vld [vmem:[%s3442_s7 + $0x320] sm:$0xff] }
 0x15e   :  { %904 = vmatpush.msrb.mxu0 %v797_v41  ;;  %927 = vmatpush.msrb.mxu1 %v829_v42  ;;  %v828_v41 = vld [vmem:[%s3442_s7 + $0x1b8] sm:$0xff]  ;;  %v839_v42 = vld [vmem:[%s3442_s7 + $0x210] sm:$0xff] }
 0x15f   :  { %947 = vmatpush.msrb.mxu2 %v867_v43  ;;  %970 = vmatpush.msrb.mxu3 %v899_v44  ;;  %v871_v43 = vld [vmem:[%s3442_s7 + $0x310] sm:$0xff]  ;;  %v794_v44 = vld [vmem:[%s3442_s7 + $0xa8] sm:$0xff] }
 0x160   :  { %905 = vmatpush.msrb.mxu0 %v795_v45  ;;  %928 = vmatpush.msrb.mxu1 %v827_v46  ;;  %v826_v45 = vld [vmem:[%s3442_s7 + $0x1a8] sm:$0xff]  ;;  %v837_v46 = vld [vmem:[%s3442_s7 + $0x200] sm:$0xff] }
 0x161   :  { %948 = vmatpush.msrb.mxu2 %v865_v47  ;;  %971 = vmatpush.msrb.mxu3 %v897_v48  ;;  %v869_v47 = vld [vmem:[%s3442_s7 + $0x300] sm:$0xff]  ;;  %v792_v48 = vld [vmem:[%s3442_s7 + $0x98] sm:$0xff] }
 0x162   :  { %906 = vmatpush.msrb.mxu0 %v793_v49  ;;  %929 = vmatpush.msrb.mxu1 %v825_v50  ;;  %v824_v49 = vld [vmem:[%s3442_s7 + $0x198] sm:$0xff] }
 0x163   :  { %1829 = vmatmul.msk.f32.vlgmr.msra.gmra.mxu2 %vm566_vm6, %v665_v40  ;;  %1831 = vmatmul.msk.f32.vlgmr.msra.gmra.mxu3 %vm566_vm6, %v665_v40  ;;  %v796_v40 = vld [vmem:[%s3442_s7 + $0xb8] sm:$0xff] }
 0x164   :  { %907 = vmatpush.msrb.mxu0 %v791_v51  ;;  %930 = vmatpush.msrb.mxu1 %v823_v33  ;;  %v868_v50 = vld [vmem:[%s3442_s7 + $0x2f8] sm:$0xff]  ;;  %v790_v33 = vld [vmem:[%s3442_s7 + $0x88] sm:$0xff] }
 0x165   :  { %1826 = vmatmul.msk.f32.gmra.mxu0 %vm566_vm6, %v666_v52  ;;  %1828 = vmatmul.msk.f32.gmra.mxu1 %vm566_vm6, %v666_v52  ;;  %v900_v51 = vld [vmem:[%s3442_s7 + $0x3f8] sm:$0xff] }
 0x166   :  { %908 = vmatpush.msrb.mxu0 %v789_v53  ;;  %931 = vmatpush.msrb.mxu1 %v821_v54  ;;  %v866_v53 = vld [vmem:[%s3442_s7 + $0x2e8] sm:$0xff] }
 0x167   :  { %949 = vmatpush.msrb.mxu2 %v863_v55  ;;  %972 = vmatpush.msrb.mxu3 %v895_v0  ;;  %v898_v54 = vld [vmem:[%s3442_s7 + $0x3e8] sm:$0xff]  ;;  %v788_v55 = vld [vmem:[%s3442_s7 + $0x78] sm:$0xff] }
 0x168   :  { %909 = vmatpush.msrb.mxu0 %v787_v56  ;;  %932 = vmatpush.msrb.mxu1 %v819_v2  ;;  %v820_v0 = vld [vmem:[%s3442_s7 + $0x178] sm:$0xff] }
 0x169   :  { %950 = vmatpush.msrb.mxu2 %v861_v3  ;;  %973 = vmatpush.msrb.mxu3 %v893_v6  ;;  %v864_v56 = vld [vmem:[%s3442_s7 + $0x2d8] sm:$0xff]  ;;  %v786_v3 = vld [vmem:[%s3442_s7 + $0x68] sm:$0xff] }
 0x16a   :  { %910 = vmatpush.msrb.mxu0 %v785_v7  ;;  %933 = vmatpush.msrb.mxu1 %v817_v18  ;;  %v896_v2 = vld [vmem:[%s3442_s7 + $0x3d8] sm:$0xff]  ;;  %v818_v6 = vld [vmem:[%s3442_s7 + $0x168] sm:$0xff] }
 0x16b   :  { %1830 = vmatmul.msk.f32.gmra.mxu2 %vm566_vm6, %v666_v52  ;;  %1832 = vmatmul.msk.f32.gmra.mxu3 %vm566_vm6, %v666_v52  ;;  %v822_v52 = vld [vmem:[%s3442_s7 + $0x188] sm:$0xff] }
 0x16c   :  { %911 = vmatpush.msrb.mxu0 %v783_v61  ;;  %934 = vmatpush.msrb.mxu1 %v815_v62  ;;  %v862_v7 = vld [vmem:[%s3442_s7 + $0x2c8] sm:$0xff]  ;;  %v784_v61 = vld [vmem:[%s3442_s7 + $0x58] sm:$0xff] }
 0x16d   :  { %951 = vmatpush.msrb.mxu2 %v859_v14  ;;  %974 = vmatpush.msrb.mxu3 %v891_v15  ;;  %v894_v18 = vld [vmem:[%s3442_s7 + $0x3c8] sm:$0xff]  ;;  %v816_v62 = vld [vmem:[%s3442_s7 + $0x158] sm:$0xff] }
 0x16e   :  { %912 = vmatpush.msrb.mxu0 %v781_v19  ;;  %935 = vmatpush.msrb.mxu1 %v813_v57  ;;  %v860_v14 = vld [vmem:[%s3442_s7 + $0x2b8] sm:$0xff]  ;;  %v782_v19 = vld [vmem:[%s3442_s7 + $0x48] sm:$0xff] }
 0x16f   :  { %952 = vmatpush.msrb.mxu2 %v857_v58  ;;  %975 = vmatpush.msrb.mxu3 %v889_v10  ;;  %v892_v15 = vld [vmem:[%s3442_s7 + $0x3b8] sm:$0xff]  ;;  %v814_v57 = vld [vmem:[%s3442_s7 + $0x148] sm:$0xff] }
 0x170   :  { %913 = vmatpush.msrb.mxu0 %v779_v11  ;;  %936 = vmatpush.msrb.mxu1 %v811_v22  ;;  %v858_v58 = vld [vmem:[%s3442_s7 + $0x2a8] sm:$0xff]  ;;  %v780_v11 = vld [vmem:[%s3442_s7 + $0x38] sm:$0xff] }
 0x171   :  { %953 = vmatpush.msrb.mxu2 %v855_v23  ;;  %976 = vmatpush.msrb.mxu3 %v887_v26  ;;  %v890_v10 = vld [vmem:[%s3442_s7 + $0x3a8] sm:$0xff]  ;;  %v812_v22 = vld [vmem:[%s3442_s7 + $0x138] sm:$0xff] }
 0x172   :  { %914 = vmatpush.msrb.mxu0 %v777_v27  ;;  %937 = vmatpush.msrb.mxu1 %v809_v30  ;;  %v856_v23 = vld [vmem:[%s3442_s7 + $0x298] sm:$0xff]  ;;  %v778_v27 = vld [vmem:[%s3442_s7 + $0x28] sm:$0xff] }
 0x173   :  { %954 = vmatpush.msrb.mxu2 %v853_v31  ;;  %977 = vmatpush.msrb.mxu3 %v885_v63  ;;  %v888_v26 = vld [vmem:[%s3442_s7 + $0x398] sm:$0xff]  ;;  %v810_v30 = vld [vmem:[%s3442_s7 + $0x128] sm:$0xff] }
 0x174   :  { %915 = vmatpush.msrb.mxu0 %v775_v16  ;;  %938 = vmatpush.msrb.mxu1 %v807_v4  ;;  %v854_v31 = vld [vmem:[%s3442_s7 + $0x288] sm:$0xff]  ;;  %v776_v16 = vld [vmem:[%s3442_s7 + $0x18] sm:$0xff] }
 0x175   :  { %955 = vmatpush.msrb.mxu2 %v851_v5  ;;  %978 = vmatpush.msrb.mxu3 %v883_v8  ;;  %v886_v63 = vld [vmem:[%s3442_s7 + $0x388] sm:$0xff]  ;;  %v808_v4 = vld [vmem:[%s3442_s7 + $0x118] sm:$0xff] }
 0x176   :  { %916 = vmatpush.msrb.mxu0 %v773_v9  ;;  %939 = vmatpush.msrb.mxu1 %v805_v20  ;;  %v852_v5 = vld [vmem:[%s3442_s7 + $0x278] sm:$0xff]  ;;  %v774_v9 = vld [vmem:[%s3442_s7 + $0x8] sm:$0xff] }
 0x177   :  { %956 = vmatpush.msrb.mxu2 %v849_v1  ;;  %979 = vmatpush.msrb.mxu3 %v881_v17  ;;  %v884_v8 = vld [vmem:[%s3442_s7 + $0x378] sm:$0xff]  ;;  %v806_v20 = vld [vmem:[%s3442_s7 + $0x108] sm:$0xff] }
 0x178   :  { %993 = vmatpush.msra.mxu0 %v804_v21  ;;  %1016 = vmatpush.msra.mxu1 %v836_v24  ;;  %v850_v1 = vld [vmem:[%s3442_s7 + $0x268] sm:$0xff]  ;;  %v848_v21 = vld [vmem:[%s3442_s7 + $0x258] sm:$0xff] }
 0x179   :  { %957 = vmatpush.msrb.mxu2 %v847_v59  ;;  %980 = vmatpush.msrb.mxu3 %v879_v12  ;;  %v882_v17 = vld [vmem:[%s3442_s7 + $0x368] sm:$0xff]  ;;  %v880_v24 = vld [vmem:[%s3442_s7 + $0x358] sm:$0xff] }
 0x17a   :  { %994 = vmatpush.msra.mxu0 %v802_v25  ;;  %1017 = vmatpush.msra.mxu1 %v834_v60  ;;  %v846_v59 = vld [vmem:[%s3442_s7 + $0x248] sm:$0xff]  ;;  %v844_v25 = vld [vmem:[%s3442_s7 + $0x238] sm:$0xff] }
 0x17b   :  { %958 = vmatpush.msrb.mxu2 %v845_v13  ;;  %981 = vmatpush.msrb.mxu3 %v877_v32  ;;  %v878_v12 = vld [vmem:[%s3442_s7 + $0x348] sm:$0xff]  ;;  %v876_v60 = vld [vmem:[%s3442_s7 + $0x338] sm:$0xff] }
 0x17c   :  { %995 = vmatpush.msra.mxu0 %v800_v28  ;;  %1018 = vmatpush.msra.mxu1 %v832_v29  ;;  %v842_v13 = vld [vmem:[%s3442_s7 + $0x228] sm:$0xff]  ;;  %v840_v28 = vld [vmem:[%s3442_s7 + $0x218] sm:$0xff] }
 0x17d   :  { %959 = vmatpush.msrb.mxu2 %v843_v34  ;;  %982 = vmatpush.msrb.mxu3 %v875_v35  ;;  %v874_v32 = vld [vmem:[%s3442_s7 + $0x328] sm:$0xff]  ;;  %v872_v29 = vld [vmem:[%s3442_s7 + $0x318] sm:$0xff] }
 0x17e   :  { %996 = vmatpush.msra.mxu0 %v798_v36  ;;  %1019 = vmatpush.msra.mxu1 %v830_v37  ;;  %v838_v36 = vld [vmem:[%s3442_s7 + $0x208] sm:$0xff] }
 0x17f   :  { %960 = vmatpush.msrb.mxu2 %v841_v38  ;;  %983 = vmatpush.msrb.mxu3 %v873_v39  ;;  %v870_v37 = vld [vmem:[%s3442_s7 + $0x308] sm:$0xff] }
 0x180   :  { %997 = vmatpush.msra.mxu0 %v796_v40  ;;  %1020 = vmatpush.msra.mxu1 %v828_v41 }
 0x181   :  { %961 = vmatpush.msrb.mxu2 %v839_v42  ;;  %984 = vmatpush.msrb.mxu3 %v871_v43 }
 0x182   :  { %998 = vmatpush.msra.mxu0 %v794_v44  ;;  %1021 = vmatpush.msra.mxu1 %v826_v45 }
 0x183   :  { %962 = vmatpush.msrb.mxu2 %v837_v46  ;;  %985 = vmatpush.msrb.mxu3 %v869_v47  ;;  %v1115_v46 = vld [vmem:[%s3444_s8 + $0xf0] sm:$0xff] }
 0x184   :  { %999 = vmatpush.msra.mxu0 %v792_v48  ;;  %1022 = vmatpush.msra.mxu1 %v824_v49  ;;  %v1147_v47 = vld [vmem:[%s3444_s8 + $0x1f0] sm:$0xff]  ;;  %v1113_v48 = vld [vmem:[%s3444_s8 + $0xe0] sm:$0xff] }
 0x185   :  { %1039 = vmatpush.msra.mxu2 %v868_v50  ;;  %1062 = vmatpush.msra.mxu3 %v900_v51  ;;  %v1145_v49 = vld [vmem:[%s3444_s8 + $0x1e0] sm:$0xff] }
 0x186   :  { %1000 = vmatpush.msra.mxu0 %v790_v33  ;;  %1023 = vmatpush.msra.mxu1 %v822_v52  ;;  %v1111_v33 = vld [vmem:[%s3444_s8 + $0xd0] sm:$0xff] }
 0x187   :  { %1040 = vmatpush.msra.mxu2 %v866_v53  ;;  %1063 = vmatpush.msra.mxu3 %v898_v54  ;;  %v1143_v52 = vld [vmem:[%s3444_s8 + $0x1d0] sm:$0xff]  ;;  %v1109_v53 = vld [vmem:[%s3444_s8 + $0xc0] sm:$0xff] }
 0x188   :  { %1001 = vmatpush.msra.mxu0 %v788_v55  ;;  %1024 = vmatpush.msra.mxu1 %v820_v0  ;;  %v1141_v54 = vld [vmem:[%s3444_s8 + $0x1c0] sm:$0xff] }
 0x189   :  { %1041 = vmatpush.msra.mxu2 %v864_v56  ;;  %1064 = vmatpush.msra.mxu3 %v896_v2 }
 0x18a   :  { %1002 = vmatpush.msra.mxu0 %v786_v3  ;;  %1025 = vmatpush.msra.mxu1 %v818_v6  ;;  %v1107_v3 = vld [vmem:[%s3444_s8 + $0xb0] sm:$0xff] }
 0x18b   :  { %1042 = vmatpush.msra.mxu2 %v862_v7  ;;  %1065 = vmatpush.msra.mxu3 %v894_v18  ;;  %v1139_v6 = vld [vmem:[%s3444_s8 + $0x1b0] sm:$0xff]  ;;  %v1105_v7 = vld [vmem:[%s3444_s8 + $0xa0] sm:$0xff] }
 0x18c   :  { %1003 = vmatpush.msra.mxu0 %v784_v61  ;;  %1026 = vmatpush.msra.mxu1 %v816_v62  ;;  %v1137_v18 = vld [vmem:[%s3444_s8 + $0x1a0] sm:$0xff] }
 0x18d   :  { %1043 = vmatpush.msra.mxu2 %v860_v14  ;;  %1066 = vmatpush.msra.mxu3 %v892_v15 }
 0x18e   :  { %1004 = vmatpush.msra.mxu0 %v782_v19  ;;  %1027 = vmatpush.msra.mxu1 %v814_v57  ;;  %v1103_v19 = vld [vmem:[%s3444_s8 + $0x90] sm:$0xff] }
 0x18f   :  { %1044 = vmatpush.msra.mxu2 %v858_v58  ;;  %1067 = vmatpush.msra.mxu3 %v890_v10  ;;  %v1135_v57 = vld [vmem:[%s3444_s8 + $0x190] sm:$0xff] }
 0x190   :  { %1005 = vmatpush.msra.mxu0 %v780_v11  ;;  %1028 = vmatpush.msra.mxu1 %v812_v22  ;;  %v1179_v58 = vld [vmem:[%s3444_s8 + $0x2f0] sm:$0xff]  ;;  %v1101_v11 = vld [vmem:[%s3444_s8 + $0x80] sm:$0xff] }
 0x191   :  { %1045 = vmatpush.msra.mxu2 %v856_v23  ;;  %1068 = vmatpush.msra.mxu3 %v888_v26  ;;  %v1211_v10 = vld [vmem:[%s3444_s8 + $0x3f0] sm:$0xff]  ;;  %v1133_v22 = vld [vmem:[%s3444_s8 + $0x180] sm:$0xff] }
 0x192   :  { %1006 = vmatpush.msra.mxu0 %v778_v27  ;;  %1029 = vmatpush.msra.mxu1 %v810_v30  ;;  %v1177_v23 = vld [vmem:[%s3444_s8 + $0x2e0] sm:$0xff]  ;;  %v1099_v27 = vld [vmem:[%s3444_s8 + $0x70] sm:$0xff] }
 0x193   :  { %1046 = vmatpush.msra.mxu2 %v854_v31  ;;  %1069 = vmatpush.msra.mxu3 %v886_v63  ;;  %v1209_v26 = vld [vmem:[%s3444_s8 + $0x3e0] sm:$0xff]  ;;  %v1131_v30 = vld [vmem:[%s3444_s8 + $0x170] sm:$0xff] }
 0x194   :  { %1007 = vmatpush.msra.mxu0 %v776_v16  ;;  %1030 = vmatpush.msra.mxu1 %v808_v4  ;;  %v1175_v31 = vld [vmem:[%s3444_s8 + $0x2d0] sm:$0xff] }
 0x195   :  { %1047 = vmatpush.msra.mxu2 %v852_v5  ;;  %1070 = vmatpush.msra.mxu3 %v884_v8  ;;  %v1207_v63 = vld [vmem:[%s3444_s8 + $0x3d0] sm:$0xff]  ;;  %v1097_v5 = vld [vmem:[%s3444_s8 + $0x60] sm:$0xff] }
 0x196   :  { %1008 = vmatpush.msra.mxu0 %v774_v9  ;;  %1031 = vmatpush.msra.mxu1 %v806_v20  ;;  %v1129_v8 = vld [vmem:[%s3444_s8 + $0x160] sm:$0xff] }
 0x197   :  { %1048 = vmatpush.msra.mxu2 %v850_v1  ;;  %1071 = vmatpush.msra.mxu3 %v882_v17  ;;  %v1173_v1 = vld [vmem:[%s3444_s8 + $0x2c0] sm:$0xff] }
 0x198   :  { %v1205_v17 = vld [vmem:[%s3444_s8 + $0x3c0] sm:$0xff] }
 0x199   :  { %1049 = vmatpush.msra.mxu2 %v848_v21  ;;  %1072 = vmatpush.msra.mxu3 %v880_v24  ;;  %v1095_v21 = vld [vmem:[%s3444_s8 + $0x50] sm:$0xff] }
 0x19a   :  { %v1127_v24 = vld [vmem:[%s3444_s8 + $0x150] sm:$0xff] }
 0x19b   :  { %1050 = vmatpush.msra.mxu2 %v846_v59  ;;  %1073 = vmatpush.msra.mxu3 %v878_v12  ;;  %v1171_v59 = vld [vmem:[%s3444_s8 + $0x2b0] sm:$0xff] }
 0x19c   :  { %v1203_v12 = vld [vmem:[%s3444_s8 + $0x3b0] sm:$0xff] }
 0x19d   :  { %1051 = vmatpush.msra.mxu2 %v844_v25  ;;  %1074 = vmatpush.msra.mxu3 %v876_v60  ;;  %v1093_v25 = vld [vmem:[%s3444_s8 + $0x40] sm:$0xff] }
 0x19e   :  { %v1125_v60 = vld [vmem:[%s3444_s8 + $0x140] sm:$0xff] }
 0x19f   :  { %1052 = vmatpush.msra.mxu2 %v842_v13  ;;  %1075 = vmatpush.msra.mxu3 %v874_v32  ;;  %v1169_v13 = vld [vmem:[%s3444_s8 + $0x2a0] sm:$0xff] }
 0x1a0   :  { %v1201_v32 = vld [vmem:[%s3444_s8 + $0x3a0] sm:$0xff] }
 0x1a1   :  { %1053 = vmatpush.msra.mxu2 %v840_v28  ;;  %1076 = vmatpush.msra.mxu3 %v872_v29  ;;  %v1091_v28 = vld [vmem:[%s3444_s8 + $0x30] sm:$0xff] }
 0x1a2   :  { %v1123_v29 = vld [vmem:[%s3444_s8 + $0x130] sm:$0xff] }
 0x1a3   :  { %1054 = vmatpush.msra.mxu2 %v838_v36  ;;  %1077 = vmatpush.msra.mxu3 %v870_v37  ;;  %v1167_v36 = vld [vmem:[%s3444_s8 + $0x290] sm:$0xff] }
 0x1a4   :  { %v1199_v37 = vld [vmem:[%s3444_s8 + $0x390] sm:$0xff] }
 0x1c8   :  { %v2544_v34 = vpop.f32.mrf.mxu0  ;;  %v2546_v35 = vpop.f32.mrf.mxu1 }
 0x1d2   :  { %v2554_v38 = vpop.f32.mrf.mxu0  ;;  %v2556_v39 = vpop.f32.mrf.mxu1 }
 0x1d5   :  { %v2558_v40 = vpop.f32.mrf.mxu2  ;;  %v2560_v41 = vpop.f32.mrf.mxu3 }
 0x1da   :  { %v690_v42 = vpop.f32.mrf.mxu0  ;;  %v713_v43 = vpop.f32.mrf.mxu1 }
 0x1db   :  { %v2563_v44 = vmax.f32 %v2544_v34, %v690_v42  ;;  %v2566_v45 = vmax.f32 %v2546_v35, %v713_v43  ;;  %v1089_v42 = vld [vmem:[%s3444_s8 + $0x20] sm:$0xff] }
 0x1dc   :  { %v1121_v43 = vld [vmem:[%s3444_s8 + $0x120] sm:$0xff] }
 0x1dd   :  { %917 = vmatmul.f32.vlgmr.msrb.gmra.mxu0 %v2563_v44  ;;  %940 = vmatmul.f32.vlgmr.msrb.gmra.mxu1 %v2566_v45 }
 0x1de   :  { %1213 = vmatpush.msrb.mxu0 %v1115_v46  ;;  %1236 = vmatpush.msrb.mxu1 %v1147_v47  ;;  %v2582_v50 = vpop.f32.mrf.mxu2  ;;  %v2584_v51 = vpop.f32.mrf.mxu3  ;;  %v1165_v46 = vld [vmem:[%s3444_s8 + $0x280] sm:$0xff] }
 0x1df   :  { %v1197_v47 = vld [vmem:[%s3444_s8 + $0x380] sm:$0xff] }
 0x1e0   :  { %1214 = vmatpush.msrb.mxu0 %v1113_v48  ;;  %1237 = vmatpush.msrb.mxu1 %v1145_v49  ;;  %v1087_v48 = vld [vmem:[%s3444_s8 + $0x10] sm:$0xff] }
 0x1e1   :  { %v1119_v49 = vld [vmem:[%s3444_s8 + $0x110] sm:$0xff] }
 0x1e2   :  { %1215 = vmatpush.msrb.mxu0 %v1111_v33  ;;  %1238 = vmatpush.msrb.mxu1 %v1143_v52  ;;  %v693_v55 = vpop.f32.mrf.mxu0  ;;  %v716_v0 = vpop.f32.mrf.mxu1  ;;  %v1163_v33 = vld [vmem:[%s3444_s8 + $0x270] sm:$0xff] }
 0x1e3   :  { %v2599_v56 = vmax.f32 %v2554_v38, %v693_v55  ;;  %v2602_v2 = vmax.f32 %v2556_v39, %v716_v0  ;;  %v1195_v52 = vld [vmem:[%s3444_s8 + $0x370] sm:$0xff]  ;;  %v1161_v55 = vld [vmem:[%s3444_s8 + $0x260] sm:$0xff] }
 0x1e4   :  { %1216 = vmatpush.msrb.mxu0 %v1109_v53  ;;  %1239 = vmatpush.msrb.mxu1 %v1141_v54  ;;  %v1085_v53 = vld [vmem:[%s3444_s8] sm:$0xff] }
 0x1e5   :  { %920 = vmatmul.f32.gmra.mxu0 %v2599_v56  ;;  %943 = vmatmul.f32.gmra.mxu1 %v2602_v2  ;;  %v1117_v54 = vld [vmem:[%s3444_s8 + $0x100] sm:$0xff] }
 0x1e6   :  { %1217 = vmatpush.msrb.mxu0 %v1107_v3  ;;  %1240 = vmatpush.msrb.mxu1 %v1139_v6  ;;  %v736_v61 = vpop.f32.mrf.mxu2  ;;  %v759_v62 = vpop.f32.mrf.mxu3  ;;  %v1193_v0 = vld [vmem:[%s3444_s8 + $0x360] sm:$0xff]  ;;  %v1116_v3 = vld [vmem:[%s3444_s8 + $0xf8] sm:$0xff] }
 0x1e7   :  { %v2619_v14 = vmax.f32 %v2558_v40, %v736_v61  ;;  %v2622_v15 = vmax.f32 %v2560_v41, %v759_v62  ;;  %v1148_v6 = vld [vmem:[%s3444_s8 + $0x1f8] sm:$0xff]  ;;  %v1114_v61 = vld [vmem:[%s3444_s8 + $0xe8] sm:$0xff] }
 0x1e8   :  { %1218 = vmatpush.msrb.mxu0 %v1105_v7  ;;  %1241 = vmatpush.msrb.mxu1 %v1137_v18  ;;  %v1159_v7 = vld [vmem:[%s3444_s8 + $0x250] sm:$0xff]  ;;  %v1146_v62 = vld [vmem:[%s3444_s8 + $0x1e8] sm:$0xff] }
 0x1e9   :  { %963 = vmatmul.f32.vlgmr.msrb.gmra.mxu2 %v2619_v14  ;;  %986 = vmatmul.f32.vlgmr.msrb.gmra.mxu3 %v2622_v15  ;;  %v1191_v18 = vld [vmem:[%s3444_s8 + $0x350] sm:$0xff] }
 0x1ea   :  { %1219 = vmatpush.msrb.mxu0 %v1103_v19  ;;  %1242 = vmatpush.msrb.mxu1 %v1135_v57  ;;  %v1157_v19 = vld [vmem:[%s3444_s8 + $0x240] sm:$0xff] }
 0x1eb   :  { %1259 = vmatpush.msrb.mxu2 %v1179_v58  ;;  %1282 = vmatpush.msrb.mxu3 %v1211_v10  ;;  %v1189_v57 = vld [vmem:[%s3444_s8 + $0x340] sm:$0xff]  ;;  %v1112_v58 = vld [vmem:[%s3444_s8 + $0xd8] sm:$0xff] }
 0x1ec   :  { %1220 = vmatpush.msrb.mxu0 %v1101_v11  ;;  %1243 = vmatpush.msrb.mxu1 %v1133_v22  ;;  %v1144_v10 = vld [vmem:[%s3444_s8 + $0x1d8] sm:$0xff]  ;;  %v1155_v11 = vld [vmem:[%s3444_s8 + $0x230] sm:$0xff] }
 0x1ed   :  { %1260 = vmatpush.msrb.mxu2 %v1177_v23  ;;  %1283 = vmatpush.msrb.mxu3 %v1209_v26  ;;  %v1187_v22 = vld [vmem:[%s3444_s8 + $0x330] sm:$0xff]  ;;  %v1110_v23 = vld [vmem:[%s3444_s8 + $0xc8] sm:$0xff] }
 0x1ee   :  { %1009 = vmatmul.f32.vlgmr.msra.gmra.mxu0 %v2563_v44  ;;  %1032 = vmatmul.f32.vlgmr.msra.gmra.mxu1 %v2566_v45  ;;  %v739_v16 = vpop.f32.mrf.mxu2  ;;  %v762_v4 = vpop.f32.mrf.mxu3  ;;  %v1142_v26 = vld [vmem:[%s3444_s8 + $0x1c8] sm:$0xff] }
 0x1ef   :  { %1221 = vmatpush.msrb.mxu0 %v1099_v27  ;;  %1244 = vmatpush.msrb.mxu1 %v1131_v30  ;;  %v2671_v9 = vmax.f32 %v2582_v50, %v739_v16  ;;  %v2674_v20 = vmax.f32 %v2584_v51, %v762_v4  ;;  %v1153_v27 = vld [vmem:[%s3444_s8 + $0x220] sm:$0xff]  ;;  %v1151_v16 = vld [vmem:[%s3444_s8 + $0x210] sm:$0xff] }
 0x1f0   :  { %1261 = vmatpush.msrb.mxu2 %v1175_v31  ;;  %1284 = vmatpush.msrb.mxu3 %v1207_v63  ;;  %v1185_v30 = vld [vmem:[%s3444_s8 + $0x320] sm:$0xff]  ;;  %v1108_v31 = vld [vmem:[%s3444_s8 + $0xb8] sm:$0xff]  ;;  %v1183_v4 = vld [vmem:[%s3444_s8 + $0x310] sm:$0xff] }
 0x1f1   :  { %1222 = vmatpush.msrb.mxu0 %v1097_v5  ;;  %1245 = vmatpush.msrb.mxu1 %v1129_v8  ;;  %v1140_v63 = vld [vmem:[%s3444_s8 + $0x1b8] sm:$0xff]  ;;  %v1106_v5 = vld [vmem:[%s3444_s8 + $0xa8] sm:$0xff] }
 0x1f2   :  { %1262 = vmatpush.msrb.mxu2 %v1173_v1  ;;  %1285 = vmatpush.msrb.mxu3 %v1205_v17  ;;  %v1138_v8 = vld [vmem:[%s3444_s8 + $0x1a8] sm:$0xff]  ;;  %v1149_v1 = vld [vmem:[%s3444_s8 + $0x200] sm:$0xff] }
 0x1f3   :  { %966 = vmatmul.f32.gmra.mxu2 %v2671_v9  ;;  %989 = vmatmul.f32.gmra.mxu3 %v2674_v20  ;;  %v1181_v17 = vld [vmem:[%s3444_s8 + $0x300] sm:$0xff] }
 0x1f4   :  { %1223 = vmatpush.msrb.mxu0 %v1095_v21  ;;  %1246 = vmatpush.msrb.mxu1 %v1127_v24  ;;  %v1104_v21 = vld [vmem:[%s3444_s8 + $0x98] sm:$0xff] }
 0x1f5   :  { %1263 = vmatpush.msrb.mxu2 %v1171_v59  ;;  %1286 = vmatpush.msrb.mxu3 %v1203_v12  ;;  %v1136_v24 = vld [vmem:[%s3444_s8 + $0x198] sm:$0xff] }
 0x1f6   :  { %1224 = vmatpush.msrb.mxu0 %v1093_v25  ;;  %1247 = vmatpush.msrb.mxu1 %v1125_v60  ;;  %v1180_v59 = vld [vmem:[%s3444_s8 + $0x2f8] sm:$0xff]  ;;  %v1102_v25 = vld [vmem:[%s3444_s8 + $0x88] sm:$0xff] }
 0x1f7   :  { %1264 = vmatpush.msrb.mxu2 %v1169_v13  ;;  %1287 = vmatpush.msrb.mxu3 %v1201_v32  ;;  %v1212_v12 = vld [vmem:[%s3444_s8 + $0x3f8] sm:$0xff]  ;;  %v1134_v60 = vld [vmem:[%s3444_s8 + $0x188] sm:$0xff] }
 0x1f8   :  { %1012 = vmatmul.f32.gmra.mxu0 %v2599_v56  ;;  %1035 = vmatmul.f32.gmra.mxu1 %v2602_v2  ;;  %v1178_v13 = vld [vmem:[%s3444_s8 + $0x2e8] sm:$0xff] }
 0x1f9   :  { %1225 = vmatpush.msrb.mxu0 %v1091_v28  ;;  %1248 = vmatpush.msrb.mxu1 %v1123_v29  ;;  %v1210_v32 = vld [vmem:[%s3444_s8 + $0x3e8] sm:$0xff]  ;;  %v1100_v28 = vld [vmem:[%s3444_s8 + $0x78] sm:$0xff] }
 0x1fa   :  { %1265 = vmatpush.msrb.mxu2 %v1167_v36  ;;  %1288 = vmatpush.msrb.mxu3 %v1199_v37  ;;  %v1132_v29 = vld [vmem:[%s3444_s8 + $0x178] sm:$0xff] }
 0x1fb   :  { %1226 = vmatpush.msrb.mxu0 %v1089_v42  ;;  %1249 = vmatpush.msrb.mxu1 %v1121_v43  ;;  %v1176_v36 = vld [vmem:[%s3444_s8 + $0x2d8] sm:$0xff]  ;;  %v1098_v42 = vld [vmem:[%s3444_s8 + $0x68] sm:$0xff] }
 0x1fc   :  { %1266 = vmatpush.msrb.mxu2 %v1165_v46  ;;  %1289 = vmatpush.msrb.mxu3 %v1197_v47  ;;  %v1208_v37 = vld [vmem:[%s3444_s8 + $0x3d8] sm:$0xff]  ;;  %v1130_v43 = vld [vmem:[%s3444_s8 + $0x168] sm:$0xff] }
 0x1fd   :  { %1055 = vmatmul.f32.vlgmr.msra.gmra.mxu2 %v2619_v14  ;;  %1078 = vmatmul.f32.vlgmr.msra.gmra.mxu3 %v2622_v15  ;;  %v1174_v46 = vld [vmem:[%s3444_s8 + $0x2c8] sm:$0xff] }
 0x1fe   :  { %1227 = vmatpush.msrb.mxu0 %v1087_v48  ;;  %1250 = vmatpush.msrb.mxu1 %v1119_v49  ;;  %v1206_v47 = vld [vmem:[%s3444_s8 + $0x3c8] sm:$0xff]  ;;  %v1096_v48 = vld [vmem:[%s3444_s8 + $0x58] sm:$0xff] }
 0x1ff   :  { %1267 = vmatpush.msrb.mxu2 %v1163_v33  ;;  %1290 = vmatpush.msrb.mxu3 %v1195_v52  ;;  %v1128_v49 = vld [vmem:[%s3444_s8 + $0x158] sm:$0xff] }
 0x200   :  { %1228 = vmatpush.msrb.mxu0 %v1085_v53  ;;  %1251 = vmatpush.msrb.mxu1 %v1117_v54  ;;  %v1172_v33 = vld [vmem:[%s3444_s8 + $0x2b8] sm:$0xff]  ;;  %v1094_v53 = vld [vmem:[%s3444_s8 + $0x48] sm:$0xff] }
 0x201   :  { %1268 = vmatpush.msrb.mxu2 %v1161_v55  ;;  %1291 = vmatpush.msrb.mxu3 %v1193_v0  ;;  %v1204_v52 = vld [vmem:[%s3444_s8 + $0x3b8] sm:$0xff]  ;;  %v1126_v54 = vld [vmem:[%s3444_s8 + $0x148] sm:$0xff] }
 0x202   :  { %1305 = vmatpush.msra.mxu0 %v1116_v3  ;;  %1328 = vmatpush.msra.mxu1 %v1148_v6  ;;  %v1170_v55 = vld [vmem:[%s3444_s8 + $0x2a8] sm:$0xff]  ;;  %v1092_v3 = vld [vmem:[%s3444_s8 + $0x38] sm:$0xff] }
 0x203   :  { %1229 = vmatmul.f32.vlgmr.msrb.gmra.mxu0 %v2563_v44  ;;  %1252 = vmatmul.f32.vlgmr.msrb.gmra.mxu1 %v2566_v45  ;;  %v1202_v0 = vld [vmem:[%s3444_s8 + $0x3a8] sm:$0xff]  ;;  %v1124_v6 = vld [vmem:[%s3444_s8 + $0x138] sm:$0xff] }
 0x204   :  { %1269 = vmatpush.msrb.mxu2 %v1159_v7  ;;  %1292 = vmatpush.msrb.mxu3 %v1191_v18  ;;  %v1168_v7 = vld [vmem:[%s3444_s8 + $0x298] sm:$0xff] }
 0x205   :  { %1306 = vmatpush.msra.mxu0 %v1114_v61  ;;  %1329 = vmatpush.msra.mxu1 %v1146_v62  ;;  %v1200_v18 = vld [vmem:[%s3444_s8 + $0x398] sm:$0xff]  ;;  %v1090_v61 = vld [vmem:[%s3444_s8 + $0x28] sm:$0xff] }
 0x206   :  { %1270 = vmatpush.msrb.mxu2 %v1157_v19  ;;  %1293 = vmatpush.msrb.mxu3 %v1189_v57  ;;  %v1122_v62 = vld [vmem:[%s3444_s8 + $0x128] sm:$0xff] }
 0x207   :  { %1307 = vmatpush.msra.mxu0 %v1112_v58  ;;  %1330 = vmatpush.msra.mxu1 %v1144_v10  ;;  %v1166_v19 = vld [vmem:[%s3444_s8 + $0x288] sm:$0xff]  ;;  %v1088_v58 = vld [vmem:[%s3444_s8 + $0x18] sm:$0xff] }
 0x208   :  { %1058 = vmatmul.f32.gmra.mxu2 %v2671_v9  ;;  %1081 = vmatmul.f32.gmra.mxu3 %v2674_v20  ;;  %v1198_v57 = vld [vmem:[%s3444_s8 + $0x388] sm:$0xff]  ;;  %v1120_v10 = vld [vmem:[%s3444_s8 + $0x118] sm:$0xff] }
 0x209   :  { %1271 = vmatpush.msrb.mxu2 %v1155_v11  ;;  %1294 = vmatpush.msrb.mxu3 %v1187_v22  ;;  %v1164_v11 = vld [vmem:[%s3444_s8 + $0x278] sm:$0xff] }
 0x20a   :  { %1308 = vmatpush.msra.mxu0 %v1110_v23  ;;  %1331 = vmatpush.msra.mxu1 %v1142_v26  ;;  %v1196_v22 = vld [vmem:[%s3444_s8 + $0x378] sm:$0xff]  ;;  %v1086_v23 = vld [vmem:[%s3444_s8 + $0x8] sm:$0xff] }
 0x20b   :  { %1272 = vmatpush.msrb.mxu2 %v1153_v27  ;;  %1295 = vmatpush.msrb.mxu3 %v1185_v30  ;;  %v1118_v26 = vld [vmem:[%s3444_s8 + $0x108] sm:$0xff] }
 0x20c   :  { %1309 = vmatpush.msra.mxu0 %v1108_v31  ;;  %1332 = vmatpush.msra.mxu1 %v1140_v63  ;;  %v1162_v27 = vld [vmem:[%s3444_s8 + $0x268] sm:$0xff]  ;;  %v1435_v31 = vld [vmem:[%s3442_s7 + $0xf0] sm:$0xff] }
 0x20d   :  { %1232 = vmatmul.f32.gmra.mxu0 %v2599_v56  ;;  %1255 = vmatmul.f32.gmra.mxu1 %v2602_v2  ;;  %v1194_v30 = vld [vmem:[%s3444_s8 + $0x368] sm:$0xff]  ;;  %v1467_v63 = vld [vmem:[%s3442_s7 + $0x1f0] sm:$0xff] }
 0x20e   :  { %1273 = vmatpush.msrb.mxu2 %v1151_v16  ;;  %1296 = vmatpush.msrb.mxu3 %v1183_v4  ;;  %v1160_v16 = vld [vmem:[%s3444_s8 + $0x258] sm:$0xff] }
 0x20f   :  { %1310 = vmatpush.msra.mxu0 %v1106_v5  ;;  %1333 = vmatpush.msra.mxu1 %v1138_v8  ;;  %v1192_v4 = vld [vmem:[%s3444_s8 + $0x358] sm:$0xff]  ;;  %v1433_v5 = vld [vmem:[%s3442_s7 + $0xe0] sm:$0xff] }
 0x210   :  { %1274 = vmatpush.msrb.mxu2 %v1149_v1  ;;  %1297 = vmatpush.msrb.mxu3 %v1181_v17  ;;  %v1465_v8 = vld [vmem:[%s3442_s7 + $0x1e0] sm:$0xff]  ;;  %v1158_v1 = vld [vmem:[%s3444_s8 + $0x248] sm:$0xff]  ;;  %v1463_v17 = vld [vmem:[%s3442_s7 + $0x1d0] sm:$0xff] }
 0x211   :  { %1311 = vmatpush.msra.mxu0 %v1104_v21  ;;  %1334 = vmatpush.msra.mxu1 %v1136_v24  ;;  %v1156_v21 = vld [vmem:[%s3444_s8 + $0x238] sm:$0xff] }
 0x212   :  { %1351 = vmatpush.msra.mxu2 %v1180_v59  ;;  %1374 = vmatpush.msra.mxu3 %v1212_v12  ;;  %v1188_v24 = vld [vmem:[%s3444_s8 + $0x338] sm:$0xff]  ;;  %v1429_v59 = vld [vmem:[%s3442_s7 + $0xc0] sm:$0xff] }
 0x213   :  { %1275 = vmatmul.f32.vlgmr.msrb.gmra.mxu2 %v2619_v14  ;;  %1298 = vmatmul.f32.vlgmr.msrb.gmra.mxu3 %v2622_v15  ;;  %v1461_v12 = vld [vmem:[%s3442_s7 + $0x1c0] sm:$0xff] }
 0x214   :  { %1312 = vmatpush.msra.mxu0 %v1102_v25  ;;  %1335 = vmatpush.msra.mxu1 %v1134_v60  ;;  %v1154_v25 = vld [vmem:[%s3444_s8 + $0x228] sm:$0xff] }
 0x215   :  { %1352 = vmatpush.msra.mxu2 %v1178_v13  ;;  %1375 = vmatpush.msra.mxu3 %v1210_v32  ;;  %v1186_v60 = vld [vmem:[%s3444_s8 + $0x328] sm:$0xff]  ;;  %v1427_v13 = vld [vmem:[%s3442_s7 + $0xb0] sm:$0xff] }
 0x216   :  { %1313 = vmatpush.msra.mxu0 %v1100_v28  ;;  %1336 = vmatpush.msra.mxu1 %v1132_v29  ;;  %v1459_v32 = vld [vmem:[%s3442_s7 + $0x1b0] sm:$0xff]  ;;  %v1152_v28 = vld [vmem:[%s3444_s8 + $0x218] sm:$0xff] }
 0x217   :  { %1353 = vmatpush.msra.mxu2 %v1176_v36  ;;  %1376 = vmatpush.msra.mxu3 %v1208_v37  ;;  %v1184_v29 = vld [vmem:[%s3444_s8 + $0x318] sm:$0xff]  ;;  %v1425_v36 = vld [vmem:[%s3442_s7 + $0xa0] sm:$0xff] }
 0x218   :  { %1314 = vmatpush.msra.mxu0 %v1098_v42  ;;  %1337 = vmatpush.msra.mxu1 %v1130_v43  ;;  %v1457_v37 = vld [vmem:[%s3442_s7 + $0x1a0] sm:$0xff]  ;;  %v1150_v42 = vld [vmem:[%s3444_s8 + $0x208] sm:$0xff]  ;;  %v1455_v43 = vld [vmem:[%s3442_s7 + $0x190] sm:$0xff] }
 0x219   :  { %1354 = vmatpush.msra.mxu2 %v1174_v46  ;;  %1377 = vmatpush.msra.mxu3 %v1206_v47  ;;  %v1499_v46 = vld [vmem:[%s3442_s7 + $0x2f0] sm:$0xff] }
 0x21a   :  { %1315 = vmatpush.msra.mxu0 %v1096_v48  ;;  %1338 = vmatpush.msra.mxu1 %v1128_v49  ;;  %v1531_v47 = vld [vmem:[%s3442_s7 + $0x3f0] sm:$0xff]  ;;  %v1421_v48 = vld [vmem:[%s3442_s7 + $0x80] sm:$0xff] }
 0x21b   :  { %1355 = vmatpush.msra.mxu2 %v1172_v33  ;;  %1378 = vmatpush.msra.mxu3 %v1204_v52  ;;  %v1453_v49 = vld [vmem:[%s3442_s7 + $0x180] sm:$0xff]  ;;  %v1451_v52 = vld [vmem:[%s3442_s7 + $0x170] sm:$0xff] }
 0x21c   :  { %1278 = vmatmul.f32.gmra.mxu2 %v2671_v9  ;;  %1301 = vmatmul.f32.gmra.mxu3 %v2674_v20  ;;  %v1497_v33 = vld [vmem:[%s3442_s7 + $0x2e0] sm:$0xff] }
 0x21d   :  { %1316 = vmatpush.msra.mxu0 %v1094_v53  ;;  %1339 = vmatpush.msra.mxu1 %v1126_v54  ;;  %v1495_v53 = vld [vmem:[%s3442_s7 + $0x2d0] sm:$0xff] }
 0x21e   :  { %1356 = vmatpush.msra.mxu2 %v1170_v55  ;;  %1379 = vmatpush.msra.mxu3 %v1202_v0  ;;  %v1527_v54 = vld [vmem:[%s3442_s7 + $0x3d0] sm:$0xff]  ;;  %v1417_v55 = vld [vmem:[%s3442_s7 + $0x60] sm:$0xff] }
 0x21f   :  { %1317 = vmatpush.msra.mxu0 %v1092_v3  ;;  %1340 = vmatpush.msra.mxu1 %v1124_v6  ;;  %v1449_v0 = vld [vmem:[%s3442_s7 + $0x160] sm:$0xff] }
 0x220   :  { %1357 = vmatpush.msra.mxu2 %v1168_v7  ;;  %1380 = vmatpush.msra.mxu3 %v1200_v18  ;;  %v1493_v3 = vld [vmem:[%s3442_s7 + $0x2c0] sm:$0xff]  ;;  %v1415_v7 = vld [vmem:[%s3442_s7 + $0x50] sm:$0xff] }
 0x221   :  { %1318 = vmatpush.msra.mxu0 %v1090_v61  ;;  %1341 = vmatpush.msra.mxu1 %v1122_v62  ;;  %v1525_v6 = vld [vmem:[%s3442_s7 + $0x3c0] sm:$0xff]  ;;  %v1447_v18 = vld [vmem:[%s3442_s7 + $0x150] sm:$0xff] }
 0x222   :  { %1358 = vmatpush.msra.mxu2 %v1166_v19  ;;  %1381 = vmatpush.msra.mxu3 %v1198_v57  ;;  %v1491_v61 = vld [vmem:[%s3442_s7 + $0x2b0] sm:$0xff]  ;;  %v1413_v19 = vld [vmem:[%s3442_s7 + $0x40] sm:$0xff] }
 0x223   :  { %1319 = vmatpush.msra.mxu0 %v1088_v58  ;;  %1342 = vmatpush.msra.mxu1 %v1120_v10  ;;  %v1523_v62 = vld [vmem:[%s3442_s7 + $0x3b0] sm:$0xff]  ;;  %v1445_v57 = vld [vmem:[%s3442_s7 + $0x140] sm:$0xff] }
 0x224   :  { %1359 = vmatpush.msra.mxu2 %v1164_v11  ;;  %1382 = vmatpush.msra.mxu3 %v1196_v22  ;;  %v1489_v58 = vld [vmem:[%s3442_s7 + $0x2a0] sm:$0xff]  ;;  %v1443_v10 = vld [vmem:[%s3442_s7 + $0x130] sm:$0xff] }
 0x225   :  { %1320 = vmatpush.msra.mxu0 %v1086_v23  ;;  %1343 = vmatpush.msra.mxu1 %v1118_v26  ;;  %v1487_v11 = vld [vmem:[%s3442_s7 + $0x290] sm:$0xff]  ;;  %v1409_v23 = vld [vmem:[%s3442_s7 + $0x20] sm:$0xff] }
 0x226   :  { %1360 = vmatpush.msra.mxu2 %v1162_v27  ;;  %1383 = vmatpush.msra.mxu3 %v1194_v30  ;;  %v1519_v22 = vld [vmem:[%s3442_s7 + $0x390] sm:$0xff]  ;;  %v1441_v26 = vld [vmem:[%s3442_s7 + $0x120] sm:$0xff] }
 0x227   :  { %1321 = vmatmul.f32.vlgmr.msra.gmra.mxu0 %v2563_v44  ;;  %1344 = vmatmul.f32.vlgmr.msra.gmra.mxu1 %v2566_v45  ;;  %v1190_v44 = vld [vmem:[%s3444_s8 + $0x348] sm:$0xff]  ;;  %v1431_v45 = vld [vmem:[%s3442_s7 + $0xd0] sm:$0xff]  ;;  %v1485_v27 = vld [vmem:[%s3442_s7 + $0x280] sm:$0xff] }
 0x228   :  { %1533 = vmatpush.msrb.mxu0 %v1435_v31  ;;  %1556 = vmatpush.msrb.mxu1 %v1467_v63  ;;  %v1517_v30 = vld [vmem:[%s3442_s7 + $0x380] sm:$0xff]  ;;  %v1407_v31 = vld [vmem:[%s3442_s7 + $0x10] sm:$0xff] }
 0x229   :  { %1361 = vmatpush.msra.mxu2 %v1160_v16  ;;  %1384 = vmatpush.msra.mxu3 %v1192_v4  ;;  %v1439_v63 = vld [vmem:[%s3442_s7 + $0x110] sm:$0xff] }
 0x22a   :  { %1534 = vmatpush.msrb.mxu0 %v1433_v5  ;;  %1557 = vmatpush.msrb.mxu1 %v1465_v8  ;;  %v1483_v16 = vld [vmem:[%s3442_s7 + $0x270] sm:$0xff]  ;;  %v1405_v5 = vld [vmem:[%s3442_s7] sm:$0xff] }
 0x22b   :  { %1362 = vmatpush.msra.mxu2 %v1158_v1  ;;  %1385 = vmatpush.msra.mxu3 %v1190_v44  ;;  %v1515_v4 = vld [vmem:[%s3442_s7 + $0x370] sm:$0xff]  ;;  %v1437_v8 = vld [vmem:[%s3442_s7 + $0x100] sm:$0xff] }
 0x22c   :  { %1535 = vmatpush.msrb.mxu0 %v1431_v45  ;;  %1558 = vmatpush.msrb.mxu1 %v1463_v17  ;;  %v1481_v1 = vld [vmem:[%s3442_s7 + $0x260] sm:$0xff]  ;;  %v1436_v45 = vld [vmem:[%s3442_s7 + $0xf8] sm:$0xff] }
 0x22d   :  { %1363 = vmatpush.msra.mxu2 %v1156_v21  ;;  %1386 = vmatpush.msra.mxu3 %v1188_v24  ;;  %v1513_v44 = vld [vmem:[%s3442_s7 + $0x360] sm:$0xff]  ;;  %v1468_v17 = vld [vmem:[%s3442_s7 + $0x1f8] sm:$0xff]  ;;  %v1479_v21 = vld [vmem:[%s3442_s7 + $0x250] sm:$0xff] }
 0x22e   :  { %1536 = vmatpush.msrb.mxu0 %v1429_v59  ;;  %1559 = vmatpush.msrb.mxu1 %v1461_v12  ;;  %v1511_v24 = vld [vmem:[%s3442_s7 + $0x350] sm:$0xff]  ;;  %v1434_v59 = vld [vmem:[%s3442_s7 + $0xe8] sm:$0xff] }
 0x22f   :  { %1364 = vmatpush.msra.mxu2 %v1154_v25  ;;  %1387 = vmatpush.msra.mxu3 %v1186_v60  ;;  %v1466_v12 = vld [vmem:[%s3442_s7 + $0x1e8] sm:$0xff]  ;;  %v1477_v25 = vld [vmem:[%s3442_s7 + $0x240] sm:$0xff] }
 0x230   :  { %1324 = vmatmul.f32.gmra.mxu0 %v2599_v56  ;;  %1347 = vmatmul.f32.gmra.mxu1 %v2602_v2  ;;  %v1182_v56 = vld [vmem:[%s3444_s8 + $0x308] sm:$0xff]  ;;  %v1423_v2 = vld [vmem:[%s3442_s7 + $0x90] sm:$0xff]  ;;  %v1509_v60 = vld [vmem:[%s3442_s7 + $0x340] sm:$0xff] }
 0x231   :  { %1537 = vmatpush.msrb.mxu0 %v1427_v13  ;;  %1560 = vmatpush.msrb.mxu1 %v1459_v32  ;;  %v1432_v13 = vld [vmem:[%s3442_s7 + $0xd8] sm:$0xff] }
 0x232   :  { %1365 = vmatpush.msra.mxu2 %v1152_v28  ;;  %1388 = vmatpush.msra.mxu3 %v1184_v29  ;;  %v1464_v32 = vld [vmem:[%s3442_s7 + $0x1d8] sm:$0xff]  ;;  %v1475_v28 = vld [vmem:[%s3442_s7 + $0x230] sm:$0xff] }
 0x233   :  { %1538 = vmatpush.msrb.mxu0 %v1425_v36  ;;  %1561 = vmatpush.msrb.mxu1 %v1457_v37  ;;  %v1507_v29 = vld [vmem:[%s3442_s7 + $0x330] sm:$0xff]  ;;  %v1430_v36 = vld [vmem:[%s3442_s7 + $0xc8] sm:$0xff] }
 0x234   :  { %1366 = vmatpush.msra.mxu2 %v1150_v42  ;;  %1389 = vmatpush.msra.mxu3 %v1182_v56  ;;  %v1462_v37 = vld [vmem:[%s3442_s7 + $0x1c8] sm:$0xff]  ;;  %v1473_v42 = vld [vmem:[%s3442_s7 + $0x220] sm:$0xff] }
 0x235   :  { %1367 = vmatmul.f32.vlgmr.msra.gmra.mxu2 %v2619_v14  ;;  %1390 = vmatmul.f32.vlgmr.msra.gmra.mxu3 %v2622_v15  ;;  %v1529_v14 = vld [vmem:[%s3442_s7 + $0x3e0] sm:$0xff]  ;;  %v1419_v15 = vld [vmem:[%s3442_s7 + $0x70] sm:$0xff] }
 0x236   :  { %1539 = vmatpush.msrb.mxu0 %v1423_v2  ;;  %1562 = vmatpush.msrb.mxu1 %v1455_v43  ;;  %v1505_v56 = vld [vmem:[%s3442_s7 + $0x320] sm:$0xff]  ;;  %v1428_v2 = vld [vmem:[%s3442_s7 + $0xb8] sm:$0xff] }
 0x237   :  { %1579 = vmatpush.msrb.mxu2 %v1499_v46  ;;  %1602 = vmatpush.msrb.mxu3 %v1531_v47  ;;  %v1460_v43 = vld [vmem:[%s3442_s7 + $0x1b8] sm:$0xff]  ;;  %v1471_v46 = vld [vmem:[%s3442_s7 + $0x210] sm:$0xff] }
 0x238   :  { %1540 = vmatpush.msrb.mxu0 %v1421_v48  ;;  %1563 = vmatpush.msrb.mxu1 %v1453_v49  ;;  %v1503_v47 = vld [vmem:[%s3442_s7 + $0x310] sm:$0xff]  ;;  %v1426_v48 = vld [vmem:[%s3442_s7 + $0xa8] sm:$0xff] }
 0x239   :  { %1580 = vmatpush.msrb.mxu2 %v1497_v33  ;;  %1603 = vmatpush.msrb.mxu3 %v1529_v14  ;;  %v1458_v49 = vld [vmem:[%s3442_s7 + $0x1a8] sm:$0xff]  ;;  %v1469_v33 = vld [vmem:[%s3442_s7 + $0x200] sm:$0xff] }
 0x23a   :  { %1541 = vmatpush.msrb.mxu0 %v1419_v15  ;;  %1564 = vmatpush.msrb.mxu1 %v1451_v52  ;;  %v1501_v14 = vld [vmem:[%s3442_s7 + $0x300] sm:$0xff]  ;;  %v1424_v15 = vld [vmem:[%s3442_s7 + $0x98] sm:$0xff] }
 0x23b   :  { %1581 = vmatpush.msrb.mxu2 %v1495_v53  ;;  %1604 = vmatpush.msrb.mxu3 %v1527_v54  ;;  %v1456_v52 = vld [vmem:[%s3442_s7 + $0x198] sm:$0xff] }
 0x23c   :  { %1542 = vmatpush.msrb.mxu0 %v1417_v55  ;;  %1565 = vmatpush.msrb.mxu1 %v1449_v0  ;;  %v1500_v53 = vld [vmem:[%s3442_s7 + $0x2f8] sm:$0xff]  ;;  %v1422_v55 = vld [vmem:[%s3442_s7 + $0x88] sm:$0xff] }
 0x23d   :  { %1582 = vmatpush.msrb.mxu2 %v1493_v3  ;;  %1605 = vmatpush.msrb.mxu3 %v1525_v6  ;;  %v1532_v54 = vld [vmem:[%s3442_s7 + $0x3f8] sm:$0xff]  ;;  %v1454_v0 = vld [vmem:[%s3442_s7 + $0x188] sm:$0xff] }
 0x23e   :  { %1370 = vmatmul.f32.gmra.mxu2 %v2671_v9  ;;  %1393 = vmatmul.f32.gmra.mxu3 %v2674_v20  ;;  %v1521_v9 = vld [vmem:[%s3442_s7 + $0x3a0] sm:$0xff]  ;;  %v1411_v20 = vld [vmem:[%s3442_s7 + $0x30] sm:$0xff]  ;;  %v1498_v3 = vld [vmem:[%s3442_s7 + $0x2e8] sm:$0xff] }
 0x23f   :  { %1543 = vmatpush.msrb.mxu0 %v1415_v7  ;;  %1566 = vmatpush.msrb.mxu1 %v1447_v18  ;;  %v1530_v6 = vld [vmem:[%s3442_s7 + $0x3e8] sm:$0xff]  ;;  %v1420_v7 = vld [vmem:[%s3442_s7 + $0x78] sm:$0xff] }
 0x240   :  { %1583 = vmatpush.msrb.mxu2 %v1491_v61  ;;  %1606 = vmatpush.msrb.mxu3 %v1523_v62  ;;  %v1452_v18 = vld [vmem:[%s3442_s7 + $0x178] sm:$0xff] }
 0x241   :  { %1544 = vmatpush.msrb.mxu0 %v1413_v19  ;;  %1567 = vmatpush.msrb.mxu1 %v1445_v57  ;;  %v1496_v61 = vld [vmem:[%s3442_s7 + $0x2d8] sm:$0xff]  ;;  %v1418_v19 = vld [vmem:[%s3442_s7 + $0x68] sm:$0xff] }
 0x242   :  { %1584 = vmatpush.msrb.mxu2 %v1489_v58  ;;  %1607 = vmatpush.msrb.mxu3 %v1521_v9  ;;  %v1528_v62 = vld [vmem:[%s3442_s7 + $0x3d8] sm:$0xff]  ;;  %v1450_v57 = vld [vmem:[%s3442_s7 + $0x168] sm:$0xff] }
 0x243   :  { %1545 = vmatpush.msrb.mxu0 %v1411_v20  ;;  %1568 = vmatpush.msrb.mxu1 %v1443_v10  ;;  %v1494_v58 = vld [vmem:[%s3442_s7 + $0x2c8] sm:$0xff]  ;;  %v1416_v20 = vld [vmem:[%s3442_s7 + $0x58] sm:$0xff] }
 0x244   :  { %1585 = vmatpush.msrb.mxu2 %v1487_v11  ;;  %1608 = vmatpush.msrb.mxu3 %v1519_v22  ;;  %v1526_v9 = vld [vmem:[%s3442_s7 + $0x3c8] sm:$0xff]  ;;  %v1448_v10 = vld [vmem:[%s3442_s7 + $0x158] sm:$0xff] }
 0x245   :  { %1546 = vmatpush.msrb.mxu0 %v1409_v23  ;;  %1569 = vmatpush.msrb.mxu1 %v1441_v26  ;;  %v1492_v11 = vld [vmem:[%s3442_s7 + $0x2b8] sm:$0xff]  ;;  %v1414_v23 = vld [vmem:[%s3442_s7 + $0x48] sm:$0xff] }
 0x246   :  { %1586 = vmatpush.msrb.mxu2 %v1485_v27  ;;  %1609 = vmatpush.msrb.mxu3 %v1517_v30  ;;  %v1524_v22 = vld [vmem:[%s3442_s7 + $0x3b8] sm:$0xff]  ;;  %v1446_v26 = vld [vmem:[%s3442_s7 + $0x148] sm:$0xff] }
 0x247   :  { %1547 = vmatpush.msrb.mxu0 %v1407_v31  ;;  %1570 = vmatpush.msrb.mxu1 %v1439_v63  ;;  %v1490_v27 = vld [vmem:[%s3442_s7 + $0x2a8] sm:$0xff]  ;;  %v1412_v31 = vld [vmem:[%s3442_s7 + $0x38] sm:$0xff] }
 0x248   :  { %1587 = vmatpush.msrb.mxu2 %v1483_v16  ;;  %1610 = vmatpush.msrb.mxu3 %v1515_v4  ;;  %v1522_v30 = vld [vmem:[%s3442_s7 + $0x3a8] sm:$0xff]  ;;  %v1444_v63 = vld [vmem:[%s3442_s7 + $0x138] sm:$0xff] }
 0x249   :  { %1548 = vmatpush.msrb.mxu0 %v1405_v5  ;;  %1571 = vmatpush.msrb.mxu1 %v1437_v8  ;;  %v1488_v16 = vld [vmem:[%s3442_s7 + $0x298] sm:$0xff]  ;;  %v1410_v5 = vld [vmem:[%s3442_s7 + $0x28] sm:$0xff] }
 0x24a   :  { %1588 = vmatpush.msrb.mxu2 %v1481_v1  ;;  %1611 = vmatpush.msrb.mxu3 %v1513_v44  ;;  %v1520_v4 = vld [vmem:[%s3442_s7 + $0x398] sm:$0xff]  ;;  %v1442_v8 = vld [vmem:[%s3442_s7 + $0x128] sm:$0xff] }
 0x24b   :  { %1549 = vmatmul.f32.vlgmr.msrb.gmra.mxu0 %v2544_v34  ;;  %1572 = vmatmul.f32.vlgmr.msrb.gmra.mxu1 %v2546_v35  ;;  %v1486_v1 = vld [vmem:[%s3442_s7 + $0x288] sm:$0xff] }
 0x24c   :  { %1625 = vmatpush.msra.mxu0 %v1436_v45  ;;  %1648 = vmatpush.msra.mxu1 %v1468_v17  ;;  %v1518_v44 = vld [vmem:[%s3442_s7 + $0x388] sm:$0xff]  ;;  %v1408_v45 = vld [vmem:[%s3442_s7 + $0x18] sm:$0xff] }
 0x24d   :  { %1589 = vmatpush.msrb.mxu2 %v1479_v21  ;;  %1612 = vmatpush.msrb.mxu3 %v1511_v24  ;;  %v1440_v17 = vld [vmem:[%s3442_s7 + $0x118] sm:$0xff] }
 0x24e   :  { %1626 = vmatpush.msra.mxu0 %v1434_v59  ;;  %1649 = vmatpush.msra.mxu1 %v1466_v12  ;;  %v1484_v21 = vld [vmem:[%s3442_s7 + $0x278] sm:$0xff] }
 0x24f   :  { %1590 = vmatpush.msrb.mxu2 %v1477_v25  ;;  %1613 = vmatpush.msrb.mxu3 %v1509_v60  ;;  %v1516_v24 = vld [vmem:[%s3442_s7 + $0x378] sm:$0xff]  ;;  %v1406_v25 = vld [vmem:[%s3442_s7 + $0x8] sm:$0xff] }
 0x250   :  { %1627 = vmatpush.msra.mxu0 %v1432_v13  ;;  %1650 = vmatpush.msra.mxu1 %v1464_v32  ;;  %v1438_v60 = vld [vmem:[%s3442_s7 + $0x108] sm:$0xff] }
 0x251   :  { %1591 = vmatpush.msrb.mxu2 %v1475_v28  ;;  %1614 = vmatpush.msrb.mxu3 %v1507_v29  ;;  %v1482_v13 = vld [vmem:[%s3442_s7 + $0x268] sm:$0xff]  ;;  %v1480_v28 = vld [vmem:[%s3442_s7 + $0x258] sm:$0xff] }
 0x252   :  { %1628 = vmatpush.msra.mxu0 %v1430_v36  ;;  %1651 = vmatpush.msra.mxu1 %v1462_v37  ;;  %v1514_v32 = vld [vmem:[%s3442_s7 + $0x368] sm:$0xff]  ;;  %v1512_v29 = vld [vmem:[%s3442_s7 + $0x358] sm:$0xff] }
 0x253   :  { %1592 = vmatpush.msrb.mxu2 %v1473_v42  ;;  %1615 = vmatpush.msrb.mxu3 %v1505_v56  ;;  %v1478_v37 = vld [vmem:[%s3442_s7 + $0x248] sm:$0xff] }
 0x254   :  { %1552 = vmatmul.f32.gmra.mxu0 %v2554_v38  ;;  %1575 = vmatmul.f32.gmra.mxu1 %v2556_v39  ;;  %v1510_v42 = vld [vmem:[%s3442_s7 + $0x348] sm:$0xff] }
 0x255   :  { %1629 = vmatpush.msra.mxu0 %v1428_v2  ;;  %1652 = vmatpush.msra.mxu1 %v1460_v43  ;;  %v1476_v2 = vld [vmem:[%s3442_s7 + $0x238] sm:$0xff]  ;;  %v1506_v43 = vld [vmem:[%s3442_s7 + $0x328] sm:$0xff] }
 0x256   :  { %1593 = vmatpush.msrb.mxu2 %v1471_v46  ;;  %1616 = vmatpush.msrb.mxu3 %v1503_v47 }
 0x257   :  { %1630 = vmatpush.msra.mxu0 %v1426_v48  ;;  %1653 = vmatpush.msra.mxu1 %v1458_v49  ;;  %v1472_v48 = vld [vmem:[%s3442_s7 + $0x218] sm:$0xff] }
 0x258   :  { %1594 = vmatpush.msrb.mxu2 %v1469_v33  ;;  %1617 = vmatpush.msrb.mxu3 %v1501_v14  ;;  %v1504_v49 = vld [vmem:[%s3442_s7 + $0x318] sm:$0xff]  ;;  %v1470_v33 = vld [vmem:[%s3442_s7 + $0x208] sm:$0xff] }
 0x259   :  { %1595 = vmatmul.f32.vlgmr.msrb.gmra.mxu2 %v2558_v40  ;;  %1618 = vmatmul.f32.vlgmr.msrb.gmra.mxu3 %v2560_v41  ;;  %v1502_v14 = vld [vmem:[%s3442_s7 + $0x308] sm:$0xff] }
 0x25a   :  { %1631 = vmatpush.msra.mxu0 %v1424_v15  ;;  %1654 = vmatpush.msra.mxu1 %v1456_v52  ;;  %v3350_v59 = vpop.f32.mrf.mxu0  ;;  %v3352_v12 = vpop.f32.mrf.mxu1 }
 0x25b   :  { %1671 = vmatpush.msra.mxu2 %v1500_v53  ;;  %1694 = vmatpush.msra.mxu3 %v1532_v54 }
 0x25c   :  { %1632 = vmatpush.msra.mxu0 %v1422_v55  ;;  %1655 = vmatpush.msra.mxu1 %v1454_v0 }
 0x25d   :  { %1672 = vmatpush.msra.mxu2 %v1498_v3  ;;  %1695 = vmatpush.msra.mxu3 %v1530_v6 }
 0x25e   :  { %1633 = vmatpush.msra.mxu0 %v1420_v7  ;;  %1656 = vmatpush.msra.mxu1 %v1452_v18 }
 0x25f   :  { %1673 = vmatpush.msra.mxu2 %v1496_v61  ;;  %1696 = vmatpush.msra.mxu3 %v1528_v62  ;;  %v942_v61 = vadd.f32 %v3352_v12, %v3350_v59 }
 0x260   :  { %1634 = vmatpush.msra.mxu0 %v1418_v19  ;;  %1657 = vmatpush.msra.mxu1 %v1450_v57 }
 0x261   :  { %1674 = vmatpush.msra.mxu2 %v1494_v58  ;;  %1697 = vmatpush.msra.mxu3 %v1526_v9 }
 0x262   :  { %1598 = vmatmul.f32.gmra.mxu2 %v2582_v50  ;;  %1621 = vmatmul.f32.gmra.mxu3 %v2584_v51  ;;  %v921_v46 = vpop.f32.mrf.mxu0  ;;  %v944_v47 = vpop.f32.mrf.mxu1 }
 0x263   :  { %1635 = vmatpush.msra.mxu0 %v1416_v20  ;;  %1658 = vmatpush.msra.mxu1 %v1448_v10  ;;  %v945_v10 = vadd.f32 %v944_v47, %v921_v46 }
 0x264   :  { %1675 = vmatpush.msra.mxu2 %v1492_v11  ;;  %1698 = vmatpush.msra.mxu3 %v1524_v22 }
 0x265   :  { %1636 = vmatpush.msra.mxu0 %v1414_v23  ;;  %1659 = vmatpush.msra.mxu1 %v1446_v26 }
 0x266   :  { %1676 = vmatpush.msra.mxu2 %v1490_v27  ;;  %1699 = vmatpush.msra.mxu3 %v1522_v30 }
 0x267   :  { %1637 = vmatpush.msra.mxu0 %v1412_v31  ;;  %1660 = vmatpush.msra.mxu1 %v1444_v63 }
 0x268   :  { %1677 = vmatpush.msra.mxu2 %v1488_v16  ;;  %1700 = vmatpush.msra.mxu3 %v1520_v4 }
 0x269   :  { %1638 = vmatpush.msra.mxu0 %v1410_v5  ;;  %1661 = vmatpush.msra.mxu1 %v1442_v8 }
 0x26a   :  { %1678 = vmatpush.msra.mxu2 %v1486_v1  ;;  %1701 = vmatpush.msra.mxu3 %v1518_v44 }
 0x26b   :  { %1639 = vmatpush.msra.mxu0 %v1408_v45  ;;  %1662 = vmatpush.msra.mxu1 %v1440_v17 }
 0x26c   :  { %1679 = vmatpush.msra.mxu2 %v1484_v21  ;;  %1702 = vmatpush.msra.mxu3 %v1516_v24  ;;  %v964_v36 = vpop.f32.mrf.mxu2  ;;  %v987_v56 = vpop.f32.mrf.mxu3 }
 0x26d   :  { %1640 = vmatpush.msra.mxu0 %v1406_v25  ;;  %1663 = vmatpush.msra.mxu1 %v1438_v60 }
 0x26e   :  { %1680 = vmatpush.msra.mxu2 %v1482_v13  ;;  %1703 = vmatpush.msra.mxu3 %v1514_v32 }
 0x26f   :  { %1641 = vmatmul.f32.vlgmr.msra.gmra.mxu0 %v2544_v34  ;;  %1664 = vmatmul.f32.vlgmr.msra.gmra.mxu1 %v2546_v35  ;;  %v1508_v34 = vld [vmem:[%s3442_s7 + $0x338] sm:$0xff]  ;;  %v1474_v35 = vld [vmem:[%s3442_s7 + $0x228] sm:$0xff] }
 0x270   :  { %1681 = vmatpush.msra.mxu2 %v1480_v28  ;;  %1704 = vmatpush.msra.mxu3 %v1512_v29 }
 0x272   :  { %1682 = vmatpush.msra.mxu2 %v1478_v37  ;;  %1705 = vmatpush.msra.mxu3 %v1510_v42 }
 0x274   :  { %1683 = vmatpush.msra.mxu2 %v1476_v2  ;;  %1706 = vmatpush.msra.mxu3 %v1508_v34 }
 0x276   :  { %1684 = vmatpush.msra.mxu2 %v1474_v35  ;;  %1707 = vmatpush.msra.mxu3 %v1506_v43  ;;  %v967_v15 = vpop.f32.mrf.mxu2  ;;  %v990_v52 = vpop.f32.mrf.mxu3 }
 0x277   :  { %1644 = vmatmul.f32.gmra.mxu0 %v2554_v38  ;;  %1667 = vmatmul.f32.gmra.mxu1 %v2556_v39  ;;  %v1010_v38 = vpop.f32.mrf.mxu0  ;;  %v1033_v39 = vpop.f32.mrf.mxu1  ;;  %v968_v11 = vadd.f32 %v967_v15, %v945_v10 }
 0x278   :  { %1685 = vmatpush.msra.mxu2 %v1472_v48  ;;  %1708 = vmatpush.msra.mxu3 %v1504_v49  ;;  %v1034_v5 = vadd.f32 %v1033_v39, %v1010_v38 }
 0x279   :  { %v991_v30 = vadd.f32 %v990_v52, %v968_v11 }
 0x27a   :  { %1686 = vmatpush.msra.mxu2 %v1470_v33  ;;  %1709 = vmatpush.msra.mxu3 %v1502_v14 }
 0x27b   :  { %1687 = vmatmul.f32.vlgmr.msra.gmra.mxu2 %v2558_v40  ;;  %1710 = vmatmul.f32.vlgmr.msra.gmra.mxu3 %v2560_v41  ;;  %v965_v40 = vadd.f32 %v964_v36, %v942_v61 }
 0x27d   :  { %v988_v58 = vadd.f32 %v987_v56, %v965_v40 }
 0x27f   :  { %v1013_v55 = vpop.f32.mrf.mxu0  ;;  %v1036_v0 = vpop.f32.mrf.mxu1 }
 0x280   :  { %v1056_v53 = vpop.f32.mrf.mxu2  ;;  %v1079_v54 = vpop.f32.mrf.mxu3  ;;  %v1037_v60 = vadd.f32 %v1036_v0, %v1013_v55 }
 0x281   :  { %v1057_v8 = vadd.f32 %v1056_v53, %v1034_v5 }
 0x283   :  { %1690 = vmatmul.f32.gmra.mxu2 %v2582_v50  ;;  %1713 = vmatmul.f32.gmra.mxu3 %v2584_v51  ;;  %v1080_v21 = vadd.f32 %v1079_v54, %v1057_v8 }
 0x287   :  { %v1230_v7 = vpop.f32.mrf.mxu0  ;;  %v1253_v18 = vpop.f32.mrf.mxu1 }
 0x288   :  { %v1254_v62 = vadd.f32 %v1253_v18, %v1230_v7 }
 0x28b   :  { %v1059_v3 = vpop.f32.mrf.mxu2  ;;  %v1082_v6 = vpop.f32.mrf.mxu3 }
 0x28c   :  { %v1060_v13 = vadd.f32 %v1059_v3, %v1037_v60 }
 0x28e   :  { %v1083_v37 = vadd.f32 %v1082_v6, %v1060_v13 }
 0x28f   :  { %v1233_v50 = vpop.f32.mrf.mxu0  ;;  %v1256_v20 = vpop.f32.mrf.mxu1 }
 0x290   :  { %v1257_v22 = vadd.f32 %v1256_v20, %v1233_v50 }
 0x296   :  { %v1276_v41 = vpop.f32.mrf.mxu2  ;;  %v1299_v57 = vpop.f32.mrf.mxu3 }
 0x297   :  { %v1277_v19 = vadd.f32 %v1276_v41, %v1254_v62 }
 0x299   :  { %v1300_v9 = vadd.f32 %v1299_v57, %v1277_v19 }
 0x29b   :  { %v1397_v51 = vmax.f32 %v988_v58, %v1300_v9 }
 0x29d   :  { %1401 = vst [vmem:[%s3445_s9] sm:$0xff] %v1397_v51 }
 0x29f   :  { %v1279_v23 = vpop.f32.mrf.mxu2  ;;  %v1302_v27 = vpop.f32.mrf.mxu3 }
 0x2a0   :  { %v1280_v26 = vadd.f32 %v1279_v23, %v1257_v22 }
 0x2a2   :  { %v1303_v31 = vadd.f32 %v1302_v27, %v1280_v26 }
 0x2a4   :  { %v1399_v63 = vmax.f32 %v991_v30, %v1303_v31  ;;  %v1322_v16 = vpop.f32.mrf.mxu0  ;;  %v1345_v4 = vpop.f32.mrf.mxu1 }
 0x2a5   :  { %v1346_v1 = vadd.f32 %v1345_v4, %v1322_v16 }
 0x2a6   :  { %1403 = vst [vmem:[%s3445_s9 + $0x10] sm:$0xff] %v1399_v63 }
 0x2ad   :  { %v1325_v59 = vpop.f32.mrf.mxu0  ;;  %v1348_v12 = vpop.f32.mrf.mxu1 }
 0x2ae   :  { %v1349_v32 = vadd.f32 %v1348_v12, %v1325_v59 }
 0x2b8   :  { %v1368_v44 = vpop.f32.mrf.mxu2  ;;  %v1391_v17 = vpop.f32.mrf.mxu3 }
 0x2b9   :  { %v1369_v45 = vadd.f32 %v1368_v44, %v1346_v1 }
 0x2bb   :  { %v1392_v24 = vadd.f32 %v1391_v17, %v1369_v45 }
 0x2bd   :  { %v1398_v25 = vmax.f32 %v1080_v21, %v1392_v24 }
 0x2bf   :  { %1402 = vst [vmem:[%s3445_s9 + $0x8] sm:$0xff] %v1398_v25 }
 0x2c1   :  { %v1371_v28 = vpop.f32.mrf.mxu2  ;;  %v1394_v36 = vpop.f32.mrf.mxu3 }
 0x2c2   :  { %v1372_v29 = vadd.f32 %v1371_v28, %v1349_v32 }
 0x2c4   :  { %v1395_v42 = vadd.f32 %v1394_v36, %v1372_v29 }
 0x2c6   :  { %v1400_v56 = vmax.f32 %v1083_v37, %v1395_v42 }
 0x2c8   :  { %1404 = vst [vmem:[%s3445_s9 + $0x18] sm:$0xff] %v1400_v56  ;;  %v1550_v2 = vpop.f32.mrf.mxu0  ;;  %v1573_v34 = vpop.f32.mrf.mxu1 }
 0x2c9   :  { %v1574_v35 = vadd.f32 %v1573_v34, %v1550_v2 }
 0x2d1   :  { %v1553_v49 = vpop.f32.mrf.mxu0  ;;  %v1576_v33 = vpop.f32.mrf.mxu1 }
 0x2d2   :  { %v1577_v14 = vadd.f32 %v1576_v33, %v1553_v49 }
 0x2dc   :  { %v1596_v43 = vpop.f32.mrf.mxu2  ;;  %v1619_v47 = vpop.f32.mrf.mxu3 }
 0x2dd   :  { %v1597_v46 = vadd.f32 %v1596_v43, %v1574_v35 }
 0x2df   :  { %v1620_v48 = vadd.f32 %v1619_v47, %v1597_v46 }
 0x2e1   :  { %1717 = vst [vmem:[%s3446_s10] sm:$0xff] %v1620_v48 }
 0x2e5   :  { %v1599_v15 = vpop.f32.mrf.mxu2  ;;  %v1622_v38 = vpop.f32.mrf.mxu3 }
 0x2e6   :  { %v1600_v52 = vadd.f32 %v1599_v15, %v1577_v14 }
 0x2e8   :  { %v1623_v39 = vadd.f32 %v1622_v38, %v1600_v52 }
 0x2ea   :  { %1719 = vst [vmem:[%s3446_s10 + $0x10] sm:$0xff] %v1623_v39 }
 0x2ec   :  { %v1642_v53 = vpop.f32.mrf.mxu0  ;;  %v1665_v54 = vpop.f32.mrf.mxu1 }
 0x2ed   :  { %v1666_v55 = vadd.f32 %v1665_v54, %v1642_v53 }
 0x2f4   :  { %v1645_v18 = vpop.f32.mrf.mxu0  ;;  %v1668_v61 = vpop.f32.mrf.mxu1 }
 0x2f5   :  { %v1669_v40 = vadd.f32 %v1668_v61, %v1645_v18 }
 0x2fe   :  { %v1688_v0 = vpop.f32.mrf.mxu2  ;;  %v1711_v3 = vpop.f32.mrf.mxu3 }
 0x2ff   :  { %v1689_v6 = vadd.f32 %v1688_v0, %v1666_v55 }
 0x301   :  { %v1712_v7 = vadd.f32 %v1711_v3, %v1689_v6 }
 0x303   :  { %1718 = vst [vmem:[%s3446_s10 + $0x8] sm:$0xff] %v1712_v7 }
 0x306   :  { %v1691_v62 = vpop.f32.mrf.mxu2  ;;  %v1714_v19 = vpop.f32.mrf.mxu3 }
 0x307   :  { %v1692_v41 = vadd.f32 %v1691_v62, %v1669_v40 }
 0x309   :  { %v1715_v57 = vadd.f32 %v1714_v19, %v1692_v41 }
 0x30b   :  { %1720 = vst [vmem:[%s3446_s10 + $0x18] sm:$0xff] %v1715_v57 }

// kernel: autoencoder_forward.11
= control target key start
LH: loop header
LB: loop body
LE: loop exit
PB: predicated region body
PF: predicated region fallthrough
CT: control target
= control target key end

     0   :  { %v1819_v0 = vmov 0   ;;  %vm100_vm7 = vcmask 1040384   ;;  %vm101_vm8 = vsmask.f32 256  ;;  %s2870_s3 = inlined_call_operand.vmem [shape: f32[16,1], index: 3, kind: input, shape index: {}]   ;;  %s2871_s4 = inlined_call_operand.vmem [shape: f32[16,1], index: 4, kind: input, shape index: {}]   ;;  %s2872_s1 = inlined_call_operand.vmem [shape: bf16[3,256,256], index: 1, kind: input, shape index: {}]   ;;  %s2873_s0 = inlined_call_operand.vmem [shape: f32[16,256], index: 0, kind: input, shape index: {}]   ;;  %s2874_s5 = inlined_call_operand.vmem [shape: f32[1,256], index: 5, kind: input, shape index: {}]   ;;  %s2875_s6 = inlined_call_operand.vmem [shape: f32[1,256], index: 6, kind: input, shape index: {}]   ;;  %s2876_s10 = inlined_call_operand.vmem [shape: f32[256,128], index: 10, kind: input, shape index: {}]   ;;  %s2877_s2 = inlined_call_operand.vmem [shape: f32[1,256], index: 2, kind: input, shape index: {}]   ;;  %s2878_s7 = inlined_call_operand.vmem [shape: f32[16,256], index: 7, kind: input, shape index: {}]   ;;  %s2879_s8 = inlined_call_operand.vmem [shape: f32[8,16], index: 8, kind: input, shape index: {}]   ;;  %s2880_s11 = inlined_call_operand.vmem [shape: f32[256,128], index: 11, kind: input, shape index: {}]   ;;  %s2881_s9 = inlined_call_operand.vmem [shape: f32[8,16], index: 9, kind: input, shape index: {}]   ;;  %s2882_s12 = inlined_call_operand.vmem [shape: f32[8,128], index: 12, kind: output, shape index: {0}]   ;;  %s2883_s13 = inlined_call_operand.vmem [shape: f32[8,128], index: 13, kind: output, shape index: {1}]  }
   0x1   :  { %1817 = vset.pattern.permute.xlu0 %v1819_v0  ;;  %v116_v1 = vld [vmem:[%s2870_s3] sm:$0xff]  ;;  %1818 = vset.pattern.permute.xlu1 %v1819_v0  ;;  %v117_v3 = vld [vmem:[%s2870_s3 + $0x8] sm:$0xff]  ;;  %v1358_v5 = vld [vmem:[%s2872_s1 + $0x170] sm:$0xf] }
   0x2   :  { %v146_v2 = vld [vmem:[%s2871_s4] sm:$0xff]  ;;  %vm118_vm0 = vcmp.gt.f32.partialorder %v116_v1, 0.0  ;;  %vm119_vm2 = vcmp.gt.f32.partialorder %v117_v3, 0.0  ;;  %v147_v4 = vld [vmem:[%s2871_s4 + $0x8] sm:$0xff]  ;;  %v1767_v8 = vld [vmem:[%s2872_s1 + $0x174] sm:$0xf0] }
   0x3   :  { %vm148_vm1 = vcmp.gt.f32.partialorder %v146_v2, 0.0  ;;  %v120_v6 = vsel %vm118_vm0, 1, %v1819_v0  ;;  %vm149_vm3 = vcmp.gt.f32.partialorder %v147_v4, 0.0  ;;  %v121_v9 = vsel %vm119_vm2, 1, %v1819_v0  ;;  %v1422_v12 = vld [vmem:[%s2872_s1 + $0x1f0] sm:$0xf]  ;;  %vm102_vm12 = vmand %vm100_vm7, %vm101_vm8 }
   0x4   :  { %v150_v7 = vsel %vm148_vm1, 1, %v1819_v0  ;;  %123 = vperm.xlu0 %1817, %v120_v6   ;;  %v151_v10 = vsel %vm149_vm3, 1, %v1819_v0  ;;  %v1359_v11 = vor.u32 %v1767_v8, %v1358_v5  ;;  %v1783_v13 = vld [vmem:[%s2872_s1 + $0x1f4] sm:$0xf0]  ;;  %v1766_v15 = vld [vmem:[%s2872_s1 + $0x174] sm:$0xf] }
   0x5   :  { %153 = vperm.xlu1 %1818, %v150_v7   ;;  %v1423_v14 = vor.u32 %v1783_v13, %v1422_v12  ;;  %v1360_v16 = vld [vmem:[%s2872_s1 + $0x178] sm:$0xf0]  ;;  %v1782_v17 = vld [vmem:[%s2872_s1 + $0x1f4] sm:$0xf]  ;;  %v1350_v20 = vld [vmem:[%s2872_s1 + $0x160] sm:$0xf] }
   0x6   :  { %403 = vmatpush.bf16.msra.mxu0 %v1359_v11  ;;  %v1363_v18 = vor.u32 %v1766_v15, %v1360_v16  ;;  %v1424_v19 = vld [vmem:[%s2872_s1 + $0x1f8] sm:$0xf0]  ;;  %v1765_v21 = vld [vmem:[%s2872_s1 + $0x164] sm:$0xf0]  ;;  %v1414_v24 = vld [vmem:[%s2872_s1 + $0x1e0] sm:$0xf] }
   0x7   :  { %417 = vmatpush.bf16.msra.mxu1 %v1423_v14  ;;  %v1427_v22 = vor.u32 %v1782_v17, %v1424_v19  ;;  %v1351_v23 = vor.u32 %v1765_v21, %v1350_v20  ;;  %v1781_v25 = vld [vmem:[%s2872_s1 + $0x1e4] sm:$0xf0]  ;;  %v1764_v26 = vld [vmem:[%s2872_s1 + $0x164] sm:$0xf]  ;;  %v1352_v28 = vld [vmem:[%s2872_s1 + $0x168] sm:$0xf0] }
   0x8   :  { %431 = vmatpush.bf16.msra.mxu2 %v1363_v18  ;;  %v1415_v27 = vor.u32 %v1781_v25, %v1414_v24  ;;  %v1780_v29 = vld [vmem:[%s2872_s1 + $0x1e4] sm:$0xf]  ;;  %v1416_v30 = vld [vmem:[%s2872_s1 + $0x1e8] sm:$0xf0]  ;;  %v1355_v31 = vor.u32 %v1764_v26, %v1352_v28  ;;  %v1342_v33 = vld [vmem:[%s2872_s1 + $0x150] sm:$0xf] }
   0x9   :  { %445 = vmatpush.bf16.msra.mxu3 %v1427_v22  ;;  %v1419_v32 = vor.u32 %v1780_v29, %v1416_v30  ;;  %v1763_v34 = vld [vmem:[%s2872_s1 + $0x154] sm:$0xf0]  ;;  %v1406_v35 = vld [vmem:[%s2872_s1 + $0x1d0] sm:$0xf]  ;;  %v1762_v38 = vld [vmem:[%s2872_s1 + $0x154] sm:$0xf] }
   0xa   :  { %404 = vmatpush.bf16.msra.mxu0 %v1351_v23  ;;  %v1343_v36 = vor.u32 %v1763_v34, %v1342_v33  ;;  %v1779_v37 = vld [vmem:[%s2872_s1 + $0x1d4] sm:$0xf0]  ;;  %v1344_v39 = vld [vmem:[%s2872_s1 + $0x158] sm:$0xf0]  ;;  %v1778_v41 = vld [vmem:[%s2872_s1 + $0x1d4] sm:$0xf] }
   0xb   :  { %418 = vmatpush.bf16.msra.mxu1 %v1415_v27  ;;  %v1407_v40 = vor.u32 %v1779_v37, %v1406_v35  ;;  %v1408_v42 = vld [vmem:[%s2872_s1 + $0x1d8] sm:$0xf0]  ;;  %v1334_v43 = vld [vmem:[%s2872_s1 + $0x140] sm:$0xf]  ;;  %v1761_v44 = vld [vmem:[%s2872_s1 + $0x144] sm:$0xf0]  ;;  %v1347_v47 = vor.u32 %v1762_v38, %v1344_v39 }
   0xc   :  { %126 = vperm.xlu0 %1817, %v121_v9   ;;  %v1398_v45 = vld [vmem:[%s2872_s1 + $0x1c0] sm:$0xf]  ;;  %v1777_v46 = vld [vmem:[%s2872_s1 + $0x1c4] sm:$0xf0]  ;;  %432 = vmatpush.bf16.msra.mxu2 %v1355_v31  ;;  %v1411_v48 = vor.u32 %v1778_v41, %v1408_v42  ;;  %v1760_v49 = vld [vmem:[%s2872_s1 + $0x144] sm:$0xf]  ;;  %v1335_v50 = vor.u32 %v1761_v44, %v1334_v43 }
   0xd   :  { %156 = vperm.xlu1 %1818, %v151_v10   ;;  %446 = vmatpush.bf16.msra.mxu3 %v1419_v32  ;;  %v1336_v51 = vld [vmem:[%s2872_s1 + $0x148] sm:$0xf0]  ;;  %v1776_v52 = vld [vmem:[%s2872_s1 + $0x1c4] sm:$0xf]  ;;  %v1399_v54 = vor.u32 %v1777_v46, %v1398_v45  ;;  %v1326_v55 = vld [vmem:[%s2872_s1 + $0x130] sm:$0xf] }
   0xe   :  { %405 = vmatpush.bf16.msra.mxu0 %v1343_v36  ;;  %v1400_v53 = vld [vmem:[%s2872_s1 + $0x1c8] sm:$0xf0]  ;;  %v1759_v56 = vld [vmem:[%s2872_s1 + $0x134] sm:$0xf0]  ;;  %v1390_v57 = vld [vmem:[%s2872_s1 + $0x1b0] sm:$0xf]  ;;  %v1339_v59 = vor.u32 %v1760_v49, %v1336_v51 }
   0xf   :  { %419 = vmatpush.bf16.msra.mxu1 %v1407_v40  ;;  %v1775_v58 = vld [vmem:[%s2872_s1 + $0x1b4] sm:$0xf0]  ;;  %v1403_v60 = vor.u32 %v1776_v52, %v1400_v53  ;;  %v1758_v61 = vld [vmem:[%s2872_s1 + $0x134] sm:$0xf]  ;;  %v1327_v62 = vor.u32 %v1759_v56, %v1326_v55  ;;  %v1328_v63 = vld [vmem:[%s2872_s1 + $0x138] sm:$0xf0] }
  0x10   :  { %433 = vmatpush.bf16.msra.mxu2 %v1347_v47  ;;  %v1774_v1 = vld [vmem:[%s2872_s1 + $0x1b4] sm:$0xf]  ;;  %v1392_v2 = vld [vmem:[%s2872_s1 + $0x1b8] sm:$0xf0]  ;;  %v1391_v3 = vor.u32 %v1775_v58, %v1390_v57  ;;  %v1318_v4 = vld [vmem:[%s2872_s1 + $0x120] sm:$0xf]  ;;  %v1331_v8 = vor.u32 %v1758_v61, %v1328_v63 }
  0x11   :  { %447 = vmatpush.bf16.msra.mxu3 %v1411_v48  ;;  %v1757_v5 = vld [vmem:[%s2872_s1 + $0x124] sm:$0xf0]  ;;  %v1382_v6 = vld [vmem:[%s2872_s1 + $0x1a0] sm:$0xf]  ;;  %v1395_v9 = vor.u32 %v1774_v1, %v1392_v2  ;;  %v1756_v10 = vld [vmem:[%s2872_s1 + $0x124] sm:$0xf] }
  0x12   :  { %406 = vmatpush.bf16.msra.mxu0 %v1335_v50  ;;  %v1773_v7 = vld [vmem:[%s2872_s1 + $0x1a4] sm:$0xf0]  ;;  %v1319_v11 = vor.u32 %v1757_v5, %v1318_v4  ;;  %v1320_v12 = vld [vmem:[%s2872_s1 + $0x128] sm:$0xf0]  ;;  %v1772_v13 = vld [vmem:[%s2872_s1 + $0x1a4] sm:$0xf] }
  0x13   :  { %420 = vmatpush.bf16.msra.mxu1 %v1399_v54  ;;  %v1384_v14 = vld [vmem:[%s2872_s1 + $0x1a8] sm:$0xf0]  ;;  %v1383_v15 = vor.u32 %v1773_v7, %v1382_v6  ;;  %v1310_v16 = vld [vmem:[%s2872_s1 + $0x110] sm:$0xf]  ;;  %v1755_v17 = vld [vmem:[%s2872_s1 + $0x114] sm:$0xf0]  ;;  %v1323_v20 = vor.u32 %v1756_v10, %v1320_v12 }
  0x14   :  { %434 = vmatpush.bf16.msra.mxu2 %v1339_v59  ;;  %v1374_v18 = vld [vmem:[%s2872_s1 + $0x190] sm:$0xf]  ;;  %v1771_v19 = vld [vmem:[%s2872_s1 + $0x194] sm:$0xf0]  ;;  %v1387_v21 = vor.u32 %v1772_v13, %v1384_v14  ;;  %v1754_v22 = vld [vmem:[%s2872_s1 + $0x114] sm:$0xf]  ;;  %v1311_v24 = vor.u32 %v1755_v17, %v1310_v16 }
  0x15   :  { %448 = vmatpush.bf16.msra.mxu3 %v1403_v60  ;;  %v1312_v23 = vld [vmem:[%s2872_s1 + $0x118] sm:$0xf0]  ;;  %v1770_v25 = vld [vmem:[%s2872_s1 + $0x194] sm:$0xf]  ;;  %v1302_v27 = vld [vmem:[%s2872_s1 + $0x100] sm:$0xf]  ;;  %v1375_v28 = vor.u32 %v1771_v19, %v1374_v18 }
  0x16   :  { %407 = vmatpush.bf16.msra.mxu0 %v1327_v62  ;;  %v1376_v26 = vld [vmem:[%s2872_s1 + $0x198] sm:$0xf0]  ;;  %v1753_v29 = vld [vmem:[%s2872_s1 + $0x104] sm:$0xf0]  ;;  %v1366_v30 = vld [vmem:[%s2872_s1 + $0x180] sm:$0xf]  ;;  %v1315_v35 = vor.u32 %v1754_v22, %v1312_v23 }
  0x17   :  { %421 = vmatpush.bf16.msra.mxu1 %v1391_v3  ;;  %v1769_v31 = vld [vmem:[%s2872_s1 + $0x184] sm:$0xf0]  ;;  %v1752_v32 = vld [vmem:[%s2872_s1 + $0x104] sm:$0xf]  ;;  %v1486_v33 = vld [vmem:[%s2872_s1 + $0x70] sm:$0xf]  ;;  %v1379_v36 = vor.u32 %v1770_v25, %v1376_v26  ;;  %v1303_v40 = vor.u32 %v1753_v29, %v1302_v27 }
  0x18   :  { %435 = vmatpush.bf16.msra.mxu2 %v1331_v8  ;;  %v1735_v34 = vld [vmem:[%s2872_s1 + $0x74] sm:$0xf0]  ;;  %v1304_v37 = vld [vmem:[%s2872_s1 + $0x108] sm:$0xf0]  ;;  %v1550_v38 = vld [vmem:[%s2872_s1 + $0xf0] sm:$0xf]  ;;  %v1367_v44 = vor.u32 %v1769_v31, %v1366_v30 }
  0x19   :  { %449 = vmatpush.bf16.msra.mxu3 %v1395_v9  ;;  %v1751_v39 = vld [vmem:[%s2872_s1 + $0xf4] sm:$0xf0]  ;;  %v1768_v41 = vld [vmem:[%s2872_s1 + $0x184] sm:$0xf]  ;;  %v1368_v42 = vld [vmem:[%s2872_s1 + $0x188] sm:$0xf0]  ;;  %v1487_v45 = vor.u32 %v1735_v34, %v1486_v33  ;;  %v1307_v52 = vor.u32 %v1752_v32, %v1304_v37 }
  0x1a   :  { %408 = vmatpush.bf16.msra.mxu0 %v1319_v11  ;;  %v1734_v43 = vld [vmem:[%s2872_s1 + $0x74] sm:$0xf]  ;;  %v1488_v46 = vld [vmem:[%s2872_s1 + $0x78] sm:$0xf0]  ;;  %v1551_v49 = vor.u32 %v1751_v39, %v1550_v38  ;;  %v1478_v50 = vld [vmem:[%s2872_s1 + $0x60] sm:$0xf]  ;;  %v1371_v53 = vor.u32 %v1768_v41, %v1368_v42 }
  0x1b   :  { %422 = vmatpush.bf16.msra.mxu1 %v1383_v15  ;;  %v1750_v47 = vld [vmem:[%s2872_s1 + $0xf4] sm:$0xf]  ;;  %v1552_v48 = vld [vmem:[%s2872_s1 + $0xf8] sm:$0xf0]  ;;  %v1733_v51 = vld [vmem:[%s2872_s1 + $0x64] sm:$0xf0]  ;;  %v1491_v56 = vor.u32 %v1734_v43, %v1488_v46 }
  0x1c   :  { %436 = vmatpush.bf16.msra.mxu2 %v1323_v20  ;;  %v1542_v54 = vld [vmem:[%s2872_s1 + $0xe0] sm:$0xf]  ;;  %v1749_v55 = vld [vmem:[%s2872_s1 + $0xe4] sm:$0xf0]  ;;  %v1555_v57 = vor.u32 %v1750_v47, %v1552_v48  ;;  %v1732_v58 = vld [vmem:[%s2872_s1 + $0x64] sm:$0xf]  ;;  %v1479_v61 = vor.u32 %v1733_v51, %v1478_v50 }
  0x1d   :  { %450 = vmatpush.bf16.msra.mxu3 %v1387_v21  ;;  %v1480_v59 = vld [vmem:[%s2872_s1 + $0x68] sm:$0xf0]  ;;  %v1748_v60 = vld [vmem:[%s2872_s1 + $0xe4] sm:$0xf]  ;;  %v1470_v63 = vld [vmem:[%s2872_s1 + $0x50] sm:$0xf]  ;;  %v1543_v2 = vor.u32 %v1749_v55, %v1542_v54 }
  0x1e   :  { %409 = vmatpush.bf16.msra.mxu0 %v1311_v24  ;;  %v1544_v62 = vld [vmem:[%s2872_s1 + $0xe8] sm:$0xf0]  ;;  %v1731_v1 = vld [vmem:[%s2872_s1 + $0x54] sm:$0xf0]  ;;  %v1534_v3 = vld [vmem:[%s2872_s1 + $0xd0] sm:$0xf]  ;;  %v1483_v9 = vor.u32 %v1732_v58, %v1480_v59 }
  0x1f   :  { %423 = vmatpush.bf16.msra.mxu1 %v1375_v28  ;;  %v1747_v4 = vld [vmem:[%s2872_s1 + $0xd4] sm:$0xf0]  ;;  %v1730_v5 = vld [vmem:[%s2872_s1 + $0x54] sm:$0xf]  ;;  %v1472_v6 = vld [vmem:[%s2872_s1 + $0x58] sm:$0xf0]  ;;  %v1547_v10 = vor.u32 %v1748_v60, %v1544_v62  ;;  %v1471_v14 = vor.u32 %v1731_v1, %v1470_v63 }
  0x20   :  { %437 = vmatpush.bf16.msra.mxu2 %v1315_v35  ;;  %v1746_v7 = vld [vmem:[%s2872_s1 + $0xd4] sm:$0xf]  ;;  %v1536_v8 = vld [vmem:[%s2872_s1 + $0xd8] sm:$0xf0]  ;;  %v1462_v11 = vld [vmem:[%s2872_s1 + $0x40] sm:$0xf]  ;;  %v1535_v18 = vor.u32 %v1747_v4, %v1534_v3  ;;  %v1475_v23 = vor.u32 %v1730_v5, %v1472_v6 }
  0x21   :  { %451 = vmatpush.bf16.msra.mxu3 %v1379_v36  ;;  %v1729_v12 = vld [vmem:[%s2872_s1 + $0x44] sm:$0xf0]  ;;  %v46_v13 = vld [vmem:[%s2873_s0] sm:$0xff]  ;;  %v48_v16 = vld [vmem:[%s2873_s0 + $0x10] sm:$0xff]  ;;  %v1539_v24 = vor.u32 %v1746_v7, %v1536_v8  ;;  %vm111_vm2 = vcmask 1047552   ;;  %vm947_vm8 = vcmask 130048  }
  0x22   :  { %410 = vmatpush.bf16.msra.mxu0 %v1303_v40  ;;  %v47_v15 = vld [vmem:[%s2873_s0 + $0x8] sm:$0xff]  ;;  %v50_v17 = vld [vmem:[%s2874_s5] sm:$0x3]  ;;  %v49_v19 = vld [vmem:[%s2873_s0 + $0x18] sm:$0xff]  ;;  %v1463_v34 = vor.u32 %v1729_v12, %v1462_v11  ;;  %vm112_vm3 = vsmask.f32 7424 }
  0x23   :  { %424 = vmatpush.bf16.msra.mxu1 %v1367_v44  ;;  %v52_v20 = vperm.slane %v50_v17, 0  ;;  %v53_v21 = vperm.slane %v50_v17, 1  ;;  %v60_v22 = vld [vmem:[%s2875_s6] sm:$0x3]  ;;  %v1745_v26 = vld [vmem:[%s2872_s1 + $0xc4] sm:$0xf0] }
  0x24   :  { %438 = vmatpush.bf16.msra.mxu2 %v1307_v52  ;;  %v1526_v25 = vld [vmem:[%s2872_s1 + $0xc0] sm:$0xf]  ;;  %v62_v27 = vperm.slane %v60_v22, 0  ;;  %v63_v28 = vperm.slane %v60_v22, 1  ;;  %v1728_v29 = vld [vmem:[%s2872_s1 + $0x44] sm:$0xf] }
  0x25   :  { %452 = vmatpush.bf16.msra.mxu3 %v1371_v53  ;;  %v1464_v30 = vld [vmem:[%s2872_s1 + $0x48] sm:$0xf0]  ;;  %v56_v31 = vmul.f32 %v52_v20, %v46_v13  ;;  %v57_v32 = vmul.f32 %v53_v21, %v47_v15  ;;  %v58_v33 = vmul.f32 %v52_v20, %v48_v16  ;;  %v1744_v35 = vld [vmem:[%s2872_s1 + $0xc4] sm:$0xf]  ;;  %v59_v37 = vmul.f32 %v53_v21, %v49_v19  ;;  %v1454_v39 = vld [vmem:[%s2872_s1 + $0x30] sm:$0xf] }
  0x26   :  { %619 = vmatpush.bf16.msrb.mxu0 %v1487_v45  ;;  %v1528_v36 = vld [vmem:[%s2872_s1 + $0xc8] sm:$0xf0]  ;;  %v1527_v38 = vor.u32 %v1745_v26, %v1526_v25  ;;  %v1727_v40 = vld [vmem:[%s2872_s1 + $0x34] sm:$0xf0]  ;;  %v1467_v44 = vor.u32 %v1728_v29, %v1464_v30  ;;  %v1518_v45 = vld [vmem:[%s2872_s1 + $0xb0] sm:$0xf] }
  0x27   :  { %633 = vmatpush.bf16.msrb.mxu1 %v1551_v49  ;;  %v66_v41 = vadd.f32 %v62_v27, %v56_v31  ;;  %v67_v42 = vadd.f32 %v63_v28, %v57_v32  ;;  %v68_v43 = vadd.f32 %v62_v27, %v58_v33  ;;  %v1743_v46 = vld [vmem:[%s2872_s1 + $0xb4] sm:$0xf0]  ;;  %v1726_v47 = vld [vmem:[%s2872_s1 + $0x34] sm:$0xf]  ;;  %v69_v48 = vadd.f32 %v63_v28, %v59_v37  ;;  %v1456_v50 = vld [vmem:[%s2872_s1 + $0x38] sm:$0xf0] }
  0x28   :  { %647 = vmatpush.bf16.msrb.mxu2 %v1491_v56  ;;  %v1531_v49 = vor.u32 %v1744_v35, %v1528_v36  ;;  %v1455_v54 = vor.u32 %v1727_v40, %v1454_v39  ;;  %v1742_v55 = vld [vmem:[%s2872_s1 + $0xb4] sm:$0xf]  ;;  %v1520_v56 = vld [vmem:[%s2872_s1 + $0xb8] sm:$0xf0]  ;;  %v1519_v58 = vor.u32 %v1743_v46, %v1518_v45  ;;  %v1446_v60 = vld [vmem:[%s2872_s1 + $0x20] sm:$0xf] }
  0x29   :  { %661 = vmatpush.bf16.msrb.mxu3 %v1555_v57  ;;  %v70_v51 = vmax.f32 %v66_v41, 0.0  ;;  %v71_v52 = vmax.f32 %v67_v42, 0.0  ;;  %v72_v53 = vmax.f32 %v68_v43, 0.0  ;;  %v73_v57 = vmax.f32 %v69_v48, 0.0  ;;  %v1725_v62 = vld [vmem:[%s2872_s1 + $0x24] sm:$0xf0] }
  0x2a   :  { %620 = vmatpush.bf16.msrb.mxu0 %v1479_v61  ;;  %v1510_v63 = vld [vmem:[%s2872_s1 + $0xa0] sm:$0xf]  ;;  %v1741_v1 = vld [vmem:[%s2872_s1 + $0xa4] sm:$0xf0]  ;;  %v1523_v3 = vor.u32 %v1742_v55, %v1520_v56  ;;  %v1724_v6 = vld [vmem:[%s2872_s1 + $0x24] sm:$0xf]  ;;  %v1447_v12 = vor.u32 %v1725_v62, %v1446_v60 }
  0x2b   :  { %634 = vmatpush.bf16.msrb.mxu1 %v1543_v2  ;;  %v74_v59 = vpack.c.bf16 %v71_v52, %v70_v51  ;;  %v75_v61 = vpack.c.bf16 %v73_v57, %v72_v53  ;;  %v1459_v2 = vor.u32 %v1726_v47, %v1456_v50  ;;  %v1512_v11 = vld [vmem:[%s2872_s1 + $0xa8] sm:$0xf0]  ;;  %v1511_v13 = vor.u32 %v1741_v1, %v1510_v63  ;;  %v1723_v17 = vld [vmem:[%s2872_s1 + $0x14] sm:$0xf0]  ;;  %v1722_v22 = vld [vmem:[%s2872_s1 + $0x14] sm:$0xf] }
  0x2c   :  { %648 = vmatpush.bf16.msrb.mxu2 %v1483_v9  ;;  %v1448_v9 = vld [vmem:[%s2872_s1 + $0x28] sm:$0xf0]  ;;  %v1739_v19 = vld [vmem:[%s2872_s1 + $0x94] sm:$0xf0]  ;;  %v1504_v25 = vld [vmem:[%s2872_s1 + $0x98] sm:$0xf0] }
  0x2d   :  { %662 = vmatpush.bf16.msrb.mxu3 %v1547_v10  ;;  %v78_v4 = vunpack.c.l.b16 %v74_v59  ;;  %v79_v5 = vunpack.c.h.b16 %v74_v59  ;;  %v80_v7 = vunpack.c.l.b16 %v75_v61  ;;  %v81_v8 = vunpack.c.h.b16 %v75_v61  ;;  %v1740_v10 = vld [vmem:[%s2872_s1 + $0xa4] sm:$0xf]  ;;  %v1430_v30 = vld [vmem:[%s2872_s1] sm:$0xf]  ;;  %v1721_v31 = vld [vmem:[%s2872_s1 + $0x4] sm:$0xf0] }
  0x2e   :  { %621 = vmatpush.bf16.msrb.mxu0 %v1471_v14  ;;  %v1438_v14 = vld [vmem:[%s2872_s1 + $0x10] sm:$0xf]  ;;  %v1451_v20 = vor.u32 %v1724_v6, %v1448_v9  ;;  %v1515_v21 = vor.u32 %v1740_v10, %v1512_v11  ;;  %v1494_v32 = vld [vmem:[%s2872_s1 + $0x80] sm:$0xf]  ;;  %v1431_v33 = vor.u32 %v1721_v31, %v1430_v30  ;;  %v1720_v35 = vld [vmem:[%s2872_s1 + $0x4] sm:$0xf] }
  0x2f   :  { %635 = vmatpush.bf16.msrb.mxu1 %v1535_v18  ;;  %v2265_v15 = vpack.c.b16 %v80_v7, %v78_v4  ;;  %v2267_v16 = vpack.c.b16 %v81_v8, %v79_v5  ;;  %v1502_v18 = vld [vmem:[%s2872_s1 + $0x90] sm:$0xf]  ;;  %v1439_v26 = vor.u32 %v1723_v17, %v1438_v14  ;;  %v1432_v36 = vld [vmem:[%s2872_s1 + $0x8] sm:$0xf0]  ;;  %v1736_v39 = vld [vmem:[%s2872_s1 + $0x84] sm:$0xf] }
  0x30   :  { %649 = vmatpush.bf16.msrb.mxu2 %v1475_v23  ;;  %v1440_v23 = vld [vmem:[%s2872_s1 + $0x18] sm:$0xf0]  ;;  %v1503_v27 = vor.u32 %v1739_v19, %v1502_v18  ;;  %v1496_v40 = vld [vmem:[%s2872_s1 + $0x88] sm:$0xf0]  ;;  %v1646_v41 = vld [vmem:[%s2872_s1 + $0x270] sm:$0xf] }
  0x31   :  { %663 = vmatpush.bf16.msrb.mxu3 %v1539_v24  ;;  %439 = vmatmul.bf16.vlgmr.msra.gmra.mxu2 %v2265_v15  ;;  %v1738_v24 = vld [vmem:[%s2872_s1 + $0x94] sm:$0xf]  ;;  %v1443_v28 = vor.u32 %v1722_v22, %v1440_v23  ;;  %v1499_v42 = vor.u32 %v1736_v39, %v1496_v40  ;;  %v1799_v43 = vld [vmem:[%s2872_s1 + $0x274] sm:$0xf0]  ;;  %v1712_v52 = vld [vmem:[%s2872_s1 + $0x2f8] sm:$0xf0] }
  0x32   :  { %622 = vmatpush.bf16.msrb.mxu0 %v1463_v34  ;;  %453 = vmatmul.bf16.vlgmr.msra.gmra.mxu3 %v2267_v16  ;;  %v1507_v29 = vor.u32 %v1738_v24, %v1504_v25  ;;  %v1737_v34 = vld [vmem:[%s2872_s1 + $0x84] sm:$0xf0]  ;;  %v1815_v45 = vld [vmem:[%s2872_s1 + $0x2f4] sm:$0xf0]  ;;  %v1647_v46 = vor.u32 %v1799_v43, %v1646_v41  ;;  %v1798_v48 = vld [vmem:[%s2872_s1 + $0x274] sm:$0xf] }
  0x33   :  { %636 = vmatpush.bf16.msrb.mxu1 %v1527_v38  ;;  %411 = vmatmul.bf16.vlgmr.msra.gmra.mxu0 %v2265_v15  ;;  %v1495_v37 = vor.u32 %v1737_v34, %v1494_v32  ;;  %v1435_v38 = vor.u32 %v1720_v35, %v1432_v36  ;;  %v1814_v50 = vld [vmem:[%s2872_s1 + $0x2f4] sm:$0xf]  ;;  %v1638_v53 = vld [vmem:[%s2872_s1 + $0x260] sm:$0xf]  ;;  %v1796_v59 = vld [vmem:[%s2872_s1 + $0x264] sm:$0xf] }
  0x34   :  { %650 = vmatpush.bf16.msrb.mxu2 %v1467_v44  ;;  %425 = vmatmul.bf16.vlgmr.msra.gmra.mxu1 %v2267_v16  ;;  %v1710_v44 = vld [vmem:[%s2872_s1 + $0x2f0] sm:$0xf]  ;;  %v1715_v55 = vor.u32 %v1814_v50, %v1712_v52  ;;  %v1702_v57 = vld [vmem:[%s2872_s1 + $0x2e0] sm:$0xf]  ;;  %v1640_v61 = vld [vmem:[%s2872_s1 + $0x268] sm:$0xf0] }
  0x35   :  { %664 = vmatpush.bf16.msrb.mxu3 %v1531_v49  ;;  %v1711_v47 = vor.u32 %v1815_v45, %v1710_v44  ;;  %v1648_v49 = vld [vmem:[%s2872_s1 + $0x278] sm:$0xf0]  ;;  %v1812_v62 = vld [vmem:[%s2872_s1 + $0x2e4] sm:$0xf]  ;;  %v1704_v63 = vld [vmem:[%s2872_s1 + $0x2e8] sm:$0xf0]  ;;  %v1643_v1 = vor.u32 %v1796_v59, %v1640_v61 }
  0x36   :  { %623 = vmatpush.bf16.msrb.mxu0 %v1455_v54  ;;  %v1651_v51 = vor.u32 %v1798_v48, %v1648_v49  ;;  %v1797_v54 = vld [vmem:[%s2872_s1 + $0x264] sm:$0xf0]  ;;  %v1795_v4 = vld [vmem:[%s2872_s1 + $0x254] sm:$0xf0]  ;;  %v1694_v5 = vld [vmem:[%s2872_s1 + $0x2d0] sm:$0xf] }
  0x37   :  { %637 = vmatpush.bf16.msrb.mxu1 %v1519_v58  ;;  %v1639_v56 = vor.u32 %v1797_v54, %v1638_v53  ;;  %v1813_v58 = vld [vmem:[%s2872_s1 + $0x2e4] sm:$0xf0]  ;;  %v1811_v7 = vld [vmem:[%s2872_s1 + $0x2d4] sm:$0xf0]  ;;  %v1794_v8 = vld [vmem:[%s2872_s1 + $0x254] sm:$0xf] }
  0x38   :  { %651 = vmatpush.bf16.msrb.mxu2 %v1459_v2  ;;  %v1703_v60 = vor.u32 %v1813_v58, %v1702_v57  ;;  %v1707_v2 = vor.u32 %v1812_v62, %v1704_v63  ;;  %v1632_v9 = vld [vmem:[%s2872_s1 + $0x258] sm:$0xf0]  ;;  %v1695_v10 = vor.u32 %v1811_v7, %v1694_v5  ;;  %v1622_v17 = vld [vmem:[%s2872_s1 + $0x240] sm:$0xf]  ;;  %v1793_v18 = vld [vmem:[%s2872_s1 + $0x244] sm:$0xf0] }
  0x39   :  { %665 = vmatpush.bf16.msrb.mxu3 %v1523_v3  ;;  %v1630_v3 = vld [vmem:[%s2872_s1 + $0x250] sm:$0xf]  ;;  %v1635_v11 = vor.u32 %v1794_v8, %v1632_v9  ;;  %v1686_v19 = vld [vmem:[%s2872_s1 + $0x2c0] sm:$0xf]  ;;  %v1792_v22 = vld [vmem:[%s2872_s1 + $0x244] sm:$0xf] }
  0x3a   :  { %624 = vmatpush.bf16.msrb.mxu0 %v1447_v12  ;;  %v1631_v6 = vor.u32 %v1795_v4, %v1630_v3  ;;  %v1810_v12 = vld [vmem:[%s2872_s1 + $0x2d4] sm:$0xf]  ;;  %v1624_v23 = vld [vmem:[%s2872_s1 + $0x248] sm:$0xf0]  ;;  %v1791_v30 = vld [vmem:[%s2872_s1 + $0x234] sm:$0xf0] }
  0x3b   :  { %638 = vmatpush.bf16.msrb.mxu1 %v1511_v13  ;;  %v1696_v13 = vld [vmem:[%s2872_s1 + $0x2d8] sm:$0xf0]  ;;  %v1627_v25 = vor.u32 %v1792_v22, %v1624_v23  ;;  %v1678_v31 = vld [vmem:[%s2872_s1 + $0x2b0] sm:$0xf]  ;;  %v1790_v34 = vld [vmem:[%s2872_s1 + $0x234] sm:$0xf] }
  0x3c   :  { %652 = vmatpush.bf16.msrb.mxu2 %v1451_v20  ;;  %v1699_v14 = vor.u32 %v1810_v12, %v1696_v13  ;;  %v1623_v20 = vor.u32 %v1793_v18, %v1622_v17  ;;  %v1616_v36 = vld [vmem:[%s2872_s1 + $0x238] sm:$0xf0]  ;;  %v1606_v41 = vld [vmem:[%s2872_s1 + $0x220] sm:$0xf]  ;;  %v1805_v45 = vld [vmem:[%s2872_s1 + $0x2a4] sm:$0xf0] }
  0x3d   :  { %666 = vmatpush.bf16.msrb.mxu3 %v1515_v21  ;;  %v1809_v21 = vld [vmem:[%s2872_s1 + $0x2c4] sm:$0xf0]  ;;  %v1619_v39 = vor.u32 %v1790_v34, %v1616_v36  ;;  %v1670_v44 = vld [vmem:[%s2872_s1 + $0x2a0] sm:$0xf]  ;;  %v1608_v48 = vld [vmem:[%s2872_s1 + $0x228] sm:$0xf0] }
  0x3e   :  { %625 = vmatpush.bf16.msrb.mxu0 %v1439_v26  ;;  %v1687_v24 = vor.u32 %v1809_v21, %v1686_v19  ;;  %v1808_v26 = vld [vmem:[%s2872_s1 + $0x2c4] sm:$0xf]  ;;  %v1672_v50 = vld [vmem:[%s2872_s1 + $0x2a8] sm:$0xf0]  ;;  %v1598_v53 = vld [vmem:[%s2872_s1 + $0x210] sm:$0xf] }
  0x3f   :  { %639 = vmatpush.bf16.msrb.mxu1 %v1503_v27  ;;  %v1688_v27 = vld [vmem:[%s2872_s1 + $0x2c8] sm:$0xf0]  ;;  %v1804_v49 = vld [vmem:[%s2872_s1 + $0x2a4] sm:$0xf]  ;;  %v1787_v54 = vld [vmem:[%s2872_s1 + $0x214] sm:$0xf0] }
  0x40   :  { %653 = vmatpush.bf16.msrb.mxu2 %v1443_v28  ;;  %v1691_v28 = vor.u32 %v1808_v26, %v1688_v27  ;;  %v1675_v52 = vor.u32 %v1804_v49, %v1672_v50  ;;  %v1786_v57 = vld [vmem:[%s2872_s1 + $0x214] sm:$0xf]  ;;  %v1600_v58 = vld [vmem:[%s2872_s1 + $0x218] sm:$0xf0]  ;;  %v1599_v59 = vor.u32 %v1787_v54, %v1598_v53  ;;  %v1590_v63 = vld [vmem:[%s2872_s1 + $0x200] sm:$0xf] }
  0x41   :  { %667 = vmatpush.bf16.msrb.mxu3 %v1507_v29  ;;  %v1614_v29 = vld [vmem:[%s2872_s1 + $0x230] sm:$0xf]  ;;  %v1802_v61 = vld [vmem:[%s2872_s1 + $0x294] sm:$0xf]  ;;  %v1664_v62 = vld [vmem:[%s2872_s1 + $0x298] sm:$0xf0] }
  0x42   :  { %626 = vmatpush.bf16.msrb.mxu0 %v1431_v33  ;;  %v1615_v32 = vor.u32 %v1791_v30, %v1614_v29  ;;  %v1807_v33 = vld [vmem:[%s2872_s1 + $0x2b4] sm:$0xf0]  ;;  %v1654_v3 = vld [vmem:[%s2872_s1 + $0x280] sm:$0xf]  ;;  %v1801_v4 = vld [vmem:[%s2872_s1 + $0x284] sm:$0xf0]  ;;  %v1667_v5 = vor.u32 %v1802_v61, %v1664_v62 }
  0x43   :  { %640 = vmatpush.bf16.msrb.mxu1 %v1495_v37  ;;  %v1679_v35 = vor.u32 %v1807_v33, %v1678_v31  ;;  %v1806_v37 = vld [vmem:[%s2872_s1 + $0x2b4] sm:$0xf]  ;;  %v1592_v7 = vld [vmem:[%s2872_s1 + $0x208] sm:$0xf0]  ;;  %v1800_v8 = vld [vmem:[%s2872_s1 + $0x284] sm:$0xf]  ;;  %v140_v33 = vunpack.c.h.b16 %v1819_v0 }
  0x44   :  { %654 = vmatpush.bf16.msrb.mxu2 %v1435_v38  ;;  %v1680_v38 = vld [vmem:[%s2872_s1 + $0x2b8] sm:$0xf0]  ;;  %v1656_v9 = vld [vmem:[%s2872_s1 + $0x288] sm:$0xf0]  ;;  %v85_v18 = vshrl.u32 %v2265_v15, 16  ;;  %v92_v19 = vshrl.u32 %v2267_v16, 16 }
  0x45   :  { %668 = vmatpush.bf16.msrb.mxu3 %v1499_v42  ;;  %v1683_v40 = vor.u32 %v1806_v37, %v1680_v38  ;;  %v1789_v42 = vld [vmem:[%s2872_s1 + $0x224] sm:$0xf0]  ;;  %v1659_v17 = vor.u32 %v1800_v8, %v1656_v9  ;;  %v88_v22 = vshll.u32 %v2265_v15, 16  ;;  %v2525_v9 = vld [vmem:[%s2876_s10 + $0x78] sm:$0xff] }
  0x46   :  { %868 = vmatpush.bf16.msra.mxu0 %v1647_v46  ;;  %v1607_v43 = vor.u32 %v1789_v42, %v1606_v41  ;;  %v1788_v46 = vld [vmem:[%s2872_s1 + $0x224] sm:$0xf]  ;;  %v87_v21 = vrot.slane %v85_v18, 7  ;;  %v94_v23 = vrot.slane %v92_v19, 7 }
  0x47   :  { %882 = vmatpush.bf16.msra.mxu1 %v1711_v47  ;;  %v1671_v47 = vor.u32 %v1805_v45, %v1670_v44  ;;  %v105_v42 = vrot.slane %v88_v22, 1 }
  0x48   :  { %896 = vmatpush.bf16.msra.mxu2 %v1651_v51  ;;  %v1611_v51 = vor.u32 %v1788_v46, %v1608_v48  ;;  %v90_v29 = vor.u32 %v88_v22, %v87_v21 }
  0x49   :  { %910 = vmatpush.bf16.msra.mxu3 %v1715_v55  ;;  %v1662_v55 = vld [vmem:[%s2872_s1 + $0x290] sm:$0xf]  ;;  %v106_v46 = vor.u32 %v105_v42, %v85_v18  ;;  %v2552_v18 = vld [vmem:[%s2877_s2] sm:$0x3]  ;;  %v2603_v42 = vld [vmem:[%s2876_s10 + $0x48] sm:$0xff] }
  0x4a   :  { %869 = vmatpush.bf16.msra.mxu0 %v1639_v56  ;;  %v1803_v56 = vld [vmem:[%s2872_s1 + $0x294] sm:$0xf0]  ;;  %v103_v34 = vsel %vm102_vm12, 0, %v90_v29 }
  0x4b   :  { %883 = vmatpush.bf16.msra.mxu1 %v1703_v60  ;;  %v1663_v60 = vor.u32 %v1803_v56, %v1662_v55 }
  0x4c   :  { %897 = vmatpush.bf16.msra.mxu2 %v1643_v1  ;;  %v1603_v1 = vor.u32 %v1786_v57, %v1600_v58 }
  0x4d   :  { %911 = vmatpush.bf16.msra.mxu3 %v1707_v2  ;;  %v1785_v2 = vld [vmem:[%s2872_s1 + $0x204] sm:$0xf0] }
  0x4e   :  { %870 = vmatpush.bf16.msra.mxu0 %v1631_v6  ;;  %v1784_v6 = vld [vmem:[%s2872_s1 + $0x204] sm:$0xf] }
  0x4f   :  { %884 = vmatpush.bf16.msra.mxu1 %v1695_v10  ;;  %v1591_v10 = vor.u32 %v1785_v2, %v1590_v63  ;;  %v1595_v12 = vor.u32 %v1784_v6, %v1592_v7 }
  0x50   :  { %898 = vmatpush.bf16.msra.mxu2 %v1635_v11  ;;  %v1655_v11 = vor.u32 %v1801_v4, %v1654_v3 }
  0x51   :  { %912 = vmatpush.bf16.msra.mxu3 %v1699_v14 }
  0x52   :  { %871 = vmatpush.bf16.msra.mxu0 %v1623_v20 }
  0x53   :  { %885 = vmatpush.bf16.msra.mxu1 %v1687_v24  ;;  %v95_v24 = vshll.u32 %v2267_v16, 16 }
  0x54   :  { %899 = vmatpush.bf16.msra.mxu2 %v1627_v25 }
  0x55   :  { %913 = vmatpush.bf16.msra.mxu3 %v1691_v28  ;;  %v97_v30 = vor.u32 %v95_v24, %v94_v23  ;;  %v2563_v23 = vld [vmem:[%s2876_s10 + $0x60] sm:$0xff] }
  0x56   :  { %872 = vmatpush.bf16.msra.mxu0 %v1615_v32  ;;  %v139_v32 = vunpack.c.l.b16 %v1819_v0 }
  0x57   :  { %886 = vmatpush.bf16.msra.mxu1 %v1679_v35  ;;  %v104_v35 = vsel %vm102_vm12, 0, %v97_v30  ;;  %v930_v30 = vperm.slane %v2552_v18, 0 }
  0x58   :  { %900 = vmatpush.bf16.msra.mxu2 %v1619_v39 }
  0x59   :  { %914 = vmatpush.bf16.msra.mxu3 %v1683_v40 }
  0x5a   :  { %873 = vmatpush.bf16.msra.mxu0 %v1607_v43  ;;  %v107_v43 = vrot.slane %v95_v24, 1 }
  0x5b   :  { %887 = vmatpush.bf16.msra.mxu1 %v1671_v47 }
  0x5c   :  { %901 = vmatpush.bf16.msra.mxu2 %v1611_v51  ;;  %v108_v47 = vor.u32 %v107_v43, %v92_v19  ;;  %v2558_v19 = vld [vmem:[%s2876_s10 + $0xe8] sm:$0xff] }
  0x5d   :  { %915 = vmatpush.bf16.msra.mxu3 %v1675_v52 }
  0x5e   :  { %874 = vmatpush.bf16.msra.mxu0 %v1599_v59 }
  0x5f   :  { %888 = vmatpush.bf16.msra.mxu1 %v1663_v60 }
  0x60   :  { %902 = vmatpush.bf16.msra.mxu2 %v1603_v1 }
  0x61   :  { %916 = vmatpush.bf16.msra.mxu3 %v1667_v5 }
  0x62   :  { %875 = vmatpush.bf16.msra.mxu0 %v1591_v10  ;;  %v2530_v10 = vld [vmem:[%s2876_s10 + $0x70] sm:$0xff] }
  0x63   :  { %889 = vmatpush.bf16.msra.mxu1 %v1655_v11  ;;  %v2536_v11 = vld [vmem:[%s2876_s10 + $0xf8] sm:$0xff] }
  0x64   :  { %903 = vmatpush.bf16.msra.mxu2 %v1595_v12  ;;  %v2541_v12 = vld [vmem:[%s2876_s10 + $0xf0] sm:$0xff] }
  0x65   :  { %917 = vmatpush.bf16.msra.mxu3 %v1659_v17  ;;  %v2546_v17 = vld [vmem:[%s2876_s10 + $0x68] sm:$0xff] }
  0x76   :  { %v124_v13 = vpop.permute.xlu0 %123 }
  0x77   :  { %v154_v14 = vpop.permute.xlu1 %153  ;;  %vm128_vm4 = vcmp.eq.s32.totalorder %v124_v13, 1 }
  0x78   :  { %vm130_vm5 = vmpackc.low %vm128_vm4, %vm128_vm4  ;;  %vm158_vm9 = vcmp.eq.s32.totalorder %v154_v14, 1 }
  0x79   :  { %v132_v20 = vsel %vm130_vm5, 65537, %v1819_v0  ;;  %vm160_vm13 = vmpackc.low %vm158_vm9, %vm158_vm9 }
  0x7a   :  { %v134_v25 = vunpack.c.l.b16 %v132_v20  ;;  %v162_v36 = vsel %vm160_vm13, 65537, %v1819_v0 }
  0x7b   :  { %v164_v40 = vunpack.c.l.b16 %v162_v36 }
  0x7c   :  { %v1264_v31 = vunpack.i.l.s16 %v134_v25 }
  0x7d   :  { %v1266_v44 = vunpack.i.l.s16 %v164_v40 }
  0x7e   :  { %v127_v26 = vpop.permute.xlu0 %126  ;;  %vm141_vm15 = vcmp.ne.s32.totalorder %v1264_v31, %v139_v32 }
  0x7f   :  { %v157_v27 = vpop.permute.xlu1 %156  ;;  %vm129_vm6 = vcmp.eq.s32.totalorder %v127_v26, 1  ;;  %vm171_vm4 = vcmp.ne.s32.totalorder %v1266_v44, %v139_v32  ;;  %v2576_v32 = vld [vmem:[%s2876_s10 + $0x58] sm:$0xff]  ;;  %v938_v44 = vld [vmem:[%s2878_s7] sm:$0xff] }
  0x80   :  { %vm131_vm10 = vmpackc.low %vm129_vm6, %vm129_vm6  ;;  %vm159_vm11 = vcmp.eq.s32.totalorder %v157_v27, 1  ;;  %v2570_v27 = vld [vmem:[%s2876_s10 + $0xe0] sm:$0xff] }
  0x81   :  { %v133_v28 = vsel %vm131_vm10, 65537, %v1819_v0  ;;  %vm161_vm14 = vmpackc.low %vm159_vm11, %vm159_vm11 }
  0x82   :  { %v135_v15 = vunpack.c.l.b16 %v133_v28  ;;  %v163_v37 = vsel %vm161_vm14, 65537, %v1819_v0  ;;  %vm113_vm6 = vmand %vm111_vm2, %vm112_vm3 }
  0x83   :  { %v165_v41 = vunpack.c.l.b16 %v163_v37  ;;  %v114_v0 = vsel %vm113_vm6, %v106_v46, 0  ;;  %v115_v48 = vsel %vm113_vm6, %v108_v47, 0 }
  0x84   :  { %v1265_v16 = vunpack.i.l.s16 %v135_v15 }
  0x85   :  { %v1267_v45 = vunpack.i.l.s16 %v165_v41 }
  0x86   :  { %vm142_vm0 = vcmp.ne.s32.totalorder %v1265_v16, %v140_v33  ;;  %v2583_v16 = vld [vmem:[%s2876_s10 + $0xd8] sm:$0xff] }
  0x87   :  { %vm143_vm1 = vmpackc.low %vm142_vm0, %vm141_vm15  ;;  %vm172_vm5 = vcmp.ne.s32.totalorder %v1267_v45, %v140_v33  ;;  %v2613_v45 = vld [vmem:[%s2876_s10 + $0xc8] sm:$0xff] }
  0x88   :  { %v144_v38 = vsel %vm143_vm1, %v103_v34, 0  ;;  %v145_v39 = vsel %vm143_vm1, %v104_v35, 0  ;;  %vm173_vm7 = vmpackc.low %vm172_vm5, %vm171_vm4  ;;  %v2588_v35 = vld [vmem:[%s2876_s10 + $0x50] sm:$0xff] }
  0x89   :  { %627 = vmatmul.bf16.vlgmr.msrb.gmra.mxu0 %v144_v38  ;;  %641 = vmatmul.bf16.vlgmr.msrb.gmra.mxu1 %v145_v39  ;;  %v174_v49 = vsel %vm173_vm7, %v114_v0, 0  ;;  %v175_v50 = vsel %vm173_vm7, %v115_v48, 0  ;;  %v2618_v48 = vld [vmem:[%s2876_s10 + $0x40] sm:$0xff] }
  0x8a   :  { %655 = vmatmul.bf16.vlgmr.msrb.gmra.mxu2 %v144_v38  ;;  %669 = vmatmul.bf16.vlgmr.msrb.gmra.mxu3 %v145_v39  ;;  %v940_v38 = vld [vmem:[%s2878_s7 + $0x10] sm:$0xff] }
  0x8b   :  { %1069 = vmatpush.msrb.mxu0 %v2525_v9  ;;  %1089 = vmatpush.msrb.mxu1 %v2536_v11  ;;  %v2598_v39 = vld [vmem:[%s2876_s10 + $0xd0] sm:$0xff] }
  0x8d   :  { %1070 = vmatpush.msrb.mxu0 %v2530_v10  ;;  %1090 = vmatpush.msrb.mxu1 %v2541_v12 }
  0x8f   :  { %1071 = vmatpush.msrb.mxu0 %v2546_v17  ;;  %1091 = vmatpush.msrb.mxu1 %v2558_v19 }
  0x91   :  { %1072 = vmatpush.msrb.mxu0 %v2563_v23  ;;  %1092 = vmatpush.msrb.mxu1 %v2570_v27 }
  0x93   :  { %1073 = vmatpush.msrb.mxu0 %v2576_v32  ;;  %1093 = vmatpush.msrb.mxu1 %v2583_v16 }
  0x95   :  { %1074 = vmatpush.msrb.mxu0 %v2588_v35  ;;  %1094 = vmatpush.msrb.mxu1 %v2598_v39 }
  0x97   :  { %1075 = vmatpush.msrb.mxu0 %v2603_v42  ;;  %1095 = vmatpush.msrb.mxu1 %v2613_v45 }
  0x99   :  { %876 = vmatmul.bf16.vlgmr.msra.gmra.mxu0 %v174_v49  ;;  %890 = vmatmul.bf16.vlgmr.msra.gmra.mxu1 %v175_v50 }
  0x9a   :  { %904 = vmatmul.bf16.vlgmr.msra.gmra.mxu2 %v174_v49  ;;  %918 = vmatmul.bf16.vlgmr.msra.gmra.mxu3 %v175_v50 }
  0x9b   :  { %1076 = vmatpush.msrb.mxu0 %v2618_v48 }
  0xb0   :  { %v412_v51 = vpop.f32.mrf.mxu0 }
  0xb1   :  { %v426_v52 = vpop.f32.mrf.mxu1 }
  0xb2   :  { %v427_v6 = vadd.f32 %v426_v52, %v412_v51  ;;  %v931_v51 = vperm.slane %v2552_v18, 1  ;;  %v991_v18 = vld [vmem:[%s2881_s9] sm:$0xff] }
  0xb4   :  { %v440_v53 = vpop.f32.mrf.mxu2 }
  0xb5   :  { %v454_v54 = vpop.f32.mrf.mxu3 }
  0xb6   :  { %v455_v24 = vadd.f32 %v454_v54, %v440_v53  ;;  %v2627_v53 = vld [vmem:[%s2876_s10 + $0xc0] sm:$0xff] }
  0xb7   :  { %1096 = vmatpush.msrb.mxu1 %v2627_v53 }
  0xb8   :  { %v414_v55 = vpop.f32.mrf.mxu0 }
  0xb9   :  { %v428_v56 = vpop.f32.mrf.mxu1 }
  0xba   :  { %v429_v7 = vadd.f32 %v428_v56, %v414_v55  ;;  %v2632_v55 = vld [vmem:[%s2876_s10 + $0x38] sm:$0xff] }
  0xbb   :  { %1077 = vmatpush.msrb.mxu0 %v2632_v55 }
  0xbc   :  { %v442_v57 = vpop.f32.mrf.mxu2 }
  0xbd   :  { %v456_v58 = vpop.f32.mrf.mxu3 }
  0xbe   :  { %v457_v15 = vadd.f32 %v456_v58, %v442_v57  ;;  %v946_v57 = vld [vmem:[%s2879_s8] sm:$0xff]  ;;  %v2642_v58 = vld [vmem:[%s2876_s10 + $0xb8] sm:$0xff] }
  0xbf   :  { %1097 = vmatpush.msrb.mxu1 %v2642_v58 }
 0x106   :  { %v628_v59 = vpop.f32.mrf.mxu0  ;;  %v642_v60 = vpop.f32.mrf.mxu1 }
 0x107   :  { %v629_v8 = vadd.f32 %v628_v59, %v427_v6  ;;  %v941_v59 = vld [vmem:[%s2878_s7 + $0x18] sm:$0xff]  ;;  %v1123_v6 = vld [vmem:[%s2880_s11 + $0x70] sm:$0xff] }
 0x109   :  { %v643_v20 = vadd.f32 %v642_v60, %v629_v8  ;;  %v2650_v60 = vld [vmem:[%s2876_s10 + $0x30] sm:$0xff] }
 0x10a   :  { %1078 = vmatpush.msrb.mxu0 %v2650_v60 }
 0x10d   :  { %v656_v61 = vpop.f32.mrf.mxu2  ;;  %v670_v62 = vpop.f32.mrf.mxu3 }
 0x10e   :  { %v630_v63 = vpop.f32.mrf.mxu0  ;;  %v644_v1 = vpop.f32.mrf.mxu1  ;;  %v657_v33 = vadd.f32 %v656_v61, %v455_v24  ;;  %v2722_v24 = vld [vmem:[%s2876_s10 + $0x90] sm:$0xff] }
 0x10f   :  { %v631_v13 = vadd.f32 %v630_v63, %v429_v7  ;;  %v2657_v63 = vld [vmem:[%s2876_s10 + $0xb0] sm:$0xff]  ;;  %v2684_v7 = vld [vmem:[%s2876_s10 + $0x20] sm:$0xff] }
 0x110   :  { %v671_v43 = vadd.f32 %v670_v62, %v657_v33  ;;  %1098 = vmatpush.msrb.mxu1 %v2657_v63  ;;  %v1053_v33 = vld [vmem:[%s2876_s10 + $0x80] sm:$0xff] }
 0x111   :  { %v645_v28 = vadd.f32 %v644_v1, %v631_v13  ;;  %v1124_v1 = vld [vmem:[%s2880_s11 + $0x78] sm:$0xff]  ;;  %v2691_v13 = vld [vmem:[%s2876_s10 + $0xa0] sm:$0xff] }
 0x115   :  { %v658_v2 = vpop.f32.mrf.mxu2  ;;  %v2520_v3 = vpop.f32.mrf.mxu3 }
 0x116   :  { %v877_v4 = vpop.f32.mrf.mxu0  ;;  %v891_v5 = vpop.f32.mrf.mxu1  ;;  %v659_v36 = vadd.f32 %v658_v2, %v457_v15  ;;  %v939_v2 = vld [vmem:[%s2878_s7 + $0x8] sm:$0xff] }
 0x117   :  { %v892_v14 = vadd.f32 %v891_v5, %v877_v4  ;;  %v2676_v5 = vld [vmem:[%s2876_s10 + $0xa8] sm:$0xff] }
 0x118   :  { %v673_v49 = vadd.f32 %v2520_v3, %v659_v36  ;;  %v2669_v3 = vld [vmem:[%s2876_s10 + $0x28] sm:$0xff]  ;;  %1099 = vmatpush.msrb.mxu1 %v2676_v5  ;;  %v1137_v36 = vld [vmem:[%s2880_s11 + $0xe0] sm:$0xff] }
 0x119   :  { %v924_v29 = vadd.f32 %v892_v14, %v643_v20  ;;  %1079 = vmatpush.msrb.mxu0 %v2669_v3  ;;  %v2696_v14 = vld [vmem:[%s2876_s10 + $0x18] sm:$0xff]  ;;  %v1138_v15 = vld [vmem:[%s2880_s11 + $0xe8] sm:$0xff] }
 0x11a   :  { %v2706_v20 = vld [vmem:[%s2876_s10 + $0x98] sm:$0xff]  ;;  %1100 = vmatpush.msrb.mxu1 %v2691_v13 }
 0x11b   :  { %v934_v40 = vadd.f32 %v930_v30, %v924_v29  ;;  %1080 = vmatpush.msrb.mxu0 %v2684_v7  ;;  %v2741_v29 = vld [vmem:[%s2876_s10 + $0x88] sm:$0xff] }
 0x11c   :  { %1101 = vmatpush.msrb.mxu1 %v2706_v20 }
 0x11d   :  { %v905_v21 = vpop.f32.mrf.mxu2  ;;  %v919_v22 = vpop.f32.mrf.mxu3  ;;  %v942_v54 = vadd.f32 %v938_v44, %v934_v40  ;;  %1081 = vmatpush.msrb.mxu0 %v2696_v14  ;;  %v1135_v40 = vld [vmem:[%s2880_s11 + $0xd0] sm:$0xff]  ;;  %v1128_v44 = vld [vmem:[%s2880_s11 + $0x98] sm:$0xff] }
 0x11e   :  { %v879_v25 = vpop.f32.mrf.mxu0  ;;  %v893_v26 = vpop.f32.mrf.mxu1  ;;  %v920_v37 = vadd.f32 %v919_v22, %v905_v21  ;;  %v2712_v21 = vld [vmem:[%s2876_s10 + $0x10] sm:$0xff]  ;;  %v1140_v22 = vld [vmem:[%s2880_s11 + $0xf8] sm:$0xff]  ;;  %1102 = vmatpush.msrb.mxu1 %v2722_v24 }
 0x11f   :  { %v894_v31 = vadd.f32 %v893_v26, %v879_v25  ;;  %v2728_v25 = vld [vmem:[%s2876_s10 + $0x8] sm:$0xff]  ;;  %1082 = vmatpush.msrb.mxu0 %v2712_v21 }
 0x120   :  { %v925_v50 = vadd.f32 %v920_v37, %v671_v43  ;;  %v1122_v26 = vld [vmem:[%s2880_s11 + $0x68] sm:$0xff]  ;;  %1103 = vmatpush.msrb.mxu1 %v2741_v29  ;;  %v1119_v37 = vld [vmem:[%s2880_s11 + $0x50] sm:$0xff] }
 0x121   :  { %v926_v34 = vadd.f32 %v894_v31, %v645_v28  ;;  %v1139_v28 = vld [vmem:[%s2880_s11 + $0xf0] sm:$0xff]  ;;  %v1121_v31 = vld [vmem:[%s2880_s11 + $0x60] sm:$0xff]  ;;  %1083 = vmatpush.msrb.mxu0 %v2728_v25  ;;  %v1110_v43 = vld [vmem:[%s2880_s11 + $0x8] sm:$0xff] }
 0x122   :  { %v935_v61 = vadd.f32 %v931_v51, %v925_v50  ;;  %1104 = vmatpush.msrb.mxu1 %v1053_v33 }
 0x123   :  { %v936_v41 = vadd.f32 %v930_v30, %v926_v34  ;;  %v1037_v30 = vld [vmem:[%s2876_s10] sm:$0xff]  ;;  %v1120_v34 = vld [vmem:[%s2880_s11 + $0x58] sm:$0xff] }
 0x124   :  { %v943_v8 = vadd.f32 %v939_v2, %v935_v61  ;;  %1084 = vmatpush.msrb.mxu0 %v1037_v30  ;;  %1235 = vmatpush.msra.mxu1 %v2536_v11  ;;  %v1134_v11 = vld [vmem:[%s2880_s11 + $0xc8] sm:$0xff] }
 0x125   :  { %v944_v46 = vadd.f32 %v940_v38, %v936_v41  ;;  %v907_v47 = vpop.f32.mrf.mxu2  ;;  %v921_v0 = vpop.f32.mrf.mxu3  ;;  %v1136_v38 = vld [vmem:[%s2880_s11 + $0xd8] sm:$0xff]  ;;  %v1129_v41 = vld [vmem:[%s2880_s11 + $0xa0] sm:$0xff] }
 0x126   :  { %v922_v52 = vadd.f32 %v921_v0, %v907_v47  ;;  %1215 = vmatpush.msra.mxu0 %v2525_v9  ;;  %v1118_v9 = vld [vmem:[%s2880_s11 + $0x48] sm:$0xff]  ;;  %1236 = vmatpush.msra.mxu1 %v2541_v12  ;;  %v1133_v12 = vld [vmem:[%s2880_s11 + $0xc0] sm:$0xff] }
 0x127   :  { %965 = vmatpush.msrb.mxu2 %v944_v46  ;;  %v1126_v47 = vld [vmem:[%s2880_s11 + $0x88] sm:$0xff]  ;;  %v1125_v0 = vld [vmem:[%s2880_s11 + $0x80] sm:$0xff] }
 0x128   :  { %v927_v56 = vadd.f32 %v922_v52, %v673_v49  ;;  %1216 = vmatpush.msra.mxu0 %v2530_v10  ;;  %v1117_v10 = vld [vmem:[%s2880_s11 + $0x40] sm:$0xff]  ;;  %1237 = vmatpush.msra.mxu1 %v2558_v19  ;;  %v1115_v19 = vld [vmem:[%s2880_s11 + $0x30] sm:$0xff] }
 0x129   :  { %966 = vmatpush.msrb.mxu2 %v942_v54 }
 0x12a   :  { %v937_v62 = vadd.f32 %v931_v51, %v927_v56  ;;  %1716 = vmatmul.msk.f32.vlgmr.msrb.gmra.mxu2 %vm947_vm8, %v946_v57  ;;  %1217 = vmatpush.msra.mxu0 %v2546_v17  ;;  %v1116_v17 = vld [vmem:[%s2880_s11 + $0x38] sm:$0xff] }
 0x12b   :  { %1009 = vmatpush.msra.mxu2 %v944_v46  ;;  %1238 = vmatpush.msra.mxu1 %v2570_v27  ;;  %v1131_v27 = vld [vmem:[%s2880_s11 + $0xb0] sm:$0xff] }
 0x12c   :  { %v945_v4 = vadd.f32 %v941_v59, %v937_v62  ;;  %1218 = vmatpush.msra.mxu0 %v2563_v23  ;;  %v1132_v23 = vld [vmem:[%s2880_s11 + $0xb8] sm:$0xff]  ;;  %v1127_v46 = vld [vmem:[%s2880_s11 + $0x90] sm:$0xff] }
 0x12d   :  { %1010 = vmatpush.msra.mxu2 %v942_v54  ;;  %1239 = vmatpush.msra.mxu1 %v2583_v16  ;;  %v1113_v16 = vld [vmem:[%s2880_s11 + $0x20] sm:$0xff] }
 0x12e   :  { %985 = vmatpush.msrb.mxu3 %v945_v4  ;;  %1219 = vmatpush.msra.mxu0 %v2576_v32  ;;  %v1114_v32 = vld [vmem:[%s2880_s11 + $0x28] sm:$0xff] }
 0x12f   :  { %1141 = vmatpush.msrb.mxu2 %v1124_v1  ;;  %1240 = vmatpush.msra.mxu1 %v2598_v39  ;;  %v1130_v39 = vld [vmem:[%s2880_s11 + $0xa8] sm:$0xff] }
 0x130   :  { %986 = vmatpush.msrb.mxu3 %v943_v8  ;;  %1220 = vmatpush.msra.mxu0 %v2588_v35  ;;  %v1112_v35 = vld [vmem:[%s2880_s11 + $0x18] sm:$0xff] }
 0x131   :  { %1142 = vmatpush.msrb.mxu2 %v1123_v6  ;;  %1717 = vmatmul.msk.f32.vlgmr.msrb.gmra.mxu3 %vm947_vm8, %v946_v57 }
 0x132   :  { %1029 = vmatpush.msra.mxu3 %v945_v4  ;;  %1718 = vmatmul.msk.f32.vlgmr.msra.gmra.mxu2 %vm947_vm8, %v991_v18 }
 0x133   :  { %1143 = vmatpush.msrb.mxu2 %v1122_v26  ;;  %1221 = vmatpush.msra.mxu0 %v2603_v42  ;;  %v1111_v42 = vld [vmem:[%s2880_s11 + $0x10] sm:$0xff] }
 0x134   :  { %1030 = vmatpush.msra.mxu3 %v943_v8  ;;  %1241 = vmatpush.msra.mxu1 %v2613_v45  ;;  %v1109_v45 = vld [vmem:[%s2880_s11] sm:$0xff] }
 0x135   :  { %1144 = vmatpush.msrb.mxu2 %v1121_v31  ;;  %1222 = vmatpush.msra.mxu0 %v2618_v48 }
 0x136   :  { %1161 = vmatpush.msrb.mxu3 %v1140_v22  ;;  %1242 = vmatpush.msra.mxu1 %v2627_v53 }
 0x137   :  { %1145 = vmatpush.msrb.mxu2 %v1120_v34  ;;  %1223 = vmatpush.msra.mxu0 %v2632_v55 }
 0x138   :  { %1162 = vmatpush.msrb.mxu3 %v1139_v28  ;;  %1243 = vmatpush.msra.mxu1 %v2642_v58 }
 0x139   :  { %1719 = vmatmul.msk.f32.vlgmr.msra.gmra.mxu3 %vm947_vm8, %v991_v18  ;;  %1146 = vmatpush.msrb.mxu2 %v1119_v37 }
 0x13a   :  { %1163 = vmatpush.msrb.mxu3 %v1138_v15  ;;  %1224 = vmatpush.msra.mxu0 %v2650_v60 }
 0x13b   :  { %1147 = vmatpush.msrb.mxu2 %v1118_v9  ;;  %1244 = vmatpush.msra.mxu1 %v2657_v63 }
 0x13c   :  { %1164 = vmatpush.msrb.mxu3 %v1137_v36  ;;  %1225 = vmatpush.msra.mxu0 %v2669_v3 }
 0x13d   :  { %1148 = vmatpush.msrb.mxu2 %v1117_v10  ;;  %1245 = vmatpush.msra.mxu1 %v2676_v5 }
 0x13e   :  { %1165 = vmatpush.msrb.mxu3 %v1136_v38  ;;  %1226 = vmatpush.msra.mxu0 %v2684_v7 }
 0x13f   :  { %1246 = vmatpush.msra.mxu1 %v2691_v13  ;;  %1149 = vmatpush.msrb.mxu2 %v1116_v17 }
 0x140   :  { %1166 = vmatpush.msrb.mxu3 %v1135_v40  ;;  %1227 = vmatpush.msra.mxu0 %v2696_v14 }
 0x141   :  { %1247 = vmatpush.msra.mxu1 %v2706_v20  ;;  %1150 = vmatpush.msrb.mxu2 %v1115_v19 }
 0x142   :  { %1167 = vmatpush.msrb.mxu3 %v1134_v11  ;;  %1228 = vmatpush.msra.mxu0 %v2712_v21 }
 0x143   :  { %1248 = vmatpush.msra.mxu1 %v2722_v24  ;;  %1151 = vmatpush.msrb.mxu2 %v1114_v32 }
 0x144   :  { %1168 = vmatpush.msrb.mxu3 %v1133_v12  ;;  %1229 = vmatpush.msra.mxu0 %v2728_v25 }
 0x145   :  { %1249 = vmatpush.msra.mxu1 %v2741_v29  ;;  %1152 = vmatpush.msrb.mxu2 %v1113_v16 }
 0x146   :  { %1230 = vmatpush.msra.mxu0 %v1037_v30  ;;  %1169 = vmatpush.msrb.mxu3 %v1132_v23 }
 0x147   :  { %1250 = vmatpush.msra.mxu1 %v1053_v33  ;;  %1153 = vmatpush.msrb.mxu2 %v1112_v35 }
 0x148   :  { %1170 = vmatpush.msrb.mxu3 %v1131_v27 }
 0x149   :  { %1154 = vmatpush.msrb.mxu2 %v1111_v42 }
 0x14a   :  { %1171 = vmatpush.msrb.mxu3 %v1130_v39 }
 0x14b   :  { %1155 = vmatpush.msrb.mxu2 %v1110_v43 }
 0x14c   :  { %1172 = vmatpush.msrb.mxu3 %v1129_v41 }
 0x14d   :  { %1156 = vmatpush.msrb.mxu2 %v1109_v45 }
 0x14e   :  { %1173 = vmatpush.msrb.mxu3 %v1128_v44 }
 0x150   :  { %1174 = vmatpush.msrb.mxu3 %v1127_v46 }
 0x152   :  { %1175 = vmatpush.msrb.mxu3 %v1126_v47 }
 0x154   :  { %1176 = vmatpush.msrb.mxu3 %v1125_v0 }
 0x1ad   :  { %v968_v48 = vpop.f32.mrf.mxu2 }
 0x1b4   :  { %v988_v49 = vpop.f32.mrf.mxu3 }
 0x1b5   :  { %v1012_v50 = vpop.f32.mrf.mxu2 }
 0x1b6   :  { %v1035_v51 = vmax.f32 %v968_v48, %v1012_v50 }
 0x1b8   :  { %1085 = vmatmul.f32.vlgmr.msrb.gmra.mxu0 %v1035_v51  ;;  %1157 = vmatmul.f32.vlgmr.msrb.gmra.mxu2 %v1035_v51 }
 0x1bc   :  { %v1032_v52 = vpop.f32.mrf.mxu3 }
 0x1bd   :  { %v1036_v53 = vmax.f32 %v988_v49, %v1032_v52 }
 0x1bf   :  { %1105 = vmatmul.f32.vlgmr.msrb.gmra.mxu1 %v1036_v53  ;;  %1177 = vmatmul.f32.vlgmr.msrb.gmra.mxu3 %v1036_v53 }
 0x1c0   :  { %1231 = vmatmul.f32.vlgmr.msra.gmra.mxu0 %v968_v48 }
 0x1c7   :  { %1251 = vmatmul.f32.vlgmr.msra.gmra.mxu1 %v988_v49 }
 0x235   :  { %v1086_v54 = vpop.f32.mrf.mxu0 }
 0x23b   :  { %v1158_v56 = vpop.f32.mrf.mxu2 }
 0x23c   :  { %v1106_v55 = vpop.f32.mrf.mxu1 }
 0x23d   :  { %v1107_v58 = vadd.f32 %v1106_v55, %v1086_v54  ;;  %v1232_v60 = vpop.f32.mrf.mxu0 }
 0x242   :  { %v1178_v57 = vpop.f32.mrf.mxu3 }
 0x243   :  { %v1179_v59 = vadd.f32 %v1178_v57, %v1158_v56 }
 0x244   :  { %v1252_v61 = vpop.f32.mrf.mxu1 }
 0x245   :  { %v1181_v62 = vmax.f32 %v1107_v58, %v1179_v59  ;;  %v1253_v63 = vadd.f32 %v1252_v61, %v1232_v60 }
 0x247   :  { %1182 = vst [vmem:[%s2882_s12] sm:$0xff] %v1181_v62 }
 0x248   :  { %1255 = vst [vmem:[%s2883_s13] sm:$0xff] %v1253_v63 }

// kernel: autoencoder_forward.12
= control target key start
LH: loop header
LB: loop body
LE: loop exit
PB: predicated region body
PF: predicated region fallthrough
CT: control target
= control target key end

     0   :  { %v667_v0 = vmov 0   ;;  %vm75_vm2 = vcmask 1043456   ;;  %vm76_vm3 = vsmask.f32 3328  ;;  %vm68_vm7 = vcmask 1040384   ;;  %s957_s4 = inlined_call_operand.vmem [shape: f32[8,1], index: 4, kind: input, shape index: {}]   ;;  %s958_s3 = inlined_call_operand.vmem [shape: f32[8,1], index: 3, kind: input, shape index: {}]   ;;  %s959_s1 = inlined_call_operand.vmem [shape: bf16[3,128,128], index: 1, kind: input, shape index: {}]   ;;  %s960_s5 = inlined_call_operand.vmem [shape: f32[1,128], index: 5, kind: input, shape index: {}]   ;;  %s961_s6 = inlined_call_operand.vmem [shape: f32[1,128], index: 6, kind: input, shape index: {}]   ;;  %s962_s0 = inlined_call_operand.vmem [shape: f32[8,128], index: 0, kind: input, shape index: {}]   ;;  %s963_s2 = inlined_call_operand.vmem [shape: f32[1,128], index: 2, kind: input, shape index: {}]   ;;  %s964_s10 = inlined_call_operand.vmem [shape: f32[128,64], index: 10, kind: input, shape index: {}]   ;;  %s965_s11 = inlined_call_operand.vmem [shape: f32[128,64], index: 11, kind: input, shape index: {}]   ;;  %s966_s7 = inlined_call_operand.vmem [shape: f32[8,128], index: 7, kind: input, shape index: {}]   ;;  %s967_s8 = inlined_call_operand.vmem [shape: f32[4,8], index: 8, kind: input, shape index: {}]   ;;  %s968_s9 = inlined_call_operand.vmem [shape: f32[4,8], index: 9, kind: input, shape index: {}]   ;;  %s969_s13 = inlined_call_operand.vmem [shape: f32[4,64], index: 13, kind: output, shape index: {1}]   ;;  %s970_s12 = inlined_call_operand.vmem [shape: f32[4,64], index: 12, kind: output, shape index: {0}]  }
   0x1   :  { %663 = vset.pattern.permute.xlu0 %v667_v0  ;;  %v88_v1 = vld [vmem:[%s957_s4] sm:$0xff]  ;;  %v653_v2 = vld [vmem:[%s959_s1 + $0x78] sm:$0xff]  ;;  %v652_v6 = vld [vmem:[%s959_s1 + $0x70] sm:$0xff]  ;;  %vm69_vm8 = vsmask.f32 256  ;;  %vm339_vm12 = vcmask 64512  }
   0x2   :  { %vm89_vm0 = vcmp.gt.f32.partialorder %v88_v1, 0.0  ;;  %v661_v3 = vld [vmem:[%s959_s1 + $0xb8] sm:$0xff]  ;;  %v79_v5 = vld [vmem:[%s958_s3] sm:$0xff]  ;;  %178 = vmatpush.bf16.msra.mxu0 %v653_v2  ;;  %v660_v8 = vld [vmem:[%s959_s1 + $0xb0] sm:$0xff]  ;;  %vm461_vm13 = vcmask 519168  }
   0x3   :  { %v90_v4 = vsel %vm89_vm0, 1, %v667_v0  ;;  %v645_v7 = vld [vmem:[%s959_s1 + $0x38] sm:$0xff]  ;;  %317 = vmatpush.bf16.msra.mxu2 %v661_v3  ;;  %v644_v9 = vld [vmem:[%s959_s1 + $0x30] sm:$0xff]  ;;  %vm80_vm1 = vcmp.gt.f32.partialorder %v79_v5, 0.0  ;;  %v651_v10 = vld [vmem:[%s959_s1 + $0x68] sm:$0xff] }
   0x4   :  { %92 = vperm.xlu0 %663, %v90_v4   ;;  %239 = vmatpush.bf16.msra.mxu1 %v645_v7  ;;  %v659_v11 = vld [vmem:[%s959_s1 + $0xa8] sm:$0xff]  ;;  %v81_v12 = vsel %vm80_vm1, 1, %v667_v0  ;;  %v650_v14 = vld [vmem:[%s959_s1 + $0x60] sm:$0xff]  ;;  %v649_v17 = vld [vmem:[%s959_s1 + $0x58] sm:$0xff] }
   0x5   :  { %v643_v13 = vld [vmem:[%s959_s1 + $0x28] sm:$0xff]  ;;  %v658_v15 = vld [vmem:[%s959_s1 + $0xa0] sm:$0xff]  ;;  %v657_v18 = vld [vmem:[%s959_s1 + $0x98] sm:$0xff] }
   0x6   :  { %179 = vmatpush.bf16.msra.mxu0 %v652_v6  ;;  %v642_v16 = vld [vmem:[%s959_s1 + $0x20] sm:$0xff]  ;;  %v641_v19 = vld [vmem:[%s959_s1 + $0x18] sm:$0xff]  ;;  %v648_v20 = vld [vmem:[%s959_s1 + $0x50] sm:$0xff] }
   0x7   :  { %318 = vmatpush.bf16.msra.mxu2 %v660_v8  ;;  %v656_v21 = vld [vmem:[%s959_s1 + $0x90] sm:$0xff]  ;;  %v647_v22 = vld [vmem:[%s959_s1 + $0x48] sm:$0xff]  ;;  %v664_v24 = vld [vmem:[%s960_s5] ss:$0 sm:$0xff] }
   0x8   :  { %240 = vmatpush.bf16.msra.mxu1 %v644_v9  ;;  %v655_v23 = vld [vmem:[%s959_s1 + $0x88] sm:$0xff]  ;;  %v44_v25 = vld [vmem:[%s962_s0] sm:$0xff]  ;;  %v640_v31 = vld [vmem:[%s959_s1 + $0x10] sm:$0xff] }
   0x9   :  { %v49_v26 = vmul.f32 %v664_v24, %v44_v25  ;;  %v665_v27 = vld [vmem:[%s961_s6] ss:$0 sm:$0xff]  ;;  %v639_v34 = vld [vmem:[%s959_s1 + $0x8] sm:$0xff]  ;;  %vm77_vm4 = vmand %vm75_vm2, %vm76_vm3 }
   0xa   :  { %180 = vmatpush.bf16.msra.mxu0 %v651_v10  ;;  %v646_v30 = vld [vmem:[%s959_s1 + $0x40] sm:$0xff]  ;;  %vm70_vm9 = vmand %vm68_vm7, %vm69_vm8  ;;  %v828_v52 = vld [vmem:[%s964_s10 + $0x78] sm:$0xff] }
   0xb   :  { %319 = vmatpush.bf16.msra.mxu2 %v659_v11  ;;  %v54_v28 = vadd.f32 %v665_v27, %v49_v26  ;;  %v654_v32 = vld [vmem:[%s959_s1 + $0x80] sm:$0xff]  ;;  %v833_v53 = vld [vmem:[%s964_s10 + $0x70] sm:$0xff]  ;;  %v439_v54 = vld [vmem:[%s965_s11 + $0x78] sm:$0xff] }
   0xc   :  { %83 = vperm.xlu0 %663, %v81_v12   ;;  %241 = vmatpush.bf16.msra.mxu1 %v643_v13  ;;  %v638_v35 = vld [vmem:[%s959_s1] sm:$0xff]  ;;  %v842_v55 = vld [vmem:[%s964_s10 + $0x68] sm:$0xff]  ;;  %v438_v56 = vld [vmem:[%s965_s11 + $0x70] sm:$0xff] }
   0xd   :  { %v55_v29 = vmax.f32 %v54_v28, 0.0  ;;  %v437_v57 = vld [vmem:[%s965_s11 + $0x68] sm:$0xff]  ;;  %v854_v58 = vld [vmem:[%s964_s10 + $0x60] sm:$0xff]  ;;  %v474_v60 = vld [vmem:[%s964_s10 + $0x58] sm:$0xff] }
   0xe   :  { %181 = vmatpush.bf16.msra.mxu0 %v650_v14  ;;  %v436_v59 = vld [vmem:[%s965_s11 + $0x60] sm:$0xff]  ;;  %v435_v61 = vld [vmem:[%s965_s11 + $0x58] sm:$0xff]  ;;  %v473_v62 = vld [vmem:[%s964_s10 + $0x50] sm:$0xff] }
   0xf   :  { %320 = vmatpush.bf16.msra.mxu2 %v658_v15  ;;  %v56_v33 = vpack.c.bf16 %v55_v29, %v55_v29  ;;  %v434_v63 = vld [vmem:[%s965_s11 + $0x50] sm:$0xff]  ;;  %v472_v0 = vld [vmem:[%s964_s10 + $0x48] sm:$0xff]  ;;  %v471_v3 = vld [vmem:[%s964_s10 + $0x40] sm:$0xff] }
  0x10   :  { %242 = vmatpush.bf16.msra.mxu1 %v642_v16  ;;  %v433_v1 = vld [vmem:[%s965_s11 + $0x48] sm:$0xff]  ;;  %v432_v4 = vld [vmem:[%s965_s11 + $0x40] sm:$0xff]  ;;  %v470_v6 = vld [vmem:[%s964_s10 + $0x38] sm:$0xff] }
  0x11   :  { %v58_v36 = vunpack.c.l.b16 %v56_v33  ;;  %v666_v8 = vld [vmem:[%s963_s2] ss:$0 sm:$0xff]  ;;  %v431_v9 = vld [vmem:[%s965_s11 + $0x38] sm:$0xff]  ;;  %v469_v10 = vld [vmem:[%s964_s10 + $0x30] sm:$0xff] }
  0x12   :  { %182 = vmatpush.bf16.msra.mxu0 %v649_v17  ;;  %v430_v12 = vld [vmem:[%s965_s11 + $0x30] sm:$0xff]  ;;  %v336_v13 = vld [vmem:[%s966_s7] sm:$0xff]  ;;  %v468_v14 = vld [vmem:[%s964_s10 + $0x28] sm:$0xff] }
  0x13   :  { %321 = vmatpush.bf16.msra.mxu2 %v657_v18  ;;  %v59_v37 = vpack.c.b16 %v58_v36, %v58_v36  ;;  %v467_v17 = vld [vmem:[%s964_s10 + $0x20] sm:$0xff]  ;;  %v429_v25 = vld [vmem:[%s965_s11 + $0x28] sm:$0xff]  ;;  %v427_v28 = vld [vmem:[%s965_s11 + $0x18] sm:$0xff] }
  0x14   :  { %243 = vmatpush.bf16.msra.mxu1 %v641_v19  ;;  %v338_v19 = vld [vmem:[%s967_s8] sm:$0xf]  ;;  %v426_v29 = vld [vmem:[%s965_s11 + $0x10] sm:$0xff] }
  0x15   :  { %v64_v38 = vshll.u32 %v59_v37, 16  ;;  %v61_v39 = vshrl.u32 %v59_v37, 16  ;;  %v363_v24 = vld [vmem:[%s968_s9] sm:$0xf] }
  0x16   :  { %183 = vmatpush.bf16.msra.mxu0 %v648_v20  ;;  %v463_v26 = vld [vmem:[%s964_s10] sm:$0xff] }
  0x17   :  { %322 = vmatpush.bf16.msra.mxu2 %v656_v21  ;;  %v72_v40 = vrot.slane %v64_v38, 1  ;;  %v63_v44 = vrot.slane %v61_v39, 7  ;;  %v466_v21 = vld [vmem:[%s964_s10 + $0x18] sm:$0xff]  ;;  %v428_v27 = vld [vmem:[%s965_s11 + $0x20] sm:$0xff] }
  0x18   :  { %244 = vmatpush.bf16.msra.mxu1 %v640_v31  ;;  %v424_v31 = vld [vmem:[%s965_s11] sm:$0xff] }
  0x19   :  { %v73_v41 = vor.u32 %v72_v40, %v61_v39  ;;  %v66_v46 = vor.u32 %v64_v38, %v63_v44 }
  0x1a   :  { %184 = vmatpush.bf16.msra.mxu0 %v647_v22  ;;  %v465_v22 = vld [vmem:[%s964_s10 + $0x10] sm:$0xff] }
  0x1b   :  { %323 = vmatpush.bf16.msra.mxu2 %v655_v23  ;;  %v78_v43 = vsel %vm77_vm4, %v73_v41, 0  ;;  %v71_v48 = vsel %vm70_vm9, 0, %v66_v46  ;;  %v464_v23 = vld [vmem:[%s964_s10 + $0x8] sm:$0xff] }
  0x1c   :  { %245 = vmatpush.bf16.msra.mxu1 %v639_v34 }
  0x1e   :  { %185 = vmatpush.bf16.msra.mxu0 %v646_v30  ;;  %v425_v30 = vld [vmem:[%s965_s11 + $0x8] sm:$0xff] }
  0x1f   :  { %324 = vmatpush.bf16.msra.mxu2 %v654_v32 }
  0x20   :  { %246 = vmatpush.bf16.msra.mxu1 %v638_v35 }
  0x21   :  { %186 = vmatmul.bf16.vlgmr.msra.gmra.mxu0 %v56_v33 }
  0x22   :  { %440 = vmatpush.msrb.mxu0 %v439_v54 }
  0x24   :  { %479 = vmatpush.msrb.mxu1 %v828_v52  ;;  %441 = vmatpush.msrb.mxu0 %v438_v56 }
  0x26   :  { %480 = vmatpush.msrb.mxu1 %v833_v53  ;;  %442 = vmatpush.msrb.mxu0 %v437_v57 }
  0x28   :  { %481 = vmatpush.msrb.mxu1 %v842_v55  ;;  %443 = vmatpush.msrb.mxu0 %v436_v59 }
  0x2a   :  { %482 = vmatpush.msrb.mxu1 %v854_v58  ;;  %444 = vmatpush.msrb.mxu0 %v435_v61 }
  0x2c   :  { %483 = vmatpush.msrb.mxu1 %v474_v60  ;;  %445 = vmatpush.msrb.mxu0 %v434_v63 }
  0x2e   :  { %484 = vmatpush.msrb.mxu1 %v473_v62  ;;  %446 = vmatpush.msrb.mxu0 %v433_v1 }
  0x30   :  { %485 = vmatpush.msrb.mxu1 %v472_v0  ;;  %447 = vmatpush.msrb.mxu0 %v432_v4 }
  0x32   :  { %486 = vmatpush.msrb.mxu1 %v471_v3  ;;  %448 = vmatpush.msrb.mxu0 %v431_v9 }
  0x34   :  { %487 = vmatpush.msrb.mxu1 %v470_v6  ;;  %449 = vmatpush.msrb.mxu0 %v430_v12 }
  0x36   :  { %488 = vmatpush.msrb.mxu1 %v469_v10  ;;  %450 = vmatpush.msrb.mxu0 %v429_v25 }
  0x38   :  { %489 = vmatpush.msrb.mxu1 %v468_v14  ;;  %451 = vmatpush.msrb.mxu0 %v428_v27 }
  0x3a   :  { %490 = vmatpush.msrb.mxu1 %v467_v17  ;;  %452 = vmatpush.msrb.mxu0 %v427_v28 }
  0x3c   :  { %491 = vmatpush.msrb.mxu1 %v466_v21  ;;  %453 = vmatpush.msrb.mxu0 %v426_v29 }
  0x3e   :  { %492 = vmatpush.msrb.mxu1 %v465_v22  ;;  %454 = vmatpush.msrb.mxu0 %v425_v30 }
  0x40   :  { %493 = vmatpush.msrb.mxu1 %v464_v23  ;;  %455 = vmatpush.msrb.mxu0 %v424_v31 }
  0x42   :  { %494 = vmatpush.msrb.mxu1 %v463_v26 }
  0x76   :  { %v93_v42 = vpop.permute.xlu0 %92 }
  0x77   :  { %vm94_vm5 = vcmp.eq.s32.totalorder %v93_v42, 1 }
  0x78   :  { %vm95_vm6 = vmpackc.low %vm94_vm5, %vm94_vm5 }
  0x79   :  { %v96_v45 = vsel %vm95_vm6, %v78_v43, 0 }
  0x7a   :  { %325 = vmatmul.bf16.vlgmr.msra.gmra.mxu2 %v96_v45 }
  0x7e   :  { %v84_v47 = vpop.permute.xlu0 %83 }
  0x7f   :  { %vm85_vm10 = vcmp.eq.s32.totalorder %v84_v47, 1 }
  0x80   :  { %vm86_vm11 = vmpackc.low %vm85_vm10, %vm85_vm10 }
  0x81   :  { %v87_v49 = vsel %vm86_vm11, %v71_v48, 0 }
  0x82   :  { %247 = vmatmul.bf16.vlgmr.msra.gmra.mxu1 %v87_v49 }
  0x9e   :  { %v187_v50 = vpop.f32.mrf.mxu0 }
  0xa6   :  { %v189_v51 = vpop.f32.mrf.mxu0 }
  0xfd   :  { %v326_v2 = vpop.f32.mrf.mxu2 }
  0xff   :  { %v248_v5 = vpop.f32.mrf.mxu1 }
 0x100   :  { %v249_v7 = vadd.f32 %v248_v5, %v187_v50 }
 0x102   :  { %v330_v11 = vadd.f32 %v326_v2, %v249_v7 }
 0x104   :  { %v335_v15 = vadd.f32 %v666_v8, %v330_v11 }
 0x105   :  { %v328_v16 = vpop.f32.mrf.mxu2 }
 0x106   :  { %v337_v18 = vadd.f32 %v336_v13, %v335_v15 }
 0x107   :  { %v250_v20 = vpop.f32.mrf.mxu1 }
 0x108   :  { %358 = vmatpush.msra.mxu3 %v337_v18 }
 0x109   :  { %636 = vmatmul.msk.f32.vlgmr.msra.gmra.mxu3 %vm339_vm12, %v338_v19 }
 0x10a   :  { %382 = vmatpush.msrb.mxu3 %v337_v18 }
 0x10c   :  { %404 = vmatpush.msra.mxu3 %v828_v52 }
 0x10e   :  { %405 = vmatpush.msra.mxu3 %v833_v53 }
 0x110   :  { %406 = vmatpush.msra.mxu3 %v842_v55 }
 0x111   :  { %637 = vmatmul.msk.f32.vlgmr.msrb.gmra.mxu3 %vm339_vm12, %v363_v24 }
 0x112   :  { %407 = vmatpush.msra.mxu3 %v854_v58 }
 0x114   :  { %408 = vmatpush.msra.mxu3 %v474_v60 }
 0x116   :  { %409 = vmatpush.msra.mxu3 %v473_v62 }
 0x118   :  { %410 = vmatpush.msra.mxu3 %v472_v0 }
 0x11a   :  { %411 = vmatpush.msra.mxu3 %v471_v3 }
 0x11c   :  { %412 = vmatpush.msra.mxu3 %v470_v6 }
 0x11e   :  { %413 = vmatpush.msra.mxu3 %v469_v10 }
 0x120   :  { %414 = vmatpush.msra.mxu3 %v468_v14 }
 0x122   :  { %415 = vmatpush.msra.mxu3 %v467_v17 }
 0x124   :  { %416 = vmatpush.msra.mxu3 %v466_v21 }
 0x126   :  { %417 = vmatpush.msra.mxu3 %v465_v22 }
 0x128   :  { %418 = vmatpush.msra.mxu3 %v464_v23 }
 0x12a   :  { %419 = vmatpush.msra.mxu3 %v463_v26 }
 0x18c   :  { %v360_v32 = vpop.f32.mrf.mxu3 }
 0x18d   :  { %495 = vmatmul.f32.vlgmr.msrb.gmra.mxu1 %v360_v32 }
 0x194   :  { %v384_v33 = vpop.f32.mrf.mxu3 }
 0x195   :  { %v387_v34 = vmax.f32 %v360_v32, %v384_v33 }
 0x197   :  { %420 = vmatmul.f32.vlgmr.msra.gmra.mxu3 %v387_v34  ;;  %456 = vmatmul.f32.vlgmr.msrb.gmra.mxu0 %v387_v34 }
 0x20a   :  { %v496_v35 = vpop.f32.mrf.mxu1 }
 0x20b   :  { %499 = vst.msk [vmem:[%s969_s13] sm:$0xf] %vm461_vm13, %v496_v35 }
 0x214   :  { %v457_v36 = vpop.f32.mrf.mxu0 }
 0x21a   :  { %v421_v37 = vpop.f32.mrf.mxu3 }
 0x21b   :  { %v460_v38 = vmax.f32 %v421_v37, %v457_v36 }
 0x21d   :  { %462 = vst.msk [vmem:[%s970_s12] sm:$0xf] %vm461_vm13, %v460_v38 }

// kernel: autoencoder_forward.13
= control target key start
LH: loop header
LB: loop body
LE: loop exit
PB: predicated region body
PF: predicated region fallthrough
CT: control target
= control target key end

     0   :  { %v328_v0 = vmov 0   ;;  %vm124_vm2 = vcmask 523264   ;;  %vm61_vm3 = vcmask 1041408   ;;  %vm62_vm4 = vsmask.f32 1280  ;;  %s437_s4 = inlined_call_operand.vmem [shape: f32[4,1], index: 4, kind: input, shape index: {}]   ;;  %s438_s3 = inlined_call_operand.vmem [shape: f32[4,1], index: 3, kind: input, shape index: {}]   ;;  %s439_s1 = inlined_call_operand.vmem [shape: bf16[3,64,64], index: 1, kind: input, shape index: {}]   ;;  %s440_s5 = inlined_call_operand.vmem [shape: f32[1,64], index: 5, kind: input, shape index: {}]   ;;  %s441_s6 = inlined_call_operand.vmem [shape: f32[1,64], index: 6, kind: input, shape index: {}]   ;;  %s442_s0 = inlined_call_operand.vmem [shape: f32[4,64], index: 0, kind: input, shape index: {}]   ;;  %s443_s2 = inlined_call_operand.vmem [shape: f32[1,64], index: 2, kind: input, shape index: {}]   ;;  %s444_s7 = inlined_call_operand.vmem [shape: f32[4,64], index: 7, kind: input, shape index: {}]   ;;  %s445_s8 = inlined_call_operand.vmem [shape: f32[4,64], index: 8, kind: output, shape index: {}]  }
   0x1   :  { %324 = vset.pattern.permute.xlu0 %v328_v0  ;;  %v74_v1 = vld [vmem:[%s437_s4] sm:$0xf]  ;;  %v318_v2 = vld [vmem:[%s439_s1 + $0x38] sm:$0xff]  ;;  %v317_v6 = vld [vmem:[%s439_s1 + $0x30] sm:$0xff]  ;;  %vm54_vm8 = vcmask 1040384   ;;  %vm238_vm13 = vcmask 519168  }
   0x2   :  { %vm75_vm0 = vcmp.gt.f32.partialorder %v74_v1, 0.0  ;;  %v322_v3 = vld [vmem:[%s439_s1 + $0x58] sm:$0xff]  ;;  %v65_v5 = vld [vmem:[%s438_s3] sm:$0xf]  ;;  %132 = vmatpush.bf16.msra.mxu0 %v318_v2  ;;  %v321_v8 = vld [vmem:[%s439_s1 + $0x50] sm:$0xff] }
   0x3   :  { %v76_v4 = vsel %vm75_vm0, 1, %v328_v0  ;;  %v314_v7 = vld [vmem:[%s439_s1 + $0x18] sm:$0xff]  ;;  %221 = vmatpush.bf16.msra.mxu2 %v322_v3  ;;  %vm66_vm1 = vcmp.gt.f32.partialorder %v65_v5, 0.0  ;;  %v316_v9 = vld [vmem:[%s439_s1 + $0x28] sm:$0xff]  ;;  %v325_v12 = vld [vmem:[%s440_s5] ss:$0 sm:$0xff] }
   0x4   :  { %78 = vperm.xlu0 %324, %v76_v4   ;;  %172 = vmatpush.bf16.msra.mxu1 %v314_v7  ;;  %v320_v10 = vld [vmem:[%s439_s1 + $0x48] sm:$0xff]  ;;  %v67_v11 = vsel %vm66_vm1, 1, %v328_v0  ;;  %v30_v13 = vld [vmem:[%s442_s0] sm:$0xf]  ;;  %v313_v19 = vld [vmem:[%s439_s1 + $0x10] sm:$0xff] }
   0x5   :  { %v35_v14 = vmul.f32 %v325_v12, %v30_v13  ;;  %v326_v15 = vld [vmem:[%s441_s6] ss:$0 sm:$0xff]  ;;  %v312_v22 = vld [vmem:[%s439_s1 + $0x8] sm:$0xff]  ;;  %vm63_vm5 = vmand %vm61_vm3, %vm62_vm4  ;;  %vm55_vm9 = vsmask.f32 256 }
   0x6   :  { %133 = vmatpush.bf16.msra.mxu0 %v317_v6  ;;  %v315_v18 = vld [vmem:[%s439_s1 + $0x20] sm:$0xff]  ;;  %vm56_vm10 = vmand %vm54_vm8, %vm55_vm9 }
   0x7   :  { %222 = vmatpush.bf16.msra.mxu2 %v321_v8  ;;  %v40_v16 = vadd.f32 %v326_v15, %v35_v14  ;;  %v319_v20 = vld [vmem:[%s439_s1 + $0x40] sm:$0xff] }
   0x8   :  { %173 = vmatpush.bf16.msra.mxu1 %v313_v19  ;;  %v311_v23 = vld [vmem:[%s439_s1] sm:$0xff] }
   0x9   :  { %v41_v17 = vmax.f32 %v40_v16, 0.0  ;;  %v327_v43 = vld [vmem:[%s443_s2] ss:$0 sm:$0xff] }
   0xa   :  { %134 = vmatpush.bf16.msra.mxu0 %v316_v9  ;;  %v236_v45 = vld [vmem:[%s444_s7] sm:$0xf] }
   0xb   :  { %223 = vmatpush.bf16.msra.mxu2 %v320_v10  ;;  %v42_v21 = vpack.c.bf16 %v41_v17, %v41_v17 }
   0xc   :  { %69 = vperm.xlu0 %324, %v67_v11   ;;  %174 = vmatpush.bf16.msra.mxu1 %v312_v22 }
   0xd   :  { %v44_v24 = vunpack.c.l.b16 %v42_v21 }
   0xe   :  { %135 = vmatpush.bf16.msra.mxu0 %v315_v18 }
   0xf   :  { %224 = vmatpush.bf16.msra.mxu2 %v319_v20  ;;  %v45_v25 = vpack.c.b16 %v44_v24, %v44_v24 }
  0x10   :  { %175 = vmatpush.bf16.msra.mxu1 %v311_v23 }
  0x11   :  { %268 = vmatmul.msk.bf16.vlgmr.msra.gmra.mxu0 %vm124_vm2, %v42_v21  ;;  %v50_v26 = vshll.u32 %v45_v25, 16  ;;  %v47_v27 = vshrl.u32 %v45_v25, 16 }
  0x13   :  { %v58_v28 = vrot.slane %v50_v26, 1  ;;  %v49_v32 = vrot.slane %v47_v27, 7 }
  0x15   :  { %v59_v29 = vor.u32 %v58_v28, %v47_v27  ;;  %v52_v34 = vor.u32 %v50_v26, %v49_v32 }
  0x17   :  { %v64_v31 = vsel %vm63_vm5, %v59_v29, 0  ;;  %v57_v36 = vsel %vm56_vm10, 0, %v52_v34 }
  0x76   :  { %v79_v30 = vpop.permute.xlu0 %78 }
  0x77   :  { %vm80_vm6 = vcmp.eq.s32.totalorder %v79_v30, 1 }
  0x78   :  { %vm81_vm7 = vmpackc.low %vm80_vm6, %vm80_vm6 }
  0x79   :  { %v82_v33 = vsel %vm81_vm7, %v64_v31, 0 }
  0x7a   :  { %310 = vmatmul.msk.bf16.vlgmr.msra.gmra.mxu2 %vm124_vm2, %v82_v33 }
  0x7e   :  { %v70_v35 = vpop.permute.xlu0 %69 }
  0x7f   :  { %vm71_vm11 = vcmp.eq.s32.totalorder %v70_v35, 1 }
  0x80   :  { %vm72_vm12 = vmpackc.low %vm71_vm11, %vm71_vm11 }
  0x81   :  { %v73_v37 = vsel %vm72_vm12, %v57_v36, 0 }
  0x82   :  { %285 = vmatmul.msk.bf16.vlgmr.msra.gmra.mxu1 %vm124_vm2, %v73_v37 }
  0x8e   :  { %v137_v38 = vpop.f32.mrf.mxu0 }
  0x96   :  { %v139_v39 = vpop.f32.mrf.mxu0 }
  0xfd   :  { %v226_v40 = vpop.f32.mrf.mxu2 }
  0xff   :  { %v177_v41 = vpop.f32.mrf.mxu1 }
 0x100   :  { %v178_v42 = vadd.f32 %v177_v41, %v137_v38 }
 0x102   :  { %v230_v44 = vadd.f32 %v226_v40, %v178_v42 }
 0x104   :  { %v235_v46 = vadd.f32 %v327_v43, %v230_v44 }
 0x105   :  { %v228_v47 = vpop.f32.mrf.mxu2 }
 0x106   :  { %v237_v48 = vadd.f32 %v236_v45, %v235_v46 }
 0x107   :  { %v179_v49 = vpop.f32.mrf.mxu1 }
 0x108   :  { %239 = vst.msk [vmem:[%s445_s8] sm:$0xf] %vm238_vm13, %v237_v48 }

// kernel: autoencoder_forward.14
= control target key start
LH: loop header
LB: loop body
LE: loop exit
PB: predicated region body
PF: predicated region fallthrough
CT: control target
= control target key end

     0   :  { %v329_v0 = vmov 0   ;;  %vm105_vm2 = vcmask 523264   ;;  %vm42_vm3 = vcmask 1041408   ;;  %vm43_vm4 = vsmask.f32 1280  ;;  %s414_s4 = inlined_call_operand.vmem [shape: f32[4,1], index: 4, kind: input, shape index: {}]   ;;  %s415_s3 = inlined_call_operand.vmem [shape: f32[4,1], index: 3, kind: input, shape index: {}]   ;;  %s416_s1 = inlined_call_operand.vmem [shape: bf16[3,64,2], index: 1, kind: input, shape index: {}]   ;;  %s417_s0 = inlined_call_operand.vmem [shape: f32[4,64], index: 0, kind: input, shape index: {}]   ;;  %s418_s2 = inlined_call_operand.vmem [shape: f32[1,2], index: 2, kind: input, shape index: {}]   ;;  %s419_s5 = inlined_call_operand.vmem [shape: f32[4,2], index: 5, kind: output, shape index: {}]  }
   0x1   :  { %323 = vset.pattern.permute.xlu0 %v329_v0  ;;  %v55_v1 = vld [vmem:[%s414_s4] sm:$0xf]  ;;  %v317_v2 = vld [vmem:[%s416_s1 + $0x38] sm:$0xff]  ;;  %v316_v6 = vld [vmem:[%s416_s1 + $0x30] sm:$0xff]  ;;  %vm35_vm8 = vcmask 1040384  }
   0x2   :  { %vm56_vm0 = vcmp.gt.f32.partialorder %v55_v1, 0.0  ;;  %v321_v3 = vld [vmem:[%s416_s1 + $0x58] sm:$0xff]  ;;  %v46_v5 = vld [vmem:[%s415_s3] sm:$0xf]  ;;  %113 = vmatpush.bf16.msra.mxu0 %v317_v2  ;;  %v320_v8 = vld [vmem:[%s416_s1 + $0x50] sm:$0xff] }
   0x3   :  { %v57_v4 = vsel %vm56_vm0, 1, %v329_v0  ;;  %v313_v7 = vld [vmem:[%s416_s1 + $0x18] sm:$0xff]  ;;  %202 = vmatpush.bf16.msra.mxu2 %v321_v3  ;;  %vm47_vm1 = vcmp.gt.f32.partialorder %v46_v5, 0.0  ;;  %v315_v9 = vld [vmem:[%s416_s1 + $0x28] sm:$0xff]  ;;  %v21_v12 = vld [vmem:[%s417_s0] sm:$0xf] }
   0x4   :  { %59 = vperm.xlu0 %323, %v57_v4   ;;  %153 = vmatpush.bf16.msra.mxu1 %v313_v7  ;;  %v319_v10 = vld [vmem:[%s416_s1 + $0x48] sm:$0xff]  ;;  %v48_v11 = vsel %vm47_vm1, 1, %v329_v0  ;;  %v22_v13 = vmax.f32 %v21_v12, 0.0  ;;  %v314_v14 = vld [vmem:[%s416_s1 + $0x20] sm:$0xff]  ;;  %v312_v15 = vld [vmem:[%s416_s1 + $0x10] sm:$0xff]  ;;  %vm236_vm0 = vcmask 11264  }
   0x5   :  { %v318_v16 = vld [vmem:[%s416_s1 + $0x40] sm:$0xff]  ;;  %v311_v18 = vld [vmem:[%s416_s1 + $0x8] sm:$0xff]  ;;  %vm44_vm5 = vmand %vm42_vm3, %vm43_vm4  ;;  %vm36_vm9 = vsmask.f32 256 }
   0x6   :  { %114 = vmatpush.bf16.msra.mxu0 %v316_v6  ;;  %v23_v17 = vpack.c.bf16 %v22_v13, %v22_v13  ;;  %v310_v19 = vld [vmem:[%s416_s1] sm:$0xff]  ;;  %vm37_vm10 = vmand %vm35_vm8, %vm36_vm9 }
   0x7   :  { %203 = vmatpush.bf16.msra.mxu2 %v320_v8  ;;  %v324_v39 = vld [vmem:[%s418_s2] ss:$0 sm:$0xff] }
   0x8   :  { %154 = vmatpush.bf16.msra.mxu1 %v312_v15  ;;  %v25_v20 = vunpack.c.l.b16 %v23_v17 }
   0xa   :  { %115 = vmatpush.bf16.msra.mxu0 %v315_v9  ;;  %v26_v21 = vpack.c.b16 %v25_v20, %v25_v20 }
   0xb   :  { %204 = vmatpush.bf16.msra.mxu2 %v319_v10 }
   0xc   :  { %50 = vperm.xlu0 %323, %v48_v11   ;;  %155 = vmatpush.bf16.msra.mxu1 %v311_v18  ;;  %v31_v22 = vshll.u32 %v26_v21, 16  ;;  %v28_v23 = vshrl.u32 %v26_v21, 16 }
   0xe   :  { %116 = vmatpush.bf16.msra.mxu0 %v314_v14  ;;  %v39_v24 = vrot.slane %v31_v22, 1  ;;  %v30_v28 = vrot.slane %v28_v23, 7 }
   0xf   :  { %205 = vmatpush.bf16.msra.mxu2 %v318_v16 }
  0x10   :  { %156 = vmatpush.bf16.msra.mxu1 %v310_v19  ;;  %v40_v25 = vor.u32 %v39_v24, %v28_v23  ;;  %v33_v30 = vor.u32 %v31_v22, %v30_v28 }
  0x11   :  { %266 = vmatmul.msk.bf16.vlgmr.msra.gmra.mxu0 %vm105_vm2, %v23_v17 }
  0x12   :  { %v45_v27 = vsel %vm44_vm5, %v40_v25, 0  ;;  %v38_v32 = vsel %vm37_vm10, 0, %v33_v30 }
  0x76   :  { %v60_v26 = vpop.permute.xlu0 %59 }
  0x77   :  { %vm61_vm6 = vcmp.eq.s32.totalorder %v60_v26, 1 }
  0x78   :  { %vm62_vm7 = vmpackc.low %vm61_vm6, %vm61_vm6 }
  0x79   :  { %v63_v29 = vsel %vm62_vm7, %v45_v27, 0 }
  0x7a   :  { %308 = vmatmul.msk.bf16.vlgmr.msra.gmra.mxu2 %vm105_vm2, %v63_v29 }
  0x7e   :  { %v51_v31 = vpop.permute.xlu0 %50 }
  0x7f   :  { %vm52_vm11 = vcmp.eq.s32.totalorder %v51_v31, 1 }
  0x80   :  { %vm53_vm12 = vmpackc.low %vm52_vm11, %vm52_vm11 }
  0x81   :  { %v54_v33 = vsel %vm53_vm12, %v38_v32, 0 }
  0x82   :  { %283 = vmatmul.msk.bf16.vlgmr.msra.gmra.mxu1 %vm105_vm2, %v54_v33 }
  0x8e   :  { %v118_v34 = vpop.f32.mrf.mxu0 }
  0x96   :  { %v120_v35 = vpop.f32.mrf.mxu0 }
  0xfd   :  { %v207_v36 = vpop.f32.mrf.mxu2 }
  0xff   :  { %v158_v37 = vpop.f32.mrf.mxu1 }
 0x100   :  { %v159_v38 = vadd.f32 %v158_v37, %v118_v34 }
 0x102   :  { %v211_v40 = vadd.f32 %v207_v36, %v159_v38 }
 0x104   :  { %v216_v41 = vadd.f32 %v324_v39, %v211_v40 }
 0x105   :  { %v209_v42 = vpop.f32.mrf.mxu2 }
 0x106   :  { %v309_v43 = vmul.f32 -1.442695, %v216_v41 }
 0x107   :  { %v160_v44 = vpop.f32.mrf.mxu1 }
 0x108   :  { %325 = vpow2.f32 %v309_v43 }
 0x10e   :  { %v326_v45 = vpop.eup %325 }
 0x10f   :  { %v220_v46 = vadd.f32 1.0, %v326_v45 }
 0x111   :  { %327 = vrcp.f32 %v220_v46  ;;  %v232_v50 = vand.u32 2147483648, %v220_v46  ;;  %v230_v52 = vand.u32 2147483647, %v220_v46  ;;  %vm226_vm14 = vweird.f32 %v220_v46 }
 0x113   :  { %v233_v54 = vor.u32 1.1754944e-38, %v232_v50  ;;  %vm231_vm1 = vcmp.eq.f32.partialorder %v230_v52, 8.507059e+37 }
 0x117   :  { %v328_v47 = vpop.eup %327 }
 0x118   :  { %v222_v48 = vmul.f32 %v328_v47, %v220_v46  ;;  %vm227_vm13 = vweird.f32 %v328_v47 }
 0x119   :  { %vm228_vm15 = vmor %vm226_vm14, %vm227_vm13 }
 0x11a   :  { %v223_v49 = vsub.f32 1.0, %v222_v48 }
 0x11c   :  { %v224_v51 = vmul.f32 %v328_v47, %v223_v49 }
 0x11e   :  { %v225_v53 = vadd.f32 %v328_v47, %v224_v51 }
 0x120   :  { %v229_v55 = vsel %vm228_vm15, %v328_v47, %v225_v53 }
 0x121   :  { %v234_v56 = vsel %vm231_vm1, %v233_v54, %v229_v55 }
 0x122   :  { %237 = vst.msk [vmem:[%s419_s5] sm:$0xf] %vm236_vm0, %v234_v56 }

// kernel: autoencoder_forward.15
= control target key start
LH: loop header
LB: loop body
LE: loop exit
PB: predicated region body
PF: predicated region fallthrough
CT: control target
= control target key end

     0   :  { %v147_v0 = vmov 0   ;;  %vm34_vm2 = vcmask 1040384   ;;  %vm66_vm3 = vcmask 15360   ;;  %vm41_vm4 = vcmask 1041408   ;;  %s209_s4 = inlined_call_operand.vmem [shape: f32[4,1], index: 4, kind: input, shape index: {}]   ;;  %s210_s3 = inlined_call_operand.vmem [shape: f32[4,1], index: 3, kind: input, shape index: {}]   ;;  %s211_s0 = inlined_call_operand.vmem [shape: f32[4,2], index: 0, kind: input, shape index: {}]   ;;  %s212_s1 = inlined_call_operand.vmem [shape: bf16[3,2,64], index: 1, kind: input, shape index: {}]   ;;  %s213_s2 = inlined_call_operand.vmem [shape: f32[1,64], index: 2, kind: input, shape index: {}]   ;;  %s214_s5 = inlined_call_operand.vmem [shape: f32[4,64], index: 5, kind: output, shape index: {}]  }
   0x1   :  { %145 = vset.pattern.permute.xlu0 %v147_v0  ;;  %v54_v1 = vld [vmem:[%s209_s4] sm:$0xf]  ;;  %vm42_vm5 = vsmask.f32 1280  ;;  %vm35_vm9 = vsmask.f32 256 }
   0x2   :  { %vm55_vm0 = vcmp.gt.f32.partialorder %v54_v1, 0.0  ;;  %v45_v3 = vld [vmem:[%s210_s3] sm:$0xf]  ;;  %vm43_vm6 = vmand %vm41_vm4, %vm42_vm5  ;;  %vm133_vm13 = vcmask 519168  }
   0x3   :  { %v56_v2 = vsel %vm55_vm0, 1, %v147_v0  ;;  %vm46_vm1 = vcmp.gt.f32.partialorder %v45_v3, 0.0  ;;  %v21_v5 = vld [vmem:[%s211_s0] sm:$0xf]  ;;  %vm36_vm10 = vmand %vm34_vm2, %vm35_vm9 }
   0x4   :  { %58 = vperm.xlu0 %145, %v56_v2   ;;  %v47_v4 = vsel %vm46_vm1, 1, %v147_v0  ;;  %v139_v6 = vld [vmem:[%s212_s1 + $0x1] sm:$0x1]  ;;  %v142_v7 = vld [vmem:[%s212_s1 + $0x2] sm:$0x1]  ;;  %v22_v10 = vpack.c.bf16 %v21_v5, %v21_v5 }
   0x5   :  { %v72_v8 = vsel %vm34_vm2, %v139_v6, 0  ;;  %v112_v9 = vsel %vm34_vm2, %v142_v7, 0  ;;  %v63_v11 = vld [vmem:[%s212_s1] sm:$0x1] }
   0x6   :  { %81 = vmatpush.bf16.msra.mxu0 %v72_v8  ;;  %121 = vmatpush.bf16.msra.mxu2 %v112_v9  ;;  %v91_v12 = vsel %vm34_vm2, %v63_v11, 0  ;;  %v24_v13 = vunpack.c.l.b16 %v22_v10  ;;  %v146_v32 = vld [vmem:[%s213_s2] ss:$0 sm:$0xff] }
   0x7   :  { %100 = vmatpush.bf16.msra.mxu1 %v91_v12 }
   0x8   :  { %v25_v14 = vpack.c.b16 %v24_v13, %v24_v13 }
   0x9   :  { %140 = vmatmul.msk.bf16.vlgmr.msra.gmra.mxu0 %vm66_vm3, %v22_v10 }
   0xa   :  { %v30_v15 = vshll.u32 %v25_v14, 16  ;;  %v27_v16 = vshrl.u32 %v25_v14, 16 }
   0xc   :  { %49 = vperm.xlu0 %145, %v47_v4   ;;  %v38_v17 = vrot.slane %v30_v15, 1  ;;  %v29_v21 = vrot.slane %v27_v16, 7 }
   0xe   :  { %v39_v18 = vor.u32 %v38_v17, %v27_v16  ;;  %v32_v23 = vor.u32 %v30_v15, %v29_v21 }
  0x10   :  { %v44_v20 = vsel %vm43_vm6, %v39_v18, 0  ;;  %v37_v25 = vsel %vm36_vm10, 0, %v32_v23 }
  0x76   :  { %v59_v19 = vpop.permute.xlu0 %58 }
  0x77   :  { %vm60_vm7 = vcmp.eq.s32.totalorder %v59_v19, 1 }
  0x78   :  { %vm61_vm8 = vmpackc.low %vm60_vm7, %vm60_vm7 }
  0x79   :  { %v62_v22 = vsel %vm61_vm8, %v44_v20, 0 }
  0x7a   :  { %143 = vmatmul.msk.bf16.vlgmr.msra.gmra.mxu2 %vm66_vm3, %v62_v22 }
  0x7e   :  { %v50_v24 = vpop.permute.xlu0 %49 }
  0x7f   :  { %vm51_vm11 = vcmp.eq.s32.totalorder %v50_v24, 1 }
  0x80   :  { %vm52_vm12 = vmpackc.low %vm51_vm11, %vm51_vm11 }
  0x81   :  { %v53_v26 = vsel %vm52_vm12, %v37_v25, 0 }
  0x82   :  { %141 = vmatmul.msk.bf16.vlgmr.msra.gmra.mxu1 %vm66_vm3, %v53_v26 }
  0x86   :  { %v83_v27 = vpop.f32.mrf.mxu0 }
  0x8e   :  { %v85_v28 = vpop.f32.mrf.mxu0 }
  0xfd   :  { %v123_v29 = vpop.f32.mrf.mxu2 }
  0xff   :  { %v102_v30 = vpop.f32.mrf.mxu1 }
 0x100   :  { %v103_v31 = vadd.f32 %v102_v30, %v83_v27 }
 0x102   :  { %v127_v33 = vadd.f32 %v123_v29, %v103_v31 }
 0x104   :  { %v132_v34 = vadd.f32 %v146_v32, %v127_v33 }
 0x105   :  { %v125_v35 = vpop.f32.mrf.mxu2 }
 0x106   :  { %134 = vst.msk [vmem:[%s214_s5] sm:$0xf] %vm133_vm13, %v132_v34 }
 0x107   :  { %v104_v36 = vpop.f32.mrf.mxu1 }

// kernel: autoencoder_forward.16
= control target key start
LH: loop header
LB: loop body
LE: loop exit
PB: predicated region body
PF: predicated region fallthrough
CT: control target
= control target key end

     0   :  { %v415_v2 = vmov 0   ;;  %vm51_vm1 = vcmask 1041408   ;;  %vm87_vm3 = vcmask 1043456   ;;  %vm47_vm4 = vcmask 31744   ;;  %s556_s0 = inlined_call_operand.vmem [shape: f32[4,64], index: 0, kind: input, shape index: {}]   ;;  %s557_s5 = inlined_call_operand.vmem [shape: f32[1,64], index: 5, kind: input, shape index: {}]   ;;  %s558_s6 = inlined_call_operand.vmem [shape: f32[1,64], index: 6, kind: input, shape index: {}]   ;;  %s559_s3 = inlined_call_operand.vmem [shape: f32[8,1], index: 3, kind: input, shape index: {}]   ;;  %s560_s1 = inlined_call_operand.vmem [shape: bf16[3,64,128], index: 1, kind: input, shape index: {}]   ;;  %s561_s4 = inlined_call_operand.vmem [shape: f32[8,1], index: 4, kind: input, shape index: {}]   ;;  %s562_s7 = inlined_call_operand.vmem [shape: bf16[8,4], index: 7, kind: input, shape index: {}]   ;;  %s563_s8 = inlined_call_operand.vmem [shape: f32[64,128], index: 8, kind: input, shape index: {}]   ;;  %s564_s2 = inlined_call_operand.vmem [shape: f32[1,128], index: 2, kind: input, shape index: {}]   ;;  %s565_s9 = inlined_call_operand.vmem [shape: f32[8,128], index: 9, kind: output, shape index: {}]  }
   0x1   :  { %v33_v0 = vld [vmem:[%s556_s0] sm:$0xf]  ;;  %411 = vset.pattern.permute.xlu0 %v415_v2  ;;  %v405_v6 = vld [vmem:[%s560_s1 + $0x38] sm:$0xff]  ;;  %v404_v10 = vld [vmem:[%s560_s1 + $0x30] sm:$0xff]  ;;  %vm150_vm5 = vcmask 523264   ;;  %vm80_vm7 = vcmask 1040384  }
   0x2   :  { %v412_v1 = vld [vmem:[%s557_s5] ss:$0 sm:$0xff]  ;;  %158 = vmatpush.bf16.msra.mxu1 %v405_v6  ;;  %v403_v17 = vld [vmem:[%s560_s1 + $0x28] sm:$0xff]  ;;  %v401_v19 = vld [vmem:[%s560_s1 + $0x18] sm:$0xff]  ;;  %vm88_vm6 = vsmask.f32 3328 }
   0x3   :  { %v413_v3 = vld [vmem:[%s558_s6] ss:$0 sm:$0xff]  ;;  %v38_v4 = vmul.f32 %v412_v1, %v33_v0  ;;  %v409_v20 = vld [vmem:[%s560_s1 + $0x58] sm:$0xff]  ;;  %198 = vmatpush.bf16.msra.mxu2 %v401_v19  ;;  %v400_v21 = vld [vmem:[%s560_s1 + $0x10] sm:$0xff]  ;;  %vm81_vm8 = vsmask.f32 256 }
   0x4   :  { %v91_v5 = vld [vmem:[%s559_s3] sm:$0xff]  ;;  %247 = vmatpush.bf16.msra.mxu3 %v409_v20  ;;  %v408_v22 = vld [vmem:[%s560_s1 + $0x50] sm:$0xff]  ;;  %v399_v23 = vld [vmem:[%s560_s1 + $0x8] sm:$0xff] }
   0x5   :  { %vm92_vm0 = vcmp.gt.f32.partialorder %v91_v5, 0.0  ;;  %v43_v7 = vadd.f32 %v413_v3, %v38_v4  ;;  %v100_v9 = vld [vmem:[%s561_s4] sm:$0xff]  ;;  %v407_v24 = vld [vmem:[%s560_s1 + $0x48] sm:$0xff]  ;;  %v297_v27 = vld [vmem:[%s563_s8 + $0x38] sm:$0xff] }
   0x6   :  { %v93_v8 = vsel %vm92_vm0, 1, %v415_v2  ;;  %vm101_vm2 = vcmp.gt.f32.partialorder %v100_v9, 0.0  ;;  %159 = vmatpush.bf16.msra.mxu1 %v404_v10  ;;  %v46_v15 = vld [vmem:[%s562_s7] sm:$0xf]  ;;  %v296_v28 = vld [vmem:[%s563_s8 + $0x30] sm:$0xff]  ;;  %v295_v29 = vld [vmem:[%s563_s8 + $0x28] sm:$0xff] }
   0x7   :  { %95 = vperm.xlu0 %411, %v93_v8   ;;  %v44_v11 = vmax.f32 %v43_v7, 0.0  ;;  %v102_v14 = vsel %vm101_vm2, 1, %v415_v2  ;;  %v262_v16 = vunpack.c.l.bf16 %v46_v15  ;;  %v402_v18 = vld [vmem:[%s560_s1 + $0x20] sm:$0xff]  ;;  %199 = vmatpush.bf16.msra.mxu2 %v400_v21  ;;  %v293_v31 = vld [vmem:[%s563_s8 + $0x18] sm:$0xff]  ;;  %v292_v32 = vld [vmem:[%s563_s8 + $0x10] sm:$0xff] }
   0x8   :  { %248 = vmatpush.bf16.msra.mxu3 %v408_v22  ;;  %v398_v25 = vld [vmem:[%s560_s1] sm:$0xff]  ;;  %v291_v33 = vld [vmem:[%s563_s8 + $0x8] sm:$0xff]  ;;  %vm89_vm9 = vmand %vm87_vm3, %vm88_vm6 }
   0x9   :  { %v45_v12 = vpack.c.bf16 %v44_v11, %v44_v11  ;;  %v406_v26 = vld [vmem:[%s560_s1 + $0x40] sm:$0xff]  ;;  %vm82_vm12 = vmand %vm80_vm7, %vm81_vm8 }
   0xa   :  { %160 = vmatpush.bf16.msra.mxu1 %v403_v17  ;;  %v294_v30 = vld [vmem:[%s563_s8 + $0x20] sm:$0xff] }
   0xb   :  { %v53_v13 = vsel %vm51_vm1, %v45_v12, 0  ;;  %200 = vmatpush.bf16.msra.mxu2 %v399_v23  ;;  %v290_v34 = vld [vmem:[%s563_s8] sm:$0xff] }
   0xc   :  { %62 = vmatpush.bf16.msra.mxu0 %v53_v13  ;;  %249 = vmatpush.bf16.msra.mxu3 %v407_v24  ;;  %v414_v58 = vld [vmem:[%s564_s2] ss:$0 sm:$0xff] }
   0xe   :  { %161 = vmatpush.bf16.msra.mxu1 %v402_v18 }
   0xf   :  { %104 = vperm.xlu0 %411, %v102_v14   ;;  %327 = vmatmul.msk.bf16.vlgmr.msra.gmra.mxu0 %vm47_vm4, %v46_v15 }
  0x10   :  { %395 = vmatpush.msk.msrb.mxu0 %vm87_vm3, %v33_v0  ;;  %201 = vmatpush.bf16.msra.mxu2 %v398_v25 }
  0x11   :  { %250 = vmatpush.bf16.msra.mxu3 %v406_v26 }
  0x12   :  { %309 = vmatpush.msrb.mxu1 %v297_v27 }
  0x14   :  { %310 = vmatpush.msrb.mxu1 %v296_v28 }
  0x16   :  { %311 = vmatpush.msrb.mxu1 %v295_v29 }
  0x18   :  { %312 = vmatpush.msrb.mxu1 %v294_v30 }
  0x1a   :  { %313 = vmatpush.msrb.mxu1 %v293_v31 }
  0x1c   :  { %314 = vmatpush.msrb.mxu1 %v292_v32 }
  0x1e   :  { %315 = vmatpush.msrb.mxu1 %v291_v33 }
  0x1f   :  { %396 = vmatmul.msk.f32.vlgmr.msrb.gmra.mxu0 %vm47_vm4, %v262_v16 }
  0x20   :  { %316 = vmatpush.msrb.mxu1 %v290_v34 }
  0x79   :  { %v96_v35 = vpop.permute.xlu0 %95 }
  0x7a   :  { %vm97_vm10 = vcmp.eq.s32.totalorder %v96_v35, 1 }
  0x7b   :  { %vm98_vm13 = vmpackc.low %vm97_vm10, %vm97_vm10 }
  0x81   :  { %v105_v42 = vpop.permute.xlu0 %104 }
  0x82   :  { %vm106_vm11 = vcmp.eq.s32.totalorder %v105_v42, 1 }
  0x83   :  { %vm107_vm14 = vmpackc.low %vm106_vm11, %vm106_vm11 }
  0x8c   :  { %v64_v36 = vpop.f32.mrf.mxu0 }
  0x8d   :  { %v68_v37 = vpack.c.bf16 %v64_v36, %v64_v36 }
  0x8f   :  { %v70_v38 = vunpack.c.l.b16 %v68_v37  ;;  %352 = vmatmul.msk.bf16.vlgmr.msra.gmra.mxu1 %vm150_vm5, %v68_v37 }
  0x91   :  { %v71_v39 = vpack.c.b16 %v70_v38, %v70_v38 }
  0x93   :  { %v73_v40 = vshrl.u32 %v71_v39, 16  ;;  %v76_v41 = vshll.u32 %v71_v39, 16 }
  0x94   :  { %v66_v43 = vpop.f32.mrf.mxu0 }
  0x95   :  { %v84_v44 = vrot.slane %v76_v41, 1  ;;  %v75_v45 = vrot.slane %v73_v40, 7 }
  0x97   :  { %v85_v46 = vor.u32 %v84_v44, %v73_v40  ;;  %v78_v47 = vor.u32 %v76_v41, %v75_v45 }
  0x99   :  { %v90_v48 = vsel %vm89_vm9, %v85_v46, 0  ;;  %v83_v49 = vsel %vm82_vm12, 0, %v78_v47 }
  0x9a   :  { %v108_v50 = vsel %vm107_vm14, %v90_v48, 0  ;;  %v99_v51 = vsel %vm98_vm13, %v83_v49, 0 }
  0x9b   :  { %369 = vmatmul.msk.bf16.vlgmr.msra.gmra.mxu2 %vm150_vm5, %v99_v51  ;;  %394 = vmatmul.msk.bf16.vlgmr.msra.gmra.mxu3 %vm150_vm5, %v108_v50 }
  0x9c   :  { %v287_v52 = vpop.f32.mrf.mxu0 }
  0x9f   :  { %397 = vmatmul.msk.f32.vlgmr.msrb.gmra.mxu1 %vm150_vm5, %v287_v52 }
 0x10c   :  { %v163_v53 = vpop.f32.mrf.mxu1 }
 0x114   :  { %v165_v54 = vpop.f32.mrf.mxu1 }
 0x11c   :  { %v318_v60 = vpop.f32.mrf.mxu1 }
 0x11e   :  { %v203_v55 = vpop.f32.mrf.mxu2  ;;  %v252_v56 = vpop.f32.mrf.mxu3 }
 0x11f   :  { %v204_v57 = vadd.f32 %v203_v55, %v163_v53 }
 0x121   :  { %v256_v59 = vadd.f32 %v252_v56, %v204_v57 }
 0x123   :  { %v261_v61 = vadd.f32 %v414_v58, %v256_v59 }
 0x125   :  { %v321_v62 = vadd.f32 %v318_v60, %v261_v61 }
 0x126   :  { %v205_v63 = vpop.f32.mrf.mxu2  ;;  %v254_v0 = vpop.f32.mrf.mxu3 }
 0x127   :  { %322 = vst [vmem:[%s565_s9] sm:$0xff] %v321_v62 }

// kernel: autoencoder_forward.17
= control target key start
LH: loop header
LB: loop body
LE: loop exit
PB: predicated region body
PF: predicated region fallthrough
CT: control target
= control target key end

     0   :  { %v960_v2 = vmov 0   ;;  %vm59_vm2 = vcmask 1043456   ;;  %vm55_vm5 = vcmask 64512   ;;  %vm92_vm14 = vcmask 1040384   ;;  %s1457_s0 = inlined_call_operand.vmem [shape: f32[8,128], index: 0, kind: input, shape index: {}]   ;;  %s1458_s5 = inlined_call_operand.vmem [shape: f32[1,128], index: 5, kind: input, shape index: {}]   ;;  %s1459_s6 = inlined_call_operand.vmem [shape: f32[1,128], index: 6, kind: input, shape index: {}]   ;;  %s1460_s3 = inlined_call_operand.vmem [shape: f32[16,1], index: 3, kind: input, shape index: {}]   ;;  %s1461_s4 = inlined_call_operand.vmem [shape: f32[16,1], index: 4, kind: input, shape index: {}]   ;;  %s1462_s1 = inlined_call_operand.vmem [shape: bf16[3,128,256], index: 1, kind: input, shape index: {}]   ;;  %s1463_s7 = inlined_call_operand.vmem [shape: bf16[16,8], index: 7, kind: input, shape index: {}]   ;;  %s1464_s8 = inlined_call_operand.vmem [shape: f32[128,256], index: 8, kind: input, shape index: {}]   ;;  %s1465_s2 = inlined_call_operand.vmem [shape: f32[1,256], index: 2, kind: input, shape index: {}]   ;;  %s1466_s9 = inlined_call_operand.vmem [shape: f32[16,256], index: 9, kind: output, shape index: {}]  }
   0x1   :  { %v1014_v0 = vld [vmem:[%s1457_s0] sm:$0xff]  ;;  %956 = vset.pattern.permute.xlu0 %v960_v2  ;;  %957 = vset.pattern.permute.xlu1 %v960_v2  ;;  %v754_v7 = vld [vmem:[%s1462_s1 + $0xf0] sm:$0xf]  ;;  %v104_v11 = vld [vmem:[%s1460_s3 + $0x8] sm:$0xff]  ;;  %vm93_vm15 = vsmask.f32 256 }
   0x2   :  { %v958_v1 = vld [vmem:[%s1458_s5] ss:$0 sm:$0xff]  ;;  %v133_v12 = vld [vmem:[%s1461_s4 + $0x8] sm:$0xff]  ;;  %v938_v13 = vld [vmem:[%s1462_s1 + $0xf4] sm:$0xf0]  ;;  %vm106_vm3 = vcmp.gt.f32.partialorder %v104_v11, 0.0 }
   0x3   :  { %v959_v3 = vld [vmem:[%s1459_s6] ss:$0 sm:$0xff]  ;;  %v40_v4 = vmul.f32 %v958_v1, %v1014_v0  ;;  %v755_v14 = vor.u32 %v938_v13, %v754_v7  ;;  %v937_v15 = vld [vmem:[%s1462_s1 + $0xf4] sm:$0xf]  ;;  %v756_v16 = vld [vmem:[%s1462_s1 + $0xf8] sm:$0xf0] }
   0x4   :  { %v103_v5 = vld [vmem:[%s1460_s3] sm:$0xff]  ;;  %v759_v18 = vor.u32 %v937_v15, %v756_v16  ;;  %v936_v20 = vld [vmem:[%s1462_s1 + $0xe4] sm:$0xf0]  ;;  %vm135_vm4 = vcmp.gt.f32.partialorder %v133_v12, 0.0  ;;  %v748_v23 = vld [vmem:[%s1462_s1 + $0xe8] sm:$0xf0] }
   0x5   :  { %v132_v6 = vld [vmem:[%s1461_s4] sm:$0xff]  ;;  %vm105_vm0 = vcmp.gt.f32.partialorder %v103_v5, 0.0  ;;  %v45_v8 = vadd.f32 %v959_v3, %v40_v4  ;;  %275 = vmatpush.bf16.msra.mxu1 %v755_v14  ;;  %v738_v26 = vld [vmem:[%s1462_s1 + $0xd0] sm:$0xf]  ;;  %v934_v27 = vld [vmem:[%s1462_s1 + $0xd4] sm:$0xf0] }
   0x6   :  { %vm134_vm1 = vcmp.gt.f32.partialorder %v132_v6, 0.0  ;;  %v107_v9 = vsel %vm105_vm0, 1, %v960_v2  ;;  %v746_v19 = vld [vmem:[%s1462_s1 + $0xe0] sm:$0xf]  ;;  %v935_v22 = vld [vmem:[%s1462_s1 + $0xe4] sm:$0xf]  ;;  %289 = vmatpush.bf16.msra.mxu2 %v759_v18  ;;  %v739_v34 = vor.u32 %v934_v27, %v738_v26  ;;  %vm94_vm0 = vmand %vm92_vm14, %vm93_vm15 }
   0x7   :  { %v136_v10 = vsel %vm134_vm1, 1, %v960_v2  ;;  %110 = vperm.xlu0 %956, %v107_v9   ;;  %v46_v17 = vmax.f32 %v45_v8, 0.0  ;;  %v747_v21 = vor.u32 %v936_v20, %v746_v19  ;;  %v751_v25 = vor.u32 %v935_v22, %v748_v23  ;;  %v933_v28 = vld [vmem:[%s1462_s1 + $0xd4] sm:$0xf]  ;;  %v740_v29 = vld [vmem:[%s1462_s1 + $0xd8] sm:$0xf0] }
   0x8   :  { %139 = vperm.xlu1 %957, %v136_v10   ;;  %v906_v31 = vld [vmem:[%s1463_s7] sm:$0xff]  ;;  %v108_v32 = vsel %vm106_vm3, 1, %v960_v2  ;;  %v137_v33 = vsel %vm135_vm4, 1, %v960_v2  ;;  %v743_v35 = vor.u32 %v933_v28, %v740_v29  ;;  %v932_v37 = vld [vmem:[%s1462_s1 + $0xc4] sm:$0xf0]  ;;  %vm99_vm4 = vcmask 1047552  }
   0x9   :  { %v47_v24 = vpack.c.bf16 %v46_v17, %v46_v17  ;;  %276 = vmatpush.bf16.msra.mxu1 %v747_v21  ;;  %v730_v36 = vld [vmem:[%s1462_s1 + $0xc0] sm:$0xf]  ;;  %v931_v38 = vld [vmem:[%s1462_s1 + $0xc4] sm:$0xf]  ;;  %v732_v39 = vld [vmem:[%s1462_s1 + $0xc8] sm:$0xf0] }
   0xa   :  { %290 = vmatpush.bf16.msra.mxu2 %v751_v25  ;;  %v818_v40 = vld [vmem:[%s1462_s1 + $0x70] sm:$0xf]  ;;  %v922_v41 = vld [vmem:[%s1462_s1 + $0x74] sm:$0xf0]  ;;  %v921_v43 = vld [vmem:[%s1462_s1 + $0x74] sm:$0xf]  ;;  %v731_v45 = vor.u32 %v932_v37, %v730_v36  ;;  %v735_v47 = vor.u32 %v931_v38, %v732_v39 }
   0xb   :  { %v61_v30 = vsel %vm59_vm2, %v47_v24, 0  ;;  %v819_v42 = vor.u32 %v922_v41, %v818_v40  ;;  %v820_v44 = vld [vmem:[%s1462_s1 + $0x78] sm:$0xf0]  ;;  %v722_v48 = vld [vmem:[%s1462_s1 + $0xb0] sm:$0xf] }
   0xc   :  { %70 = vmatpush.bf16.msra.mxu0 %v61_v30  ;;  %v823_v46 = vor.u32 %v921_v43, %v820_v44  ;;  %v930_v49 = vld [vmem:[%s1462_s1 + $0xb4] sm:$0xf0]  ;;  %v929_v50 = vld [vmem:[%s1462_s1 + $0xb4] sm:$0xf]  ;;  %v724_v51 = vld [vmem:[%s1462_s1 + $0xb8] sm:$0xf0] }
   0xd   :  { %277 = vmatpush.bf16.msra.mxu1 %v739_v34  ;;  %383 = vmatpush.bf16.msra.mxu3 %v819_v42  ;;  %v723_v52 = vor.u32 %v930_v49, %v722_v48  ;;  %v727_v53 = vor.u32 %v929_v50, %v724_v51  ;;  %v714_v54 = vld [vmem:[%s1462_s1 + $0xa0] sm:$0xf]  ;;  %v928_v55 = vld [vmem:[%s1462_s1 + $0xa4] sm:$0xf0]  ;;  %v927_v56 = vld [vmem:[%s1462_s1 + $0xa4] sm:$0xf] }
   0xe   :  { %291 = vmatpush.bf16.msra.mxu2 %v743_v35  ;;  %v716_v57 = vld [vmem:[%s1462_s1 + $0xa8] sm:$0xf0]  ;;  %v715_v58 = vor.u32 %v928_v55, %v714_v54  ;;  %v706_v60 = vld [vmem:[%s1462_s1 + $0x90] sm:$0xf]  ;;  %v926_v61 = vld [vmem:[%s1462_s1 + $0x94] sm:$0xf0] }
   0xf   :  { %113 = vperm.xlu0 %956, %v108_v32   ;;  %675 = vmatmul.msk.bf16.vlgmr.msra.gmra.mxu0 %vm55_vm5, %v906_v31  ;;  %v719_v59 = vor.u32 %v927_v56, %v716_v57  ;;  %v925_v62 = vld [vmem:[%s1462_s1 + $0x94] sm:$0xf]  ;;  %v708_v63 = vld [vmem:[%s1462_s1 + $0x98] sm:$0xf0]  ;;  %v707_v1 = vor.u32 %v926_v61, %v706_v60  ;;  %v810_v4 = vld [vmem:[%s1462_s1 + $0x60] sm:$0xf] }
  0x10   :  { %142 = vperm.xlu1 %957, %v137_v33   ;;  %397 = vmatpush.bf16.msrb.mxu0 %v823_v46  ;;  %v711_v3 = vor.u32 %v925_v62, %v708_v63  ;;  %v920_v5 = vld [vmem:[%s1462_s1 + $0x64] sm:$0xf0]  ;;  %v919_v6 = vld [vmem:[%s1462_s1 + $0x64] sm:$0xf]  ;;  %v812_v8 = vld [vmem:[%s1462_s1 + $0x68] sm:$0xf0] }
  0x11   :  { %278 = vmatpush.bf16.msra.mxu1 %v731_v45  ;;  %v811_v7 = vor.u32 %v920_v5, %v810_v4  ;;  %v698_v9 = vld [vmem:[%s1462_s1 + $0x80] sm:$0xf]  ;;  %v924_v10 = vld [vmem:[%s1462_s1 + $0x84] sm:$0xf0]  ;;  %v815_v11 = vor.u32 %v919_v6, %v812_v8  ;;  %v923_v13 = vld [vmem:[%s1462_s1 + $0x84] sm:$0xf] }
  0x12   :  { %292 = vmatpush.bf16.msra.mxu2 %v735_v47  ;;  %v699_v12 = vor.u32 %v924_v10, %v698_v9  ;;  %v700_v14 = vld [vmem:[%s1462_s1 + $0x88] sm:$0xf0]  ;;  %v802_v16 = vld [vmem:[%s1462_s1 + $0x50] sm:$0xf]  ;;  %v918_v17 = vld [vmem:[%s1462_s1 + $0x54] sm:$0xf0] }
  0x13   :  { %384 = vmatpush.bf16.msra.mxu3 %v811_v7  ;;  %v703_v15 = vor.u32 %v923_v13, %v700_v14  ;;  %v917_v18 = vld [vmem:[%s1462_s1 + $0x54] sm:$0xf]  ;;  %v803_v19 = vor.u32 %v918_v17, %v802_v16  ;;  %v804_v20 = vld [vmem:[%s1462_s1 + $0x58] sm:$0xf0]  ;;  %v898_v21 = vld [vmem:[%s1462_s1 + $0x170] sm:$0xf] }
  0x14   :  { %398 = vmatpush.bf16.msrb.mxu0 %v815_v11  ;;  %v954_v22 = vld [vmem:[%s1462_s1 + $0x174] sm:$0xf0]  ;;  %v807_v23 = vor.u32 %v917_v18, %v804_v20  ;;  %v953_v25 = vld [vmem:[%s1462_s1 + $0x174] sm:$0xf]  ;;  %v900_v26 = vld [vmem:[%s1462_s1 + $0x178] sm:$0xf0] }
  0x15   :  { %279 = vmatpush.bf16.msra.mxu1 %v723_v52  ;;  %v899_v24 = vor.u32 %v954_v22, %v898_v21  ;;  %v903_v27 = vor.u32 %v953_v25, %v900_v26  ;;  %v794_v28 = vld [vmem:[%s1462_s1 + $0x40] sm:$0xf]  ;;  %v916_v29 = vld [vmem:[%s1462_s1 + $0x44] sm:$0xf0]  ;;  %v915_v30 = vld [vmem:[%s1462_s1 + $0x44] sm:$0xf] }
  0x16   :  { %293 = vmatpush.bf16.msra.mxu2 %v727_v53  ;;  %v795_v31 = vor.u32 %v916_v29, %v794_v28  ;;  %v796_v32 = vld [vmem:[%s1462_s1 + $0x48] sm:$0xf0]  ;;  %v890_v33 = vld [vmem:[%s1462_s1 + $0x160] sm:$0xf]  ;;  %v952_v34 = vld [vmem:[%s1462_s1 + $0x164] sm:$0xf0] }
  0x17   :  { %385 = vmatpush.bf16.msra.mxu3 %v803_v19  ;;  %v799_v35 = vor.u32 %v915_v30, %v796_v32  ;;  %v891_v36 = vor.u32 %v952_v34, %v890_v33  ;;  %v951_v37 = vld [vmem:[%s1462_s1 + $0x164] sm:$0xf]  ;;  %v892_v38 = vld [vmem:[%s1462_s1 + $0x168] sm:$0xf0]  ;;  %v786_v40 = vld [vmem:[%s1462_s1 + $0x30] sm:$0xf] }
  0x18   :  { %399 = vmatpush.bf16.msrb.mxu0 %v807_v23  ;;  %v895_v39 = vor.u32 %v951_v37, %v892_v38  ;;  %v914_v41 = vld [vmem:[%s1462_s1 + $0x34] sm:$0xf0]  ;;  %v913_v42 = vld [vmem:[%s1462_s1 + $0x34] sm:$0xf]  ;;  %v788_v44 = vld [vmem:[%s1462_s1 + $0x38] sm:$0xf0] }
  0x19   :  { %280 = vmatpush.bf16.msra.mxu1 %v715_v58  ;;  %v787_v43 = vor.u32 %v914_v41, %v786_v40  ;;  %v882_v45 = vld [vmem:[%s1462_s1 + $0x150] sm:$0xf]  ;;  %v950_v46 = vld [vmem:[%s1462_s1 + $0x154] sm:$0xf0]  ;;  %v791_v47 = vor.u32 %v913_v42, %v788_v44  ;;  %v949_v49 = vld [vmem:[%s1462_s1 + $0x154] sm:$0xf] }
  0x1a   :  { %294 = vmatpush.bf16.msra.mxu2 %v719_v59  ;;  %v883_v48 = vor.u32 %v950_v46, %v882_v45  ;;  %v884_v50 = vld [vmem:[%s1462_s1 + $0x158] sm:$0xf0]  ;;  %v778_v52 = vld [vmem:[%s1462_s1 + $0x20] sm:$0xf]  ;;  %v912_v53 = vld [vmem:[%s1462_s1 + $0x24] sm:$0xf0] }
  0x1b   :  { %386 = vmatpush.bf16.msra.mxu3 %v795_v31  ;;  %v887_v51 = vor.u32 %v949_v49, %v884_v50  ;;  %v911_v54 = vld [vmem:[%s1462_s1 + $0x24] sm:$0xf]  ;;  %v779_v55 = vor.u32 %v912_v53, %v778_v52  ;;  %v780_v56 = vld [vmem:[%s1462_s1 + $0x28] sm:$0xf0]  ;;  %v874_v57 = vld [vmem:[%s1462_s1 + $0x140] sm:$0xf] }
  0x1c   :  { %400 = vmatpush.bf16.msrb.mxu0 %v799_v35  ;;  %v948_v58 = vld [vmem:[%s1462_s1 + $0x144] sm:$0xf0]  ;;  %v783_v59 = vor.u32 %v911_v54, %v780_v56  ;;  %v947_v61 = vld [vmem:[%s1462_s1 + $0x144] sm:$0xf]  ;;  %v876_v62 = vld [vmem:[%s1462_s1 + $0x148] sm:$0xf0]  ;;  %v126_v56 = vunpack.c.l.b16 %v960_v2 }
  0x1d   :  { %281 = vmatpush.bf16.msra.mxu1 %v707_v1  ;;  %v875_v60 = vor.u32 %v948_v58, %v874_v57  ;;  %v879_v63 = vor.u32 %v947_v61, %v876_v62  ;;  %v770_v1 = vld [vmem:[%s1462_s1 + $0x10] sm:$0xf]  ;;  %v909_v5 = vld [vmem:[%s1462_s1 + $0x14] sm:$0xf]  ;;  %v772_v6 = vld [vmem:[%s1462_s1 + $0x18] sm:$0xf0]  ;;  %v127_v57 = vunpack.c.h.b16 %v960_v2 }
  0x1e   :  { %295 = vmatpush.bf16.msra.mxu2 %v711_v3  ;;  %v910_v3 = vld [vmem:[%s1462_s1 + $0x14] sm:$0xf0]  ;;  %v775_v7 = vor.u32 %v909_v5, %v772_v6  ;;  %v866_v8 = vld [vmem:[%s1462_s1 + $0x130] sm:$0xf]  ;;  %v945_v11 = vld [vmem:[%s1462_s1 + $0x134] sm:$0xf] }
  0x1f   :  { %387 = vmatpush.bf16.msra.mxu3 %v787_v43  ;;  %v771_v4 = vor.u32 %v910_v3, %v770_v1  ;;  %v946_v9 = vld [vmem:[%s1462_s1 + $0x134] sm:$0xf0]  ;;  %v762_v14 = vld [vmem:[%s1462_s1] sm:$0xf]  ;;  %v907_v16 = vld [vmem:[%s1462_s1 + $0x4] sm:$0xf] }
  0x20   :  { %401 = vmatpush.bf16.msrb.mxu0 %v791_v47  ;;  %v867_v10 = vor.u32 %v946_v9, %v866_v8  ;;  %v764_v18 = vld [vmem:[%s1462_s1 + $0x8] sm:$0xf0]  ;;  %v858_v19 = vld [vmem:[%s1462_s1 + $0x120] sm:$0xf]  ;;  %v944_v20 = vld [vmem:[%s1462_s1 + $0x124] sm:$0xf0] }
  0x21   :  { %282 = vmatpush.bf16.msra.mxu1 %v699_v12  ;;  %v868_v12 = vld [vmem:[%s1462_s1 + $0x138] sm:$0xf0]  ;;  %v767_v21 = vor.u32 %v907_v16, %v764_v18  ;;  %v859_v22 = vor.u32 %v944_v20, %v858_v19  ;;  %v943_v23 = vld [vmem:[%s1462_s1 + $0x124] sm:$0xf]  ;;  %v942_v28 = vld [vmem:[%s1462_s1 + $0x114] sm:$0xf0] }
  0x22   :  { %296 = vmatpush.bf16.msra.mxu2 %v703_v15  ;;  %v871_v13 = vor.u32 %v945_v11, %v868_v12  ;;  %v908_v15 = vld [vmem:[%s1462_s1 + $0x4] sm:$0xf0]  ;;  %v941_v30 = vld [vmem:[%s1462_s1 + $0x114] sm:$0xf]  ;;  %v852_v31 = vld [vmem:[%s1462_s1 + $0x118] sm:$0xf0] }
  0x23   :  { %388 = vmatpush.bf16.msra.mxu3 %v779_v55  ;;  %v763_v17 = vor.u32 %v908_v15, %v762_v14  ;;  %v842_v32 = vld [vmem:[%s1462_s1 + $0x100] sm:$0xf]  ;;  %v940_v33 = vld [vmem:[%s1462_s1 + $0x104] sm:$0xf0]  ;;  %v939_v34 = vld [vmem:[%s1462_s1 + $0x104] sm:$0xf] }
  0x24   :  { %402 = vmatpush.bf16.msrb.mxu0 %v783_v59  ;;  %v844_v35 = vld [vmem:[%s1462_s1 + $0x108] sm:$0xf0]  ;;  %v843_v37 = vor.u32 %v940_v33, %v842_v32  ;;  %v48_v9 = vld [vmem:[%s1463_s7] sm:$0xff]   ;;  %v611_v12 = vld [vmem:[%s1464_s8 + $0xf0] sm:$0xff] }
  0x25   :  { %508 = vmatpush.bf16.msrb.mxu1 %v899_v24  ;;  %v860_v24 = vld [vmem:[%s1462_s1 + $0x128] sm:$0xf0]  ;;  %v847_v38 = vor.u32 %v939_v34, %v844_v35  ;;  %v551_v11 = vunpack.c.h.bf16 %v48_v9  ;;  %v609_v14 = vld [vmem:[%s1464_s8 + $0xe0] sm:$0xff]  ;;  %v607_v16 = vld [vmem:[%s1464_s8 + $0xd0] sm:$0xff] }
  0x26   :  { %522 = vmatpush.bf16.msrb.mxu2 %v903_v27  ;;  %v863_v26 = vor.u32 %v943_v23, %v860_v24  ;;  %v850_v27 = vld [vmem:[%s1462_s1 + $0x110] sm:$0xf]  ;;  %v610_v15 = vld [vmem:[%s1464_s8 + $0xe8] sm:$0xff]  ;;  %v605_v18 = vld [vmem:[%s1464_s8 + $0xc0] sm:$0xff] }
  0x27   :  { %389 = vmatpush.bf16.msra.mxu3 %v771_v4  ;;  %v851_v29 = vor.u32 %v942_v28, %v850_v27  ;;  %v606_v19 = vld [vmem:[%s1464_s8 + $0xc8] sm:$0xff]  ;;  %v603_v20 = vld [vmem:[%s1464_s8 + $0xb0] sm:$0xff]  ;;  %v592_v32 = vld [vmem:[%s1464_s8 + $0x58] sm:$0xff] }
  0x28   :  { %403 = vmatpush.bf16.msrb.mxu0 %v775_v7  ;;  %v602_v23 = vld [vmem:[%s1464_s8 + $0xa8] sm:$0xff]  ;;  %v599_v24 = vld [vmem:[%s1464_s8 + $0x90] sm:$0xff]  ;;  %v589_v33 = vld [vmem:[%s1464_s8 + $0x40] sm:$0xff] }
  0x29   :  { %509 = vmatpush.bf16.msrb.mxu1 %v891_v36  ;;  %v598_v27 = vld [vmem:[%s1464_s8 + $0x88] sm:$0xff]  ;;  %v595_v28 = vld [vmem:[%s1464_s8 + $0x70] sm:$0xff] }
  0x2a   :  { %523 = vmatpush.bf16.msrb.mxu2 %v895_v39  ;;  %v590_v34 = vld [vmem:[%s1464_s8 + $0x48] sm:$0xff]  ;;  %v587_v35 = vld [vmem:[%s1464_s8 + $0x30] sm:$0xff] }
  0x2b   :  { %390 = vmatpush.bf16.msra.mxu3 %v763_v17  ;;  %v608_v17 = vld [vmem:[%s1464_s8 + $0xd8] sm:$0xff] }
  0x2c   :  { %404 = vmatpush.bf16.msrb.mxu0 %v767_v21  ;;  %v604_v21 = vld [vmem:[%s1464_s8 + $0xb8] sm:$0xff] }
  0x2d   :  { %510 = vmatpush.bf16.msrb.mxu1 %v883_v48 }
  0x2e   :  { %524 = vmatpush.bf16.msrb.mxu2 %v887_v51 }
  0x2f   :  { %573 = vmatpush.msrb.mxu3 %v1014_v0  ;;  %v855_v0 = vor.u32 %v941_v30, %v852_v31  ;;  %v593_v30 = vld [vmem:[%s1464_s8 + $0x60] sm:$0xff]  ;;  %v594_v31 = vld [vmem:[%s1464_s8 + $0x68] sm:$0xff] }
  0x30   :  { %613 = vmatpush.msra.mxu0 %v611_v12 }
  0x31   :  { %511 = vmatpush.bf16.msrb.mxu1 %v875_v60 }
  0x32   :  { %525 = vmatpush.bf16.msrb.mxu2 %v879_v63  ;;  %614 = vmatpush.msra.mxu0 %v609_v14 }
  0x34   :  { %615 = vmatpush.msra.mxu0 %v607_v16 }
  0x35   :  { %512 = vmatpush.bf16.msrb.mxu1 %v867_v10  ;;  %v550_v10 = vunpack.c.l.bf16 %v48_v9 }
  0x36   :  { %526 = vmatpush.bf16.msrb.mxu2 %v871_v13  ;;  %v612_v13 = vld [vmem:[%s1464_s8 + $0xf8] sm:$0xff]  ;;  %616 = vmatpush.msra.mxu0 %v605_v18 }
  0x38   :  { %617 = vmatpush.msra.mxu0 %v603_v20 }
  0x39   :  { %513 = vmatpush.bf16.msrb.mxu1 %v859_v22  ;;  %v601_v22 = vld [vmem:[%s1464_s8 + $0xa0] sm:$0xff] }
  0x3a   :  { %527 = vmatpush.bf16.msrb.mxu2 %v863_v26  ;;  %618 = vmatpush.msra.mxu0 %v601_v22  ;;  %v597_v26 = vld [vmem:[%s1464_s8 + $0x80] sm:$0xff] }
  0x3c   :  { %619 = vmatpush.msra.mxu0 %v599_v24 }
  0x3d   :  { %514 = vmatpush.bf16.msrb.mxu1 %v851_v29  ;;  %v596_v29 = vld [vmem:[%s1464_s8 + $0x78] sm:$0xff] }
  0x3e   :  { %528 = vmatpush.bf16.msrb.mxu2 %v855_v0  ;;  %620 = vmatpush.msra.mxu0 %v597_v26  ;;  %v591_v0 = vld [vmem:[%s1464_s8 + $0x50] sm:$0xff] }
  0x40   :  { %621 = vmatpush.msra.mxu0 %v595_v28 }
  0x41   :  { %515 = vmatpush.bf16.msrb.mxu1 %v843_v37  ;;  %v585_v37 = vld [vmem:[%s1464_s8 + $0x20] sm:$0xff] }
  0x42   :  { %529 = vmatpush.bf16.msrb.mxu2 %v847_v38  ;;  %622 = vmatpush.msra.mxu0 %v593_v30  ;;  %v586_v38 = vld [vmem:[%s1464_s8 + $0x28] sm:$0xff] }
  0x44   :  { %623 = vmatpush.msra.mxu0 %v591_v0 }
  0x46   :  { %624 = vmatpush.msra.mxu0 %v589_v33 }
  0x48   :  { %625 = vmatpush.msra.mxu0 %v587_v35 }
  0x4a   :  { %626 = vmatpush.msra.mxu0 %v585_v37 }
  0x79   :  { %v111_v25 = vpop.permute.xlu0 %110 }
  0x7a   :  { %v140_v36 = vpop.permute.xlu1 %139  ;;  %vm115_vm6 = vcmp.eq.s32.totalorder %v111_v25, 1  ;;  %v600_v25 = vld [vmem:[%s1464_s8 + $0x98] sm:$0xff] }
  0x7b   :  { %vm117_vm8 = vmpackc.low %vm115_vm6, %vm115_vm6  ;;  %vm144_vm10 = vcmp.eq.s32.totalorder %v140_v36, 1  ;;  %vm100_vm6 = vsmask.f32 7424  ;;  %v588_v36 = vld [vmem:[%s1464_s8 + $0x38] sm:$0xff] }
  0x7c   :  { %v119_v42 = vsel %vm117_vm8, 65537, %v960_v2  ;;  %vm146_vm12 = vmpackc.low %vm144_vm10, %vm144_vm10 }
  0x7d   :  { %v121_v47 = vunpack.c.l.b16 %v119_v42  ;;  %v148_v51 = vsel %vm146_vm12, 65537, %v960_v2  ;;  %v582_v42 = vld [vmem:[%s1464_s8 + $0x8] sm:$0xff] }
  0x7e   :  { %v150_v60 = vunpack.c.l.b16 %v148_v51 }
  0x7f   :  { %v676_v54 = vunpack.i.l.s16 %v121_v47 }
  0x80   :  { %v678_v3 = vunpack.i.l.s16 %v150_v60 }
  0x81   :  { %v114_v39 = vpop.permute.xlu0 %113  ;;  %vm128_vm1 = vcmp.ne.s32.totalorder %v676_v54, %v126_v56 }
  0x82   :  { %vm116_vm7 = vcmp.eq.s32.totalorder %v114_v39, 1  ;;  %v143_v41 = vpop.permute.xlu1 %142  ;;  %vm157_vm8 = vcmp.ne.s32.totalorder %v678_v3, %v126_v56  ;;  %v583_v39 = vld [vmem:[%s1464_s8 + $0x10] sm:$0xff] }
  0x83   :  { %vm118_vm9 = vmpackc.low %vm116_vm7, %vm116_vm7  ;;  %vm145_vm11 = vcmp.eq.s32.totalorder %v143_v41, 1  ;;  %627 = vmatpush.msra.mxu0 %v583_v39  ;;  %v581_v41 = vld [vmem:[%s1464_s8] sm:$0xff] }
  0x84   :  { %v120_v44 = vsel %vm118_vm9, 65537, %v960_v2  ;;  %vm147_vm13 = vmpackc.low %vm145_vm11, %vm145_vm11 }
  0x85   :  { %v122_v48 = vunpack.c.l.b16 %v120_v44  ;;  %v149_v53 = vsel %vm147_vm13, 65537, %v960_v2  ;;  %vm101_vm7 = vmand %vm99_vm4, %vm100_vm6  ;;  %628 = vmatpush.msra.mxu0 %v581_v41 }
  0x86   :  { %v151_v61 = vunpack.c.l.b16 %v149_v53 }
  0x87   :  { %v677_v55 = vunpack.i.l.s16 %v122_v48 }
  0x88   :  { %v679_v4 = vunpack.i.l.s16 %v151_v61 }
  0x89   :  { %vm129_vm2 = vcmp.ne.s32.totalorder %v677_v55, %v127_v57  ;;  %v540_v55 = vld [vmem:[%s1465_s2] sm:$0x3] }
  0x8a   :  { %vm130_vm3 = vmpackc.low %vm129_vm2, %vm128_vm1  ;;  %vm158_vm9 = vcmp.ne.s32.totalorder %v679_v4, %v127_v57  ;;  %v542_v57 = vperm.slane %v540_v55, 0  ;;  %v543_v4 = vperm.slane %v540_v55, 1 }
  0x8b   :  { %vm159_vm10 = vmpackc.low %vm158_vm9, %vm157_vm8 }
  0x8c   :  { %v72_v40 = vpop.f32.mrf.mxu0 }
  0x8d   :  { %v77_v43 = vpack.c.bf16 %v72_v40, %v72_v40  ;;  %v584_v40 = vld [vmem:[%s1464_s8 + $0x18] sm:$0xff] }
  0x8f   :  { %v81_v49 = vunpack.c.l.b16 %v77_v43 }
  0x94   :  { %v74_v45 = vpop.f32.mrf.mxu0 }
  0x95   :  { %v78_v46 = vpack.c.bf16 %v74_v45, %v74_v45 }
  0x97   :  { %v82_v50 = vunpack.c.l.b16 %v78_v46 }
  0x99   :  { %v83_v52 = vpack.c.b16 %v82_v50, %v81_v49 }
  0x9b   :  { %283 = vmatmul.bf16.vlgmr.msra.gmra.mxu1 %v83_v52  ;;  %297 = vmatmul.bf16.vlgmr.msra.gmra.mxu2 %v83_v52  ;;  %v85_v58 = vshrl.u32 %v83_v52, 16  ;;  %v88_v59 = vshll.u32 %v83_v52, 16 }
  0x9d   :  { %v87_v62 = vrot.slane %v85_v58, 7  ;;  %v96_v1 = vrot.slane %v88_v59, 1 }
  0x9f   :  { %v90_v63 = vor.u32 %v88_v59, %v87_v62  ;;  %v97_v6 = vor.u32 %v96_v1, %v85_v58 }
  0xa1   :  { %v95_v5 = vsel %vm94_vm0, 0, %v90_v63  ;;  %v102_v7 = vsel %vm101_vm7, %v97_v6, 0 }
  0xa2   :  { %v131_v2 = vsel %vm130_vm3, %v95_v5, 0  ;;  %v160_v8 = vsel %vm159_vm10, %v102_v7, 0 }
  0xa3   :  { %391 = vmatmul.bf16.vlgmr.msra.gmra.mxu3 %v131_v2  ;;  %405 = vmatmul.bf16.vlgmr.msrb.gmra.mxu0 %v131_v2 }
  0xa4   :  { %636 = vmatpush.msra.mxu3 %v612_v13 }
  0xa6   :  { %637 = vmatpush.msra.mxu3 %v610_v15 }
  0xa8   :  { %638 = vmatpush.msra.mxu3 %v608_v17 }
  0xaa   :  { %639 = vmatpush.msra.mxu3 %v606_v19 }
  0xab   :  { %516 = vmatmul.bf16.vlgmr.msrb.gmra.mxu1 %v160_v8  ;;  %530 = vmatmul.bf16.vlgmr.msrb.gmra.mxu2 %v160_v8 }
  0xac   :  { %640 = vmatpush.msra.mxu3 %v604_v21 }
  0xae   :  { %641 = vmatpush.msra.mxu3 %v602_v23 }
  0xb0   :  { %642 = vmatpush.msra.mxu3 %v600_v25 }
  0xb2   :  { %643 = vmatpush.msra.mxu3 %v598_v27 }
  0xb3   :  { %904 = vmatmul.msk.f32.vlgmr.msrb.gmra.mxu3 %vm55_vm5, %v550_v10 }
  0xb4   :  { %644 = vmatpush.msra.mxu3 %v596_v29 }
  0xb6   :  { %645 = vmatpush.msra.mxu3 %v594_v31 }
  0xb8   :  { %646 = vmatpush.msra.mxu3 %v592_v32 }
  0xba   :  { %647 = vmatpush.msra.mxu3 %v590_v34 }
  0xbb   :  { %905 = vmatmul.msk.f32.gmra.mxu3 %vm55_vm5, %v551_v11 }
  0xbc   :  { %648 = vmatpush.msra.mxu3 %v588_v36 }
  0xbe   :  { %649 = vmatpush.msra.mxu3 %v586_v38 }
  0xc0   :  { %650 = vmatpush.msra.mxu3 %v584_v40 }
  0xc2   :  { %651 = vmatpush.msra.mxu3 %v582_v42 }
 0x118   :  { %v284_v47 = vpop.f32.mrf.mxu1 }
 0x11e   :  { %v298_v48 = vpop.f32.mrf.mxu2 }
 0x120   :  { %v286_v49 = vpop.f32.mrf.mxu1  ;;  %v406_v50 = vpop.f32.mrf.mxu0 }
 0x121   :  { %v407_v59 = vadd.f32 %v406_v50, %v298_v48 }
 0x126   :  { %v392_v43 = vpop.f32.mrf.mxu3  ;;  %v300_v51 = vpop.f32.mrf.mxu2 }
 0x127   :  { %v393_v53 = vadd.f32 %v392_v43, %v284_v47 }
 0x128   :  { %v517_v52 = vpop.f32.mrf.mxu1  ;;  %v408_v54 = vpop.f32.mrf.mxu0 }
 0x129   :  { %v536_v56 = vadd.f32 %v517_v52, %v393_v53  ;;  %v409_v8 = vadd.f32 %v408_v54, %v300_v51 }
 0x12b   :  { %v546_v61 = vadd.f32 %v542_v57, %v536_v56 }
 0x12e   :  { %v394_v44 = vpop.f32.mrf.mxu3  ;;  %v531_v58 = vpop.f32.mrf.mxu2 }
 0x12f   :  { %v395_v60 = vadd.f32 %v394_v44, %v286_v49  ;;  %v537_v1 = vadd.f32 %v531_v58, %v407_v59 }
 0x130   :  { %v519_v62 = vpop.f32.mrf.mxu1 }
 0x131   :  { %v538_v5 = vadd.f32 %v519_v62, %v395_v60  ;;  %v547_v2 = vadd.f32 %v543_v4, %v537_v1 }
 0x133   :  { %v548_v10 = vadd.f32 %v542_v57, %v538_v5 }
 0x136   :  { %v575_v45 = vpop.f32.mrf.mxu3  ;;  %v533_v6 = vpop.f32.mrf.mxu2 }
 0x137   :  { %629 = vmatmul.f32.vlgmr.msra.gmra.mxu0 %v575_v45  ;;  %652 = vmatmul.f32.vlgmr.msra.gmra.mxu3 %v575_v45  ;;  %v539_v12 = vadd.f32 %v533_v6, %v409_v8 }
 0x139   :  { %v549_v14 = vadd.f32 %v543_v4, %v539_v12 }
 0x13e   :  { %v578_v46 = vpop.f32.mrf.mxu3 }
 0x13f   :  { %632 = vmatmul.f32.gmra.mxu0 %v578_v46  ;;  %655 = vmatmul.f32.gmra.mxu3 %v578_v46 }
 0x1b4   :  { %v630_v63 = vpop.f32.mrf.mxu0 }
 0x1b5   :  { %v659_v3 = vadd.f32 %v630_v63, %v546_v61 }
 0x1b7   :  { %663 = vst [vmem:[%s1466_s9] sm:$0xff] %v659_v3 }
 0x1ba   :  { %v653_v7 = vpop.f32.mrf.mxu3 }
 0x1bb   :  { %v660_v9 = vadd.f32 %v653_v7, %v547_v2 }
 0x1bc   :  { %v633_v11 = vpop.f32.mrf.mxu0 }
 0x1bd   :  { %664 = vst [vmem:[%s1466_s9 + $0x8] sm:$0xff] %v660_v9  ;;  %v661_v13 = vadd.f32 %v633_v11, %v548_v10 }
 0x1bf   :  { %665 = vst [vmem:[%s1466_s9 + $0x10] sm:$0xff] %v661_v13 }
 0x1c2   :  { %v656_v15 = vpop.f32.mrf.mxu3 }
 0x1c3   :  { %v662_v16 = vadd.f32 %v656_v15, %v549_v14 }
 0x1c5   :  { %666 = vst [vmem:[%s1466_s9 + $0x18] sm:$0xff] %v662_v16 }

// kernel: autoencoder_forward.18
= control target key start
LH: loop header
LB: loop body
LE: loop exit
PB: predicated region body
PF: predicated region fallthrough
CT: control target
= control target key end

     0   :  { %v3606_v3 = vmov 0   ;;  %vm79_vm4 = vcmask 130048   ;;  %s5954_s0 = inlined_call_operand.vmem [shape: f32[16,256], index: 0, kind: input, shape index: {}]   ;;  %s5955_s5 = inlined_call_operand.vmem [shape: f32[1,256], index: 5, kind: input, shape index: {}]   ;;  %s5956_s6 = inlined_call_operand.vmem [shape: f32[1,256], index: 6, kind: input, shape index: {}]   ;;  %s5957_s3 = inlined_call_operand.vmem [shape: f32[32,1], index: 3, kind: input, shape index: {}]   ;;  %s5958_s1 = inlined_call_operand.vmem [shape: bf16[3,256,512], index: 1, kind: input, shape index: {}]   ;;  %s5959_s4 = inlined_call_operand.vmem [shape: f32[32,1], index: 4, kind: input, shape index: {}]   ;;  %s5960_s7 = inlined_call_operand.vmem [shape: bf16[32,16], index: 7, kind: input, shape index: {}]   ;;  %s5961_s8 = inlined_call_operand.vmem [shape: f32[256,512], index: 8, kind: input, shape index: {}]   ;;  %s5962_s2 = inlined_call_operand.vmem [shape: f32[1,512], index: 2, kind: input, shape index: {}]   ;;  %s5963_s9 = inlined_call_operand.vmem [shape: f32[32,512], index: 9, kind: output, shape index: {}]  }
   0x1   :  { %v35_v0 = vld [vmem:[%s5954_s0] sm:$0xff]  ;;  %v37_v1 = vld [vmem:[%s5954_s0 + $0x10] sm:$0xff]  ;;  %3599 = vset.pattern.permute.xlu0 %v3606_v3  ;;  %3600 = vset.pattern.permute.xlu1 %v3606_v3  ;;  %v36_v6 = vld [vmem:[%s5954_s0 + $0x8] sm:$0xff] }
   0x2   :  { %v39_v2 = vld [vmem:[%s5955_s5] sm:$0x3]  ;;  %v38_v7 = vld [vmem:[%s5954_s0 + $0x18] sm:$0xff]  ;;  %3601 = vset.pattern.permute.xlu2 %v3606_v3  ;;  %v204_v16 = vld [vmem:[%s5957_s3 + $0x10] sm:$0xff] }
   0x3   :  { %v41_v4 = vperm.slane %v39_v2, 0  ;;  %v49_v5 = vld [vmem:[%s5956_s6] sm:$0x3]  ;;  %v42_v8 = vperm.slane %v39_v2, 1  ;;  %v203_v17 = vld [vmem:[%s5957_s3 + $0x8] sm:$0xff]  ;;  %v205_v18 = vld [vmem:[%s5957_s3 + $0x18] sm:$0xff] }
   0x4   :  { %v51_v9 = vperm.slane %v49_v5, 0  ;;  %v52_v10 = vperm.slane %v49_v5, 1  ;;  %v202_v11 = vld [vmem:[%s5957_s3] sm:$0xff]  ;;  %vm208_vm1 = vcmp.gt.f32.partialorder %v204_v16, 0.0  ;;  %vm207_vm2 = vcmp.gt.f32.partialorder %v203_v17, 0.0  ;;  %v263_v24 = vld [vmem:[%s5959_s4 + $0x8] sm:$0xff] }
   0x5   :  { %v45_v12 = vmul.f32 %v41_v4, %v35_v0  ;;  %v47_v13 = vmul.f32 %v41_v4, %v37_v1  ;;  %v46_v14 = vmul.f32 %v42_v8, %v36_v6  ;;  %v48_v15 = vmul.f32 %v42_v8, %v38_v7  ;;  %v262_v23 = vld [vmem:[%s5959_s4] sm:$0xff]  ;;  %v3468_v28 = vld [vmem:[%s5958_s1 + $0x2ec] sm:$0xf0]  ;;  %v2648_v41 = vld [vmem:[%s5958_s1 + $0x2f0] sm:$0xf0] }
   0x6   :  { %vm206_vm0 = vcmp.gt.f32.partialorder %v202_v11, 0.0  ;;  %vm209_vm3 = vcmp.gt.f32.partialorder %v205_v18, 0.0  ;;  %v212_v26 = vsel %vm208_vm1, 1, %v3606_v3  ;;  %v2646_v27 = vld [vmem:[%s5958_s1 + $0x2e0] sm:$0xf]  ;;  %vm266_vm5 = vcmp.gt.f32.partialorder %v262_v23, 0.0 }
   0x7   :  { %v55_v19 = vadd.f32 %v51_v9, %v45_v12  ;;  %v57_v20 = vadd.f32 %v51_v9, %v47_v13  ;;  %v56_v21 = vadd.f32 %v52_v10, %v46_v14  ;;  %v58_v22 = vadd.f32 %v52_v10, %v48_v15  ;;  %221 = vperm.xlu1 %3600, %v212_v26   ;;  %v2774_v33 = vld [vmem:[%s5958_s1 + $0x3e0] sm:$0xf]  ;;  %v3500_v35 = vld [vmem:[%s5958_s1 + $0x3ec] sm:$0xf0]  ;;  %v3466_v40 = vld [vmem:[%s5958_s1 + $0x2e4] sm:$0xf] }
   0x8   :  { %v210_v25 = vsel %vm206_vm0, 1, %v3606_v3  ;;  %v3372_v34 = vld [vmem:[%s5960_s7] sm:$0xff]  ;;  %v211_v38 = vsel %vm207_vm2, 1, %v3606_v3  ;;  %v213_v39 = vsel %vm209_vm3, 1, %v3606_v3  ;;  %v270_v42 = vsel %vm266_vm5, 1, %v3606_v3  ;;  %v265_v47 = vld [vmem:[%s5959_s4 + $0x18] sm:$0xff] }
   0x9   :  { %v59_v29 = vmax.f32 %v55_v19, 0.0  ;;  %v61_v30 = vmax.f32 %v57_v20, 0.0  ;;  %v60_v31 = vmax.f32 %v56_v21, 0.0  ;;  %v62_v32 = vmax.f32 %v58_v22, 0.0  ;;  %215 = vperm.xlu0 %3599, %v210_v25   ;;  %v3498_v45 = vld [vmem:[%s5958_s1 + $0x3e4] sm:$0xf]  ;;  %275 = vperm.xlu2 %3601, %v270_v42  }
   0xa   :  { %vm267_vm6 = vcmp.gt.f32.partialorder %v263_v24, 0.0  ;;  %v2647_v43 = vor.u32 %v3468_v28, %v2646_v27  ;;  %v2775_v44 = vor.u32 %v3500_v35, %v2774_v33  ;;  %v2776_v46 = vld [vmem:[%s5958_s1 + $0x3f0] sm:$0xf0]  ;;  %v2651_v49 = vor.u32 %v3466_v40, %v2648_v41  ;;  %v2630_v50 = vld [vmem:[%s5958_s1 + $0x2c0] sm:$0xf]  ;;  %v3373_v27 = vld [vmem:[%s5960_s7 + $0x8] sm:$0xff] }
   0xb   :  { %v63_v36 = vpack.c.bf16 %v61_v30, %v59_v29  ;;  %v64_v37 = vpack.c.bf16 %v62_v32, %v60_v31  ;;  %v264_v48 = vld [vmem:[%s5959_s4 + $0x10] sm:$0xff]  ;;  %v2758_v52 = vld [vmem:[%s5958_s1 + $0x3c0] sm:$0xf]  ;;  %v2779_v53 = vor.u32 %v3498_v45, %v2776_v46  ;;  %v3462_v56 = vld [vmem:[%s5958_s1 + $0x2c4] sm:$0xf]  ;;  %vm269_vm7 = vcmp.gt.f32.partialorder %v265_v47, 0.0 }
   0xc   :  { %v3464_v51 = vld [vmem:[%s5958_s1 + $0x2cc] sm:$0xf0]  ;;  %775 = vmatpush.bf16.msra.mxu2 %v2647_v43  ;;  %v2632_v57 = vld [vmem:[%s5958_s1 + $0x2d0] sm:$0xf0]  ;;  %794 = vmatpush.bf16.msra.mxu3 %v2775_v44  ;;  %v3494_v60 = vld [vmem:[%s5958_s1 + $0x3c4] sm:$0xf] }
   0xd   :  { %93 = vmatpush.bf16.msra.mxu0 %v63_v36  ;;  %112 = vmatpush.bf16.msra.mxu1 %v64_v37  ;;  %v2631_v54 = vor.u32 %v3464_v51, %v2630_v50  ;;  %v3496_v55 = vld [vmem:[%s5958_s1 + $0x3cc] sm:$0xf0]  ;;  %v2635_v59 = vor.u32 %v3462_v56, %v2632_v57  ;;  %v2760_v61 = vld [vmem:[%s5958_s1 + $0x3d0] sm:$0xf0]  ;;  %v2614_v62 = vld [vmem:[%s5958_s1 + $0x2a0] sm:$0xf] }
   0xe   :  { %v2759_v58 = vor.u32 %v3496_v55, %v2758_v52  ;;  %v3460_v63 = vld [vmem:[%s5958_s1 + $0x2ac] sm:$0xf0]  ;;  %v2742_v0 = vld [vmem:[%s5958_s1 + $0x3a0] sm:$0xf]  ;;  %v3458_v2 = vld [vmem:[%s5958_s1 + $0x2a4] sm:$0xf]  ;;  %v2763_v6 = vor.u32 %v3494_v60, %v2760_v61 }
   0xf   :  { %v3492_v1 = vld [vmem:[%s5958_s1 + $0x3ac] sm:$0xf0]  ;;  %224 = vperm.xlu1 %3600, %v213_v39   ;;  %v2616_v4 = vld [vmem:[%s5958_s1 + $0x2b0] sm:$0xf0]  ;;  %vm268_vm8 = vcmp.gt.f32.partialorder %v264_v48, 0.0  ;;  %v271_v5 = vsel %vm267_vm6, 1, %v3606_v3  ;;  %v2615_v7 = vor.u32 %v3460_v63, %v2614_v62 }
  0x10   :  { %2456 = vmatmul.msk.bf16.vlgmr.msra.gmra.mxu0 %vm79_vm4, %v3372_v34  ;;  %2458 = vmatmul.msk.bf16.vlgmr.msra.gmra.mxu1 %vm79_vm4, %v3372_v34  ;;  %v2743_v8 = vor.u32 %v3492_v1, %v2742_v0  ;;  %v3490_v9 = vld [vmem:[%s5958_s1 + $0x3a4] sm:$0xf]  ;;  %v2744_v10 = vld [vmem:[%s5958_s1 + $0x3b0] sm:$0xf0]  ;;  %v2598_v11 = vld [vmem:[%s5958_s1 + $0x280] sm:$0xf]  ;;  %v2619_v12 = vor.u32 %v3458_v2, %v2616_v4 }
  0x11   :  { %813 = vmatpush.bf16.msrb.mxu0 %v2651_v49  ;;  %218 = vperm.xlu0 %3599, %v211_v38   ;;  %v3456_v13 = vld [vmem:[%s5958_s1 + $0x28c] sm:$0xf0]  ;;  %v2726_v14 = vld [vmem:[%s5958_s1 + $0x380] sm:$0xf]  ;;  %v3454_v16 = vld [vmem:[%s5958_s1 + $0x284] sm:$0xf]  ;;  %v2747_v20 = vor.u32 %v3490_v9, %v2744_v10 }
  0x12   :  { %832 = vmatpush.bf16.msrb.mxu1 %v2779_v53  ;;  %776 = vmatpush.bf16.msra.mxu2 %v2631_v54  ;;  %v3488_v15 = vld [vmem:[%s5958_s1 + $0x38c] sm:$0xf0]  ;;  %v2600_v17 = vld [vmem:[%s5958_s1 + $0x290] sm:$0xf0]  ;;  %v273_v18 = vsel %vm269_vm7, 1, %v3606_v3  ;;  %v272_v19 = vsel %vm268_vm8, 1, %v3606_v3  ;;  %v2599_v21 = vor.u32 %v3456_v13, %v2598_v11 }
  0x13   :  { %795 = vmatpush.bf16.msra.mxu3 %v2759_v58  ;;  %278 = vperm.xlu2 %3601, %v271_v5   ;;  %v2727_v22 = vor.u32 %v3488_v15, %v2726_v14  ;;  %v3486_v23 = vld [vmem:[%s5958_s1 + $0x384] sm:$0xf]  ;;  %v2728_v24 = vld [vmem:[%s5958_s1 + $0x390] sm:$0xf0]  ;;  %v2603_v25 = vor.u32 %v3454_v16, %v2600_v17  ;;  %v2582_v28 = vld [vmem:[%s5958_s1 + $0x260] sm:$0xf] }
  0x14   :  { %v2731_v26 = vor.u32 %v3486_v23, %v2728_v24  ;;  %v3452_v29 = vld [vmem:[%s5958_s1 + $0x26c] sm:$0xf0]  ;;  %v2710_v30 = vld [vmem:[%s5958_s1 + $0x360] sm:$0xf]  ;;  %v3450_v33 = vld [vmem:[%s5958_s1 + $0x264] sm:$0xf] }
  0x15   :  { %814 = vmatpush.bf16.msrb.mxu0 %v2635_v59  ;;  %v2583_v31 = vor.u32 %v3452_v29, %v2582_v28  ;;  %v3484_v32 = vld [vmem:[%s5958_s1 + $0x36c] sm:$0xf0]  ;;  %v2584_v34 = vld [vmem:[%s5958_s1 + $0x270] sm:$0xf0]  ;;  %v3482_v37 = vld [vmem:[%s5958_s1 + $0x364] sm:$0xf] }
  0x16   :  { %833 = vmatpush.bf16.msrb.mxu1 %v2763_v6  ;;  %777 = vmatpush.bf16.msra.mxu2 %v2615_v7  ;;  %v2711_v35 = vor.u32 %v3484_v32, %v2710_v30  ;;  %v2587_v36 = vor.u32 %v3450_v33, %v2584_v34  ;;  %v2712_v38 = vld [vmem:[%s5958_s1 + $0x370] sm:$0xf0]  ;;  %v2566_v40 = vld [vmem:[%s5958_s1 + $0x240] sm:$0xf]  ;;  %v3448_v41 = vld [vmem:[%s5958_s1 + $0x24c] sm:$0xf0] }
  0x17   :  { %796 = vmatpush.bf16.msra.mxu3 %v2743_v8  ;;  %284 = vperm.xlu1 %3600, %v273_v18   ;;  %v2715_v39 = vor.u32 %v3482_v37, %v2712_v38  ;;  %v2694_v42 = vld [vmem:[%s5958_s1 + $0x340] sm:$0xf]  ;;  %v2567_v43 = vor.u32 %v3448_v41, %v2566_v40  ;;  %v3480_v44 = vld [vmem:[%s5958_s1 + $0x34c] sm:$0xf0]  ;;  %v3446_v45 = vld [vmem:[%s5958_s1 + $0x244] sm:$0xf] }
  0x18   :  { %v2568_v46 = vld [vmem:[%s5958_s1 + $0x250] sm:$0xf0]  ;;  %v2695_v47 = vor.u32 %v3480_v44, %v2694_v42  ;;  %v3478_v49 = vld [vmem:[%s5958_s1 + $0x344] sm:$0xf]  ;;  %v2550_v52 = vld [vmem:[%s5958_s1 + $0x220] sm:$0xf] }
  0x19   :  { %815 = vmatpush.bf16.msrb.mxu0 %v2619_v12  ;;  %281 = vperm.xlu0 %3599, %v272_v19   ;;  %v2571_v48 = vor.u32 %v3446_v45, %v2568_v46  ;;  %v2696_v50 = vld [vmem:[%s5958_s1 + $0x350] sm:$0xf0]  ;;  %v3444_v53 = vld [vmem:[%s5958_s1 + $0x22c] sm:$0xf0]  ;;  %v2678_v54 = vld [vmem:[%s5958_s1 + $0x320] sm:$0xf] }
  0x1a   :  { %834 = vmatpush.bf16.msrb.mxu1 %v2747_v20  ;;  %778 = vmatpush.bf16.msra.mxu2 %v2599_v21  ;;  %v2699_v51 = vor.u32 %v3478_v49, %v2696_v50  ;;  %v2551_v55 = vor.u32 %v3444_v53, %v2550_v52  ;;  %v3476_v56 = vld [vmem:[%s5958_s1 + $0x32c] sm:$0xf0]  ;;  %v3442_v57 = vld [vmem:[%s5958_s1 + $0x224] sm:$0xf]  ;;  %v2552_v58 = vld [vmem:[%s5958_s1 + $0x230] sm:$0xf0] }
  0x1b   :  { %797 = vmatpush.bf16.msra.mxu3 %v2727_v22  ;;  %v2679_v59 = vor.u32 %v3476_v56, %v2678_v54  ;;  %v2555_v60 = vor.u32 %v3442_v57, %v2552_v58  ;;  %v3474_v61 = vld [vmem:[%s5958_s1 + $0x324] sm:$0xf]  ;;  %v2680_v62 = vld [vmem:[%s5958_s1 + $0x330] sm:$0xf0]  ;;  %v2534_v0 = vld [vmem:[%s5958_s1 + $0x200] sm:$0xf] }
  0x1c   :  { %v2683_v63 = vor.u32 %v3474_v61, %v2680_v62  ;;  %v3440_v1 = vld [vmem:[%s5958_s1 + $0x20c] sm:$0xf0]  ;;  %v2662_v2 = vld [vmem:[%s5958_s1 + $0x300] sm:$0xf]  ;;  %v3438_v6 = vld [vmem:[%s5958_s1 + $0x204] sm:$0xf] }
  0x1d   :  { %816 = vmatpush.bf16.msrb.mxu0 %v2603_v25  ;;  %v2535_v4 = vor.u32 %v3440_v1, %v2534_v0  ;;  %v3472_v5 = vld [vmem:[%s5958_s1 + $0x30c] sm:$0xf0]  ;;  %v2536_v7 = vld [vmem:[%s5958_s1 + $0x210] sm:$0xf0]  ;;  %v3470_v10 = vld [vmem:[%s5958_s1 + $0x304] sm:$0xf] }
  0x1e   :  { %835 = vmatpush.bf16.msrb.mxu1 %v2731_v26  ;;  %779 = vmatpush.bf16.msra.mxu2 %v2583_v31  ;;  %v2663_v8 = vor.u32 %v3472_v5, %v2662_v2  ;;  %v2539_v9 = vor.u32 %v3438_v6, %v2536_v7  ;;  %v2664_v11 = vld [vmem:[%s5958_s1 + $0x310] sm:$0xf0]  ;;  %v2654_v15 = vld [vmem:[%s5958_s1 + $0x2e8] sm:$0xf]  ;;  %v3469_v16 = vld [vmem:[%s5958_s1 + $0x2f4] sm:$0xf0] }
  0x1f   :  { %798 = vmatpush.bf16.msra.mxu3 %v2711_v35  ;;  %v2667_v12 = vor.u32 %v3470_v10, %v2664_v11  ;;  %v2782_v17 = vld [vmem:[%s5958_s1 + $0x3e8] sm:$0xf]  ;;  %v2655_v18 = vor.u32 %v3469_v16, %v2654_v15  ;;  %v3501_v19 = vld [vmem:[%s5958_s1 + $0x3f4] sm:$0xf0]  ;;  %v3467_v20 = vld [vmem:[%s5958_s1 + $0x2ec] sm:$0xf] }
  0x20   :  { %2457 = vmatmul.msk.bf16.gmra.mxu0 %vm79_vm4, %v3373_v27  ;;  %2459 = vmatmul.msk.bf16.gmra.mxu1 %vm79_vm4, %v3373_v27  ;;  %v2783_v21 = vor.u32 %v3501_v19, %v2782_v17  ;;  %v2656_v22 = vld [vmem:[%s5958_s1 + $0x2f8] sm:$0xf0]  ;;  %v3499_v23 = vld [vmem:[%s5958_s1 + $0x3ec] sm:$0xf]  ;;  %v2638_v27 = vld [vmem:[%s5958_s1 + $0x2c8] sm:$0xf] }
  0x21   :  { %817 = vmatpush.bf16.msrb.mxu0 %v2587_v36  ;;  %v2659_v24 = vor.u32 %v3467_v20, %v2656_v22  ;;  %v2784_v25 = vld [vmem:[%s5958_s1 + $0x3f8] sm:$0xf0]  ;;  %v3465_v28 = vld [vmem:[%s5958_s1 + $0x2d4] sm:$0xf0]  ;;  %v2766_v31 = vld [vmem:[%s5958_s1 + $0x3c8] sm:$0xf] }
  0x22   :  { %836 = vmatpush.bf16.msrb.mxu1 %v2715_v39  ;;  %780 = vmatpush.bf16.msra.mxu2 %v2567_v43  ;;  %v2787_v26 = vor.u32 %v3499_v23, %v2784_v25  ;;  %v2639_v30 = vor.u32 %v3465_v28, %v2638_v27  ;;  %v3497_v32 = vld [vmem:[%s5958_s1 + $0x3d4] sm:$0xf0]  ;;  %v3463_v33 = vld [vmem:[%s5958_s1 + $0x2cc] sm:$0xf]  ;;  %v2640_v35 = vld [vmem:[%s5958_s1 + $0x2d8] sm:$0xf0] }
  0x23   :  { %799 = vmatpush.bf16.msra.mxu3 %v2695_v47  ;;  %v2767_v34 = vor.u32 %v3497_v32, %v2766_v31  ;;  %v3495_v36 = vld [vmem:[%s5958_s1 + $0x3cc] sm:$0xf]  ;;  %v2643_v37 = vor.u32 %v3463_v33, %v2640_v35  ;;  %v2768_v38 = vld [vmem:[%s5958_s1 + $0x3d8] sm:$0xf0]  ;;  %v2622_v39 = vld [vmem:[%s5958_s1 + $0x2a8] sm:$0xf] }
  0x24   :  { %v2771_v41 = vor.u32 %v3495_v36, %v2768_v38  ;;  %v3461_v42 = vld [vmem:[%s5958_s1 + $0x2b4] sm:$0xf0]  ;;  %v2750_v43 = vld [vmem:[%s5958_s1 + $0x3a8] sm:$0xf]  ;;  %v3459_v46 = vld [vmem:[%s5958_s1 + $0x2ac] sm:$0xf] }
  0x25   :  { %818 = vmatpush.bf16.msrb.mxu0 %v2571_v48  ;;  %v3493_v45 = vld [vmem:[%s5958_s1 + $0x3b4] sm:$0xf0]  ;;  %v2623_v47 = vor.u32 %v3461_v42, %v2622_v39  ;;  %v2624_v49 = vld [vmem:[%s5958_s1 + $0x2b8] sm:$0xf0]  ;;  %v3491_v50 = vld [vmem:[%s5958_s1 + $0x3ac] sm:$0xf] }
  0x26   :  { %837 = vmatpush.bf16.msrb.mxu1 %v2699_v51  ;;  %781 = vmatpush.bf16.msra.mxu2 %v2551_v55  ;;  %v2751_v48 = vor.u32 %v3493_v45, %v2750_v43  ;;  %v2627_v51 = vor.u32 %v3459_v46, %v2624_v49  ;;  %v2752_v52 = vld [vmem:[%s5958_s1 + $0x3b8] sm:$0xf0]  ;;  %v2606_v54 = vld [vmem:[%s5958_s1 + $0x288] sm:$0xf]  ;;  %v3457_v55 = vld [vmem:[%s5958_s1 + $0x294] sm:$0xf0] }
  0x27   :  { %800 = vmatpush.bf16.msra.mxu3 %v2679_v59  ;;  %v2755_v53 = vor.u32 %v3491_v50, %v2752_v52  ;;  %v2607_v57 = vor.u32 %v3457_v55, %v2606_v54  ;;  %v2734_v58 = vld [vmem:[%s5958_s1 + $0x388] sm:$0xf]  ;;  %v3489_v59 = vld [vmem:[%s5958_s1 + $0x394] sm:$0xf0]  ;;  %v2608_v62 = vld [vmem:[%s5958_s1 + $0x298] sm:$0xf0] }
  0x28   :  { %v2735_v61 = vor.u32 %v3489_v59, %v2734_v58  ;;  %v2736_v1 = vld [vmem:[%s5958_s1 + $0x398] sm:$0xf0]  ;;  %v2590_v5 = vld [vmem:[%s5958_s1 + $0x268] sm:$0xf]  ;;  %v3453_v6 = vld [vmem:[%s5958_s1 + $0x274] sm:$0xf0] }
  0x29   :  { %819 = vmatpush.bf16.msrb.mxu0 %v2555_v60  ;;  %v3455_v60 = vld [vmem:[%s5958_s1 + $0x28c] sm:$0xf]  ;;  %v2591_v15 = vor.u32 %v3453_v6, %v2590_v5  ;;  %v2720_v22 = vld [vmem:[%s5958_s1 + $0x378] sm:$0xf0]  ;;  %v2574_v25 = vld [vmem:[%s5958_s1 + $0x248] sm:$0xf] }
  0x2a   :  { %838 = vmatpush.bf16.msrb.mxu1 %v2683_v63  ;;  %782 = vmatpush.bf16.msra.mxu2 %v2535_v4  ;;  %v3487_v63 = vld [vmem:[%s5958_s1 + $0x38c] sm:$0xf]  ;;  %v2611_v0 = vor.u32 %v3455_v60, %v2608_v62  ;;  %v2702_v27 = vld [vmem:[%s5958_s1 + $0x348] sm:$0xf]  ;;  %v3481_v28 = vld [vmem:[%s5958_s1 + $0x354] sm:$0xf0] }
  0x2b   :  { %801 = vmatpush.bf16.msra.mxu3 %v2663_v8  ;;  %v2739_v4 = vor.u32 %v3487_v63, %v2736_v1  ;;  %v2718_v8 = vld [vmem:[%s5958_s1 + $0x368] sm:$0xf]  ;;  %v3451_v17 = vld [vmem:[%s5958_s1 + $0x26c] sm:$0xf]  ;;  %v2703_v31 = vor.u32 %v3481_v28, %v2702_v27  ;;  %v2576_v32 = vld [vmem:[%s5958_s1 + $0x258] sm:$0xf0] }
  0x2c   :  { %v3479_v33 = vld [vmem:[%s5958_s1 + $0x34c] sm:$0xf]  ;;  %v3445_v38 = vld [vmem:[%s5958_s1 + $0x234] sm:$0xf0]  ;;  %v2686_v39 = vld [vmem:[%s5958_s1 + $0x328] sm:$0xf] }
  0x2d   :  { %820 = vmatpush.bf16.msrb.mxu0 %v2539_v9  ;;  %v3485_v9 = vld [vmem:[%s5958_s1 + $0x374] sm:$0xf0]  ;;  %v3443_v43 = vld [vmem:[%s5958_s1 + $0x22c] sm:$0xf]  ;;  %v2560_v45 = vld [vmem:[%s5958_s1 + $0x238] sm:$0xf0] }
  0x2e   :  { %839 = vmatpush.bf16.msrb.mxu1 %v2667_v12  ;;  %851 = vmatpush.bf16.msrb.mxu2 %v2655_v18  ;;  %v2719_v16 = vor.u32 %v3485_v9, %v2718_v8  ;;  %v2592_v18 = vld [vmem:[%s5958_s1 + $0x278] sm:$0xf0]  ;;  %v3477_v42 = vld [vmem:[%s5958_s1 + $0x334] sm:$0xf0]  ;;  %v3475_v49 = vld [vmem:[%s5958_s1 + $0x32c] sm:$0xf] }
  0x2f   :  { %870 = vmatpush.bf16.msrb.mxu3 %v2783_v21  ;;  %v2595_v20 = vor.u32 %v3451_v17, %v2592_v18  ;;  %v3483_v21 = vld [vmem:[%s5958_s1 + $0x36c] sm:$0xf]  ;;  %v2688_v50 = vld [vmem:[%s5958_s1 + $0x338] sm:$0xf0]  ;;  %v3441_v55 = vld [vmem:[%s5958_s1 + $0x214] sm:$0xf0] }
  0x30   :  { %v2691_v54 = vor.u32 %v3475_v49, %v2688_v50  ;;  %v3439_v62 = vld [vmem:[%s5958_s1 + $0x20c] sm:$0xf]  ;;  %v2544_v1 = vld [vmem:[%s5958_s1 + $0x218] sm:$0xf0]  ;;  %v2902_v19 = vld [vmem:[%s5958_s1 + $0xe0] sm:$0xf] }
  0x31   :  { %889 = vmatpush.bf16.msra.mxu0 %v2659_v24  ;;  %v2723_v24 = vor.u32 %v3483_v21, %v2720_v22  ;;  %v3030_v21 = vld [vmem:[%s5958_s1 + $0x1e0] sm:$0xf]  ;;  %v3436_v23 = vld [vmem:[%s5958_s1 + $0x1ec] sm:$0xf0]  ;;  %v3016_v50 = vld [vmem:[%s5958_s1 + $0x1d0] sm:$0xf0] }
  0x32   :  { %908 = vmatpush.bf16.msra.mxu1 %v2787_v26  ;;  %852 = vmatpush.bf16.msrb.mxu2 %v2639_v30  ;;  %v3449_v26 = vld [vmem:[%s5958_s1 + $0x254] sm:$0xf0]  ;;  %v3031_v28 = vor.u32 %v3436_v23, %v3030_v21  ;;  %v3422_v21 = vld [vmem:[%s5958_s1 + $0x184] sm:$0xf] }
  0x33   :  { %871 = vmatpush.bf16.msrb.mxu3 %v2767_v34  ;;  %v2575_v30 = vor.u32 %v3449_v26, %v2574_v25  ;;  %v2704_v34 = vld [vmem:[%s5958_s1 + $0x358] sm:$0xf0]  ;;  %v2904_v25 = vld [vmem:[%s5958_s1 + $0xf0] sm:$0xf0] }
  0x34   :  { %v2707_v36 = vor.u32 %v3479_v33, %v2704_v34 }
  0x35   :  { %890 = vmatpush.bf16.msra.mxu0 %v2643_v37  ;;  %v2558_v37 = vld [vmem:[%s5958_s1 + $0x228] sm:$0xf] }
  0x36   :  { %909 = vmatpush.bf16.msra.mxu1 %v2771_v41  ;;  %853 = vmatpush.bf16.msrb.mxu2 %v2623_v47  ;;  %v2559_v41 = vor.u32 %v3445_v38, %v2558_v37  ;;  %v2687_v47 = vor.u32 %v3477_v42, %v2686_v39  ;;  %v3400_v37 = vld [vmem:[%s5958_s1 + $0xcc] sm:$0xf0]  ;;  %v3014_v38 = vld [vmem:[%s5958_s1 + $0x1c0] sm:$0xf] }
  0x37   :  { %872 = vmatpush.bf16.msrb.mxu3 %v2751_v48  ;;  %v2563_v48 = vor.u32 %v3443_v43, %v2560_v45  ;;  %v3432_v39 = vld [vmem:[%s5958_s1 + $0x1cc] sm:$0xf0]  ;;  %v3398_v45 = vld [vmem:[%s5958_s1 + $0xc4] sm:$0xf] }
  0x38   :  { %v3015_v43 = vor.u32 %v3432_v39, %v3014_v38  ;;  %v2840_v38 = vld [vmem:[%s5958_s1 + $0x70] sm:$0xf0] }
  0x39   :  { %891 = vmatpush.bf16.msra.mxu0 %v2627_v51  ;;  %v2542_v51 = vld [vmem:[%s5958_s1 + $0x208] sm:$0xf] }
  0x3a   :  { %910 = vmatpush.bf16.msra.mxu1 %v2755_v53  ;;  %854 = vmatpush.bf16.msrb.mxu2 %v2607_v57  ;;  %v3473_v57 = vld [vmem:[%s5958_s1 + $0x314] sm:$0xf0]  ;;  %v2543_v63 = vor.u32 %v3441_v55, %v2542_v51  ;;  %v2870_v51 = vld [vmem:[%s5958_s1 + $0xa0] sm:$0xf] }
  0x3b   :  { %873 = vmatpush.bf16.msrb.mxu3 %v2735_v61  ;;  %v2998_v55 = vld [vmem:[%s5958_s1 + $0x1a0] sm:$0xf]  ;;  %v3426_v61 = vld [vmem:[%s5958_s1 + $0x1a4] sm:$0xf] }
  0x3d   :  { %892 = vmatpush.bf16.msra.mxu0 %v2611_v0 }
  0x3e   :  { %911 = vmatpush.bf16.msra.mxu1 %v2739_v4  ;;  %855 = vmatpush.bf16.msrb.mxu2 %v2591_v15  ;;  %v2672_v4 = vld [vmem:[%s5958_s1 + $0x318] sm:$0xf0] }
  0x3f   :  { %874 = vmatpush.bf16.msrb.mxu3 %v2719_v16  ;;  %v2547_v16 = vor.u32 %v3439_v62, %v2544_v1  ;;  %v3000_v62 = vld [vmem:[%s5958_s1 + $0x1b0] sm:$0xf0]  ;;  %v2854_v1 = vld [vmem:[%s5958_s1 + $0x80] sm:$0xf] }
  0x41   :  { %893 = vmatpush.bf16.msra.mxu0 %v2595_v20  ;;  %v3404_v20 = vld [vmem:[%s5958_s1 + $0xec] sm:$0xf0] }
  0x42   :  { %912 = vmatpush.bf16.msra.mxu1 %v2723_v24  ;;  %856 = vmatpush.bf16.msrb.mxu2 %v2575_v30  ;;  %v2903_v22 = vor.u32 %v3404_v20, %v2902_v19  ;;  %v3402_v24 = vld [vmem:[%s5958_s1 + $0xe4] sm:$0xf]  ;;  %v2856_v20 = vld [vmem:[%s5958_s1 + $0x90] sm:$0xf0] }
  0x43   :  { %875 = vmatpush.bf16.msrb.mxu3 %v2703_v31  ;;  %v3434_v30 = vld [vmem:[%s5958_s1 + $0x1e4] sm:$0xf]  ;;  %v3032_v31 = vld [vmem:[%s5958_s1 + $0x1f0] sm:$0xf0] }
  0x46   :  { %913 = vmatpush.bf16.msra.mxu1 %v2707_v36  ;;  %857 = vmatpush.bf16.msrb.mxu2 %v2559_v41  ;;  %v3035_v36 = vor.u32 %v3434_v30, %v3032_v31 }
  0x47   :  { %876 = vmatpush.bf16.msrb.mxu3 %v2687_v47  ;;  %v3430_v47 = vld [vmem:[%s5958_s1 + $0x1c4] sm:$0xf] }
  0x4a   :  { %914 = vmatpush.bf16.msra.mxu1 %v2691_v54  ;;  %858 = vmatpush.bf16.msrb.mxu2 %v2543_v63  ;;  %v3019_v54 = vor.u32 %v3430_v47, %v3016_v50  ;;  %v3384_v47 = vld [vmem:[%s5958_s1 + $0x4c] sm:$0xf0] }
  0x4b   :  { %v3416_v50 = vld [vmem:[%s5958_s1 + $0x14c] sm:$0xf0] }
  0x63   :  { %v276_v29 = vpop.permute.xlu2 %275 }
  0x64   :  { %vm286_vm9 = vcmp.eq.s32.totalorder %v276_v29, 1  ;;  %v3447_v29 = vld [vmem:[%s5958_s1 + $0x24c] sm:$0xf] }
  0x65   :  { %vm4035_vm12 = vmpackc.low %vm286_vm9, %vm286_vm9  ;;  %v2579_v35 = vor.u32 %v3447_v29, %v2576_v32  ;;  %v2907_v29 = vor.u32 %v3402_v24, %v2904_v25  ;;  %v2886_v32 = vld [vmem:[%s5958_s1 + $0xc0] sm:$0xf] }
  0x66   :  { %v294_v59 = vsel %vm4035_vm12, 65537, %v3606_v3  ;;  %v2887_v42 = vor.u32 %v3400_v37, %v2886_v32  ;;  %v2838_v32 = vld [vmem:[%s5958_s1 + $0x60] sm:$0xf]  ;;  %v3386_v37 = vld [vmem:[%s5958_s1 + $0x64] sm:$0xf]  ;;  %vm198_vm12 = vcmask 1047552  }
  0x67   :  { %894 = vmatpush.bf16.msra.mxu0 %v2579_v35  ;;  %v298_v9 = vunpack.c.l.b16 %v294_v59 }
  0x69   :  { %v2464_v33 = vunpack.i.l.s16 %v298_v9 }
  0x6b   :  { %895 = vmatpush.bf16.msra.mxu0 %v2563_v48  ;;  %v4207_v48 = vunpack.c.l.b16 %v3606_v3 }
  0x6d   :  { %v279_v56 = vpop.permute.xlu2 %278  ;;  %vm308_vm1 = vcmp.ne.s32.totalorder %v2464_v33, %v4207_v48  ;;  %v3388_v33 = vld [vmem:[%s5958_s1 + $0x6c] sm:$0xf0] }
  0x6e   :  { %vm287_vm10 = vcmp.eq.s32.totalorder %v279_v56, 1  ;;  %v2670_v56 = vld [vmem:[%s5958_s1 + $0x308] sm:$0xf] }
  0x6f   :  { %vm4047_vm13 = vmpackc.low %vm287_vm10, %vm287_vm10  ;;  %v2671_v0 = vor.u32 %v3473_v57, %v2670_v56  ;;  %896 = vmatpush.bf16.msra.mxu0 %v2547_v16  ;;  %v3428_v56 = vld [vmem:[%s5958_s1 + $0x1ac] sm:$0xf0]  ;;  %v3394_v57 = vld [vmem:[%s5958_s1 + $0xa4] sm:$0xf] }
  0x70   :  { %v295_v60 = vsel %vm4047_vm13, 65537, %v3606_v3  ;;  %v3390_v16 = vld [vmem:[%s5958_s1 + $0x84] sm:$0xf] }
  0x71   :  { %v299_v18 = vunpack.c.l.b16 %v295_v60  ;;  %877 = vmatpush.bf16.msrb.mxu3 %v2671_v0  ;;  %v2872_v60 = vld [vmem:[%s5958_s1 + $0xb0] sm:$0xf0]  ;;  %v2999_v0 = vor.u32 %v3428_v56, %v2998_v55  ;;  %v2859_v30 = vor.u32 %v3390_v16, %v2856_v20  ;;  %v3414_v56 = vld [vmem:[%s5958_s1 + $0x144] sm:$0xf]  ;;  %v3408_v16 = vld [vmem:[%s5958_s1 + $0x10c] sm:$0xf0] }
  0x72   :  { %v2824_v55 = vld [vmem:[%s5958_s1 + $0x50] sm:$0xf0] }
  0x73   :  { %v2465_v41 = vunpack.i.l.s16 %v299_v18 }
  0x79   :  { %v3919_v14 = vpop.permute.xlu1 %221 }
  0x7b   :  { %v3917_v13 = vpop.permute.xlu0 %215 }
  0x7c   :  { %vm226_vm8 = vcmp.eq.s32.totalorder %v3917_v13, 1 }
  0x7d   :  { %vm230_vm9 = vmpackc.low %vm226_vm8, %vm226_vm8 }
  0x81   :  { %v3972_v40 = vpop.permute.xlu1 %224 }
  0x83   :  { %v3980_v44 = vpop.permute.xlu0 %218 }
  0x84   :  { %vm227_vm10 = vcmp.eq.s32.totalorder %v3980_v44, 1 }
  0x85   :  { %vm4421_vm13 = vmpackc.low %vm227_vm10, %vm227_vm10 }
  0x89   :  { %v285_v2 = vpop.permute.xlu1 %284 }
  0x8a   :  { %vm289_vm11 = vcmp.eq.s32.totalorder %v285_v2, 1  ;;  %v3471_v2 = vld [vmem:[%s5958_s1 + $0x30c] sm:$0xf] }
  0x8b   :  { %v282_v7 = vpop.permute.xlu0 %281  ;;  %vm4059_vm14 = vmpackc.low %vm289_vm11, %vm289_vm11  ;;  %v2675_v17 = vor.u32 %v3471_v2, %v2672_v4  ;;  %v2875_v4 = vor.u32 %v3394_v57, %v2872_v60  ;;  %v2952_v57 = vld [vmem:[%s5958_s1 + $0x150] sm:$0xf0]  ;;  %v2934_v60 = vld [vmem:[%s5958_s1 + $0x120] sm:$0xf]  ;;  %vm183_vm11 = vsmask.f32 7424 }
  0x8c   :  { %vm288_vm15 = vcmp.eq.s32.totalorder %v282_v7, 1 }
  0x8d   :  { %v95_v10 = vpop.f32.mrf.mxu0  ;;  %v114_v11 = vpop.f32.mrf.mxu1  ;;  %vm4131_vm0 = vmpackc.low %vm288_vm15, %vm288_vm15  ;;  %915 = vmatpush.bf16.msra.mxu1 %v2675_v17  ;;  %vm229_vm15 = vcmp.eq.s32.totalorder %v3972_v40, 1 }
  0x8e   :  { %v124_v46 = vpack.c.bf16 %v114_v11, %v95_v10  ;;  %v297_v10 = vsel %vm4059_vm14, 65537, %v3606_v3  ;;  %v296_v11 = vsel %vm4131_vm0, 65537, %v3606_v3  ;;  %vm228_vm14 = vcmp.eq.s32.totalorder %v3919_v14, 1  ;;  %vm4523_vm0 = vmand %vm198_vm12, %vm183_vm11 }
  0x8f   :  { %v301_v34 = vunpack.c.l.b16 %v297_v10  ;;  %v300_v35 = vunpack.c.l.b16 %v296_v11 }
  0x90   :  { %v132_v5 = vunpack.c.l.b16 %v124_v46  ;;  %v133_v6 = vunpack.c.h.b16 %v124_v46  ;;  %v2888_v46 = vld [vmem:[%s5958_s1 + $0xd0] sm:$0xf0] }
  0x91   :  { %v2891_v49 = vor.u32 %v3398_v45, %v2888_v46  ;;  %v2466_v59 = vunpack.i.l.s16 %v300_v35  ;;  %v2839_v35 = vor.u32 %v3388_v33, %v2838_v32  ;;  %v2843_v45 = vor.u32 %v3386_v37, %v2840_v38  ;;  %v2920_v32 = vld [vmem:[%s5958_s1 + $0x110] sm:$0xf0] }
  0x93   :  { %vm315_vm5 = vcmp.ne.s32.totalorder %v2466_v59, %v4207_v48  ;;  %v3380_v59 = vld [vmem:[%s5958_s1 + $0x2c] sm:$0xf0] }
  0x95   :  { %v97_v52 = vpop.f32.mrf.mxu0  ;;  %v116_v53 = vpop.f32.mrf.mxu1 }
  0x96   :  { %v125_v58 = vpack.c.bf16 %v116_v53, %v97_v52  ;;  %v3396_v52 = vld [vmem:[%s5958_s1 + $0xac] sm:$0xf0]  ;;  %v4219_v53 = vunpack.c.h.b16 %v3606_v3 }
  0x97   :  { %v2871_v63 = vor.u32 %v3396_v52, %v2870_v51 }
  0x98   :  { %v134_v7 = vunpack.c.l.b16 %v125_v58  ;;  %v135_v8 = vunpack.c.h.b16 %v125_v58  ;;  %v2467_v58 = vunpack.i.l.s16 %v301_v34  ;;  %vm309_vm2 = vcmp.ne.s32.totalorder %v2465_v41, %v4219_v53  ;;  %v2966_v34 = vld [vmem:[%s5958_s1 + $0x160] sm:$0xf]  ;;  %v3418_v41 = vld [vmem:[%s5958_s1 + $0x164] sm:$0xf] }
  0x99   :  { %vm4262_vm6 = vmpackc.low %vm309_vm2, %vm308_vm1  ;;  %vm144_vm1 = vsmask.f32 256  ;;  %vm179_vm2 = vcmask 1040384  }
  0x9a   :  { %v4153_v12 = vpack.c.b16 %v134_v7, %v132_v5  ;;  %v4155_v15 = vpack.c.b16 %v135_v8, %v133_v6  ;;  %v3003_v5 = vor.u32 %v3426_v61, %v3000_v62  ;;  %v3392_v6 = vld [vmem:[%s5958_s1 + $0x8c] sm:$0xf0]  ;;  %v2982_v7 = vld [vmem:[%s5958_s1 + $0x180] sm:$0xf]  ;;  %vm316_vm3 = vcmp.ne.s32.totalorder %v2467_v58, %v4219_v53 }
  0x9b   :  { %v3424_v8 = vld [vmem:[%s5958_s1 + $0x18c] sm:$0xf0]  ;;  %v2855_v18 = vor.u32 %v3392_v6, %v2854_v1  ;;  %vm4279_vm7 = vmpackc.low %vm316_vm3, %vm315_vm5  ;;  %v2806_v58 = vld [vmem:[%s5958_s1 + $0x20] sm:$0xf]  ;;  %v2955_v1 = vor.u32 %v3414_v56, %v2952_v57 }
  0x9c   :  { %783 = vmatmul.bf16.vlgmr.msra.gmra.mxu2 %v4153_v12  ;;  %802 = vmatmul.bf16.vlgmr.msra.gmra.mxu3 %v4155_v15  ;;  %v2983_v19 = vor.u32 %v3424_v8, %v2982_v7  ;;  %v3412_v61 = vld [vmem:[%s5958_s1 + $0x12c] sm:$0xf0]  ;;  %v149_v62 = vshll.u32 %v4153_v12, 16  ;;  %v3410_v7 = vld [vmem:[%s5958_s1 + $0x124] sm:$0xf]  ;;  %vm4567_vm3 = vmpackc.low %vm228_vm14, %vm228_vm14 }
  0x9d   :  { %821 = vmatmul.bf16.vlgmr.msrb.gmra.mxu0 %v4153_v12  ;;  %840 = vmatmul.bf16.vlgmr.msrb.gmra.mxu1 %v4155_v15  ;;  %v100_v26 = vpop.f32.mrf.mxu0  ;;  %v119_v27 = vpop.f32.mrf.mxu1  ;;  %v2935_v6 = vor.u32 %v3412_v61, %v2934_v60  ;;  %v2936_v8 = vld [vmem:[%s5958_s1 + $0x130] sm:$0xf0]  ;;  %v2912_v56 = vld [vmem:[%s5958_s1 + $0xf8] sm:$0xf0]  ;;  %v2894_v61 = vld [vmem:[%s5958_s1 + $0xc8] sm:$0xf] }
  0x9e   :  { %1247 = vmatpush.bf16.msra.mxu2 %v2903_v22  ;;  %1266 = vmatpush.bf16.msra.mxu3 %v3031_v28  ;;  %v126_v2 = vpack.c.bf16 %v119_v27, %v100_v26  ;;  %v2984_v22 = vld [vmem:[%s5958_s1 + $0x190] sm:$0xf0]  ;;  %v3040_v60 = vld [vmem:[%s5958_s1 + $0x1f8] sm:$0xf0]  ;;  %vm4574_vm5 = vmpackc.low %vm229_vm15, %vm229_vm15 }
  0x9f   :  { %1285 = vmatpush.bf16.msrb.mxu0 %v2907_v29  ;;  %1304 = vmatpush.bf16.msrb.mxu1 %v3035_v36  ;;  %v2987_v31 = vor.u32 %v3422_v21, %v2984_v22  ;;  %v3420_v36 = vld [vmem:[%s5958_s1 + $0x16c] sm:$0xf0]  ;;  %v2939_v21 = vor.u32 %v3410_v7, %v2936_v8  ;;  %v3374_v22 = vld [vmem:[%s5958_s1 + $0x4] sm:$0xf]  ;;  %v3399_v7 = vld [vmem:[%s5958_s1 + $0xcc] sm:$0xf] }
  0xa0   :  { %v136_v23 = vunpack.c.l.b16 %v126_v2  ;;  %v137_v24 = vunpack.c.h.b16 %v126_v2  ;;  %v2967_v39 = vor.u32 %v3420_v36, %v2966_v34  ;;  %v3378_v2 = vld [vmem:[%s5958_s1 + $0x24] sm:$0xf]  ;;  %v2896_v8 = vld [vmem:[%s5958_s1 + $0xd8] sm:$0xf0] }
  0xa2   :  { %1248 = vmatpush.bf16.msra.mxu2 %v2887_v42  ;;  %1267 = vmatpush.bf16.msra.mxu3 %v3015_v43  ;;  %v2968_v42 = vld [vmem:[%s5958_s1 + $0x170] sm:$0xf0]  ;;  %v2822_v43 = vld [vmem:[%s5958_s1 + $0x40] sm:$0xf] }
  0xa3   :  { %1286 = vmatpush.bf16.msrb.mxu0 %v2891_v49  ;;  %1305 = vmatpush.bf16.msrb.mxu1 %v3019_v54  ;;  %v2971_v46 = vor.u32 %v3418_v41, %v2968_v42  ;;  %v2950_v49 = vld [vmem:[%s5958_s1 + $0x140] sm:$0xf]  ;;  %v2823_v51 = vor.u32 %v3384_v47, %v2822_v43  ;;  %v3382_v54 = vld [vmem:[%s5958_s1 + $0x44] sm:$0xf]  ;;  %v4413_v41 = vsel %vm230_vm9, 65537, %v3606_v3 }
  0xa4   :  { %v2951_v52 = vor.u32 %v3416_v50, %v2950_v49  ;;  %v2910_v50 = vld [vmem:[%s5958_s1 + $0xe8] sm:$0xf] }
  0xa5   :  { %v102_v9 = vpop.f32.mrf.mxu0  ;;  %v121_v10 = vpop.f32.mrf.mxu1 }
  0xa6   :  { %v127_v11 = vpack.c.bf16 %v121_v10, %v102_v9  ;;  %1249 = vmatpush.bf16.msra.mxu2 %v2871_v63  ;;  %1268 = vmatpush.bf16.msra.mxu3 %v2999_v0  ;;  %v156_v63 = vshll.u32 %v4155_v15, 16  ;;  %v2827_v0 = vor.u32 %v3382_v54, %v2824_v55  ;;  %v2790_v9 = vld [vmem:[%s5958_s1] sm:$0xf]  ;;  %v3376_v10 = vld [vmem:[%s5958_s1 + $0xc] sm:$0xf0] }
  0xa7   :  { %1287 = vmatpush.bf16.msrb.mxu0 %v2875_v4  ;;  %1306 = vmatpush.bf16.msrb.mxu1 %v3003_v5  ;;  %v2808_v4 = vld [vmem:[%s5958_s1 + $0x30] sm:$0xf0]  ;;  %v2807_v5 = vor.u32 %v3380_v59, %v2806_v58  ;;  %v3437_v54 = vld [vmem:[%s5958_s1 + $0x1f4] sm:$0xf0]  ;;  %v3403_v55 = vld [vmem:[%s5958_s1 + $0xec] sm:$0xf] }
  0xa8   :  { %v138_v25 = vunpack.c.l.b16 %v127_v11  ;;  %v139_v26 = vunpack.c.h.b16 %v127_v11  ;;  %v2918_v11 = vld [vmem:[%s5958_s1 + $0x100] sm:$0xf]  ;;  %v2811_v20 = vor.u32 %v3378_v2, %v2808_v4  ;;  %v2915_v58 = vor.u32 %v3403_v55, %v2912_v56  ;;  %v3435_v59 = vld [vmem:[%s5958_s1 + $0x1ec] sm:$0xf]  ;;  %v3022_v2 = vld [vmem:[%s5958_s1 + $0x1c8] sm:$0xf] }
  0xa9   :  { %v3433_v4 = vld [vmem:[%s5958_s1 + $0x1d4] sm:$0xf0]  ;;  %v2992_v55 = vld [vmem:[%s5958_s1 + $0x198] sm:$0xf0] }
  0xaa   :  { %v4283_v28 = vpack.c.b16 %v138_v25, %v136_v23  ;;  %v4285_v29 = vpack.c.b16 %v139_v26, %v137_v24  ;;  %1250 = vmatpush.bf16.msra.mxu2 %v2855_v18  ;;  %1269 = vmatpush.bf16.msra.mxu3 %v2983_v19  ;;  %v184_v18 = vrot.slane %v149_v62, 1  ;;  %v188_v19 = vrot.slane %v156_v63, 1  ;;  %v2792_v23 = vld [vmem:[%s5958_s1 + $0x10] sm:$0xf0] }
  0xab   :  { %1288 = vmatpush.bf16.msrb.mxu0 %v2859_v30  ;;  %1307 = vmatpush.bf16.msrb.mxu1 %v2987_v31  ;;  %v146_v24 = vshrl.u32 %v4153_v12, 16  ;;  %v153_v25 = vshrl.u32 %v4155_v15, 16  ;;  %v2791_v26 = vor.u32 %v3376_v10, %v2790_v9  ;;  %v2919_v30 = vor.u32 %v3408_v16, %v2918_v11  ;;  %v3406_v31 = vld [vmem:[%s5958_s1 + $0x104] sm:$0xf]  ;;  %v3431_v9 = vld [vmem:[%s5958_s1 + $0x1cc] sm:$0xf] }
  0xac   :  { %788 = vmatmul.bf16.gmra.mxu2 %v4283_v28  ;;  %807 = vmatmul.bf16.gmra.mxu3 %v4285_v29  ;;  %v163_v33 = vshll.u32 %v4283_v28, 16  ;;  %v171_v34 = vshll.u32 %v4285_v29, 16  ;;  %v2795_v13 = vor.u32 %v3374_v22, %v2792_v23  ;;  %v168_v47 = vshrl.u32 %v4285_v29, 16  ;;  %v3024_v11 = vld [vmem:[%s5958_s1 + $0x1d8] sm:$0xf0] }
  0xad   :  { %826 = vmatmul.bf16.gmra.mxu0 %v4283_v28  ;;  %845 = vmatmul.bf16.gmra.mxu1 %v4285_v29  ;;  %v189_v37 = vor.u32 %v188_v19, %v153_v25  ;;  %v2899_v10 = vor.u32 %v3399_v7, %v2896_v8  ;;  %v2878_v16 = vld [vmem:[%s5958_s1 + $0xa8] sm:$0xf]  ;;  %v3027_v19 = vor.u32 %v3431_v9, %v3024_v11  ;;  %v3395_v22 = vld [vmem:[%s5958_s1 + $0xac] sm:$0xf]  ;;  %v4582_v14 = vrot.slane %v146_v24, 7 }
  0xae   :  { %1251 = vmatpush.bf16.msra.mxu2 %v2839_v35  ;;  %1270 = vmatpush.bf16.msra.mxu3 %v2967_v39  ;;  %v185_v35 = vor.u32 %v184_v18, %v146_v24  ;;  %v4406_v36 = vrot.slane %v163_v33, 1  ;;  %v190_v38 = vrot.slane %v171_v34, 1  ;;  %v2923_v39 = vor.u32 %v3406_v31, %v2920_v32  ;;  %v3397_v18 = vld [vmem:[%s5958_s1 + $0xb4] sm:$0xf0]  ;;  %v3008_v31 = vld [vmem:[%s5958_s1 + $0x1b8] sm:$0xf0] }
  0xaf   :  { %1289 = vmatpush.bf16.msrb.mxu0 %v2843_v45  ;;  %1308 = vmatpush.bf16.msrb.mxu1 %v2971_v46  ;;  %v160_v46 = vshrl.u32 %v4283_v28, 16  ;;  %v2879_v23 = vor.u32 %v3397_v18, %v2878_v16  ;;  %v2990_v45 = vld [vmem:[%s5958_s1 + $0x188] sm:$0xf]  ;;  %v4592_v40 = vrot.slane %v153_v25, 7  ;;  %v3421_v8 = vld [vmem:[%s5958_s1 + $0x174] sm:$0xf0] }
  0xb0   :  { %v187_v42 = vsel %vm183_vm11, %v185_v35, %v4406_v36  ;;  %v191_v43 = vsel %vm183_vm11, %v189_v37, %v190_v38  ;;  %v193_v35 = vor.u32 %v190_v38, %v168_v47  ;;  %v235_v37 = vsel %vm4421_vm13, 65537, %v3606_v3  ;;  %v2862_v38 = vld [vmem:[%s5958_s1 + $0x88] sm:$0xf]  ;;  %v3387_v9 = vld [vmem:[%s5958_s1 + $0x6c] sm:$0xf] }
  0xb1   :  { %v4431_v49 = vsel %vm4262_vm6, %v187_v42, 0  ;;  %v4435_v44 = vsel %vm4262_vm6, %v191_v43, 0  ;;  %v192_v32 = vor.u32 %v4406_v36, %v160_v46  ;;  %v3393_v43 = vld [vmem:[%s5958_s1 + $0x94] sm:$0xf0]  ;;  %vm4586_vm6 = vmand %vm179_vm2, %vm144_vm1  ;;  %v2846_v24 = vld [vmem:[%s5958_s1 + $0x68] sm:$0xf] }
  0xb2   :  { %1252 = vmatpush.bf16.msra.mxu2 %v2823_v51  ;;  %1271 = vmatpush.bf16.msra.mxu3 %v2951_v52  ;;  %v3405_v51 = vld [vmem:[%s5958_s1 + $0xf4] sm:$0xf0]  ;;  %v3038_v52 = vld [vmem:[%s5958_s1 + $0x1e8] sm:$0xf] }
  0xb3   :  { %1290 = vmatpush.bf16.msrb.mxu0 %v2827_v0  ;;  %1309 = vmatpush.bf16.msrb.mxu1 %v2955_v1  ;;  %v2911_v17 = vor.u32 %v3405_v51, %v2910_v50  ;;  %v3039_v57 = vor.u32 %v3437_v54, %v3038_v52  ;;  %v3043_v0 = vor.u32 %v3435_v59, %v3040_v60  ;;  %v3401_v1 = vld [vmem:[%s5958_s1 + $0xd4] sm:$0xf0]  ;;  %v3391_v51 = vld [vmem:[%s5958_s1 + $0x8c] sm:$0xf]  ;;  %v2864_v52 = vld [vmem:[%s5958_s1 + $0x98] sm:$0xf0] }
  0xb4   :  { %v3425_v50 = vld [vmem:[%s5958_s1 + $0x194] sm:$0xf0]  ;;  %v3423_v54 = vld [vmem:[%s5958_s1 + $0x18c] sm:$0xf]  ;;  %v200_v56 = vsel %vm4523_vm0, %v192_v32, 0  ;;  %v2863_v60 = vor.u32 %v3393_v43, %v2862_v38  ;;  %v2867_v27 = vor.u32 %v3391_v51, %v2864_v52 }
  0xb5   :  { %v2974_v7 = vld [vmem:[%s5958_s1 + $0x168] sm:$0xf]  ;;  %v3383_v32 = vld [vmem:[%s5958_s1 + $0x4c] sm:$0xf]  ;;  %v3413_v43 = vld [vmem:[%s5958_s1 + $0x134] sm:$0xf0] }
  0xb6   :  { %1253 = vmatpush.bf16.msra.mxu2 %v2807_v5  ;;  %1272 = vmatpush.bf16.msra.mxu3 %v2935_v6  ;;  %v2895_v5 = vor.u32 %v3401_v1, %v2894_v61  ;;  %v3023_v6 = vor.u32 %v3433_v4, %v3022_v2  ;;  %v2991_v61 = vor.u32 %v3425_v50, %v2990_v45  ;;  %v2814_v42 = vld [vmem:[%s5958_s1 + $0x28] sm:$0xf]  ;;  %v3379_v45 = vld [vmem:[%s5958_s1 + $0x2c] sm:$0xf]  ;;  %v2816_v50 = vld [vmem:[%s5958_s1 + $0x38] sm:$0xf0] }
  0xb7   :  { %1291 = vmatpush.bf16.msrb.mxu0 %v2811_v20  ;;  %1310 = vmatpush.bf16.msrb.mxu1 %v2939_v21  ;;  %v3006_v20 = vld [vmem:[%s5958_s1 + $0x1a8] sm:$0xf]  ;;  %v3429_v21 = vld [vmem:[%s5958_s1 + $0x1b4] sm:$0xf0]  ;;  %v2995_v2 = vor.u32 %v3423_v54, %v2992_v55  ;;  %v2975_v16 = vor.u32 %v3421_v8, %v2974_v7  ;;  %v3411_v51 = vld [vmem:[%s5958_s1 + $0x12c] sm:$0xf] }
  0xb8   :  { %v2942_v38 = vld [vmem:[%s5958_s1 + $0x128] sm:$0xf]  ;;  %v2944_v52 = vld [vmem:[%s5958_s1 + $0x138] sm:$0xf0]  ;;  %v237_v54 = vsel %vm4574_vm5, 65537, %v3606_v3 }
  0xb9   :  { %v2947_v1 = vor.u32 %v3411_v51, %v2944_v52  ;;  %v3375_v4 = vld [vmem:[%s5958_s1 + $0xc] sm:$0xf]  ;;  %v3336_v52 = vld [vmem:[%s5958_s1 + $0x5d0] sm:$0xf0] }
  0xba   :  { %1254 = vmatpush.bf16.msra.mxu2 %v2791_v26  ;;  %1273 = vmatpush.bf16.msra.mxu3 %v2919_v30  ;;  %v2880_v26 = vld [vmem:[%s5958_s1 + $0xb8] sm:$0xf0]  ;;  %v3427_v30 = vld [vmem:[%s5958_s1 + $0x1ac] sm:$0xf] }
  0xbb   :  { %1292 = vmatpush.bf16.msrb.mxu0 %v2795_v13  ;;  %1311 = vmatpush.bf16.msrb.mxu1 %v2923_v39  ;;  %v3007_v13 = vor.u32 %v3429_v21, %v3006_v20  ;;  %v2883_v39 = vor.u32 %v3395_v22, %v2880_v26  ;;  %v3011_v36 = vor.u32 %v3427_v30, %v3008_v31  ;;  %v2976_v20 = vld [vmem:[%s5958_s1 + $0x178] sm:$0xf0]  ;;  %v2830_v21 = vld [vmem:[%s5958_s1 + $0x48] sm:$0xf]  ;;  %v3417_v30 = vld [vmem:[%s5958_s1 + $0x154] sm:$0xf0] }
  0xbc   :  { %859 = vmatmul.bf16.vlgmr.msrb.gmra.mxu2 %v4153_v12  ;;  %878 = vmatmul.bf16.vlgmr.msrb.gmra.mxu3 %v4155_v15  ;;  %v2958_v26 = vld [vmem:[%s5958_s1 + $0x148] sm:$0xf]  ;;  %v151_v31 = vor.u32 %v149_v62, %v4582_v14 }
  0xbd   :  { %897 = vmatmul.bf16.vlgmr.msra.gmra.mxu0 %v4153_v12  ;;  %916 = vmatmul.bf16.vlgmr.msra.gmra.mxu1 %v4155_v15  ;;  %v2959_v62 = vor.u32 %v3417_v30, %v2958_v26  ;;  %v3530_v26 = vld [vmem:[%s5958_s1 + $0x4e4] sm:$0xf]  ;;  %v3224_v30 = vld [vmem:[%s5958_s1 + $0x4f0] sm:$0xf0] }
  0xbe   :  { %1323 = vmatpush.bf16.msrb.mxu2 %v2911_v17  ;;  %1342 = vmatpush.bf16.msrb.mxu3 %v3039_v57  ;;  %v238_v17 = vunpack.c.l.b16 %v4413_v41  ;;  %v201_v57 = vsel %vm4523_vm0, %v193_v35, 0  ;;  %v4558_v41 = vsel %vm4279_vm7, %v200_v56, 0  ;;  %v2832_v35 = vld [vmem:[%s5958_s1 + $0x58] sm:$0xf0]  ;;  %v181_v55 = vsel %vm4586_vm6, 0, %v151_v31 }
  0xbf   :  { %1361 = vmatpush.bf16.msra.mxu0 %v2915_v58  ;;  %1380 = vmatpush.bf16.msra.mxu1 %v3043_v0  ;;  %v4562_v58 = vsel %vm4279_vm7, %v201_v57, 0  ;;  %v239_v0 = vunpack.c.l.b16 %v235_v37  ;;  %v3415_v37 = vld [vmem:[%s5958_s1 + $0x14c] sm:$0xf]  ;;  %v2835_v15 = vor.u32 %v3383_v32, %v2832_v35  ;;  %v3318_v56 = vld [vmem:[%s5958_s1 + $0x5a0] sm:$0xf] }
  0xc1   :  { %v2461_v11 = vunpack.i.l.s16 %v239_v0  ;;  %v2819_v0 = vor.u32 %v3379_v45, %v2816_v50  ;;  %v3208_v45 = vld [vmem:[%s5958_s1 + $0x4d0] sm:$0xf0]  ;;  %v3558_v50 = vld [vmem:[%s5958_s1 + $0x5c4] sm:$0xf] }
  0xc2   :  { %1324 = vmatpush.bf16.msrb.mxu2 %v2895_v5  ;;  %1343 = vmatpush.bf16.msrb.mxu3 %v3023_v6  ;;  %v2460_v5 = vunpack.i.l.s16 %v238_v17  ;;  %v3389_v6 = vld [vmem:[%s5958_s1 + $0x74] sm:$0xf0]  ;;  %v236_v17 = vsel %vm4567_vm3, 65537, %v3606_v3  ;;  %v2798_v3 = vld [vmem:[%s5958_s1 + $0x8] sm:$0xf] }
  0xc3   :  { %1362 = vmatpush.bf16.msra.mxu0 %v2899_v10  ;;  %1381 = vmatpush.bf16.msra.mxu1 %v3027_v19  ;;  %v2847_v25 = vor.u32 %v3389_v6, %v2846_v24  ;;  %v2848_v10 = vld [vmem:[%s5958_s1 + $0x78] sm:$0xf0]  ;;  %v3419_v19 = vld [vmem:[%s5958_s1 + $0x16c] sm:$0xf]  ;;  %vm249_vm8 = vcmp.ne.s32.totalorder %v2461_v11, %v4219_v53  ;;  %v240_v7 = vunpack.c.l.b16 %v236_v17  ;;  %v3190_v17 = vld [vmem:[%s5958_s1 + $0x4a0] sm:$0xf] }
  0xc4   :  { %v2851_v18 = vor.u32 %v3387_v9, %v2848_v10  ;;  %v2979_v22 = vor.u32 %v3419_v19, %v2976_v20  ;;  %vm248_vm7 = vcmp.ne.s32.totalorder %v2460_v5, %v4207_v48  ;;  %v2800_v5 = vld [vmem:[%s5958_s1 + $0x18] sm:$0xf0]  ;;  %v3407_v24 = vld [vmem:[%s5958_s1 + $0x10c] sm:$0xf]  ;;  %v162_v19 = vrot.slane %v160_v46, 7 }
  0xc5   :  { %vm4686_vm9 = vmpackc.low %vm249_vm8, %vm248_vm7  ;;  %v2928_v6 = vld [vmem:[%s5958_s1 + $0x118] sm:$0xf0]  ;;  %v170_v20 = vrot.slane %v168_v47, 7  ;;  %v3564_v47 = vld [vmem:[%s5958_s1 + $0x5ec] sm:$0xf0]  ;;  %v2462_v31 = vunpack.i.l.s16 %v240_v7 }
  0xc6   :  { %1325 = vmatpush.bf16.msrb.mxu2 %v2879_v23  ;;  %1344 = vmatpush.bf16.msrb.mxu3 %v3007_v13  ;;  %v3385_v23 = vld [vmem:[%s5958_s1 + $0x54] sm:$0xf0]  ;;  %v158_v13 = vor.u32 %v156_v63, %v4592_v40  ;;  %v4718_v10 = vsel %vm4686_vm9, %v181_v55, 0  ;;  %v3339_v55 = vor.u32 %v3558_v50, %v3336_v52  ;;  %v3176_v7 = vld [vmem:[%s5958_s1 + $0x490] sm:$0xf0] }
  0xc7   :  { %1363 = vmatpush.bf16.msra.mxu0 %v2883_v39  ;;  %1382 = vmatpush.bf16.msra.mxu1 %v3011_v36  ;;  %v2831_v12 = vor.u32 %v3385_v23, %v2830_v21  ;;  %v2960_v39 = vld [vmem:[%s5958_s1 + $0x158] sm:$0xf0]  ;;  %v3381_v36 = vld [vmem:[%s5958_s1 + $0x34] sm:$0xf0]  ;;  %v3222_v21 = vld [vmem:[%s5958_s1 + $0x4e0] sm:$0xf]  ;;  %vm255_vm10 = vcmp.ne.s32.totalorder %v2462_v31, %v4207_v48 }
  0xc8   :  { %v2963_v63 = vor.u32 %v3415_v37, %v2960_v39  ;;  %v182_v57 = vsel %vm4586_vm6, 0, %v158_v13  ;;  %v2815_v59 = vor.u32 %v3381_v36, %v2814_v42  ;;  %v3350_v23 = vld [vmem:[%s5958_s1 + $0x5e0] sm:$0xf]  ;;  %v3227_v37 = vor.u32 %v3530_v26, %v3224_v30  ;;  %v3562_v13 = vld [vmem:[%s5958_s1 + $0x5e4] sm:$0xf] }
  0xc9   :  { %v4722_v11 = vsel %vm4686_vm9, %v182_v57, 0  ;;  %v3351_v35 = vor.u32 %v3564_v47, %v3350_v23  ;;  %v3528_v42 = vld [vmem:[%s5958_s1 + $0x4cc] sm:$0xf0]  ;;  %v3334_v36 = vld [vmem:[%s5958_s1 + $0x5c0] sm:$0xf] }
  0xca   :  { %1326 = vmatpush.bf16.msrb.mxu2 %v2863_v60  ;;  %1345 = vmatpush.bf16.msrb.mxu3 %v2991_v61  ;;  %v2943_v60 = vor.u32 %v3413_v43, %v2942_v38  ;;  %v3377_v61 = vld [vmem:[%s5958_s1 + $0x14] sm:$0xf0]  ;;  %v3526_v43 = vld [vmem:[%s5958_s1 + $0x4c4] sm:$0xf]  ;;  %v3556_v57 = vld [vmem:[%s5958_s1 + $0x5ac] sm:$0xf0] }
  0xcb   :  { %1364 = vmatpush.bf16.msra.mxu0 %v2867_v27  ;;  %1383 = vmatpush.bf16.msra.mxu1 %v2995_v2  ;;  %v2926_v27 = vld [vmem:[%s5958_s1 + $0x108] sm:$0xf]  ;;  %v3409_v2 = vld [vmem:[%s5958_s1 + $0x114] sm:$0xf0]  ;;  %v2799_v8 = vor.u32 %v3377_v61, %v2798_v3  ;;  %v3211_v51 = vor.u32 %v3526_v43, %v3208_v45  ;;  %v173_v3 = vor.u32 %v171_v34, %v170_v20  ;;  %v3302_v48 = vld [vmem:[%s5958_s1 + $0x580] sm:$0xf] }
  0xcc   :  { %864 = vmatmul.bf16.gmra.mxu2 %v4283_v28  ;;  %883 = vmatmul.bf16.gmra.mxu3 %v4285_v29  ;;  %v2927_v9 = vor.u32 %v3409_v2, %v2926_v27  ;;  %v3320_v27 = vld [vmem:[%s5958_s1 + $0x5b0] sm:$0xf0]  ;;  %v3174_v2 = vld [vmem:[%s5958_s1 + $0x480] sm:$0xf]  ;;  %v3514_v47 = vld [vmem:[%s5958_s1 + $0x464] sm:$0xf] }
  0xcd   :  { %902 = vmatmul.bf16.gmra.mxu0 %v4283_v28  ;;  %921 = vmatmul.bf16.gmra.mxu1 %v4285_v29  ;;  %v3319_v28 = vor.u32 %v3556_v57, %v3318_v56  ;;  %v3158_v20 = vld [vmem:[%s5958_s1 + $0x460] sm:$0xf]  ;;  %v3160_v26 = vld [vmem:[%s5958_s1 + $0x470] sm:$0xf0]  ;;  %v3508_v50 = vld [vmem:[%s5958_s1 + $0x42c] sm:$0xf0] }
  0xce   :  { %1327 = vmatpush.bf16.msrb.mxu2 %v2847_v25  ;;  %1346 = vmatpush.bf16.msrb.mxu3 %v2975_v16  ;;  %v241_v25 = vunpack.c.l.b16 %v237_v54  ;;  %v2803_v16 = vor.u32 %v3375_v4, %v2800_v5  ;;  %v3524_v54 = vld [vmem:[%s5958_s1 + $0x4ac] sm:$0xf0]  ;;  %v3518_v5 = vld [vmem:[%s5958_s1 + $0x484] sm:$0xf]  ;;  %v3163_v31 = vor.u32 %v3514_v47, %v3160_v26  ;;  %v3272_v43 = vld [vmem:[%s5958_s1 + $0x550] sm:$0xf0] }
  0xcf   :  { %1365 = vmatpush.bf16.msra.mxu0 %v2851_v18  ;;  %1384 = vmatpush.bf16.msra.mxu1 %v2979_v22  ;;  %v2931_v18 = vor.u32 %v3407_v24, %v2928_v6  ;;  %v3532_v22 = vld [vmem:[%s5958_s1 + $0x4ec] sm:$0xf0]  ;;  %v3191_v61 = vor.u32 %v3524_v54, %v3190_v17  ;;  %v174_v6 = vsel %vm144_vm1, %v4592_v40, %v173_v3  ;;  %v3126_v45 = vld [vmem:[%s5958_s1 + $0x420] sm:$0xf]  ;;  %v3128_v56 = vld [vmem:[%s5958_s1 + $0x430] sm:$0xf0] }
  0xd0   :  { %v3223_v46 = vor.u32 %v3532_v22, %v3222_v21  ;;  %v2463_v32 = vunpack.i.l.s16 %v241_v25  ;;  %v3520_v4 = vld [vmem:[%s5958_s1 + $0x48c] sm:$0xf0]  ;;  %v3550_v25 = vld [vmem:[%s5958_s1 + $0x584] sm:$0xf]  ;;  %v3286_v22 = vld [vmem:[%s5958_s1 + $0x560] sm:$0xf] }
  0xd1   :  { %v3516_v21 = vld [vmem:[%s5958_s1 + $0x46c] sm:$0xf0]  ;;  %v3254_v17 = vld [vmem:[%s5958_s1 + $0x520] sm:$0xf]  ;;  %v3538_v57 = vld [vmem:[%s5958_s1 + $0x524] sm:$0xf] }
  0xd2   :  { %1328 = vmatpush.bf16.msrb.mxu2 %v2831_v12  ;;  %1347 = vmatpush.bf16.msrb.mxu3 %v2959_v62  ;;  %v3352_v12 = vld [vmem:[%s5958_s1 + $0x5f0] sm:$0xf0]  ;;  %v3206_v62 = vld [vmem:[%s5958_s1 + $0x4c0] sm:$0xf]  ;;  %vm256_vm11 = vcmp.ne.s32.totalorder %v2463_v32, %v4219_v53  ;;  %v3552_v53 = vld [vmem:[%s5958_s1 + $0x58c] sm:$0xf0]  ;;  %v3159_v23 = vor.u32 %v3516_v21, %v3158_v20 }
  0xd3   :  { %1366 = vmatpush.bf16.msra.mxu0 %v2835_v15  ;;  %1385 = vmatpush.bf16.msra.mxu1 %v2963_v63  ;;  %v3355_v39 = vor.u32 %v3562_v13, %v3352_v12  ;;  %v3560_v15 = vld [vmem:[%s5958_s1 + $0x5cc] sm:$0xf0]  ;;  %v3207_v63 = vor.u32 %v3528_v42, %v3206_v62  ;;  %vm4814_vm12 = vmpackc.low %vm256_vm11, %vm255_vm10  ;;  %v3546_v32 = vld [vmem:[%s5958_s1 + $0x564] sm:$0xf] }
  0xd4   :  { %v3335_v38 = vor.u32 %v3560_v15, %v3334_v36  ;;  %v3512_v12 = vld [vmem:[%s5958_s1 + $0x44c] sm:$0xf0]  ;;  %v3270_v62 = vld [vmem:[%s5958_s1 + $0x540] sm:$0xf]  ;;  %v3510_v42 = vld [vmem:[%s5958_s1 + $0x444] sm:$0xf] }
  0xd5   :  { %v3144_v36 = vld [vmem:[%s5958_s1 + $0x450] sm:$0xf0]  ;;  %v3542_v15 = vld [vmem:[%s5958_s1 + $0x544] sm:$0xf]  ;;  %v3540_v54 = vld [vmem:[%s5958_s1 + $0x52c] sm:$0xf0] }
  0xd6   :  { %1329 = vmatpush.bf16.msrb.mxu2 %v2815_v59  ;;  %1348 = vmatpush.bf16.msrb.mxu3 %v2943_v60  ;;  %v3522_v59 = vld [vmem:[%s5958_s1 + $0x4a4] sm:$0xf]  ;;  %v165_v60 = vor.u32 %v163_v33, %v162_v19  ;;  %v3275_v52 = vor.u32 %v3542_v15, %v3272_v43  ;;  %v3255_v3 = vor.u32 %v3540_v54, %v3254_v17  ;;  %v3360_v20 = vld [vmem:[%s5958_s1 + $0x5f8] sm:$0xf0]  ;;  %v3561_v26 = vld [vmem:[%s5958_s1 + $0x5d4] sm:$0xf0] }
  0xd7   :  { %1367 = vmatpush.bf16.msra.mxu0 %v2819_v0  ;;  %1386 = vmatpush.bf16.msra.mxu1 %v2947_v1  ;;  %v3192_v0 = vld [vmem:[%s5958_s1 + $0x4b0] sm:$0xf0]  ;;  %v3554_v1 = vld [vmem:[%s5958_s1 + $0x5a4] sm:$0xf]  ;;  %v3557_v15 = vld [vmem:[%s5958_s1 + $0x5b4] sm:$0xf0] }
  0xd8   :  { %v3195_v33 = vor.u32 %v3522_v59, %v3192_v0  ;;  %v3323_v34 = vor.u32 %v3554_v1, %v3320_v27  ;;  %v166_v24 = vsel %vm144_vm1, %v4582_v14, %v165_v60  ;;  %v3175_v14 = vor.u32 %v3520_v4, %v3174_v2  ;;  %v3256_v59 = vld [vmem:[%s5958_s1 + $0x530] sm:$0xf0]  ;;  %v3504_v27 = vld [vmem:[%s5958_s1 + $0x40c] sm:$0xf0]  ;;  %v3502_v2 = vld [vmem:[%s5958_s1 + $0x404] sm:$0xf] }
  0xd9   :  { %v4848_v40 = vsel %vm4814_vm12, %v166_v24, 0  ;;  %v3127_v60 = vor.u32 %v3508_v50, %v3126_v45  ;;  %v3259_v1 = vor.u32 %v3538_v57, %v3256_v59  ;;  %v3112_v4 = vld [vmem:[%s5958_s1 + $0x410] sm:$0xf0]  ;;  %v3200_v43 = vld [vmem:[%s5958_s1 + $0x4b8] sm:$0xf0] }
  0xda   :  { %1330 = vmatpush.bf16.msrb.mxu2 %v2799_v8  ;;  %1349 = vmatpush.bf16.msrb.mxu3 %v2927_v9  ;;  %v3304_v8 = vld [vmem:[%s5958_s1 + $0x590] sm:$0xf0]  ;;  %v3303_v9 = vor.u32 %v3552_v53, %v3302_v48  ;;  %v3534_v48 = vld [vmem:[%s5958_s1 + $0x504] sm:$0xf]  ;;  %v3115_v53 = vor.u32 %v3502_v2, %v3112_v4  ;;  %v3555_v45 = vld [vmem:[%s5958_s1 + $0x5ac] sm:$0xf] }
  0xdb   :  { %1368 = vmatpush.bf16.msra.mxu0 %v2803_v16  ;;  %1387 = vmatpush.bf16.msra.mxu1 %v2931_v18  ;;  %v4852_v16 = vsel %vm4814_vm12, %v174_v6, 0  ;;  %v3179_v18 = vor.u32 %v3518_v5, %v3176_v7  ;;  %v3307_v19 = vor.u32 %v3550_v25, %v3304_v8  ;;  %v3240_v5 = vld [vmem:[%s5958_s1 + $0x510] sm:$0xf0]  ;;  %v3230_v6 = vld [vmem:[%s5958_s1 + $0x4e8] sm:$0xf] }
  0xdc   :  { %1255 = vmatmul.bf16.vlgmr.msra.gmra.mxu2 %v4718_v10  ;;  %1274 = vmatmul.bf16.vlgmr.msra.gmra.mxu3 %v4722_v11  ;;  %v3243_v24 = vor.u32 %v3534_v48, %v3240_v5  ;;  %v3533_v7 = vld [vmem:[%s5958_s1 + $0x4f4] sm:$0xf0]  ;;  %v3358_v25 = vld [vmem:[%s5958_s1 + $0x5e8] sm:$0xf]  ;;  %v3328_v50 = vld [vmem:[%s5958_s1 + $0x5b8] sm:$0xf0] }
  0xdd   :  { %1293 = vmatmul.bf16.vlgmr.msrb.gmra.mxu0 %v4718_v10  ;;  %1312 = vmatmul.bf16.vlgmr.msrb.gmra.mxu1 %v4722_v11  ;;  %v3231_v8 = vor.u32 %v3533_v7, %v3230_v6  ;;  %v3182_v17 = vld [vmem:[%s5958_s1 + $0x488] sm:$0xf]  ;;  %v3521_v54 = vld [vmem:[%s5958_s1 + $0x494] sm:$0xf0]  ;;  %v3168_v2 = vld [vmem:[%s5958_s1 + $0x478] sm:$0xf0] }
  0xde   :  { %1784 = vmatpush.bf16.msra.mxu2 %v3223_v46  ;;  %1803 = vmatpush.bf16.msra.mxu3 %v3351_v35  ;;  %v3548_v46 = vld [vmem:[%s5958_s1 + $0x56c] sm:$0xf0]  ;;  %v3288_v35 = vld [vmem:[%s5958_s1 + $0x570] sm:$0xf0]  ;;  %v3183_v57 = vor.u32 %v3521_v54, %v3182_v17  ;;  %v3296_v5 = vld [vmem:[%s5958_s1 + $0x578] sm:$0xf0] }
  0xdf   :  { %1822 = vmatpush.bf16.msrb.mxu0 %v3227_v37  ;;  %1841 = vmatpush.bf16.msrb.mxu1 %v3355_v39  ;;  %v3287_v30 = vor.u32 %v3548_v46, %v3286_v22  ;;  %v3142_v37 = vld [vmem:[%s5958_s1 + $0x440] sm:$0xf]  ;;  %v3291_v13 = vor.u32 %v3546_v32, %v3288_v35  ;;  %v3544_v39 = vld [vmem:[%s5958_s1 + $0x54c] sm:$0xf0]  ;;  %v3214_v22 = vld [vmem:[%s5958_s1 + $0x4c8] sm:$0xf] }
  0xe0   :  { %v3342_v46 = vld [vmem:[%s5958_s1 + $0x5c8] sm:$0xf]  ;;  %v3216_v32 = vld [vmem:[%s5958_s1 + $0x4d8] sm:$0xf0]  ;;  %v3559_v35 = vld [vmem:[%s5958_s1 + $0x5cc] sm:$0xf] }
  0xe1   :  { %v3150_v6 = vld [vmem:[%s5958_s1 + $0x448] sm:$0xf]  ;;  %v3513_v7 = vld [vmem:[%s5958_s1 + $0x454] sm:$0xf0]  ;;  %v3248_v17 = vld [vmem:[%s5958_s1 + $0x518] sm:$0xf0] }
  0xe2   :  { %1785 = vmatpush.bf16.msra.mxu2 %v3207_v63  ;;  %1804 = vmatpush.bf16.msra.mxu3 %v3335_v38  ;;  %v3143_v63 = vor.u32 %v3512_v12, %v3142_v37  ;;  %v3271_v38 = vor.u32 %v3544_v39, %v3270_v62  ;;  %v3198_v12 = vld [vmem:[%s5958_s1 + $0x4a8] sm:$0xf]  ;;  %v3525_v62 = vld [vmem:[%s5958_s1 + $0x4b4] sm:$0xf0] }
  0xe3   :  { %1823 = vmatpush.bf16.msrb.mxu0 %v3211_v51  ;;  %1842 = vmatpush.bf16.msrb.mxu1 %v3339_v55  ;;  %v3147_v51 = vor.u32 %v3510_v42, %v3144_v36  ;;  %v3506_v55 = vld [vmem:[%s5958_s1 + $0x424] sm:$0xf]  ;;  %v3199_v42 = vor.u32 %v3525_v62, %v3198_v12  ;;  %v3326_v36 = vld [vmem:[%s5958_s1 + $0x5a8] sm:$0xf] }
  0xe4   :  { %v3131_v0 = vor.u32 %v3506_v55, %v3128_v56  ;;  %v3310_v55 = vld [vmem:[%s5958_s1 + $0x588] sm:$0xf]  ;;  %v3553_v56 = vld [vmem:[%s5958_s1 + $0x594] sm:$0xf0] }
  0xe5   :  { %v3311_v59 = vor.u32 %v3553_v56, %v3310_v55  ;;  %v3118_v62 = vld [vmem:[%s5958_s1 + $0x408] sm:$0xf] }
  0xe6   :  { %1786 = vmatpush.bf16.msra.mxu2 %v3191_v61  ;;  %1805 = vmatpush.bf16.msra.mxu3 %v3319_v28  ;;  %v3110_v61 = vld [vmem:[%s5958_s1 + $0x400] sm:$0xf] }
  0xe7   :  { %1824 = vmatpush.bf16.msrb.mxu0 %v3195_v33  ;;  %1843 = vmatpush.bf16.msrb.mxu1 %v3323_v34  ;;  %v3238_v28 = vld [vmem:[%s5958_s1 + $0x500] sm:$0xf]  ;;  %v3536_v33 = vld [vmem:[%s5958_s1 + $0x50c] sm:$0xf0]  ;;  %v3111_v29 = vor.u32 %v3504_v27, %v3110_v61  ;;  %v3551_v61 = vld [vmem:[%s5958_s1 + $0x58c] sm:$0xf] }
  0xe8   :  { %v3239_v34 = vor.u32 %v3536_v33, %v3238_v28  ;;  %v3166_v28 = vld [vmem:[%s5958_s1 + $0x468] sm:$0xf]  ;;  %v3517_v33 = vld [vmem:[%s5958_s1 + $0x474] sm:$0xf0] }
  0xea   :  { %1787 = vmatpush.bf16.msra.mxu2 %v3175_v14  ;;  %1806 = vmatpush.bf16.msra.mxu3 %v3303_v9  ;;  %v3232_v14 = vld [vmem:[%s5958_s1 + $0x4f8] sm:$0xf0] }
  0xeb   :  { %1825 = vmatpush.bf16.msrb.mxu0 %v3179_v18  ;;  %1844 = vmatpush.bf16.msrb.mxu1 %v3307_v19  ;;  %v3563_v19 = vld [vmem:[%s5958_s1 + $0x5ec] sm:$0xf] }
  0xec   :  { %1260 = vmatmul.bf16.gmra.mxu2 %v4848_v40  ;;  %1279 = vmatmul.bf16.gmra.mxu3 %v4852_v16  ;;  %v3363_v21 = vor.u32 %v3563_v19, %v3360_v20  ;;  %v3280_v20 = vld [vmem:[%s5958_s1 + $0x558] sm:$0xf0] }
  0xed   :  { %1298 = vmatmul.bf16.gmra.mxu0 %v4848_v40  ;;  %1317 = vmatmul.bf16.gmra.mxu1 %v4852_v16 }
  0xee   :  { %1788 = vmatpush.bf16.msra.mxu2 %v3159_v23  ;;  %1807 = vmatpush.bf16.msra.mxu3 %v3287_v30  ;;  %v3529_v23 = vld [vmem:[%s5958_s1 + $0x4d4] sm:$0xf0]  ;;  %v3343_v30 = vor.u32 %v3561_v26, %v3342_v46  ;;  %v3262_v46 = vld [vmem:[%s5958_s1 + $0x528] sm:$0xf]  ;;  %v3507_v26 = vld [vmem:[%s5958_s1 + $0x42c] sm:$0xf] }
  0xef   :  { %1826 = vmatpush.bf16.msrb.mxu0 %v3163_v31  ;;  %1845 = vmatpush.bf16.msrb.mxu1 %v3291_v13  ;;  %v3215_v47 = vor.u32 %v3529_v23, %v3214_v22  ;;  %v3527_v31 = vld [vmem:[%s5958_s1 + $0x4cc] sm:$0xf]  ;;  %v3344_v13 = vld [vmem:[%s5958_s1 + $0x5d8] sm:$0xf0]  ;;  %v3509_v22 = vld [vmem:[%s5958_s1 + $0x434] sm:$0xf0] }
  0xf0   :  { %v3219_v37 = vor.u32 %v3527_v31, %v3216_v32  ;;  %v3347_v39 = vor.u32 %v3559_v35, %v3344_v13  ;;  %v3136_v32 = vld [vmem:[%s5958_s1 + $0x438] sm:$0xf0]  ;;  %v3539_v35 = vld [vmem:[%s5958_s1 + $0x52c] sm:$0xf] }
  0xf1   :  { %v3139_v13 = vor.u32 %v3507_v26, %v3136_v32 }
  0xf2   :  { %1789 = vmatpush.bf16.msra.mxu2 %v3143_v63  ;;  %1808 = vmatpush.bf16.msra.mxu3 %v3271_v38  ;;  %v3523_v63 = vld [vmem:[%s5958_s1 + $0x4ac] sm:$0xf]  ;;  %v3327_v38 = vor.u32 %v3557_v15, %v3326_v36  ;;  %v3537_v36 = vld [vmem:[%s5958_s1 + $0x514] sm:$0xf0] }
  0xf3   :  { %1827 = vmatpush.bf16.msrb.mxu0 %v3147_v51  ;;  %1846 = vmatpush.bf16.msrb.mxu1 %v3275_v52  ;;  %v3203_v51 = vor.u32 %v3523_v63, %v3200_v43  ;;  %v3331_v52 = vor.u32 %v3555_v45, %v3328_v50  ;;  %v3503_v45 = vld [vmem:[%s5958_s1 + $0x40c] sm:$0xf]  ;;  %v3120_v50 = vld [vmem:[%s5958_s1 + $0x418] sm:$0xf0] }
  0xf6   :  { %1790 = vmatpush.bf16.msra.mxu2 %v3127_v60  ;;  %1809 = vmatpush.bf16.msra.mxu3 %v3255_v3  ;;  %v3519_v60 = vld [vmem:[%s5958_s1 + $0x48c] sm:$0xf]  ;;  %v3184_v3 = vld [vmem:[%s5958_s1 + $0x498] sm:$0xf0] }
  0xf7   :  { %1828 = vmatpush.bf16.msrb.mxu0 %v3131_v0  ;;  %1847 = vmatpush.bf16.msrb.mxu1 %v3259_v1  ;;  %v3187_v0 = vor.u32 %v3519_v60, %v3184_v3  ;;  %v3312_v1 = vld [vmem:[%s5958_s1 + $0x598] sm:$0xf0] }
  0xf8   :  { %v3315_v27 = vor.u32 %v3551_v61, %v3312_v1  ;;  %v3603_v60 = vld [vmem:[%s5954_s0 + $0x18] sm:$0xff]  ;;  %v3605_v1 = vld [vmem:[%s5954_s0 + $0x8] sm:$0xff] }
  0xfa   :  { %1791 = vmatpush.bf16.msra.mxu2 %v3111_v29  ;;  %1810 = vmatpush.bf16.msra.mxu3 %v3239_v34  ;;  %v3294_v29 = vld [vmem:[%s5958_s1 + $0x568] sm:$0xf]  ;;  %v3167_v34 = vor.u32 %v3517_v33, %v3166_v28 }
  0xfb   :  { %1829 = vmatpush.bf16.msrb.mxu0 %v3115_v53  ;;  %1848 = vmatpush.bf16.msrb.mxu1 %v3243_v24  ;;  %v3547_v53 = vld [vmem:[%s5958_s1 + $0x56c] sm:$0xf] }
  0xfc   :  { %1331 = vmatmul.bf16.vlgmr.msrb.gmra.mxu2 %v4718_v10  ;;  %1350 = vmatmul.bf16.vlgmr.msrb.gmra.mxu3 %v4722_v11  ;;  %v3299_v24 = vor.u32 %v3547_v53, %v3296_v5 }
  0xfd   :  { %1369 = vmatmul.bf16.vlgmr.msra.gmra.mxu0 %v4718_v10  ;;  %1388 = vmatmul.bf16.vlgmr.msra.gmra.mxu1 %v4722_v11  ;;  %v3565_v10 = vld [vmem:[%s5958_s1 + $0x5f4] sm:$0xf0]  ;;  %v3531_v11 = vld [vmem:[%s5958_s1 + $0x4ec] sm:$0xf] }
  0xfe   :  { %v3359_v9 = vor.u32 %v3565_v10, %v3358_v25  ;;  %v3235_v18 = vor.u32 %v3531_v11, %v3232_v14  ;;  %1860 = vmatpush.bf16.msrb.mxu2 %v3231_v8  ;;  %v3278_v25 = vld [vmem:[%s5958_s1 + $0x548] sm:$0xf]  ;;  %v3545_v8 = vld [vmem:[%s5958_s1 + $0x554] sm:$0xf0]  ;;  %v3151_v10 = vor.u32 %v3513_v7, %v3150_v6  ;;  %v3511_v14 = vld [vmem:[%s5958_s1 + $0x44c] sm:$0xf] }
  0xff   :  { %1917 = vmatpush.bf16.msra.mxu1 %v3363_v21  ;;  %v3279_v11 = vor.u32 %v3545_v8, %v3278_v25  ;;  %v3134_v21 = vld [vmem:[%s5958_s1 + $0x428] sm:$0xf] }
 0x100   :  { %1879 = vmatpush.bf16.msrb.mxu3 %v3359_v9  ;;  %1898 = vmatpush.bf16.msra.mxu0 %v3235_v18  ;;  %v3152_v9 = vld [vmem:[%s5958_s1 + $0x458] sm:$0xf0]  ;;  %v3543_v18 = vld [vmem:[%s5958_s1 + $0x54c] sm:$0xf] }
 0x101   :  { %v3155_v19 = vor.u32 %v3511_v14, %v3152_v9  ;;  %v3283_v23 = vor.u32 %v3543_v18, %v3280_v20 }
 0x102   :  { %1861 = vmatpush.bf16.msrb.mxu2 %v3215_v47  ;;  %v3541_v47 = vld [vmem:[%s5958_s1 + $0x534] sm:$0xf0] }
 0x103   :  { %1918 = vmatpush.bf16.msra.mxu1 %v3347_v39  ;;  %v3263_v31 = vor.u32 %v3541_v47, %v3262_v46  ;;  %v3505_v39 = vld [vmem:[%s5958_s1 + $0x414] sm:$0xf0] }
 0x104   :  { %1880 = vmatpush.bf16.msrb.mxu3 %v3343_v30  ;;  %1899 = vmatpush.bf16.msra.mxu0 %v3219_v37  ;;  %v3135_v30 = vor.u32 %v3509_v22, %v3134_v21  ;;  %v3264_v37 = vld [vmem:[%s5958_s1 + $0x538] sm:$0xf0]  ;;  %v65_v22 = vld [vmem:[%s5960_s7] sm:$0xff]  }
 0x105   :  { %v3267_v12 = vor.u32 %v3539_v35, %v3264_v37  ;;  %v1978_v47 = vunpack.c.l.bf16 %v65_v22 }
 0x106   :  { %1862 = vmatpush.bf16.msrb.mxu2 %v3199_v42  ;;  %v3246_v42 = vld [vmem:[%s5958_s1 + $0x508] sm:$0xf] }
 0x107   :  { %1919 = vmatpush.bf16.msra.mxu1 %v3331_v52  ;;  %v3247_v43 = vor.u32 %v3537_v36, %v3246_v42  ;;  %v3123_v52 = vor.u32 %v3503_v45, %v3120_v50 }
 0x108   :  { %1881 = vmatpush.bf16.msrb.mxu3 %v3327_v38  ;;  %1900 = vmatpush.bf16.msra.mxu0 %v3203_v51  ;;  %v3119_v38 = vor.u32 %v3505_v39, %v3118_v62  ;;  %v3535_v51 = vld [vmem:[%s5958_s1 + $0x50c] sm:$0xf] }
 0x109   :  { %v3251_v54 = vor.u32 %v3535_v51, %v3248_v17  ;;  %v67_v62 = vld [vmem:[%s5960_s7 + $0x8] sm:$0xff]  }
 0x10a   :  { %1863 = vmatpush.bf16.msrb.mxu2 %v3183_v57  ;;  %v1980_v36 = vunpack.c.l.bf16 %v67_v62 }
 0x10b   :  { %1920 = vmatpush.bf16.msra.mxu1 %v3315_v27 }
 0x10c   :  { %1336 = vmatmul.bf16.gmra.mxu2 %v4848_v40  ;;  %1355 = vmatmul.bf16.gmra.mxu3 %v4852_v16 }
 0x10d   :  { %1374 = vmatmul.bf16.gmra.mxu0 %v4848_v40  ;;  %1393 = vmatmul.bf16.gmra.mxu1 %v4852_v16  ;;  %v3549_v40 = vld [vmem:[%s5958_s1 + $0x574] sm:$0xf0]  ;;  %v3515_v16 = vld [vmem:[%s5958_s1 + $0x46c] sm:$0xf] }
 0x10e   :  { %1882 = vmatpush.bf16.msrb.mxu3 %v3311_v59  ;;  %1901 = vmatpush.bf16.msra.mxu0 %v3187_v0  ;;  %v3295_v4 = vor.u32 %v3549_v40, %v3294_v29  ;;  %v3171_v48 = vor.u32 %v3515_v16, %v3168_v2  ;;  %v3602_v59 = vld [vmem:[%s5954_s0 + $0x10] sm:$0xff]  ;;  %v3604_v0 = vld [vmem:[%s5954_s0] sm:$0xff] }
 0x10f   :  { %1864 = vmatpush.bf16.msrb.mxu2 %v3167_v34  ;;  %1921 = vmatpush.bf16.msra.mxu1 %v3299_v24 }
 0x112   :  { %1883 = vmatpush.bf16.msrb.mxu3 %v3295_v4  ;;  %1902 = vmatpush.bf16.msra.mxu0 %v3171_v48 }
 0x113   :  { %1865 = vmatpush.bf16.msrb.mxu2 %v3151_v10  ;;  %1922 = vmatpush.bf16.msra.mxu1 %v3283_v23 }
 0x116   :  { %1884 = vmatpush.bf16.msrb.mxu3 %v3279_v11  ;;  %1903 = vmatpush.bf16.msra.mxu0 %v3155_v19 }
 0x117   :  { %1866 = vmatpush.bf16.msrb.mxu2 %v3135_v30  ;;  %1923 = vmatpush.bf16.msra.mxu1 %v3267_v12 }
 0x11a   :  { %v5142_v15 = vpop.f32.mrf.mxu0  ;;  %v5144_v63 = vpop.f32.mrf.mxu1  ;;  %1885 = vmatpush.bf16.msrb.mxu3 %v3263_v31  ;;  %1904 = vmatpush.bf16.msra.mxu0 %v3139_v13  ;;  %v1979_v31 = vunpack.c.h.bf16 %v65_v22 }
 0x11b   :  { %1867 = vmatpush.bf16.msrb.mxu2 %v3119_v38  ;;  %1924 = vmatpush.bf16.msra.mxu1 %v3251_v54  ;;  %v1981_v54 = vunpack.c.h.bf16 %v67_v62 }
 0x11c   :  { %1792 = vmatmul.bf16.vlgmr.msra.gmra.mxu2 %v4431_v49  ;;  %1811 = vmatmul.bf16.vlgmr.msra.gmra.mxu3 %v4435_v44 }
 0x11d   :  { %1830 = vmatmul.bf16.vlgmr.msrb.gmra.mxu0 %v4431_v49  ;;  %1849 = vmatmul.bf16.vlgmr.msrb.gmra.mxu1 %v4435_v44 }
 0x11e   :  { %1886 = vmatpush.bf16.msrb.mxu3 %v3247_v43  ;;  %1905 = vmatpush.bf16.msra.mxu0 %v3123_v52 }
 0x11f   :  { %v784_v55 = vpop.f32.mrf.mxu2  ;;  %v803_v56 = vpop.f32.mrf.mxu3  ;;  %2008 = vmatpush.msra.mxu2 %v3602_v59 }
 0x120   :  { %v5162_v57 = vadd.f32 %v803_v56, %v784_v55 }
 0x121   :  { %2009 = vmatpush.msra.mxu2 %v3604_v0 }
 0x122   :  { %2037 = vmatpush.msra.mxu3 %v3603_v60  ;;  %v824_v3 = vpop.f32.mrf.mxu0  ;;  %v843_v61 = vpop.f32.mrf.mxu1 }
 0x123   :  { %v844_v32 = vadd.f32 %v843_v61, %v824_v3 }
 0x124   :  { %2038 = vmatpush.msra.mxu3 %v3605_v1 }
 0x127   :  { %v786_v27 = vpop.f32.mrf.mxu2  ;;  %v805_v28 = vpop.f32.mrf.mxu3 }
 0x128   :  { %v5176_v33 = vadd.f32 %v805_v28, %v786_v27 }
 0x12a   :  { %v827_v29 = vpop.f32.mrf.mxu0  ;;  %v846_v34 = vpop.f32.mrf.mxu1 }
 0x12b   :  { %v847_v38 = vadd.f32 %v846_v34, %v827_v29 }
 0x12c   :  { %1797 = vmatmul.bf16.gmra.mxu2 %v4558_v41  ;;  %1816 = vmatmul.bf16.gmra.mxu3 %v4562_v58 }
 0x12d   :  { %1835 = vmatmul.bf16.gmra.mxu0 %v4558_v41  ;;  %1854 = vmatmul.bf16.gmra.mxu1 %v4562_v58 }
 0x12f   :  { %v789_v40 = vpop.f32.mrf.mxu2  ;;  %v808_v16 = vpop.f32.mrf.mxu3 }
 0x130   :  { %v5182_v2 = vadd.f32 %v808_v16, %v789_v40 }
 0x132   :  { %v829_v4 = vpop.f32.mrf.mxu0  ;;  %v848_v48 = vpop.f32.mrf.mxu1 }
 0x133   :  { %v849_v55 = vadd.f32 %v848_v48, %v829_v4 }
 0x137   :  { %v791_v53 = vpop.f32.mrf.mxu2  ;;  %v810_v5 = vpop.f32.mrf.mxu3 }
 0x138   :  { %v5184_v24 = vadd.f32 %v810_v5, %v791_v53 }
 0x13a   :  { %v5186_v6 = vpop.f32.mrf.mxu0  ;;  %v5188_v7 = vpop.f32.mrf.mxu1 }
 0x13b   :  { %v918_v27 = vadd.f32 %v5188_v7, %v5186_v6 }
 0x13c   :  { %1868 = vmatmul.bf16.vlgmr.msrb.gmra.mxu2 %v4431_v49  ;;  %1887 = vmatmul.bf16.vlgmr.msrb.gmra.mxu3 %v4435_v44 }
 0x13d   :  { %1906 = vmatmul.bf16.vlgmr.msra.gmra.mxu0 %v4431_v49  ;;  %1925 = vmatmul.bf16.vlgmr.msra.gmra.mxu1 %v4435_v44 }
 0x13f   :  { %v5194_v25 = vpop.f32.mrf.mxu2  ;;  %v5196_v8 = vpop.f32.mrf.mxu3 }
 0x140   :  { %v880_v4 = vadd.f32 %v5196_v8, %v5194_v25 }
 0x142   :  { %v5198_v10 = vpop.f32.mrf.mxu0  ;;  %v5200_v11 = vpop.f32.mrf.mxu1 }
 0x143   :  { %v920_v22 = vadd.f32 %v5200_v11, %v5198_v10 }
 0x147   :  { %v5202_v14 = vpop.f32.mrf.mxu2  ;;  %v5204_v9 = vpop.f32.mrf.mxu3 }
 0x14a   :  { %v5206_v18 = vpop.f32.mrf.mxu0  ;;  %v5208_v19 = vpop.f32.mrf.mxu1 }
 0x14b   :  { %v923_v25 = vadd.f32 %v5208_v19, %v5206_v18 }
 0x14c   :  { %1873 = vmatmul.bf16.gmra.mxu2 %v4558_v41  ;;  %1892 = vmatmul.bf16.gmra.mxu3 %v4562_v58 }
 0x14d   :  { %1911 = vmatmul.bf16.gmra.mxu0 %v4558_v41  ;;  %1930 = vmatmul.bf16.gmra.mxu1 %v4562_v58 }
 0x14f   :  { %v5214_v49 = vpop.f32.mrf.mxu2  ;;  %v5216_v44 = vpop.f32.mrf.mxu3 }
 0x152   :  { %v5218_v20 = vpop.f32.mrf.mxu0  ;;  %v5220_v21 = vpop.f32.mrf.mxu1 }
 0x157   :  { %v5225_v23 = vpop.f32.mrf.mxu2  ;;  %v5227_v46 = vpop.f32.mrf.mxu3 }
 0x15a   :  { %v5229_v41 = vpop.f32.mrf.mxu0  ;;  %v5231_v58 = vpop.f32.mrf.mxu1 }
 0x15c   :  { %3364 = vmatmul.msk.f32.vlgmr.msra.gmra.mxu2 %vm79_vm4, %v1978_v47  ;;  %3368 = vmatmul.msk.f32.vlgmr.msra.gmra.mxu3 %vm79_vm4, %v1978_v47 }
 0x15f   :  { %v5235_v26 = vpop.f32.mrf.mxu2  ;;  %v5237_v30 = vpop.f32.mrf.mxu3 }
 0x162   :  { %v1296_v35 = vpop.f32.mrf.mxu0  ;;  %v1315_v37 = vpop.f32.mrf.mxu1 }
 0x163   :  { %v1297_v13 = vadd.f32 %v1296_v35, %v844_v32  ;;  %v882_v32 = vadd.f32 %v5204_v9, %v5202_v14  ;;  %v925_v14 = vadd.f32 %v5220_v21, %v5218_v20  ;;  %v1257_v20 = vadd.f32 %v5235_v26, %v5162_v57 }
 0x164   :  { %3365 = vmatmul.msk.f32.gmra.mxu2 %vm79_vm4, %v1979_v31  ;;  %3369 = vmatmul.msk.f32.gmra.mxu3 %vm79_vm4, %v1979_v31 }
 0x165   :  { %v5241_v12 = vadd.f32 %v1315_v37, %v1297_v13 }
 0x167   :  { %v5246_v39 = vpop.f32.mrf.mxu2  ;;  %v5248_v42 = vpop.f32.mrf.mxu3 }
 0x168   :  { %v1259_v57 = vadd.f32 %v5246_v39, %v5176_v33  ;;  %v2172_v33 = vld [vmem:[%s5961_s8 + $0x3c0] sm:$0xff]  ;;  %v2173_v39 = vld [vmem:[%s5961_s8 + $0x3c8] sm:$0xff] }
 0x16a   :  { %v1299_v43 = vpop.f32.mrf.mxu0  ;;  %v1318_v45 = vpop.f32.mrf.mxu1 }
 0x16b   :  { %v1300_v50 = vadd.f32 %v1299_v43, %v847_v38  ;;  %v885_v38 = vadd.f32 %v5216_v44, %v5214_v49 }
 0x16c   :  { %3366 = vmatmul.msk.f32.gmra.mxu2 %vm79_vm4, %v1980_v36  ;;  %3370 = vmatmul.msk.f32.gmra.mxu3 %vm79_vm4, %v1980_v36 }
 0x16d   :  { %v5252_v51 = vadd.f32 %v1318_v45, %v1300_v50 }
 0x16f   :  { %v5254_v52 = vpop.f32.mrf.mxu2  ;;  %v5256_v17 = vpop.f32.mrf.mxu3 }
 0x172   :  { %v1301_v56 = vpop.f32.mrf.mxu0  ;;  %v1320_v59 = vpop.f32.mrf.mxu1 }
 0x173   :  { %v1302_v60 = vadd.f32 %v1301_v56, %v849_v55  ;;  %v887_v56 = vadd.f32 %v5227_v46, %v5225_v23 }
 0x174   :  { %3367 = vmatmul.msk.f32.gmra.mxu2 %vm79_vm4, %v1981_v54  ;;  %3371 = vmatmul.msk.f32.gmra.mxu3 %vm79_vm4, %v1981_v54 }
 0x175   :  { %v5260_v3 = vadd.f32 %v1320_v59, %v1302_v60 }
 0x177   :  { %v1263_v61 = vpop.f32.mrf.mxu2  ;;  %v1282_v0 = vpop.f32.mrf.mxu3 }
 0x178   :  { %v1264_v1 = vadd.f32 %v1263_v61, %v5184_v24 }
 0x17a   :  { %v5265_v28 = vadd.f32 %v1282_v0, %v1264_v1  ;;  %v1370_v29 = vpop.f32.mrf.mxu0  ;;  %v1389_v34 = vpop.f32.mrf.mxu1 }
 0x17b   :  { %v1371_v40 = vadd.f32 %v1370_v29, %v918_v27  ;;  %v1276_v29 = vadd.f32 %v5237_v30, %v1257_v20  ;;  %v2113_v30 = vld [vmem:[%s5961_s8 + $0x1e8] sm:$0xff]  ;;  %v2152_v20 = vld [vmem:[%s5961_s8 + $0x320] sm:$0xff] }
 0x17c   :  { %2238 = vmatpush.msrb.mxu2 %v2113_v30  ;;  %v2080_v30 = vld [vmem:[%s5961_s8 + $0xe0] sm:$0xff] }
 0x17d   :  { %v5267_v16 = vadd.f32 %v1389_v34, %v1371_v40 }
 0x17f   :  { %v1332_v48 = vpop.f32.mrf.mxu2  ;;  %v1351_v53 = vpop.f32.mrf.mxu3 }
 0x180   :  { %v1333_v5 = vadd.f32 %v1332_v48, %v880_v4  ;;  %v2112_v4 = vld [vmem:[%s5961_s8 + $0x1e0] sm:$0xff] }
 0x181   :  { %v2176_v48 = vld [vmem:[%s5961_s8 + $0x3e0] sm:$0xff]  ;;  %2180 = vmatpush.msrb.mxu0 %v2112_v4 }
 0x182   :  { %v5273_v24 = vadd.f32 %v1351_v53, %v1333_v5  ;;  %v1372_v47 = vpop.f32.mrf.mxu0  ;;  %v1391_v6 = vpop.f32.mrf.mxu1  ;;  %2209 = vmatpush.msrb.mxu1 %v2176_v48  ;;  %v2177_v5 = vld [vmem:[%s5961_s8 + $0x3e8] sm:$0xff] }
 0x183   :  { %v1373_v7 = vadd.f32 %v1372_v47, %v920_v22  ;;  %v2108_v22 = vld [vmem:[%s5961_s8 + $0x1c0] sm:$0xff]  ;;  %2267 = vmatpush.msrb.mxu3 %v2177_v5 }
 0x184   :  { %2181 = vmatpush.msrb.mxu0 %v2108_v22  ;;  %2210 = vmatpush.msrb.mxu1 %v2172_v33  ;;  %v2144_v22 = vld [vmem:[%s5961_s8 + $0x2e0] sm:$0xff] }
 0x185   :  { %v5275_v31 = vadd.f32 %v1391_v6, %v1373_v7  ;;  %v2104_v7 = vld [vmem:[%s5961_s8 + $0x1a0] sm:$0xff]  ;;  %2268 = vmatpush.msrb.mxu3 %v2173_v39  ;;  %v2145_v39 = vld [vmem:[%s5961_s8 + $0x2e8] sm:$0xff] }
 0x186   :  { %2182 = vmatpush.msrb.mxu0 %v2104_v7  ;;  %v2141_v7 = vld [vmem:[%s5961_s8 + $0x2c8] sm:$0xff] }
 0x187   :  { %v1334_v35 = vpop.f32.mrf.mxu2  ;;  %v1353_v37 = vpop.f32.mrf.mxu3 }
 0x188   :  { %v1335_v13 = vadd.f32 %v1334_v35, %v882_v32  ;;  %v2168_v32 = vld [vmem:[%s5961_s8 + $0x3a0] sm:$0xff]  ;;  %v2105_v35 = vld [vmem:[%s5961_s8 + $0x1a8] sm:$0xff] }
 0x189   :  { %2211 = vmatpush.msrb.mxu1 %v2168_v32 }
 0x18a   :  { %v5281_v8 = vadd.f32 %v1353_v37, %v1335_v13  ;;  %v1375_v62 = vpop.f32.mrf.mxu0  ;;  %v1394_v10 = vpop.f32.mrf.mxu1  ;;  %v1278_v37 = vadd.f32 %v5248_v42, %v1259_v57  ;;  %v2149_v57 = vld [vmem:[%s5961_s8 + $0x308] sm:$0xff] }
 0x18b   :  { %v1376_v11 = vadd.f32 %v1375_v62, %v923_v25  ;;  %v2169_v25 = vld [vmem:[%s5961_s8 + $0x3a8] sm:$0xff]  ;;  %v2100_v62 = vld [vmem:[%s5961_s8 + $0x180] sm:$0xff] }
 0x18c   :  { %2269 = vmatpush.msrb.mxu3 %v2169_v25  ;;  %2183 = vmatpush.msrb.mxu0 %v2100_v62  ;;  %v2073_v25 = vld [vmem:[%s5961_s8 + $0xa8] sm:$0xff] }
 0x18d   :  { %v5283_v36 = vadd.f32 %v1394_v10, %v1376_v11  ;;  %v2164_v10 = vld [vmem:[%s5961_s8 + $0x380] sm:$0xff] }
 0x18e   :  { %2212 = vmatpush.msrb.mxu1 %v2164_v10  ;;  %v2137_v10 = vld [vmem:[%s5961_s8 + $0x2a8] sm:$0xff] }
 0x18f   :  { %v1337_v43 = vpop.f32.mrf.mxu2  ;;  %v1356_v45 = vpop.f32.mrf.mxu3 }
 0x190   :  { %v1338_v50 = vadd.f32 %v1337_v43, %v885_v38  ;;  %v2101_v43 = vld [vmem:[%s5961_s8 + $0x188] sm:$0xff] }
 0x192   :  { %v5289_v9 = vadd.f32 %v1356_v45, %v1338_v50  ;;  %v1377_v54 = vpop.f32.mrf.mxu0  ;;  %v1396_v18 = vpop.f32.mrf.mxu1  ;;  %v2165_v45 = vld [vmem:[%s5961_s8 + $0x388] sm:$0xff]  ;;  %v2096_v50 = vld [vmem:[%s5961_s8 + $0x160] sm:$0xff] }
 0x193   :  { %v1378_v19 = vadd.f32 %v1377_v54, %v925_v14  ;;  %v2160_v54 = vld [vmem:[%s5961_s8 + $0x360] sm:$0xff]  ;;  %2270 = vmatpush.msrb.mxu3 %v2165_v45  ;;  %2184 = vmatpush.msrb.mxu0 %v2096_v50 }
 0x194   :  { %2213 = vmatpush.msrb.mxu1 %v2160_v54  ;;  %v2133_v54 = vld [vmem:[%s5961_s8 + $0x288] sm:$0xff] }
 0x195   :  { %v5291_v55 = vadd.f32 %v1396_v18, %v1378_v19  ;;  %v1262_v18 = vadd.f32 %v5254_v52, %v5182_v2  ;;  %v2156_v2 = vld [vmem:[%s5961_s8 + $0x340] sm:$0xff]  ;;  %v2157_v52 = vld [vmem:[%s5961_s8 + $0x348] sm:$0xff] }
 0x196   :  { %2214 = vmatpush.msrb.mxu1 %v2156_v2  ;;  %v2060_v2 = vld [vmem:[%s5961_s8 + $0x40] sm:$0xff] }
 0x197   :  { %v1339_v59 = vpop.f32.mrf.mxu2  ;;  %v1358_v60 = vpop.f32.mrf.mxu3 }
 0x198   :  { %v1340_v61 = vadd.f32 %v1339_v59, %v887_v56  ;;  %v2097_v56 = vld [vmem:[%s5961_s8 + $0x168] sm:$0xff]  ;;  %2215 = vmatpush.msrb.mxu1 %v2152_v20 }
 0x199   :  { %v2161_v59 = vld [vmem:[%s5961_s8 + $0x368] sm:$0xff] }
 0x19a   :  { %v5295_v49 = vadd.f32 %v1358_v60, %v1340_v61  ;;  %v1831_v44 = vpop.f32.mrf.mxu0  ;;  %v1850_v0 = vpop.f32.mrf.mxu1  ;;  %v2092_v60 = vld [vmem:[%s5961_s8 + $0x140] sm:$0xff]  ;;  %2271 = vmatpush.msrb.mxu3 %v2161_v59  ;;  %v2065_v59 = vld [vmem:[%s5961_s8 + $0x68] sm:$0xff] }
 0x19b   :  { %v5297_v1 = vadd.f32 %v1850_v0, %v1831_v44  ;;  %2185 = vmatpush.msrb.mxu0 %v2092_v60  ;;  %v2088_v0 = vld [vmem:[%s5961_s8 + $0x120] sm:$0xff]  ;;  %v2129_v60 = vld [vmem:[%s5961_s8 + $0x268] sm:$0xff] }
 0x19c   :  { %2272 = vmatpush.msrb.mxu3 %v2157_v52 }
 0x19d   :  { %2186 = vmatpush.msrb.mxu0 %v2088_v0  ;;  %v2056_v0 = vld [vmem:[%s5961_s8 + $0x20] sm:$0xff] }
 0x19f   :  { %v1793_v21 = vpop.f32.mrf.mxu2  ;;  %v1812_v27 = vpop.f32.mrf.mxu3 }
 0x1a0   :  { %v1813_v34 = vadd.f32 %v1812_v27, %v1793_v21  ;;  %v2089_v21 = vld [vmem:[%s5961_s8 + $0x128] sm:$0xff]  ;;  %v1281_v27 = vadd.f32 %v5256_v17, %v1262_v18  ;;  %v2064_v18 = vld [vmem:[%s5961_s8 + $0x60] sm:$0xff] }
 0x1a2   :  { %v5302_v40 = vadd.f32 %v1813_v34, %v1276_v29  ;;  %v1833_v23 = vpop.f32.mrf.mxu0  ;;  %v1852_v46 = vpop.f32.mrf.mxu1  ;;  %v2153_v34 = vld [vmem:[%s5961_s8 + $0x328] sm:$0xff] }
 0x1a3   :  { %v1853_v53 = vadd.f32 %v1852_v46, %v1833_v23  ;;  %v2084_v23 = vld [vmem:[%s5961_s8 + $0x100] sm:$0xff]  ;;  %2273 = vmatpush.msrb.mxu3 %v2153_v34 }
 0x1a4   :  { %v2148_v46 = vld [vmem:[%s5961_s8 + $0x300] sm:$0xff]  ;;  %2187 = vmatpush.msrb.mxu0 %v2084_v23 }
 0x1a5   :  { %v5313_v26 = vadd.f32 %v1853_v53, %v5241_v12  ;;  %v2109_v12 = vld [vmem:[%s5961_s8 + $0x1c8] sm:$0xff]  ;;  %2216 = vmatpush.msrb.mxu1 %v2148_v46  ;;  %2274 = vmatpush.msrb.mxu3 %v2149_v57  ;;  %v2052_v23 = vld [vmem:[%s5961_s8] sm:$0xff]  ;;  %v2114_v57 = vld [vmem:[%s5961_s8 + $0x1f0] sm:$0xff] }
 0x1a6   :  { %2239 = vmatpush.msrb.mxu2 %v2109_v12  ;;  %v2085_v53 = vld [vmem:[%s5961_s8 + $0x108] sm:$0xff]  ;;  %2188 = vmatpush.msrb.mxu0 %v2080_v30  ;;  %v2116_v46 = vld [vmem:[%s5961_s8 + $0x200] sm:$0xff]  ;;  %v2178_v30 = vld [vmem:[%s5961_s8 + $0x3f0] sm:$0xff] }
 0x1a7   :  { %v1795_v47 = vpop.f32.mrf.mxu2  ;;  %v1814_v6 = vpop.f32.mrf.mxu3  ;;  %2217 = vmatpush.msrb.mxu1 %v2144_v22  ;;  %v2081_v12 = vld [vmem:[%s5961_s8 + $0xe8] sm:$0xff]  ;;  %2275 = vmatpush.msrb.mxu3 %v2145_v39  ;;  %v2110_v22 = vld [vmem:[%s5961_s8 + $0x1d0] sm:$0xff]  ;;  %v5549_v39 = vld [vmem:[%s5961_s8 + $0x1d8] sm:$0xff] }
 0x1a8   :  { %v1815_v13 = vadd.f32 %v1814_v6, %v1795_v47  ;;  %2240 = vmatpush.msrb.mxu2 %v2105_v35  ;;  %v2076_v47 = vld [vmem:[%s5961_s8 + $0xc0] sm:$0xff]  ;;  %v2077_v6 = vld [vmem:[%s5961_s8 + $0xc8] sm:$0xff] }
 0x1a9   :  { %2189 = vmatpush.msrb.mxu0 %v2076_v47  ;;  %2276 = vmatpush.msrb.mxu3 %v2141_v7  ;;  %v5554_v47 = vld [vmem:[%s5961_s8 + $0x3d8] sm:$0xff] }
 0x1aa   :  { %v5352_v11 = vadd.f32 %v1815_v13, %v1278_v37  ;;  %v1836_v42 = vpop.f32.mrf.mxu0  ;;  %v1855_v38 = vpop.f32.mrf.mxu1  ;;  %2241 = vmatpush.msrb.mxu2 %v2101_v43  ;;  %v2072_v37 = vld [vmem:[%s5961_s8 + $0xa0] sm:$0xff] }
 0x1ab   :  { %v1856_v14 = vadd.f32 %v1855_v38, %v1836_v42  ;;  %v2136_v13 = vld [vmem:[%s5961_s8 + $0x2a0] sm:$0xff]  ;;  %2190 = vmatpush.msrb.mxu0 %v2072_v37  ;;  %2277 = vmatpush.msrb.mxu3 %v2137_v10  ;;  %v5572_v37 = vld [vmem:[%s5961_s8 + $0x3b8] sm:$0xff] }
 0x1ac   :  { %2242 = vmatpush.msrb.mxu2 %v2097_v56  ;;  %v2068_v42 = vld [vmem:[%s5961_s8 + $0x80] sm:$0xff]  ;;  %v5585_v10 = vld [vmem:[%s5961_s8 + $0x198] sm:$0xff] }
 0x1ad   :  { %v5369_v19 = vadd.f32 %v1856_v14, %v5252_v51  ;;  %v2093_v51 = vld [vmem:[%s5961_s8 + $0x148] sm:$0xff]  ;;  %v2132_v38 = vld [vmem:[%s5961_s8 + $0x280] sm:$0xff]  ;;  %2191 = vmatpush.msrb.mxu0 %v2068_v42  ;;  %2278 = vmatpush.msrb.mxu3 %v2133_v54  ;;  %v5590_v42 = vld [vmem:[%s5961_s8 + $0x398] sm:$0xff] }
 0x1ae   :  { %2243 = vmatpush.msrb.mxu2 %v2093_v51  ;;  %v2069_v14 = vld [vmem:[%s5961_s8 + $0x88] sm:$0xff]  ;;  %v2124_v51 = vld [vmem:[%s5961_s8 + $0x240] sm:$0xff]  ;;  %v2094_v54 = vld [vmem:[%s5961_s8 + $0x150] sm:$0xff] }
 0x1af   :  { %v1798_v61 = vpop.f32.mrf.mxu2  ;;  %v1817_v44 = vpop.f32.mrf.mxu3  ;;  %2192 = vmatpush.msrb.mxu0 %v2064_v18  ;;  %2279 = vmatpush.msrb.mxu3 %v2129_v60  ;;  %v2158_v18 = vld [vmem:[%s5961_s8 + $0x350] sm:$0xff] }
 0x1b0   :  { %v1818_v29 = vadd.f32 %v1817_v44, %v1798_v61  ;;  %2244 = vmatpush.msrb.mxu2 %v2089_v21  ;;  %v2061_v61 = vld [vmem:[%s5961_s8 + $0x48] sm:$0xff]  ;;  %v2154_v60 = vld [vmem:[%s5961_s8 + $0x330] sm:$0xff] }
 0x1b1   :  { %v2125_v44 = vld [vmem:[%s5961_s8 + $0x248] sm:$0xff]  ;;  %2193 = vmatpush.msrb.mxu0 %v2060_v2 }
 0x1b2   :  { %v5408_v4 = vadd.f32 %v1818_v29, %v1281_v27  ;;  %v1838_v17 = vpop.f32.mrf.mxu0  ;;  %v1857_v48 = vpop.f32.mrf.mxu1  ;;  %2245 = vmatpush.msrb.mxu2 %v2085_v53  ;;  %v2057_v27 = vld [vmem:[%s5961_s8 + $0x28] sm:$0xff]  ;;  %2280 = vmatpush.msrb.mxu3 %v2125_v44  ;;  %v5647_v44 = vld [vmem:[%s5961_s8 + $0x338] sm:$0xff] }
 0x1b3   :  { %v1858_v5 = vadd.f32 %v1857_v48, %v1838_v17  ;;  %v2121_v29 = vld [vmem:[%s5961_s8 + $0x228] sm:$0xff]  ;;  %2194 = vmatpush.msrb.mxu0 %v2056_v0 }
 0x1b4   :  { %2246 = vmatpush.msrb.mxu2 %v2081_v12  ;;  %v2053_v17 = vld [vmem:[%s5961_s8 + $0x8] sm:$0xff]  ;;  %2281 = vmatpush.msrb.mxu3 %v2121_v29  ;;  %v2174_v12 = vld [vmem:[%s5961_s8 + $0x3d0] sm:$0xff] }
 0x1b5   :  { %v5423_v33 = vadd.f32 %v1858_v5, %v5260_v3  ;;  %v2140_v3 = vld [vmem:[%s5961_s8 + $0x2c0] sm:$0xff]  ;;  %v2117_v48 = vld [vmem:[%s5961_s8 + $0x208] sm:$0xff]  ;;  %2195 = vmatpush.msrb.mxu0 %v2052_v23  ;;  %v5533_v5 = vld [vmem:[%s5961_s8 + $0x1f8] sm:$0xff] }
 0x1b6   :  { %2218 = vmatpush.msrb.mxu1 %v2140_v3  ;;  %2247 = vmatpush.msrb.mxu2 %v2077_v6  ;;  %v2106_v3 = vld [vmem:[%s5961_s8 + $0x1b0] sm:$0xff] }
 0x1b7   :  { %v1800_v32 = vpop.f32.mrf.mxu2  ;;  %v1819_v35 = vpop.f32.mrf.mxu3  ;;  %2282 = vmatpush.msrb.mxu3 %v2117_v48  ;;  %2296 = vmatpush.msra.mxu0 %v2114_v57  ;;  %v2170_v6 = vld [vmem:[%s5961_s8 + $0x3b0] sm:$0xff]  ;;  %v5699_v57 = vld [vmem:[%s5961_s8 + $0xd8] sm:$0xff] }
 0x1b8   :  { %v1820_v62 = vadd.f32 %v1819_v35, %v1800_v32  ;;  %2219 = vmatpush.msrb.mxu1 %v2136_v13  ;;  %2248 = vmatpush.msrb.mxu2 %v2073_v25  ;;  %v5567_v35 = vld [vmem:[%s5961_s8 + $0x1b8] sm:$0xff]  ;;  %v2102_v25 = vld [vmem:[%s5961_s8 + $0x190] sm:$0xff] }
 0x1b9   :  { %2297 = vmatpush.msra.mxu0 %v2110_v22  ;;  %v2146_v23 = vld [vmem:[%s5961_s8 + $0x2f0] sm:$0xff] }
 0x1ba   :  { %v5462_v43 = vadd.f32 %v1820_v62, %v5265_v28  ;;  %v1907_v45 = vpop.f32.mrf.mxu0  ;;  %v1926_v50 = vpop.f32.mrf.mxu1  ;;  %2220 = vmatpush.msrb.mxu1 %v2132_v38  ;;  %v2128_v28 = vld [vmem:[%s5961_s8 + $0x260] sm:$0xff]  ;;  %2249 = vmatpush.msrb.mxu2 %v2069_v14  ;;  %v2166_v62 = vld [vmem:[%s5961_s8 + $0x390] sm:$0xff]  ;;  %v5606_v14 = vld [vmem:[%s5961_s8 + $0x178] sm:$0xff] }
 0x1bb   :  { %v1927_v56 = vadd.f32 %v1926_v50, %v1907_v45  ;;  %2298 = vmatpush.msra.mxu0 %v2106_v3  ;;  %v2098_v45 = vld [vmem:[%s5961_s8 + $0x170] sm:$0xff] }
 0x1bc   :  { %2221 = vmatpush.msrb.mxu1 %v2128_v28  ;;  %2250 = vmatpush.msrb.mxu2 %v2065_v59  ;;  %v2162_v50 = vld [vmem:[%s5961_s8 + $0x370] sm:$0xff]  ;;  %v5629_v28 = vld [vmem:[%s5961_s8 + $0x358] sm:$0xff] }
 0x1bd   :  { %v5489_v52 = vadd.f32 %v1927_v56, %v5267_v16  ;;  %v2120_v16 = vld [vmem:[%s5961_s8 + $0x220] sm:$0xff]  ;;  %2299 = vmatpush.msra.mxu0 %v2102_v25  ;;  %v5624_v56 = vld [vmem:[%s5961_s8 + $0x158] sm:$0xff]  ;;  %v2090_v59 = vld [vmem:[%s5961_s8 + $0x130] sm:$0xff] }
 0x1be   :  { %2222 = vmatpush.msrb.mxu1 %v2124_v51  ;;  %2251 = vmatpush.msrb.mxu2 %v2061_v61  ;;  %v5642_v61 = vld [vmem:[%s5961_s8 + $0x138] sm:$0xff]  ;;  %v2142_v48 = vld [vmem:[%s5961_s8 + $0x2d0] sm:$0xff] }
 0x1bf   :  { %v1869_v20 = vpop.f32.mrf.mxu2  ;;  %v1888_v21 = vpop.f32.mrf.mxu3  ;;  %2300 = vmatpush.msra.mxu0 %v2098_v45  ;;  %v2074_v22 = vld [vmem:[%s5961_s8 + $0xb0] sm:$0xff]  ;;  %v5735_v45 = vld [vmem:[%s5961_s8 + $0x98] sm:$0xff] }
 0x1c0   :  { %v1889_v34 = vadd.f32 %v1888_v21, %v1869_v20  ;;  %2223 = vmatpush.msrb.mxu1 %v2120_v16  ;;  %2252 = vmatpush.msrb.mxu2 %v2057_v27  ;;  %v2086_v16 = vld [vmem:[%s5961_s8 + $0x110] sm:$0xff]  ;;  %v5660_v21 = vld [vmem:[%s5961_s8 + $0x118] sm:$0xff] }
 0x1c1   :  { %2301 = vmatpush.msra.mxu0 %v2094_v54  ;;  %v2150_v20 = vld [vmem:[%s5961_s8 + $0x310] sm:$0xff]  ;;  %v5665_v27 = vld [vmem:[%s5961_s8 + $0x318] sm:$0xff] }
 0x1c2   :  { %v5522_v53 = vadd.f32 %v1889_v34, %v5273_v24  ;;  %2224 = vmatpush.msrb.mxu1 %v2116_v46  ;;  %v5538_v24 = vld [vmem:[%s5961_s8 + $0x3f8] sm:$0xff]  ;;  %2253 = vmatpush.msrb.mxu2 %v2053_v17  ;;  %v2082_v34 = vld [vmem:[%s5961_s8 + $0xf0] sm:$0xff] }
 0x1c3   :  { %3582 = vmatpush.msra.mxu3 %v5538_v24  ;;  %2302 = vmatpush.msra.mxu0 %v2090_v59  ;;  %v5681_v46 = vld [vmem:[%s5961_s8 + $0xf8] sm:$0xff]  ;;  %v2078_v17 = vld [vmem:[%s5961_s8 + $0xd0] sm:$0xff] }
 0x1c4   :  { %2325 = vmatpush.msra.mxu1 %v2178_v30  ;;  %3566 = vmatpush.msra.mxu2 %v5533_v5  ;;  %v5704_v30 = vld [vmem:[%s5961_s8 + $0x2d8] sm:$0xff]  ;;  %v2070_v25 = vld [vmem:[%s5961_s8 + $0x90] sm:$0xff] }
 0x1c5   :  { %3583 = vmatpush.msra.mxu3 %v5554_v47  ;;  %2303 = vmatpush.msra.mxu0 %v2086_v16  ;;  %v2130_v59 = vld [vmem:[%s5961_s8 + $0x270] sm:$0xff] }
 0x1c6   :  { %2326 = vmatpush.msra.mxu1 %v2174_v12  ;;  %3567 = vmatpush.msra.mxu2 %v5549_v39  ;;  %v2138_v12 = vld [vmem:[%s5961_s8 + $0x2b0] sm:$0xff] }
 0x1c7   :  { %v1871_v7 = vpop.f32.mrf.mxu2  ;;  %v1890_v32 = vpop.f32.mrf.mxu3  ;;  %3584 = vmatpush.msra.mxu3 %v5572_v37  ;;  %2304 = vmatpush.msra.mxu0 %v2082_v34  ;;  %v5785_v34 = vld [vmem:[%s5961_s8 + $0x258] sm:$0xff] }
 0x1c8   :  { %v1891_v13 = vadd.f32 %v1890_v32, %v1871_v7  ;;  %2327 = vmatpush.msra.mxu1 %v2170_v6  ;;  %3568 = vmatpush.msra.mxu2 %v5567_v35  ;;  %v5717_v7 = vld [vmem:[%s5961_s8 + $0xb8] sm:$0xff] }
 0x1c9   :  { %3585 = vmatpush.msra.mxu3 %v5590_v42  ;;  %2305 = vmatpush.msra.mxu0 %v2078_v17  ;;  %v5722_v32 = vld [vmem:[%s5961_s8 + $0x2b8] sm:$0xff]  ;;  %v2122_v17 = vld [vmem:[%s5961_s8 + $0x230] sm:$0xff] }
 0x1ca   :  { %v5593_v38 = vadd.f32 %v1891_v13, %v5281_v8  ;;  %2328 = vmatpush.msra.mxu1 %v2166_v62  ;;  %v5611_v8 = vld [vmem:[%s5961_s8 + $0x378] sm:$0xff]  ;;  %3569 = vmatpush.msra.mxu2 %v5585_v10  ;;  %v2134_v62 = vld [vmem:[%s5961_s8 + $0x290] sm:$0xff] }
 0x1cb   :  { %3586 = vmatpush.msra.mxu3 %v5611_v8  ;;  %2306 = vmatpush.msra.mxu0 %v2074_v22  ;;  %v5805_v22 = vld [vmem:[%s5961_s8 + $0x238] sm:$0xff] }
 0x1cc   :  { %2329 = vmatpush.msra.mxu1 %v2162_v50  ;;  %3570 = vmatpush.msra.mxu2 %v5606_v14  ;;  %v5740_v50 = vld [vmem:[%s5961_s8 + $0x298] sm:$0xff] }
 0x1cd   :  { %3587 = vmatpush.msra.mxu3 %v5629_v28  ;;  %2307 = vmatpush.msra.mxu0 %v2070_v25 }
 0x1ce   :  { %2330 = vmatpush.msra.mxu1 %v2158_v18  ;;  %3571 = vmatpush.msra.mxu2 %v5624_v56  ;;  %v2066_v18 = vld [vmem:[%s5961_s8 + $0x70] sm:$0xff] }
 0x1cf   :  { %v1874_v2 = vpop.f32.mrf.mxu2  ;;  %v1893_v51 = vpop.f32.mrf.mxu3  ;;  %3588 = vmatpush.msra.mxu3 %v5647_v44  ;;  %2308 = vmatpush.msra.mxu0 %v2066_v18 }
 0x1d0   :  { %v1894_v0 = vadd.f32 %v1893_v51, %v1874_v2  ;;  %2331 = vmatpush.msra.mxu1 %v2154_v60  ;;  %3572 = vmatpush.msra.mxu2 %v5642_v61  ;;  %v5756_v60 = vld [vmem:[%s5961_s8 + $0x78] sm:$0xff]  ;;  %v2062_v2 = vld [vmem:[%s5961_s8 + $0x50] sm:$0xff] }
 0x1d1   :  { %3589 = vmatpush.msra.mxu3 %v5665_v27  ;;  %v2126_v51 = vld [vmem:[%s5961_s8 + $0x250] sm:$0xff]  ;;  %2309 = vmatpush.msra.mxu0 %v2062_v2 }
 0x1d2   :  { %v5668_v29 = vadd.f32 %v1894_v0, %v5289_v9  ;;  %2332 = vmatpush.msra.mxu1 %v2150_v20  ;;  %v5686_v9 = vld [vmem:[%s5961_s8 + $0x2f8] sm:$0xff]  ;;  %3573 = vmatpush.msra.mxu2 %v5660_v21 }
 0x1d3   :  { %3590 = vmatpush.msra.mxu3 %v5686_v9  ;;  %v5780_v20 = vld [vmem:[%s5961_s8 + $0x58] sm:$0xff] }
 0x1d4   :  { %2333 = vmatpush.msra.mxu1 %v2146_v23  ;;  %3574 = vmatpush.msra.mxu2 %v5681_v46  ;;  %v2058_v23 = vld [vmem:[%s5961_s8 + $0x30] sm:$0xff] }
 0x1d5   :  { %3591 = vmatpush.msra.mxu3 %v5704_v30  ;;  %2310 = vmatpush.msra.mxu0 %v2058_v23 }
 0x1d6   :  { %2334 = vmatpush.msra.mxu1 %v2142_v48  ;;  %3575 = vmatpush.msra.mxu2 %v5699_v57  ;;  %v5800_v48 = vld [vmem:[%s5961_s8 + $0x38] sm:$0xff] }
 0x1d7   :  { %v1876_v3 = vpop.f32.mrf.mxu2  ;;  %v1895_v6 = vpop.f32.mrf.mxu3  ;;  %3592 = vmatpush.msra.mxu3 %v5722_v32 }
 0x1d8   :  { %v1896_v13 = vadd.f32 %v1895_v6, %v1876_v3  ;;  %2335 = vmatpush.msra.mxu1 %v2138_v12  ;;  %3576 = vmatpush.msra.mxu2 %v5717_v7  ;;  %v2054_v12 = vld [vmem:[%s5961_s8 + $0x10] sm:$0xff]  ;;  %v5818_v6 = vld [vmem:[%s5961_s8 + $0x18] sm:$0xff] }
 0x1d9   :  { %3593 = vmatpush.msra.mxu3 %v5740_v50  ;;  %v2118_v3 = vld [vmem:[%s5961_s8 + $0x210] sm:$0xff]  ;;  %2311 = vmatpush.msra.mxu0 %v2054_v12 }
 0x1da   :  { %v5743_v54 = vadd.f32 %v1896_v13, %v5295_v49  ;;  %2336 = vmatpush.msra.mxu1 %v2134_v62  ;;  %v5761_v49 = vld [vmem:[%s5961_s8 + $0x278] sm:$0xff]  ;;  %3577 = vmatpush.msra.mxu2 %v5735_v45 }
 0x1db   :  { %3594 = vmatpush.msra.mxu3 %v5761_v49  ;;  %v5823_v13 = vld [vmem:[%s5961_s8 + $0x218] sm:$0xff] }
 0x1dc   :  { %2337 = vmatpush.msra.mxu1 %v2130_v59  ;;  %3578 = vmatpush.msra.mxu2 %v5756_v60 }
 0x1dd   :  { %3595 = vmatpush.msra.mxu3 %v5785_v34 }
 0x1de   :  { %2338 = vmatpush.msra.mxu1 %v2126_v51  ;;  %3579 = vmatpush.msra.mxu2 %v5780_v20 }
 0x1df   :  { %v5773_v0 = vpop.f32.mrf.mxu2  ;;  %v5775_v16 = vpop.f32.mrf.mxu3  ;;  %3596 = vmatpush.msra.mxu3 %v5805_v22 }
 0x1e0   :  { %2196 = vmatmul.f32.vlgmr.msrb.gmra.mxu0 %v5773_v0  ;;  %2225 = vmatmul.f32.vlgmr.msrb.gmra.mxu1 %v5775_v16 }
 0x1e1   :  { %2254 = vmatmul.f32.vlgmr.msrb.gmra.mxu2 %v5773_v0  ;;  %2283 = vmatmul.f32.vlgmr.msrb.gmra.mxu3 %v5775_v16 }
 0x1e2   :  { %2339 = vmatpush.msra.mxu1 %v2122_v17  ;;  %3580 = vmatpush.msra.mxu2 %v5800_v48 }
 0x1e3   :  { %3597 = vmatpush.msra.mxu3 %v5823_v13  ;;  %2354 = vmatpush.msrb.mxu0 %v5533_v5 }
 0x1e4   :  { %2340 = vmatpush.msra.mxu1 %v2118_v3  ;;  %3581 = vmatpush.msra.mxu2 %v5818_v6 }
 0x1e5   :  { %2355 = vmatpush.msrb.mxu0 %v5549_v39 }
 0x1e6   :  { %2383 = vmatpush.msrb.mxu1 %v5538_v24 }
 0x1e7   :  { %v2014_v25 = vpop.f32.mrf.mxu2  ;;  %v2043_v62 = vpop.f32.mrf.mxu3  ;;  %2356 = vmatpush.msrb.mxu0 %v5567_v35 }
 0x1e8   :  { %2199 = vmatmul.f32.gmra.mxu0 %v2014_v25  ;;  %2228 = vmatmul.f32.gmra.mxu1 %v2043_v62  ;;  %v1928_v35 = vpop.f32.mrf.mxu1 }
 0x1e9   :  { %2257 = vmatmul.f32.gmra.mxu2 %v2014_v25  ;;  %2286 = vmatmul.f32.gmra.mxu3 %v2043_v62 }
 0x1ea   :  { %2384 = vmatpush.msrb.mxu1 %v5554_v47  ;;  %2357 = vmatpush.msrb.mxu0 %v5585_v10  ;;  %v1909_v47 = vpop.f32.mrf.mxu0 }
 0x1ec   :  { %2385 = vmatpush.msrb.mxu1 %v5572_v37  ;;  %2358 = vmatpush.msrb.mxu0 %v5606_v14 }
 0x1ee   :  { %2386 = vmatpush.msrb.mxu1 %v5590_v42  ;;  %2359 = vmatpush.msrb.mxu0 %v5624_v56  ;;  %v5878_v56 = vld [vmem:[%s5962_s2] sm:$0xf] }
 0x1ef   :  { %v2017_v18 = vpop.f32.mrf.mxu2  ;;  %v2046_v5 = vpop.f32.mrf.mxu3 }
 0x1f0   :  { %2202 = vmatmul.f32.gmra.mxu0 %v2017_v18  ;;  %2231 = vmatmul.f32.gmra.mxu1 %v2046_v5  ;;  %v5867_v10 = vpop.f32.mrf.mxu1 }
 0x1f1   :  { %2260 = vmatmul.f32.gmra.mxu2 %v2017_v18  ;;  %2289 = vmatmul.f32.gmra.mxu3 %v2046_v5 }
 0x1f2   :  { %2387 = vmatpush.msrb.mxu1 %v5611_v8  ;;  %2360 = vmatpush.msrb.mxu0 %v5642_v61  ;;  %v5865_v37 = vpop.f32.mrf.mxu0  ;;  %v842_v8 = vadd.f32 %v5144_v63, %v5142_v15  ;;  %v1955_v15 = vperm.slane %v5878_v56, 1 }
 0x1f4   :  { %2388 = vmatpush.msrb.mxu1 %v5629_v28  ;;  %2361 = vmatpush.msrb.mxu0 %v5660_v21  ;;  %v1954_v28 = vperm.slane %v5878_v56, 0  ;;  %v1295_v61 = vadd.f32 %v5229_v41, %v842_v8  ;;  %v1967_v2 = vadd.f32 %v1955_v15, %v5313_v26  ;;  %v1971_v26 = vadd.f32 %v1955_v15, %v5369_v19 }
 0x1f6   :  { %2389 = vmatpush.msrb.mxu1 %v5647_v44  ;;  %2362 = vmatpush.msrb.mxu0 %v5681_v46 }
 0x1f7   :  { %v2020_v24 = vpop.f32.mrf.mxu2  ;;  %v2049_v39 = vpop.f32.mrf.mxu3 }
 0x1f8   :  { %2205 = vmatmul.f32.gmra.mxu0 %v2020_v24  ;;  %2234 = vmatmul.f32.gmra.mxu1 %v2049_v39  ;;  %v5871_v14 = vpop.f32.mrf.mxu1 }
 0x1f9   :  { %2263 = vmatmul.f32.gmra.mxu2 %v2020_v24  ;;  %2292 = vmatmul.f32.gmra.mxu3 %v2049_v39 }
 0x1fa   :  { %2390 = vmatpush.msrb.mxu1 %v5665_v27  ;;  %2363 = vmatpush.msrb.mxu0 %v5699_v57  ;;  %v5869_v42 = vpop.f32.mrf.mxu0  ;;  %v1962_v27 = vadd.f32 %v1954_v28, %v5302_v40  ;;  %v1966_v40 = vadd.f32 %v1954_v28, %v5352_v11  ;;  %v1970_v11 = vadd.f32 %v1954_v28, %v5408_v4 }
 0x1fb   :  { %v1974_v4 = vadd.f32 %v1954_v28, %v5462_v43 }
 0x1fc   :  { %2391 = vmatpush.msrb.mxu1 %v5686_v9  ;;  %2364 = vmatpush.msrb.mxu0 %v5717_v7  ;;  %v1314_v9 = vadd.f32 %v5231_v58, %v1295_v61 }
 0x1fe   :  { %2392 = vmatpush.msrb.mxu1 %v5704_v30  ;;  %2365 = vmatpush.msrb.mxu0 %v5735_v45  ;;  %v1937_v30 = vadd.f32 %v5297_v1, %v1314_v9 }
 0x200   :  { %2312 = vmatmul.f32.vlgmr.msra.gmra.mxu0 %v5773_v0  ;;  %2341 = vmatmul.f32.vlgmr.msra.gmra.mxu1 %v5775_v16 }
 0x201   :  { %2373 = vmatmul.f32.vlgmr.msra.gmra.mxu2 %v2014_v25  ;;  %2402 = vmatmul.f32.vlgmr.msra.gmra.mxu3 %v2043_v62 }
 0x202   :  { %2393 = vmatpush.msrb.mxu1 %v5722_v32  ;;  %2366 = vmatpush.msrb.mxu0 %v5756_v60  ;;  %v1963_v32 = vadd.f32 %v1955_v15, %v1937_v30 }
 0x204   :  { %2394 = vmatpush.msrb.mxu1 %v5740_v50  ;;  %2367 = vmatpush.msrb.mxu0 %v5780_v20 }
 0x206   :  { %2395 = vmatpush.msrb.mxu1 %v5761_v49  ;;  %2368 = vmatpush.msrb.mxu0 %v5800_v48 }
 0x208   :  { %2315 = vmatmul.f32.gmra.mxu0 %v2014_v25  ;;  %2344 = vmatmul.f32.gmra.mxu1 %v2043_v62  ;;  %v1956_v62 = vperm.slane %v5878_v56, 2 }
 0x209   :  { %2376 = vmatmul.f32.gmra.mxu2 %v2017_v18  ;;  %2405 = vmatmul.f32.gmra.mxu3 %v2046_v5 }
 0x20a   :  { %2396 = vmatpush.msrb.mxu1 %v5785_v34  ;;  %2369 = vmatpush.msrb.mxu0 %v5818_v6  ;;  %v1964_v28 = vadd.f32 %v1956_v62, %v5522_v53  ;;  %v1932_v53 = vadd.f32 %v5867_v10, %v5865_v37 }
 0x20c   :  { %2397 = vmatpush.msrb.mxu1 %v5805_v22 }
 0x20e   :  { %2398 = vmatpush.msrb.mxu1 %v5823_v13 }
 0x210   :  { %2318 = vmatmul.f32.gmra.mxu0 %v2017_v18  ;;  %2347 = vmatmul.f32.gmra.mxu1 %v2046_v5  ;;  %v1929_v5 = vadd.f32 %v1928_v35, %v1909_v47 }
 0x211   :  { %2379 = vmatmul.f32.gmra.mxu2 %v2020_v24  ;;  %2408 = vmatmul.f32.gmra.mxu3 %v2049_v39 }
 0x218   :  { %2321 = vmatmul.f32.gmra.mxu0 %v2020_v24  ;;  %2350 = vmatmul.f32.gmra.mxu1 %v2049_v39  ;;  %v1975_v24 = vadd.f32 %v1955_v15, %v5423_v33  ;;  %v1957_v33 = vperm.slane %v5878_v56, 3  ;;  %v1934_v56 = vadd.f32 %v5871_v14, %v5869_v42 }
 0x220   :  { %2370 = vmatmul.f32.vlgmr.msrb.gmra.mxu0 %v5773_v0  ;;  %2399 = vmatmul.f32.vlgmr.msrb.gmra.mxu1 %v5775_v16 }
 0x25d   :  { %v2197_v44 = vpop.f32.mrf.mxu0  ;;  %v2226_v21 = vpop.f32.mrf.mxu1 }
 0x25e   :  { %v2227_v46 = vadd.f32 %v2226_v21, %v2197_v44 }
 0x260   :  { %v2412_v57 = vadd.f32 %v2227_v46, %v1962_v27  ;;  %v1943_v27 = vadd.f32 %v1929_v5, %v5275_v31  ;;  %v1968_v31 = vadd.f32 %v1956_v62, %v5593_v38 }
 0x262   :  { %2428 = vst [vmem:[%s5963_s9] sm:$0xff] %v2412_v57  ;;  %v1969_v46 = vadd.f32 %v1957_v33, %v1943_v27 }
 0x264   :  { %v2255_v63 = vpop.f32.mrf.mxu2  ;;  %v2284_v7 = vpop.f32.mrf.mxu3 }
 0x265   :  { %v2285_v41 = vadd.f32 %v2284_v7, %v2255_v63  ;;  %v2200_v45 = vpop.f32.mrf.mxu0  ;;  %v2229_v50 = vpop.f32.mrf.mxu1 }
 0x266   :  { %v2230_v59 = vadd.f32 %v2229_v50, %v2200_v45 }
 0x267   :  { %v2413_v60 = vadd.f32 %v2285_v41, %v1963_v32  ;;  %v1947_v32 = vadd.f32 %v1932_v53, %v5283_v36 }
 0x268   :  { %v2416_v58 = vadd.f32 %v2230_v59, %v1966_v40  ;;  %v1972_v40 = vadd.f32 %v1956_v62, %v5668_v29  ;;  %v1976_v29 = vadd.f32 %v1956_v62, %v5743_v54 }
 0x269   :  { %2429 = vst [vmem:[%s5963_s9 + $0x8] sm:$0xff] %v2413_v60  ;;  %v1973_v41 = vadd.f32 %v1957_v33, %v1947_v32 }
 0x26a   :  { %2432 = vst [vmem:[%s5963_s9 + $0x20] sm:$0xff] %v2416_v58  ;;  %v1951_v58 = vadd.f32 %v1934_v56, %v5291_v55 }
 0x26c   :  { %v2258_v1 = vpop.f32.mrf.mxu2  ;;  %v2287_v49 = vpop.f32.mrf.mxu3 }
 0x26d   :  { %v2288_v51 = vadd.f32 %v2287_v49, %v2258_v1  ;;  %v2203_v0 = vpop.f32.mrf.mxu0  ;;  %v2232_v16 = vpop.f32.mrf.mxu1  ;;  %v1977_v1 = vadd.f32 %v1957_v33, %v1951_v58 }
 0x26e   :  { %v2233_v20 = vadd.f32 %v2232_v16, %v2203_v0 }
 0x26f   :  { %v2417_v34 = vadd.f32 %v2288_v51, %v1967_v2 }
 0x270   :  { %v2420_v23 = vadd.f32 %v2233_v20, %v1970_v11 }
 0x271   :  { %2433 = vst [vmem:[%s5963_s9 + $0x28] sm:$0xff] %v2417_v34  ;;  %v1965_v34 = vadd.f32 %v1957_v33, %v5489_v52 }
 0x272   :  { %2436 = vst [vmem:[%s5963_s9 + $0x40] sm:$0xff] %v2420_v23 }
 0x274   :  { %v2261_v17 = vpop.f32.mrf.mxu2  ;;  %v2290_v48 = vpop.f32.mrf.mxu3 }
 0x275   :  { %v2291_v22 = vadd.f32 %v2290_v48, %v2261_v17  ;;  %v2206_v12 = vpop.f32.mrf.mxu0  ;;  %v2235_v3 = vpop.f32.mrf.mxu1 }
 0x276   :  { %v2236_v6 = vadd.f32 %v2235_v3, %v2206_v12 }
 0x277   :  { %v2421_v13 = vadd.f32 %v2291_v22, %v1971_v26 }
 0x278   :  { %v2424_v25 = vadd.f32 %v2236_v6, %v1974_v4 }
 0x279   :  { %2437 = vst [vmem:[%s5963_s9 + $0x48] sm:$0xff] %v2421_v13 }
 0x27a   :  { %2440 = vst [vmem:[%s5963_s9 + $0x60] sm:$0xff] %v2424_v25 }
 0x27c   :  { %v2264_v18 = vpop.f32.mrf.mxu2  ;;  %v2293_v19 = vpop.f32.mrf.mxu3 }
 0x27d   :  { %v2294_v39 = vadd.f32 %v2293_v19, %v2264_v18  ;;  %v2313_v43 = vpop.f32.mrf.mxu0  ;;  %v2342_v8 = vpop.f32.mrf.mxu1 }
 0x27e   :  { %v2343_v61 = vadd.f32 %v2342_v8, %v2313_v43 }
 0x27f   :  { %v2425_v44 = vadd.f32 %v2294_v39, %v1975_v24 }
 0x280   :  { %v2414_v21 = vadd.f32 %v2343_v61, %v1964_v28 }
 0x281   :  { %2441 = vst [vmem:[%s5963_s9 + $0x68] sm:$0xff] %v2425_v44 }
 0x282   :  { %2430 = vst [vmem:[%s5963_s9 + $0x10] sm:$0xff] %v2414_v21 }
 0x284   :  { %v2374_v47 = vpop.f32.mrf.mxu2  ;;  %v2403_v35 = vpop.f32.mrf.mxu3 }
 0x285   :  { %v2404_v9 = vadd.f32 %v2403_v35, %v2374_v47  ;;  %v2316_v57 = vpop.f32.mrf.mxu0  ;;  %v2345_v30 = vpop.f32.mrf.mxu1 }
 0x286   :  { %v2346_v15 = vadd.f32 %v2345_v30, %v2316_v57 }
 0x287   :  { %v2419_v63 = vadd.f32 %v2404_v9, %v1969_v46 }
 0x288   :  { %v2418_v7 = vadd.f32 %v2346_v15, %v1968_v31 }
 0x289   :  { %2435 = vst [vmem:[%s5963_s9 + $0x38] sm:$0xff] %v2419_v63 }
 0x28a   :  { %2434 = vst [vmem:[%s5963_s9 + $0x30] sm:$0xff] %v2418_v7 }
 0x28c   :  { %v2377_v37 = vpop.f32.mrf.mxu2  ;;  %v2406_v10 = vpop.f32.mrf.mxu3 }
 0x28d   :  { %v2407_v38 = vadd.f32 %v2406_v10, %v2377_v37  ;;  %v2319_v45 = vpop.f32.mrf.mxu0  ;;  %v2348_v50 = vpop.f32.mrf.mxu1 }
 0x28e   :  { %v2349_v36 = vadd.f32 %v2348_v50, %v2319_v45 }
 0x28f   :  { %v2423_v59 = vadd.f32 %v2407_v38, %v1973_v41 }
 0x290   :  { %v2422_v60 = vadd.f32 %v2349_v36, %v1972_v40 }
 0x291   :  { %2439 = vst [vmem:[%s5963_s9 + $0x58] sm:$0xff] %v2423_v59 }
 0x292   :  { %2438 = vst [vmem:[%s5963_s9 + $0x50] sm:$0xff] %v2422_v60 }
 0x294   :  { %v2380_v42 = vpop.f32.mrf.mxu2  ;;  %v2409_v14 = vpop.f32.mrf.mxu3 }
 0x295   :  { %v2410_v49 = vadd.f32 %v2409_v14, %v2380_v42  ;;  %v2322_v2 = vpop.f32.mrf.mxu0  ;;  %v2351_v51 = vpop.f32.mrf.mxu1 }
 0x296   :  { %v2352_v0 = vadd.f32 %v2351_v51, %v2322_v2 }
 0x297   :  { %v2427_v16 = vadd.f32 %v2410_v49, %v1977_v1 }
 0x298   :  { %v2426_v11 = vadd.f32 %v2352_v0, %v1976_v29 }
 0x299   :  { %2443 = vst [vmem:[%s5963_s9 + $0x78] sm:$0xff] %v2427_v16 }
 0x29a   :  { %2442 = vst [vmem:[%s5963_s9 + $0x70] sm:$0xff] %v2426_v11 }
 0x29d   :  { %v2371_v55 = vpop.f32.mrf.mxu0  ;;  %v2400_v20 = vpop.f32.mrf.mxu1 }
 0x29e   :  { %v2401_v23 = vadd.f32 %v2400_v20, %v2371_v55 }
 0x2a0   :  { %v2415_v17 = vadd.f32 %v2401_v23, %v1965_v34 }
 0x2a2   :  { %2431 = vst [vmem:[%s5963_s9 + $0x18] sm:$0xff] %v2415_v17 }

// kernel: autoencoder_forward.19
= control target key start
LH: loop header
LB: loop body
LE: loop exit
PB: predicated region body
PF: predicated region fallthrough
CT: control target
= control target key end

     0   :  { %v2025_v2 = vmov 0   ;;  %s2609_s0 = inlined_call_operand.vmem [shape: f32[32,512], index: 0, kind: input, shape index: {}]   ;;  %s2610_s1 = inlined_call_operand.vmem [shape: bf16[3,512,16], index: 1, kind: input, shape index: {}]   ;;  %s2611_s2 = inlined_call_operand.vmem [shape: f32[1,16], index: 2, kind: input, shape index: {}]   ;;  %s2612_s3 = inlined_call_operand.vmem [shape: f32[32,1], index: 3, kind: input, shape index: {}]   ;;  %s2613_s4 = inlined_call_operand.vmem [shape: f32[32,1], index: 4, kind: input, shape index: {}]   ;;  %s2614_s5 = inlined_call_operand.hbm [shape: f32[32,16], index: 5, kind: output, shape index: {}]  }
   0x1   :  { %v208_v0 = vld [vmem:[%s2612_s3 + $0x10] sm:$0xff]  ;;  %v206_v1 = vld [vmem:[%s2612_s3] sm:$0xff]  ;;  %1996 = vset.pattern.permute.xlu1 %v2025_v2  ;;  %1995 = vset.pattern.permute.xlu0 %v2025_v2  ;;  %v209_v5 = vld [vmem:[%s2612_s3 + $0x18] sm:$0xff] }
   0x2   :  { %vm212_vm0 = vcmp.gt.f32.partialorder %v208_v0, 0.0  ;;  %vm210_vm1 = vcmp.gt.f32.partialorder %v206_v1, 0.0  ;;  %v207_v6 = vld [vmem:[%s2612_s3 + $0x8] sm:$0xff]  ;;  %1997 = vset.pattern.permute.xlu2 %v2025_v2  ;;  %v270_v7 = vld [vmem:[%s2613_s4] sm:$0xff]  ;;  %v1950_v8 = vld [vmem:[%s2610_s1 + $0x1b8] sm:$0xff]  ;;  %vm213_vm3 = vcmp.gt.f32.partialorder %v209_v5, 0.0 }
   0x3   :  { %v216_v3 = vsel %vm212_vm0, 1, %v2025_v2  ;;  %v214_v4 = vsel %vm210_vm1, 1, %v2025_v2  ;;  %vm274_vm2 = vcmp.gt.f32.partialorder %v270_v7, 0.0  ;;  %v1958_v9 = vld [vmem:[%s2610_s1 + $0x1f8] sm:$0xff]  ;;  %v271_v11 = vld [vmem:[%s2613_s4 + $0x8] sm:$0xff]  ;;  %vm211_vm4 = vcmp.gt.f32.partialorder %v207_v6, 0.0  ;;  %701 = vmatpush.bf16.msra.mxu2 %v1950_v8 }
   0x4   :  { %225 = vperm.xlu1 %1996, %v216_v3   ;;  %219 = vperm.xlu0 %1995, %v214_v4   ;;  %v278_v10 = vsel %vm274_vm2, 1, %v2025_v2  ;;  %v1934_v12 = vld [vmem:[%s2610_s1 + $0x138] sm:$0xff]  ;;  %v1949_v14 = vld [vmem:[%s2610_s1 + $0x1b0] sm:$0xff]  ;;  %vm275_vm5 = vcmp.gt.f32.partialorder %v271_v11, 0.0  ;;  %v217_v17 = vsel %vm213_vm3, 1, %v2025_v2  ;;  %v215_v18 = vsel %vm211_vm4, 1, %v2025_v2 }
   0x5   :  { %v1942_v13 = vld [vmem:[%s2610_s1 + $0x178] sm:$0xff]  ;;  %283 = vperm.xlu2 %1997, %v278_v10   ;;  %720 = vmatpush.bf16.msra.mxu3 %v1958_v9  ;;  %v1957_v15 = vld [vmem:[%s2610_s1 + $0x1f0] sm:$0xff]  ;;  %v1948_v21 = vld [vmem:[%s2610_s1 + $0x1a8] sm:$0xff]  ;;  %v279_v23 = vsel %vm275_vm5, 1, %v2025_v2 }
   0x6   :  { %663 = vmatpush.bf16.msra.mxu0 %v1934_v12  ;;  %v1933_v16 = vld [vmem:[%s2610_s1 + $0x130] sm:$0xff]  ;;  %682 = vmatpush.bf16.msra.mxu1 %v1942_v13  ;;  %v273_v20 = vld [vmem:[%s2613_s4 + $0x18] sm:$0xff]  ;;  %v1956_v24 = vld [vmem:[%s2610_s1 + $0x1e8] sm:$0xff] }
   0x7   :  { %v1941_v19 = vld [vmem:[%s2610_s1 + $0x170] sm:$0xff]  ;;  %702 = vmatpush.bf16.msra.mxu2 %v1949_v14  ;;  %v1932_v25 = vld [vmem:[%s2610_s1 + $0x128] sm:$0xff]  ;;  %vm277_vm6 = vcmp.gt.f32.partialorder %v273_v20, 0.0  ;;  %v1947_v27 = vld [vmem:[%s2610_s1 + $0x1a0] sm:$0xff] }
   0x8   :  { %v272_v22 = vld [vmem:[%s2613_s4 + $0x10] sm:$0xff]  ;;  %v1940_v26 = vld [vmem:[%s2610_s1 + $0x168] sm:$0xff]  ;;  %v1955_v28 = vld [vmem:[%s2610_s1 + $0x1e0] sm:$0xff]  ;;  %v281_v32 = vsel %vm277_vm6, 1, %v2025_v2 }
   0x9   :  { %721 = vmatpush.bf16.msra.mxu3 %v1957_v15  ;;  %vm276_vm7 = vcmp.gt.f32.partialorder %v272_v22, 0.0  ;;  %v1931_v29 = vld [vmem:[%s2610_s1 + $0x120] sm:$0xff]  ;;  %v1946_v31 = vld [vmem:[%s2610_s1 + $0x198] sm:$0xff]  ;;  %v26_v36 = vld [vmem:[%s2609_s0 + $0x10] sm:$0xff] }
   0xa   :  { %664 = vmatpush.bf16.msra.mxu0 %v1933_v16  ;;  %683 = vmatpush.bf16.msra.mxu1 %v1941_v19  ;;  %v1939_v30 = vld [vmem:[%s2610_s1 + $0x160] sm:$0xff]  ;;  %v280_v33 = vsel %vm276_vm7, 1, %v2025_v2  ;;  %v1954_v34 = vld [vmem:[%s2610_s1 + $0x1d8] sm:$0xff]  ;;  %v30_v38 = vld [vmem:[%s2609_s0 + $0x30] sm:$0xff]  ;;  %v42_v45 = vmax.f32 %v26_v36, 0.0 }
   0xb   :  { %703 = vmatpush.bf16.msra.mxu2 %v1948_v21  ;;  %v1930_v35 = vld [vmem:[%s2610_s1 + $0x118] sm:$0xff]  ;;  %v24_v40 = vld [vmem:[%s2609_s0] sm:$0xff]  ;;  %v25_v41 = vld [vmem:[%s2609_s0 + $0x8] sm:$0xff]  ;;  %v46_v47 = vmax.f32 %v30_v38, 0.0 }
   0xc   :  { %228 = vperm.xlu1 %1996, %v217_v17   ;;  %222 = vperm.xlu0 %1995, %v215_v18   ;;  %v27_v37 = vld [vmem:[%s2609_s0 + $0x18] sm:$0xff]  ;;  %v28_v42 = vld [vmem:[%s2609_s0 + $0x20] sm:$0xff]  ;;  %v29_v43 = vld [vmem:[%s2609_s0 + $0x28] sm:$0xff]  ;;  %v40_v50 = vmax.f32 %v24_v40, 0.0  ;;  %v41_v51 = vmax.f32 %v25_v41, 0.0 }
   0xd   :  { %286 = vperm.xlu2 %1997, %v279_v23   ;;  %722 = vmatpush.bf16.msra.mxu3 %v1956_v24  ;;  %v31_v39 = vld [vmem:[%s2609_s0 + $0x38] sm:$0xff]  ;;  %v43_v46 = vmax.f32 %v27_v37, 0.0  ;;  %v1945_v49 = vld [vmem:[%s2610_s1 + $0x190] sm:$0xff]  ;;  %v44_v52 = vmax.f32 %v28_v42, 0.0  ;;  %v45_v53 = vmax.f32 %v29_v43, 0.0  ;;  %v1944_v59 = vld [vmem:[%s2610_s1 + $0x188] sm:$0xff] }
   0xe   :  { %665 = vmatpush.bf16.msra.mxu0 %v1932_v25  ;;  %684 = vmatpush.bf16.msra.mxu1 %v1940_v26  ;;  %v1938_v44 = vld [vmem:[%s2610_s1 + $0x158] sm:$0xff]  ;;  %v47_v48 = vmax.f32 %v31_v39, 0.0  ;;  %v1953_v54 = vld [vmem:[%s2610_s1 + $0x1d0] sm:$0xff]  ;;  %v56_v60 = vpack.c.bf16 %v41_v51, %v40_v50 }
   0xf   :  { %704 = vmatpush.bf16.msra.mxu2 %v1947_v27  ;;  %v1929_v55 = vld [vmem:[%s2610_s1 + $0x110] sm:$0xff]  ;;  %v57_v57 = vpack.c.bf16 %v43_v46, %v42_v45  ;;  %v58_v61 = vpack.c.bf16 %v45_v53, %v44_v52 }
  0x10   :  { %v1937_v56 = vld [vmem:[%s2610_s1 + $0x150] sm:$0xff]  ;;  %v59_v58 = vpack.c.bf16 %v47_v48, %v46_v47 }
  0x11   :  { %723 = vmatpush.bf16.msra.mxu3 %v1955_v28 }
  0x12   :  { %666 = vmatpush.bf16.msra.mxu0 %v1931_v29  ;;  %685 = vmatpush.bf16.msra.mxu1 %v1939_v30 }
  0x13   :  { %705 = vmatpush.bf16.msra.mxu2 %v1946_v31 }
  0x14   :  { %292 = vperm.xlu1 %1996, %v281_v32   ;;  %289 = vperm.xlu0 %1995, %v280_v33  }
  0x15   :  { %724 = vmatpush.bf16.msra.mxu3 %v1954_v34 }
  0x16   :  { %667 = vmatpush.bf16.msra.mxu0 %v1930_v35  ;;  %686 = vmatpush.bf16.msra.mxu1 %v1938_v44 }
  0x17   :  { %706 = vmatpush.bf16.msra.mxu2 %v1945_v49 }
  0x18   :  { %10 = vsyncpa [#allocation3], 0  ;;  %v1952_v62 = vld [vmem:[%s2610_s1 + $0x1c8] sm:$0xff]  ;;  %v74_v1 = vunpack.c.l.b16 %v57_v57  ;;  %v78_v3 = vunpack.c.l.b16 %v59_v58  ;;  %v1943_v4 = vld [vmem:[%s2610_s1 + $0x180] sm:$0xff]  ;;  %v75_v5 = vunpack.c.h.b16 %v57_v57  ;;  %v79_v6 = vunpack.c.h.b16 %v59_v58  ;;  %s1363_s15 = sshll.u32 %s2614_s5, 4  ;;  %s2027_s16 = smov 128   ;;  %s1364_s15 = int_to_ptr.hbm [resolvable:$true] %s1363_s15 }
  0x19   :  { %725 = vmatpush.bf16.msra.mxu3 %v1953_v54  ;;  %v1928_v63 = vld [vmem:[%s2610_s1 + $0x108] sm:$0xff]  ;;  %v72_v7 = vunpack.c.l.b16 %v56_v60  ;;  %v76_v8 = vunpack.c.l.b16 %v58_v61  ;;  %v1951_v9 = vld [vmem:[%s2610_s1 + $0x1c0] sm:$0xff]  ;;  %v73_v12 = vunpack.c.h.b16 %v56_v60  ;;  %v77_v13 = vunpack.c.h.b16 %v58_v61  ;;  %v1918_v14 = vld [vmem:[%s2610_s1 + $0xb8] sm:$0xff]  ;;  %s2028_s17 = smov 8  }
  0x1a   :  { %668 = vmatpush.bf16.msra.mxu0 %v1929_v55  ;;  %687 = vmatpush.bf16.msra.mxu1 %v1937_v56  ;;  %v1936_v0 = vld [vmem:[%s2610_s1 + $0x148] sm:$0xff]  ;;  %v1927_v10 = vld [vmem:[%s2610_s1 + $0x100] sm:$0xff]  ;;  %v1902_v15 = vld [vmem:[%s2610_s1 + $0x38] sm:$0xff]  ;;  %v2220_v16 = vpack.c.b16 %v78_v3, %v74_v1  ;;  %v2234_v21 = vpack.c.b16 %v79_v6, %v75_v5  ;;  %vm96_vm11 = vsmask.f32 256  ;;  %vm165_vm12 = vcmask 1040384  }
  0x1b   :  { %707 = vmatpush.bf16.msra.mxu2 %v1944_v59  ;;  %v1935_v11 = vld [vmem:[%s2610_s1 + $0x140] sm:$0xff]  ;;  %v1910_v17 = vld [vmem:[%s2610_s1 + $0x78] sm:$0xff]  ;;  %v34_v19 = vld [vmem:[%s2609_s0 + $0x50] sm:$0xff]  ;;  %v2236_v22 = vpack.c.b16 %v76_v8, %v72_v7  ;;  %v2256_v29 = vpack.c.b16 %v77_v13, %v73_v12 }
  0x1c   :  { %v1926_v18 = vld [vmem:[%s2610_s1 + $0xf8] sm:$0xff]  ;;  %v38_v23 = vld [vmem:[%s2609_s0 + $0x70] sm:$0xff]  ;;  %v32_v25 = vld [vmem:[%s2609_s0 + $0x40] sm:$0xff]  ;;  %v50_v32 = vmax.f32 %v34_v19, 0.0 }
  0x1d   :  { %726 = vmatpush.bf16.msra.mxu3 %v1952_v62  ;;  %v35_v20 = vld [vmem:[%s2609_s0 + $0x58] sm:$0xff]  ;;  %v33_v26 = vld [vmem:[%s2609_s0 + $0x48] sm:$0xff]  ;;  %v36_v27 = vld [vmem:[%s2609_s0 + $0x60] sm:$0xff]  ;;  %v54_v34 = vmax.f32 %v38_v23, 0.0  ;;  %v48_v36 = vmax.f32 %v32_v25, 0.0 }
  0x1e   :  { %669 = vmatpush.bf16.msra.mxu0 %v1928_v63  ;;  %688 = vmatpush.bf16.msra.mxu1 %v1936_v0  ;;  %v39_v24 = vld [vmem:[%s2609_s0 + $0x78] sm:$0xff]  ;;  %v37_v28 = vld [vmem:[%s2609_s0 + $0x68] sm:$0xff]  ;;  %v1917_v30 = vld [vmem:[%s2610_s1 + $0xb0] sm:$0xff]  ;;  %v51_v33 = vmax.f32 %v35_v20, 0.0  ;;  %v49_v37 = vmax.f32 %v33_v26, 0.0  ;;  %v52_v38 = vmax.f32 %v36_v27, 0.0 }
  0x1f   :  { %708 = vmatpush.bf16.msra.mxu2 %v1943_v4  ;;  %v1901_v31 = vld [vmem:[%s2610_s1 + $0x30] sm:$0xff]  ;;  %v55_v35 = vmax.f32 %v39_v24, 0.0  ;;  %v53_v39 = vmax.f32 %v37_v28, 0.0  ;;  %v1916_v42 = vld [vmem:[%s2610_s1 + $0xa8] sm:$0xff]  ;;  %v1915_v50 = vld [vmem:[%s2610_s1 + $0xa0] sm:$0xff] }
  0x20   :  { %v1909_v40 = vld [vmem:[%s2610_s1 + $0x70] sm:$0xff]  ;;  %v61_v43 = vpack.c.bf16 %v51_v33, %v50_v32  ;;  %v1900_v45 = vld [vmem:[%s2610_s1 + $0x28] sm:$0xff]  ;;  %v60_v46 = vpack.c.bf16 %v49_v37, %v48_v36  ;;  %v1899_v53 = vld [vmem:[%s2610_s1 + $0x20] sm:$0xff] }
  0x21   :  { %727 = vmatpush.bf16.msra.mxu3 %v1951_v9  ;;  %v1925_v41 = vld [vmem:[%s2610_s1 + $0xf0] sm:$0xff]  ;;  %v63_v44 = vpack.c.bf16 %v55_v35, %v54_v34  ;;  %v62_v47 = vpack.c.bf16 %v53_v39, %v52_v38  ;;  %v1908_v48 = vld [vmem:[%s2610_s1 + $0x68] sm:$0xff]  ;;  %v1907_v58 = vld [vmem:[%s2610_s1 + $0x60] sm:$0xff] }
  0x22   :  { %670 = vmatpush.bf16.msra.mxu0 %v1927_v10  ;;  %709 = vmatmul.bf16.vlgmr.msra.gmra.mxu2 %v2220_v16  ;;  %v1924_v49 = vld [vmem:[%s2610_s1 + $0xe8] sm:$0xff]  ;;  %v82_v51 = vunpack.c.l.b16 %v61_v43  ;;  %v83_v54 = vunpack.c.h.b16 %v61_v43  ;;  %v80_v56 = vunpack.c.l.b16 %v60_v46  ;;  %v1923_v59 = vld [vmem:[%s2610_s1 + $0xe0] sm:$0xff]  ;;  %v81_v60 = vunpack.c.h.b16 %v60_v46  ;;  %v1914_v3 = vld [vmem:[%s2610_s1 + $0x98] sm:$0xff] }
  0x23   :  { %969 = vmatpush.bf16.msrb.mxu2 %v1918_v14  ;;  %689 = vmatpush.bf16.msra.mxu1 %v1935_v11  ;;  %v86_v52 = vunpack.c.l.b16 %v63_v44  ;;  %v87_v55 = vunpack.c.h.b16 %v63_v44  ;;  %v84_v57 = vunpack.c.l.b16 %v62_v47  ;;  %v85_v61 = vunpack.c.h.b16 %v62_v47  ;;  %v1898_v4 = vld [vmem:[%s2610_s1 + $0x18] sm:$0xff]  ;;  %v1913_v7 = vld [vmem:[%s2610_s1 + $0x90] sm:$0xff]  ;;  %v1912_v11 = vld [vmem:[%s2610_s1 + $0x88] sm:$0xff] }
  0x24   :  { %728 = vmatmul.bf16.vlgmr.msra.gmra.mxu3 %v2234_v21  ;;  %v1906_v5 = vld [vmem:[%s2610_s1 + $0x58] sm:$0xff]  ;;  %v1897_v8 = vld [vmem:[%s2610_s1 + $0x10] sm:$0xff]  ;;  %v1896_v12 = vld [vmem:[%s2610_s1 + $0x8] sm:$0xff]  ;;  %v112_v43 = vshrl.u32 %v2220_v16, 16  ;;  %v119_v44 = vshrl.u32 %v2234_v21, 16 }
  0x25   :  { %671 = vmatmul.bf16.vlgmr.msra.gmra.mxu0 %v2236_v22  ;;  %988 = vmatpush.bf16.msrb.mxu3 %v1926_v18  ;;  %v2298_v62 = vpack.c.b16 %v86_v52, %v82_v51  ;;  %v2300_v63 = vpack.c.b16 %v87_v55, %v83_v54  ;;  %v2302_v0 = vpack.c.b16 %v84_v57, %v80_v56  ;;  %v1922_v6 = vld [vmem:[%s2610_s1 + $0xd8] sm:$0xff]  ;;  %v1905_v9 = vld [vmem:[%s2610_s1 + $0x50] sm:$0xff]  ;;  %v1904_v13 = vld [vmem:[%s2610_s1 + $0x48] sm:$0xff]  ;;  %v108_v55 = vshll.u32 %v2256_v29, 16 }
  0x26   :  { %931 = vmatpush.bf16.msrb.mxu0 %v1902_v15  ;;  %690 = vmatmul.bf16.vlgmr.msra.gmra.mxu1 %v2256_v29  ;;  %v2304_v1 = vpack.c.b16 %v85_v61, %v81_v60  ;;  %v1921_v10 = vld [vmem:[%s2610_s1 + $0xd0] sm:$0xff]  ;;  %v1920_v14 = vld [vmem:[%s2610_s1 + $0xc8] sm:$0xff]  ;;  %v1911_v15 = vld [vmem:[%s2610_s1 + $0x80] sm:$0xff]  ;;  %v115_v60 = vshll.u32 %v2220_v16, 16  ;;  %v2452_v61 = vrot.slane %v119_v44, 7 }
  0x27   :  { %950 = vmatpush.bf16.msrb.mxu1 %v1910_v17  ;;  %970 = vmatpush.bf16.msrb.mxu2 %v1917_v30  ;;  %v1895_v17 = vld [vmem:[%s2610_s1] sm:$0xff]  ;;  %v1982_v20 = vld [vmem:[%s2610_s1 + $0x2b8] sm:$0xff]  ;;  %v1981_v26 = vld [vmem:[%s2610_s1 + $0x2b0] sm:$0xff] }
  0x28   :  { %v1903_v18 = vld [vmem:[%s2610_s1 + $0x40] sm:$0xff]  ;;  %v1966_v23 = vld [vmem:[%s2610_s1 + $0x238] sm:$0xff]  ;;  %v1965_v27 = vld [vmem:[%s2610_s1 + $0x230] sm:$0xff] }
  0x29   :  { %989 = vmatpush.bf16.msrb.mxu3 %v1925_v41  ;;  %v1919_v19 = vld [vmem:[%s2610_s1 + $0xc0] sm:$0xff]  ;;  %v1974_v24 = vld [vmem:[%s2610_s1 + $0x278] sm:$0xff]  ;;  %v1973_v28 = vld [vmem:[%s2610_s1 + $0x270] sm:$0xff]  ;;  %v98_v41 = vshrl.u32 %v2236_v22, 16 }
  0x2a   :  { %932 = vmatpush.bf16.msrb.mxu0 %v1901_v31  ;;  %v1990_v25 = vld [vmem:[%s2610_s1 + $0x2f8] sm:$0xff]  ;;  %v1989_v30 = vld [vmem:[%s2610_s1 + $0x2f0] sm:$0xff]  ;;  %v1980_v31 = vld [vmem:[%s2610_s1 + $0x2a8] sm:$0xff] }
  0x2b   :  { %951 = vmatpush.bf16.msrb.mxu1 %v1909_v40  ;;  %971 = vmatpush.bf16.msrb.mxu2 %v1916_v42  ;;  %v1964_v32 = vld [vmem:[%s2610_s1 + $0x228] sm:$0xff]  ;;  %v1979_v35 = vld [vmem:[%s2610_s1 + $0x2a0] sm:$0xff]  ;;  %v105_v42 = vshrl.u32 %v2256_v29, 16  ;;  %v1962_v46 = vld [vmem:[%s2610_s1 + $0x218] sm:$0xff]  ;;  %v2431_v52 = vrot.slane %v98_v41, 7 }
  0x2c   :  { %v1972_v33 = vld [vmem:[%s2610_s1 + $0x268] sm:$0xff]  ;;  %v1963_v36 = vld [vmem:[%s2610_s1 + $0x220] sm:$0xff]  ;;  %v1970_v47 = vld [vmem:[%s2610_s1 + $0x258] sm:$0xff] }
  0x2d   :  { %990 = vmatpush.bf16.msrb.mxu3 %v1924_v49  ;;  %v1988_v34 = vld [vmem:[%s2610_s1 + $0x2e8] sm:$0xff]  ;;  %v1971_v37 = vld [vmem:[%s2610_s1 + $0x260] sm:$0xff]  ;;  %v1961_v51 = vld [vmem:[%s2610_s1 + $0x210] sm:$0xff]  ;;  %v2436_v54 = vrot.slane %v105_v42, 7 }
  0x2e   :  { %933 = vmatpush.bf16.msrb.mxu0 %v1900_v45  ;;  %v1987_v38 = vld [vmem:[%s2610_s1 + $0x2e0] sm:$0xff]  ;;  %v1978_v45 = vld [vmem:[%s2610_s1 + $0x298] sm:$0xff]  ;;  %v1969_v56 = vld [vmem:[%s2610_s1 + $0x250] sm:$0xff] }
  0x2f   :  { %952 = vmatpush.bf16.msrb.mxu1 %v1908_v48  ;;  %972 = vmatpush.bf16.msrb.mxu2 %v1915_v50  ;;  %v1986_v48 = vld [vmem:[%s2610_s1 + $0x2d8] sm:$0xff]  ;;  %v1977_v50 = vld [vmem:[%s2610_s1 + $0x290] sm:$0xff]  ;;  %vm2488_vm0 = vmand %vm165_vm12, %vm96_vm11 }
  0x30   :  { %v1985_v57 = vld [vmem:[%s2610_s1 + $0x2d0] sm:$0xff] }
  0x31   :  { %991 = vmatpush.bf16.msrb.mxu3 %v1923_v59  ;;  %v2447_v59 = vrot.slane %v112_v43, 7 }
  0x32   :  { %934 = vmatpush.bf16.msrb.mxu0 %v1899_v53  ;;  %714 = vmatmul.bf16.gmra.mxu2 %v2298_v62  ;;  %v101_v53 = vshll.u32 %v2236_v22, 16 }
  0x33   :  { %953 = vmatpush.bf16.msrb.mxu1 %v1907_v58  ;;  %973 = vmatpush.bf16.msrb.mxu2 %v1914_v3  ;;  %v122_v3 = vshll.u32 %v2234_v21, 16 }
  0x34   :  { %733 = vmatmul.bf16.gmra.mxu3 %v2300_v63 }
  0x35   :  { %676 = vmatmul.bf16.gmra.mxu0 %v2302_v0  ;;  %992 = vmatpush.bf16.msrb.mxu3 %v1922_v6  ;;  %v1960_v6 = vld [vmem:[%s2610_s1 + $0x208] sm:$0xff] }
  0x36   :  { %695 = vmatmul.bf16.gmra.mxu1 %v2304_v1  ;;  %935 = vmatpush.bf16.msrb.mxu0 %v1898_v4 }
  0x37   :  { %954 = vmatpush.bf16.msrb.mxu1 %v1906_v5  ;;  %974 = vmatpush.bf16.msrb.mxu2 %v1913_v7  ;;  %v1976_v5 = vld [vmem:[%s2610_s1 + $0x288] sm:$0xff] }
  0x39   :  { %993 = vmatpush.bf16.msrb.mxu3 %v1921_v10  ;;  %v1968_v10 = vld [vmem:[%s2610_s1 + $0x248] sm:$0xff] }
  0x3a   :  { %936 = vmatpush.bf16.msrb.mxu0 %v1897_v8  ;;  %v103_v8 = vor.u32 %v101_v53, %v2431_v52 }
  0x3b   :  { %955 = vmatpush.bf16.msrb.mxu1 %v1905_v9  ;;  %975 = vmatpush.bf16.msrb.mxu2 %v1912_v11  ;;  %v110_v9 = vor.u32 %v108_v55, %v2436_v54  ;;  %v1984_v11 = vld [vmem:[%s2610_s1 + $0x2c8] sm:$0xff] }
  0x3d   :  { %994 = vmatpush.bf16.msrb.mxu3 %v1920_v14  ;;  %v124_v14 = vor.u32 %v122_v3, %v2452_v61 }
  0x3e   :  { %937 = vmatpush.bf16.msrb.mxu0 %v1896_v12 }
  0x3f   :  { %956 = vmatpush.bf16.msrb.mxu1 %v1904_v13  ;;  %976 = vmatpush.bf16.msrb.mxu2 %v1911_v15  ;;  %v117_v13 = vor.u32 %v115_v60, %v2447_v59  ;;  %v2481_v15 = vunpack.c.l.b16 %v2025_v2 }
  0x41   :  { %995 = vmatpush.bf16.msrb.mxu3 %v1919_v19 }
  0x42   :  { %938 = vmatpush.bf16.msrb.mxu0 %v1895_v17 }
  0x43   :  { %957 = vmatpush.bf16.msrb.mxu1 %v1903_v18  ;;  %1302 = vmatpush.bf16.msra.mxu2 %v1982_v20  ;;  %v2484_v18 = vunpack.c.h.b16 %v2025_v2 }
  0x45   :  { %1321 = vmatpush.bf16.msra.mxu3 %v1990_v25  ;;  %v1959_v25 = vld [vmem:[%s2610_s1 + $0x200] sm:$0xff] }
  0x46   :  { %1264 = vmatpush.bf16.msra.mxu0 %v1966_v23 }
  0x47   :  { %1283 = vmatpush.bf16.msra.mxu1 %v1974_v24  ;;  %1303 = vmatpush.bf16.msra.mxu2 %v1981_v26  ;;  %v1975_v24 = vld [vmem:[%s2610_s1 + $0x280] sm:$0xff] }
  0x49   :  { %1322 = vmatpush.bf16.msra.mxu3 %v1989_v30  ;;  %v1983_v30 = vld [vmem:[%s2610_s1 + $0x2c0] sm:$0xff] }
  0x4a   :  { %1265 = vmatpush.bf16.msra.mxu0 %v1965_v27 }
  0x4b   :  { %1284 = vmatpush.bf16.msra.mxu1 %v1973_v28  ;;  %1304 = vmatpush.bf16.msra.mxu2 %v1980_v31  ;;  %v1967_v28 = vld [vmem:[%s2610_s1 + $0x240] sm:$0xff]  ;;  %v167_v31 = vsel %vm2488_vm0, 0, %v103_v8  ;;  %v137_v8 = vshll.u32 %v2304_v1, 16 }
  0x4d   :  { %1323 = vmatpush.bf16.msra.mxu3 %v1988_v34  ;;  %v170_v34 = vsel %vm2488_vm0, 0, %v124_v14 }
  0x4e   :  { %1266 = vmatpush.bf16.msra.mxu0 %v1964_v32  ;;  %v168_v32 = vsel %vm2488_vm0, 0, %v110_v9  ;;  %v145_v9 = vshll.u32 %v2298_v62, 16 }
  0x4f   :  { %1285 = vmatpush.bf16.msra.mxu1 %v1972_v33  ;;  %1305 = vmatpush.bf16.msra.mxu2 %v1979_v35  ;;  %v169_v33 = vsel %vm2488_vm0, 0, %v117_v13 }
  0x50   :  { %v182_v22 = vrot.slane %v145_v9, 1 }
  0x51   :  { %1324 = vmatpush.bf16.msra.mxu3 %v1987_v38 }
  0x52   :  { %1267 = vmatpush.bf16.msra.mxu0 %v1963_v36 }
  0x53   :  { %1286 = vmatpush.bf16.msra.mxu1 %v1971_v37  ;;  %1306 = vmatpush.bf16.msra.mxu2 %v1978_v45  ;;  %v126_v45 = vshrl.u32 %v2302_v0, 16 }
  0x55   :  { %1325 = vmatpush.bf16.msra.mxu3 %v1986_v48  ;;  %v150_v48 = vshrl.u32 %v2300_v63, 16 }
  0x56   :  { %1268 = vmatpush.bf16.msra.mxu0 %v1962_v46  ;;  %v134_v46 = vshrl.u32 %v2304_v1, 16 }
  0x57   :  { %1287 = vmatpush.bf16.msra.mxu1 %v1970_v47  ;;  %1307 = vmatpush.bf16.msra.mxu2 %v1977_v50  ;;  %v142_v47 = vshrl.u32 %v2298_v62, 16 }
  0x59   :  { %1326 = vmatpush.bf16.msra.mxu3 %v1985_v57 }
  0x5a   :  { %1269 = vmatpush.bf16.msra.mxu0 %v1961_v51  ;;  %v128_v51 = vrot.slane %v126_v45, 7 }
  0x5b   :  { %1288 = vmatpush.bf16.msra.mxu1 %v1969_v56  ;;  %1308 = vmatpush.bf16.msra.mxu2 %v1976_v5  ;;  %v136_v56 = vrot.slane %v134_v46, 7  ;;  %v144_v5 = vrot.slane %v142_v47, 7 }
  0x5d   :  { %1327 = vmatpush.bf16.msra.mxu3 %v1984_v11  ;;  %v147_v13 = vor.u32 %v145_v9, %v144_v5 }
  0x5e   :  { %1270 = vmatpush.bf16.msra.mxu0 %v1960_v6  ;;  %v152_v6 = vrot.slane %v150_v48, 7 }
  0x5f   :  { %v284_v27 = vpop.permute.xlu2 %283  ;;  %1289 = vmatpush.bf16.msra.mxu1 %v1968_v10  ;;  %1309 = vmatpush.bf16.msra.mxu2 %v1975_v24  ;;  %v153_v10 = vshll.u32 %v2300_v63, 16  ;;  %v148_v20 = vsel %vm96_vm11, %v2447_v59, %v147_v13  ;;  %v172_v59 = vrot.slane %v101_v53, 1 }
  0x60   :  { %vm294_vm6 = vcmp.eq.s32.totalorder %v284_v27, 1 }
  0x61   :  { %1328 = vmatpush.bf16.msra.mxu3 %v1983_v30  ;;  %v155_v14 = vor.u32 %v153_v10, %v152_v6  ;;  %v190_v6 = vor.u32 %v182_v22, %v142_v47 }
  0x62   :  { %1271 = vmatpush.bf16.msra.mxu0 %v1959_v25 }
  0x63   :  { %1290 = vmatpush.bf16.msra.mxu1 %v1967_v28  ;;  %v156_v23 = vsel %vm96_vm11, %v2452_v61, %v155_v14  ;;  %v176_v61 = vrot.slane %v108_v55, 1 }
  0x65   :  { %v177_v53 = vor.u32 %v176_v61, %v105_v42 }
  0x76   :  { %v220_v39 = vpop.permute.xlu0 %219  ;;  %v226_v40 = vpop.permute.xlu1 %225 }
  0x77   :  { %vm230_vm8 = vcmp.eq.s32.totalorder %v220_v39, 1  ;;  %vm232_vm13 = vcmp.eq.s32.totalorder %v226_v40, 1 }
  0x78   :  { %vm234_vm9 = vmpackc.low %vm230_vm8, %vm230_vm8 }
  0x79   :  { %v238_v49 = vsel %vm234_vm9, 65537, %v2025_v2  ;;  %vm2494_vm1 = vmpackc.low %vm232_vm13, %vm232_vm13 }
  0x7a   :  { %v242_v4 = vunpack.c.l.b16 %v238_v49  ;;  %v240_v35 = vsel %vm2494_vm1, 65537, %v2025_v2 }
  0x7b   :  { %v244_v49 = vunpack.c.l.b16 %v240_v35 }
  0x7c   :  { %v1375_v17 = vunpack.i.l.s16 %v242_v4  ;;  %v287_v4 = vpop.permute.xlu2 %286 }
  0x7d   :  { %v1377_v57 = vunpack.i.l.s16 %v244_v49  ;;  %vm295_vm7 = vcmp.eq.s32.totalorder %v287_v4, 1 }
  0x7e   :  { %v223_v58 = vpop.permute.xlu0 %222  ;;  %v229_v7 = vpop.permute.xlu1 %228  ;;  %vm252_vm3 = vcmp.ne.s32.totalorder %v1375_v17, %v2481_v15  ;;  %vm299_vm12 = vmpackc.low %vm295_vm7, %vm295_vm7 }
  0x7f   :  { %vm231_vm10 = vcmp.eq.s32.totalorder %v223_v58, 1  ;;  %vm233_vm15 = vcmp.eq.s32.totalorder %v229_v7, 1  ;;  %v129_v7 = vshll.u32 %v2302_v0, 16  ;;  %vm259_vm8 = vcmp.ne.s32.totalorder %v1377_v57, %v2481_v15 }
  0x80   :  { %vm235_vm14 = vmpackc.low %vm231_vm10, %vm231_vm10  ;;  %v303_v25 = vsel %vm299_vm12, 65537, %v2025_v2 }
  0x81   :  { %v239_v12 = vsel %vm235_vm14, 65537, %v2025_v2  ;;  %vm237_vm2 = vmpackc.low %vm233_vm15, %vm233_vm15  ;;  %v131_v11 = vor.u32 %v129_v7, %v128_v51 }
  0x82   :  { %v243_v19 = vunpack.c.l.b16 %v239_v12  ;;  %v241_v36 = vsel %vm237_vm2, 65537, %v2025_v2  ;;  %v139_v12 = vor.u32 %v137_v8, %v136_v56  ;;  %vm298_vm10 = vmpackc.low %vm294_vm6, %vm294_vm6 }
  0x83   :  { %v245_v50 = vunpack.c.l.b16 %v241_v36  ;;  %v132_v17 = vsel %vm96_vm11, %v2431_v52, %v131_v11  ;;  %v302_v24 = vsel %vm298_vm10, 65537, %v2025_v2  ;;  %vm1352_vm10 = vcmask 130048  }
  0x84   :  { %v1376_v26 = vunpack.i.l.s16 %v243_v19  ;;  %v140_v19 = vsel %vm96_vm11, %v2436_v54, %v139_v12  ;;  %v306_v30 = vunpack.c.l.b16 %v302_v24 }
  0x85   :  { %v1378_v58 = vunpack.i.l.s16 %v245_v50 }
  0x86   :  { %vm253_vm4 = vcmp.ne.s32.totalorder %v1376_v26, %v2484_v18  ;;  %v293_v54 = vpop.permute.xlu1 %292  ;;  %v1379_v35 = vunpack.i.l.s16 %v306_v30 }
  0x87   :  { %vm254_vm5 = vmpackc.low %vm253_vm4, %vm252_vm3  ;;  %vm260_vm9 = vcmp.ne.s32.totalorder %v1378_v58, %v2484_v18  ;;  %vm297_vm11 = vcmp.eq.s32.totalorder %v293_v54, 1  ;;  %vm171_vm3 = vsmask.f32 7424 }
  0x88   :  { %v262_v37 = vsel %vm254_vm5, %v167_v31, 0  ;;  %v263_v38 = vsel %vm254_vm5, %v168_v32, 0  ;;  %v264_v39 = vsel %vm254_vm5, %v169_v33, 0  ;;  %v265_v40 = vsel %vm254_vm5, %v170_v34, 0  ;;  %vm261_vm13 = vmpackc.low %vm260_vm9, %vm259_vm8  ;;  %v290_v32 = vpop.permute.xlu0 %289 }
  0x89   :  { %939 = vmatmul.bf16.vlgmr.msrb.gmra.mxu0 %v262_v37  ;;  %958 = vmatmul.bf16.vlgmr.msrb.gmra.mxu1 %v263_v38  ;;  %v266_v26 = vsel %vm261_vm13, %v132_v17, 0  ;;  %v267_v27 = vsel %vm261_vm13, %v140_v19, 0  ;;  %v268_v28 = vsel %vm261_vm13, %v148_v20, 0  ;;  %v269_v52 = vsel %vm261_vm13, %v156_v23, 0  ;;  %vm301_vm1 = vmpackc.low %vm297_vm11, %vm297_vm11 }
  0x8a   :  { %977 = vmatmul.bf16.vlgmr.msrb.gmra.mxu2 %v264_v39  ;;  %996 = vmatmul.bf16.vlgmr.msrb.gmra.mxu3 %v265_v40  ;;  %v307_v31 = vunpack.c.l.b16 %v303_v25  ;;  %v180_v33 = vrot.slane %v115_v60, 1  ;;  %v184_v34 = vrot.slane %v122_v3, 1  ;;  %vm296_vm14 = vcmp.eq.s32.totalorder %v290_v32, 1 }
  0x8b   :  { %v173_v37 = vor.u32 %v172_v59, %v98_v41  ;;  %vm316_vm15 = vcmp.ne.s32.totalorder %v1379_v35, %v2481_v15  ;;  %v174_v3 = vrot.slane %v129_v7, 1  ;;  %v178_v38 = vrot.slane %v137_v8, 1  ;;  %vm300_vm2 = vmpackc.low %vm296_vm14, %vm296_vm14 }
  0x8c   :  { %v1380_v36 = vunpack.i.l.s16 %v307_v31  ;;  %v181_v55 = vor.u32 %v180_v33, %v112_v43  ;;  %v185_v60 = vor.u32 %v184_v34, %v119_v44  ;;  %v186_v41 = vrot.slane %v153_v10, 1 }
  0x8d   :  { %v175_v42 = vsel %vm171_vm3, %v173_v37, %v174_v3  ;;  %v179_v39 = vsel %vm171_vm3, %v177_v53, %v178_v38  ;;  %v305_v43 = vsel %vm301_vm1, 65537, %v2025_v2  ;;  %v304_v44 = vsel %vm300_vm2, 65537, %v2025_v2 }
  0x8e   :  { %vm317_vm0 = vcmp.ne.s32.totalorder %v1380_v36, %v2484_v18  ;;  %v183_v16 = vsel %vm171_vm3, %v181_v55, %v182_v22  ;;  %v187_v21 = vsel %vm171_vm3, %v185_v60, %v186_v41  ;;  %v309_v56 = vunpack.c.l.b16 %v305_v43 }
  0x8f   :  { %vm2570_vm4 = vmpackc.low %vm317_vm0, %vm316_vm15  ;;  %v308_v57 = vunpack.c.l.b16 %v304_v44  ;;  %vm200_vm5 = vcmask 1047552   ;;  %v188_v4 = vor.u32 %v174_v3, %v126_v45  ;;  %v189_v5 = vor.u32 %v178_v38, %v134_v46 }
  0x90   :  { %v326_v40 = vsel %vm2570_vm4, %v175_v42, 0  ;;  %v327_v49 = vsel %vm2570_vm4, %v179_v39, 0  ;;  %v328_v50 = vsel %vm2570_vm4, %v183_v16, 0  ;;  %v329_v51 = vsel %vm2570_vm4, %v187_v21, 0  ;;  %vm201_vm8 = vmand %vm200_vm5, %vm171_vm3 }
  0x91   :  { %v1382_v58 = vunpack.i.l.s16 %v309_v56  ;;  %v1381_v2 = vunpack.i.l.s16 %v308_v57  ;;  %v191_v7 = vor.u32 %v186_v41, %v150_v48  ;;  %v202_v8 = vsel %vm201_vm8, %v188_v4, 0 }
  0x92   :  { %v203_v9 = vsel %vm201_vm8, %v189_v5, 0  ;;  %v204_v0 = vsel %vm201_vm8, %v190_v6, 0  ;;  %v1998_v6 = vld [vmem:[%s2611_s2] ss:$0 sm:$0xff]  ;;  %s2026_s2 = smov [#allocation2]  }
  0x93   :  { %vm324_vm6 = vcmp.ne.s32.totalorder %v1382_v58, %v2484_v18  ;;  %vm323_vm7 = vcmp.ne.s32.totalorder %v1381_v2, %v2481_v15  ;;  %v205_v45 = vsel %vm201_vm8, %v191_v7, 0  ;;  %s1361_s12 = sshll.u32 %s2026_s2, 4  ;;  %s1362_s12 = int_to_ptr.vmem [resolvable:$true] %s1361_s12 }
  0x94   :  { %vm325_vm9 = vmpackc.low %vm324_vm6, %vm323_vm7 }
  0x95   :  { %v330_v10 = vsel %vm325_vm9, %v202_v8, 0  ;;  %v331_v1 = vsel %vm325_vm9, %v203_v9, 0  ;;  %v332_v18 = vsel %vm325_vm9, %v204_v0, 0  ;;  %v333_v46 = vsel %vm325_vm9, %v205_v45, 0 }
  0x99   :  { %944 = vmatmul.bf16.gmra.mxu0 %v266_v26  ;;  %963 = vmatmul.bf16.gmra.mxu1 %v267_v27 }
  0x9a   :  { %982 = vmatmul.bf16.gmra.mxu2 %v268_v28  ;;  %1001 = vmatmul.bf16.gmra.mxu3 %v269_v52 }
  0xa2   :  { %v672_v15 = vpop.f32.mrf.mxu0 }
  0xa3   :  { %v691_v11 = vpop.f32.mrf.mxu1 }
  0xa4   :  { %v692_v34 = vadd.f32 %v691_v11, %v672_v15 }
  0xa5   :  { %v710_v62 = vpop.f32.mrf.mxu2 }
  0xa6   :  { %v711_v55 = vadd.f32 %v710_v62, %v692_v34 }
  0xa7   :  { %v729_v47 = vpop.f32.mrf.mxu3 }
  0xa8   :  { %v730_v60 = vadd.f32 %v729_v47, %v711_v55 }
  0xa9   :  { %1272 = vmatmul.bf16.vlgmr.msra.gmra.mxu0 %v326_v40  ;;  %1291 = vmatmul.bf16.vlgmr.msra.gmra.mxu1 %v327_v49 }
  0xaa   :  { %1310 = vmatmul.bf16.vlgmr.msra.gmra.mxu2 %v328_v50  ;;  %1329 = vmatmul.bf16.vlgmr.msra.gmra.mxu3 %v329_v51  ;;  %v674_v12 = vpop.f32.mrf.mxu0 }
  0xab   :  { %v693_v63 = vpop.f32.mrf.mxu1 }
  0xac   :  { %v694_v3 = vadd.f32 %v693_v63, %v674_v12 }
  0xad   :  { %v712_v48 = vpop.f32.mrf.mxu2 }
  0xae   :  { %v713_v39 = vadd.f32 %v712_v48, %v694_v3 }
  0xaf   :  { %v731_v13 = vpop.f32.mrf.mxu3 }
  0xb0   :  { %v732_v43 = vadd.f32 %v731_v13, %v713_v39 }
  0xb2   :  { %v677_v14 = vpop.f32.mrf.mxu0 }
  0xb3   :  { %v696_v17 = vpop.f32.mrf.mxu1 }
  0xb4   :  { %v697_v21 = vadd.f32 %v696_v17, %v677_v14 }
  0xb5   :  { %v715_v19 = vpop.f32.mrf.mxu2 }
  0xb6   :  { %v716_v2 = vadd.f32 %v715_v19, %v697_v21 }
  0xb7   :  { %v734_v20 = vpop.f32.mrf.mxu3 }
  0xb8   :  { %v735_v9 = vadd.f32 %v734_v20, %v716_v2 }
  0xb9   :  { %1277 = vmatmul.bf16.gmra.mxu0 %v330_v10  ;;  %1296 = vmatmul.bf16.gmra.mxu1 %v331_v1 }
  0xba   :  { %1315 = vmatmul.bf16.gmra.mxu2 %v332_v18  ;;  %1334 = vmatmul.bf16.gmra.mxu3 %v333_v46  ;;  %v679_v23 = vpop.f32.mrf.mxu0 }
  0xbb   :  { %v698_v24 = vpop.f32.mrf.mxu1 }
  0xbc   :  { %v699_v0 = vadd.f32 %v698_v24, %v679_v23 }
  0xbd   :  { %v717_v25 = vpop.f32.mrf.mxu2 }
  0xbe   :  { %v718_v12 = vadd.f32 %v717_v25, %v699_v0 }
  0xbf   :  { %v736_v26 = vpop.f32.mrf.mxu3 }
  0xc0   :  { %v737_v17 = vadd.f32 %v736_v26, %v718_v12 }
 0x106   :  { %v940_v27 = vpop.f32.mrf.mxu0  ;;  %v959_v28 = vpop.f32.mrf.mxu1 }
 0x107   :  { %v941_v41 = vadd.f32 %v940_v27, %v730_v60 }
 0x109   :  { %v960_v16 = vadd.f32 %v959_v28, %v941_v41 }
 0x10d   :  { %v978_v52 = vpop.f32.mrf.mxu2  ;;  %v997_v30 = vpop.f32.mrf.mxu3 }
 0x10e   :  { %v942_v31 = vpop.f32.mrf.mxu0  ;;  %v961_v54 = vpop.f32.mrf.mxu1  ;;  %v979_v44 = vadd.f32 %v978_v52, %v960_v16 }
 0x10f   :  { %v943_v51 = vadd.f32 %v942_v31, %v732_v43 }
 0x110   :  { %v998_v4 = vadd.f32 %v997_v30, %v979_v44 }
 0x111   :  { %v962_v7 = vadd.f32 %v961_v54, %v943_v51 }
 0x115   :  { %v980_v59 = vpop.f32.mrf.mxu2  ;;  %v999_v61 = vpop.f32.mrf.mxu3 }
 0x116   :  { %v945_v32 = vpop.f32.mrf.mxu0  ;;  %v964_v33 = vpop.f32.mrf.mxu1  ;;  %v981_v45 = vadd.f32 %v980_v59, %v962_v7 }
 0x117   :  { %v946_v15 = vadd.f32 %v945_v32, %v735_v9 }
 0x118   :  { %v1000_v63 = vadd.f32 %v999_v61, %v981_v45 }
 0x119   :  { %v965_v13 = vadd.f32 %v964_v33, %v946_v15 }
 0x11d   :  { %v983_v35 = vpop.f32.mrf.mxu2  ;;  %v1002_v36 = vpop.f32.mrf.mxu3 }
 0x11e   :  { %v947_v37 = vpop.f32.mrf.mxu0  ;;  %v966_v53 = vpop.f32.mrf.mxu1  ;;  %v984_v19 = vadd.f32 %v983_v35, %v965_v13 }
 0x11f   :  { %v948_v28 = vadd.f32 %v947_v37, %v737_v17 }
 0x120   :  { %v1003_v30 = vadd.f32 %v1002_v36, %v984_v19 }
 0x121   :  { %v967_v32 = vadd.f32 %v966_v53, %v948_v28 }
 0x125   :  { %v985_v38 = vpop.f32.mrf.mxu2  ;;  %v1004_v22 = vpop.f32.mrf.mxu3 }
 0x126   :  { %v1273_v29 = vpop.f32.mrf.mxu0  ;;  %v1292_v42 = vpop.f32.mrf.mxu1  ;;  %v986_v61 = vadd.f32 %v985_v38, %v967_v32 }
 0x127   :  { %v1293_v40 = vadd.f32 %v1292_v42, %v1273_v29 }
 0x128   :  { %v1005_v60 = vadd.f32 %v1004_v22, %v986_v61 }
 0x12d   :  { %v1311_v49 = vpop.f32.mrf.mxu2  ;;  %v1330_v50 = vpop.f32.mrf.mxu3 }
 0x12e   :  { %v1312_v56 = vadd.f32 %v1311_v49, %v1293_v40  ;;  %v1275_v57 = vpop.f32.mrf.mxu0  ;;  %v1294_v58 = vpop.f32.mrf.mxu1 }
 0x12f   :  { %v1295_v1 = vadd.f32 %v1294_v58, %v1275_v57 }
 0x130   :  { %v1331_v5 = vadd.f32 %v1330_v50, %v1312_v56 }
 0x132   :  { %v1340_v8 = vadd.f32 %v1331_v5, %v998_v4 }
 0x134   :  { %v1348_v10 = vadd.f32 %v1998_v6, %v1340_v8 }
 0x135   :  { %v1313_v18 = vpop.f32.mrf.mxu2  ;;  %v1332_v46 = vpop.f32.mrf.mxu3 }
 0x136   :  { %1353 = vst.msk [vmem:[#allocation2] sm:$0xff] %vm1352_vm10, %v1348_v10  ;;  %v1314_v11 = vadd.f32 %v1313_v18, %v1295_v1  ;;  %v1278_v62 = vpop.f32.mrf.mxu0  ;;  %v1297_v47 = vpop.f32.mrf.mxu1 }
 0x137   :  { %v1298_v23 = vadd.f32 %v1297_v47, %v1278_v62 }
 0x138   :  { %v1333_v48 = vadd.f32 %v1332_v46, %v1314_v11 }
 0x13a   :  { %v1341_v14 = vadd.f32 %v1333_v48, %v1000_v63 }
 0x13c   :  { %v1349_v20 = vadd.f32 %v1998_v6, %v1341_v14 }
 0x13d   :  { %v1316_v24 = vpop.f32.mrf.mxu2  ;;  %v1335_v27 = vpop.f32.mrf.mxu3 }
 0x13e   :  { %1354 = vst.msk [vmem:[#allocation2 + $0x8] sm:$0xff] %vm1352_vm10, %v1349_v20  ;;  %v1317_v52 = vadd.f32 %v1316_v24, %v1298_v23  ;;  %v1280_v54 = vpop.f32.mrf.mxu0  ;;  %v1299_v59 = vpop.f32.mrf.mxu1 }
 0x13f   :  { %v1300_v33 = vadd.f32 %v1299_v59, %v1280_v54 }
 0x140   :  { %v1336_v31 = vadd.f32 %v1335_v27, %v1317_v52 }
 0x142   :  { %v1342_v25 = vadd.f32 %v1336_v31, %v1003_v30 }
 0x144   :  { %v1350_v34 = vadd.f32 %v1998_v6, %v1342_v25 }
 0x145   :  { %v1318_v55 = vpop.f32.mrf.mxu2  ;;  %v1337_v35 = vpop.f32.mrf.mxu3 }
 0x146   :  { %1355 = vst.msk [vmem:[#allocation2 + $0x10] sm:$0xff] %vm1352_vm10, %v1350_v34  ;;  %v1319_v26 = vadd.f32 %v1318_v55, %v1300_v33 }
 0x148   :  { %v1338_v3 = vadd.f32 %v1337_v35, %v1319_v26 }
 0x14a   :  { %v1343_v36 = vadd.f32 %v1338_v3, %v1005_v60 }
 0x14c   :  { %v1351_v37 = vadd.f32 %v1998_v6, %v1343_v36 }
 0x14e   :  { %1356 = vst.msk [vmem:[#allocation2 + $0x18] sm:$0xff] %vm1352_vm10, %v1351_v37 }
 0x14f   :  { %1369 = dma.vmem_to_hbm [thread:$0]  %s1362_s12, 512, %s1364_s15, [#allocation3], %s2027_s16, %s2027_s16, %s2028_s17  }
 0x150   :  { %2023 = dma.done.wait [#allocation3], 512  }
 0x151   :  { %2024 = vsyncadd [#allocation3], 4294966784 }
 0x152   :  { %1374 = vsyncpa [#allocation3], 1 }

</bundles_post_ra>
